<compile_context>
chip_gen: v6e
topology: v6e:2x2x1
jax: 0.10.0
libtpu: 0.0.40
codegen_flags: <defaults>
</compile_context>

<pallas_src>
import functools

import jax
import jax.numpy as jnp
from jax import lax
from jax.experimental import pallas as pl
from jax.experimental.pallas import tpu as pltpu


# ----------------------------------------------------------------------------
# Fused Pallas kernel: full decoder stack for one batch group (G batch rows)
# ----------------------------------------------------------------------------
def _decoder_kernel(x_ref, mask_ref, wbn_ref, aff_ref, wpc_ref, bpc_ref,
                    wpo_ref, bpo_ref, out_ref, pad_ref, *,
                    G, T, C, O, K, dilations, halo):
    M = G * T
    H = halo

    # Zero only the two halo strips (the interior is fully rewritten every
    # layer), so the halos provide conv zero-padding for every layer.  This
    # runs every grid step (scratch persists across steps).
    zeros_halo = jnp.zeros((G, H, C), jnp.float32)
    pad_ref[:, :H, :] = zeros_halo
    pad_ref[:, H + T:2 * H + T, :] = zeros_halo

    x = x_ref[...]                                        # (M, C) f32
    # Hoisted mask broadcasts (JAX does not CSE broadcast_in_dim).
    mask_c = jnp.broadcast_to(mask_ref[...], (M, C))
    mask_o = jnp.broadcast_to(mask_ref[...], (M, O))

    def conv_bn(o, li, d):
        """Dilated conv (kernel K, dilation d) as ONE im2col matmul with a
        K*C contraction, bf16 operands / f32 accumulation, then bias + ReLU +
        folded (eval-mode) BatchNorm affine.  `li`, `d` are static."""
        pad_ref[:, H:H + T, :] = o.reshape(G, T, C)
        ps = (d * (K - 1)) // 2
        # im2col: K shifted (G, T, C) views concatenated along lanes -> (M, K*C)
        # TODO(synk): tap starts (H-ps+k*d) are not 8-sublane aligned for most
        # dilations; if Mosaic relayout dominates, switch to scatter-on-write
        # into a persistent (T_pad, K*C) LHS scratch and read one aligned slab.
        cols = [pad_ref[:, H - ps + k * d: H - ps + k * d + T, :]
                for k in range(K)]
        lhs = jnp.concatenate(cols, axis=-1).reshape(M, K * C)
        y = jnp.dot(lhs.astype(jnp.bfloat16), wbn_ref[li],
                    preferred_element_type=jnp.float32)
        y = jnp.maximum(y + aff_ref[li, 0:1, :], 0.0)        # bias + ReLU (f32)
        return y * aff_ref[li, 1:2, :] + aff_ref[li, 2:3, :]  # BN scale/shift (f32)

    li = 0
    # --- ResidualConv1dBNBlock (17 residual blocks x 2 conv-bn layers) ---
    o = x * mask_c
    for d in dilations:                       # static unroll
        res = o
        o = conv_bn(o, li, d); li += 1
        o = conv_bn(o, li, d); li += 1
        o = (o + res) * mask_c

    # --- post_conv (1x1) + residual with ORIGINAL x ---
    o = jnp.dot(o.astype(jnp.bfloat16), wpc_ref[...],
                preferred_element_type=jnp.float32) + bpc_ref[...] + x

    # --- postnet: 2x conv-bn (dilation 1) then 1x1 projection, masked ---
    o = conv_bn(o, li, 1); li += 1
    o = conv_bn(o, li, 1); li += 1
    y = jnp.dot(o.astype(jnp.bfloat16), wpo_ref[...],
                preferred_element_type=jnp.float32) + bpo_ref[...]
    out_ref[...] = (y * mask_o).astype(out_ref.dtype)


def fused_decoder_call(x_mc, mask_m1, W_bn, aff, w_pc, b_pc, w_po, b_po, *,
                       B, T, C, O, K, dilations, batch_group=None):
    """x_mc: (B*T, C), mask_m1: (B*T, 1), W_bn: (L, K*C, C) bf16,
    aff: (L, 3, C) f32 = [bias, scale, shift], w_pc: (C, C) bf16,
    w_po: (C, O) bf16 -> (B*T, O) f32."""
    L = W_bn.shape[0]
    # batch_group G: G batch rows folded into the matmul M dim per grid step.
    # Default G=B (grid of 1) — best for single-TC v5e/v6e.  For large B on
    # v7x set batch_group=B//2 so the 2 TCs split the "parallel" grid.
    G = B if batch_group is None else batch_group
    assert B % G == 0, "batch must divide into batch groups"
    ng = B // G
    M = G * T

    # One-sided halo big enough for the largest asymmetric dilated pad, 8-aligned.
    p_max = (K - 1) * max(dilations) if K > 1 else 0
    need = p_max - p_max // 2
    halo = max(8, ((need + 7) // 8) * 8)

    kernel = functools.partial(_decoder_kernel, G=G, T=T, C=C, O=O, K=K,
                               dilations=tuple(dilations), halo=halo)
    return pl.pallas_call(
        kernel,
        out_shape=jax.ShapeDtypeStruct((B * T, O), jnp.float32),
        grid=(ng,),
        in_specs=[
            pl.BlockSpec((M, C), lambda i: (i, 0)),            # x (batch-major rows)
            pl.BlockSpec((M, 1), lambda i: (i, 0)),            # mask
            pl.BlockSpec((L, K * C, C), lambda i: (0, 0, 0)),  # stacked conv weights (bf16)
            pl.BlockSpec((L, 3, C), lambda i: (0, 0, 0)),      # [bias, BN scale, BN shift]
            pl.BlockSpec((C, C), lambda i: (0, 0)),            # post_conv w (bf16)
            pl.BlockSpec((1, C), lambda i: (0, 0)),            # post_conv b
            pl.BlockSpec((C, O), lambda i: (0, 0)),            # postnet out w (bf16)
            pl.BlockSpec((1, O), lambda i: (0, 0)),            # postnet out b
        ],
        out_specs=pl.BlockSpec((M, O), lambda i: (i, 0)),
        scratch_shapes=[pltpu.VMEM((G, T + 2 * halo, C), jnp.float32)],
        compiler_params=pltpu.CompilerParams(
            # v7x megacore splits the batch-group grid; no-op on v5e/v6e.
            dimension_semantics=("parallel",)),
    )(x_mc, mask_m1, W_bn, aff, w_pc, b_pc, w_po, b_po)


# ----------------------------------------------------------------------------
# Parameter init (deterministic, synthetic)
# ----------------------------------------------------------------------------
def init_conv_bn(key, c_in, c_out, k):
    kw, kb, kg, kbe, km, kv = jax.random.split(key, 6)
    w = jax.random.normal(kw, (k, c_in, c_out), jnp.float32) / jnp.sqrt(c_in * k)
    b = 0.01 * jax.random.normal(kb, (1, c_out), jnp.float32)
    gamma = 1.0 + 0.1 * jax.random.normal(kg, (1, c_out), jnp.float32)
    beta = 0.1 * jax.random.normal(kbe, (1, c_out), jnp.float32)
    mean = 0.1 * jax.random.normal(km, (1, c_out), jnp.float32)
    var = 1.0 + 0.1 * jax.random.uniform(kv, (1, c_out), jnp.float32)
    scale = gamma / jnp.sqrt(var + 1e-5)
    shift = beta - mean * scale
    return dict(w=w, b=b, scale=scale, shift=shift)


def init_conv1x1(key, c_in, c_out):
    kw, kb = jax.random.split(key)
    w = jax.random.normal(kw, (1, c_in, c_out), jnp.float32) / jnp.sqrt(c_in)
    b = 0.01 * jax.random.normal(kb, (1, c_out), jnp.float32)
    return dict(w=w, b=b)


def init_decoder_params(key, C, O, kernel_size, dilations):
    n = 2 * len(dilations) + 3 + 2
    keys = iter(jax.random.split(key, n))
    params = {
        "res_blocks": [[init_conv_bn(next(keys), C, C, kernel_size),
                        init_conv_bn(next(keys), C, C, kernel_size)]
                       for _ in dilations],
        "post_conv": init_conv1x1(next(keys), C, C),
        "postnet_bn": [init_conv_bn(next(keys), C, C, kernel_size),
                       init_conv_bn(next(keys), C, C, kernel_size)],
        "postnet_out": init_conv1x1(next(keys), C, O),
    }
    return params


# ----------------------------------------------------------------------------
# Decoder forward: stack weights (bf16), single fused Pallas call
# ----------------------------------------------------------------------------
def decoder_forward(params, x_bct, mask_b1t, *, kernel_size, dilations,
                    batch_group=None):
    B, C, T = x_bct.shape
    K = kernel_size
    # Channels-last so C sits on lanes; batch folded into the row (M) dim.
    x = jnp.transpose(x_bct, (0, 2, 1)).reshape(B * T, C)
    mask = jnp.transpose(mask_b1t, (0, 2, 1)).reshape(B * T, 1)

    # Stack all conv+BN layers (17 res blocks x 2 convs, then 2 postnet convs).
    bn_layers = []
    for p1, p2 in params["res_blocks"]:
        bn_layers += [p1, p2]
    bn_layers += params["postnet_bn"]
    # bf16 weights feed the MXU; bias / BN affine constants stay f32.
    W_bn = jnp.stack([p["w"].reshape(K * C, C) for p in bn_layers]
                     ).astype(jnp.bfloat16)                              # (L, K*C, C)
    aff = jnp.stack([jnp.concatenate([p["b"], p["scale"], p["shift"]], axis=0)
                     for p in bn_layers])                                # (L, 3, C)
    w_pc = params["post_conv"]["w"][0].astype(jnp.bfloat16)              # (C, C)
    b_pc = params["post_conv"]["b"]                                      # (1, C)
    w_po = params["postnet_out"]["w"][0].astype(jnp.bfloat16)            # (C, O)
    b_po = params["postnet_out"]["b"]                                    # (1, O)
    O = w_po.shape[-1]

    out = fused_decoder_call(x, mask, W_bn, aff, w_pc, b_pc, w_po, b_po,
                             B=B, T=T, C=C, O=O, K=K, dilations=dilations,
                             batch_group=batch_group)
    return jnp.transpose(out.reshape(B, T, O), (0, 2, 1))   # (B, O, T)


# ----------------------------------------------------------------------------
# Pure-JAX f32 reference (NCT layout, lax.conv = PyTorch Conv1d semantics)
# ----------------------------------------------------------------------------
def _ref_conv1d(x_bct, w_kio, b, dilation, pad_s, pad_e):
    w_oik = jnp.transpose(w_kio, (2, 1, 0))    # (Cout, Cin, K) like torch
    y = lax.conv_general_dilated(
        x_bct, w_oik, window_strides=(1,), padding=[(pad_s, pad_e)],
        rhs_dilation=(dilation,), dimension_numbers=("NCH", "OIH", "NCH"))
    return y + b.reshape(1, -1, 1)


def decoder_ref(params, x, mask, *, kernel_size, dilations):
    def conv_bn(o, p, d):
        pad = d * (kernel_size - 1)
        ps, pe = pad // 2, pad - (pad // 2)
        y = _ref_conv1d(o, p["w"], p["b"], d, ps, pe)
        y = jnp.maximum(y, 0.0)
        return y * p["scale"].reshape(1, -1, 1) + p["shift"].reshape(1, -1, 1)

    o = x * mask
    for (p1, p2), d in zip(params["res_blocks"], dilations):
        res = o
        o = conv_bn(o, p1, d)
        o = conv_bn(o, p2, d)
        o = (o + res) * mask
    pc = params["post_conv"]
    o = _ref_conv1d(o, pc["w"], pc["b"], 1, 0, 0) + x
    for p in params["postnet_bn"]:
        o = conv_bn(o, p, 1)
    po = params["postnet_out"]
    return _ref_conv1d(o, po["w"], po["b"], 1, 0, 0) * mask


# ----------------------------------------------------------------------------
if __name__ == "__main__":
    B, C, O, T = 2, 32, 16, 16
    kernel_size = 4
    dilations = 4 * [1, 2, 4, 8] + [1]          # 17 residual blocks

    key = jax.random.PRNGKey(0)
    kx, kp = jax.random.split(key, 2)
    x = jax.random.normal(kx, (B, C, T), jnp.float32)        # (B, C, T) like PyTorch
    lengths = jnp.array([T, T - 4])
    mask = (jnp.arange(T)[None, :] < lengths[:, None]).astype(jnp.float32)[:, None, :]  # (B,1,T)

    params = init_decoder_params(kp, C, O, kernel_size, dilations)

    out = decoder_forward(params, x, mask, kernel_size=kernel_size, dilations=dilations)
    out = jax.block_until_ready(out)
    assert out.shape == (B, O, T)

    ref = decoder_ref(params, x, mask, kernel_size=kernel_size, dilations=dilations)
    err = float(jnp.max(jnp.abs(out - ref)))
    denom = float(jnp.max(jnp.abs(ref))) + 1e-6
    # bf16 MXU operands across a 38-matmul serial chain budget ~sqrt(38)*2^-8
    # (~2.4%) relative drift vs the pure-f32 reference; accumulation is f32.
    assert err / denom < 5e-2, f"mismatch: max abs err {err} (ref max {denom})"

    print("KERNEL_OK")
</pallas_src>

<mosaic_0001>
module attributes {stable_mosaic.version = 11 : i64} {
  func.func @_decoder_kernel(%arg0: i32, %arg1: memref<32x32xf32, #tpu.memory_space<vmem>>, %arg2: memref<32x1xf32, #tpu.memory_space<vmem>>, %arg3: memref<36x128x32xbf16, #tpu.memory_space<vmem>>, %arg4: memref<36x3x32xf32, #tpu.memory_space<vmem>>, %arg5: memref<32x32xbf16, #tpu.memory_space<vmem>>, %arg6: memref<1x32xf32, #tpu.memory_space<vmem>>, %arg7: memref<32x16xbf16, #tpu.memory_space<vmem>>, %arg8: memref<1x16xf32, #tpu.memory_space<vmem>>, %arg9: memref<32x16xf32, #tpu.memory_space<vmem>>, %arg10: memref<2x48x32xf32, #tpu.memory_space<vmem>>) attributes {dimension_semantics = [#tpu.dimension_semantics<parallel>], iteration_bounds = array<i64: 1>, scalar_prefetch = 0 : i64, scratch_operands = 1 : i64, tpu.core_type = #tpu.core_type<tc>, window_params = [{transform_indices = @transform_0, window_bounds = array<i64: 32, 32>}, {transform_indices = @transform_1, window_bounds = array<i64: 32, 1>}, {pipeline_mode = #tpu.pipeline_mode<synchronous>, transform_indices = @transform_2, window_bounds = array<i64: 36, 128, 32>}, {pipeline_mode = #tpu.pipeline_mode<synchronous>, transform_indices = @transform_3, window_bounds = array<i64: 36, 3, 32>}, {pipeline_mode = #tpu.pipeline_mode<synchronous>, transform_indices = @transform_4, window_bounds = array<i64: 32, 32>}, {pipeline_mode = #tpu.pipeline_mode<synchronous>, transform_indices = @transform_5, window_bounds = array<i64: 1, 32>}, {pipeline_mode = #tpu.pipeline_mode<synchronous>, transform_indices = @transform_6, window_bounds = array<i64: 32, 16>}, {pipeline_mode = #tpu.pipeline_mode<synchronous>, transform_indices = @transform_7, window_bounds = array<i64: 1, 16>}, {transform_indices = @transform_8, window_bounds = array<i64: 32, 16>}]} {
    %cst = arith.constant 0.000000e+00 : f32
    %0 = vector.broadcast %cst : f32 to vector<2x16x32xf32>
    %c0 = arith.constant 0 : index
    %c0_0 = arith.constant 0 : index
    %c0_1 = arith.constant 0 : index
    %1 = vector.load %arg10[%c0, %c0_0, %c0_1] : memref<2x48x32xf32, #tpu.memory_space<vmem>>, vector<2x16x32xf32>
    tpu.vector_store %arg10[%c0, %c0_0, %c0_1], %0 {strides = array<i32>} : memref<2x48x32xf32, #tpu.memory_space<vmem>>, vector<2x16x32xf32>,
    %c0_2 = arith.constant 0 : index
    %c32 = arith.constant 32 : index
    %c0_3 = arith.constant 0 : index
    %2 = vector.load %arg10[%c0_2, %c32, %c0_3] : memref<2x48x32xf32, #tpu.memory_space<vmem>>, vector<2x16x32xf32>
    tpu.vector_store %arg10[%c0_2, %c32, %c0_3], %0 {strides = array<i32>} : memref<2x48x32xf32, #tpu.memory_space<vmem>>, vector<2x16x32xf32>,
    %c0_4 = arith.constant 0 : index
    %c0_5 = arith.constant 0 : index
    %3 = vector.load %arg1[%c0_4, %c0_5] : memref<32x32xf32, #tpu.memory_space<vmem>>, vector<32x32xf32>
    %c0_6 = arith.constant 0 : index
    %c0_7 = arith.constant 0 : index
    %4 = vector.load %arg2[%c0_6, %c0_7] : memref<32x1xf32, #tpu.memory_space<vmem>>, vector<32x1xf32>
    %5 = vector.shape_cast %4 : vector<32x1xf32> to vector<32x1xf32>
    %6 = vector.broadcast %5 : vector<32x1xf32> to vector<32x32xf32>
    %c0_8 = arith.constant 0 : index
    %c0_9 = arith.constant 0 : index
    %7 = vector.load %arg2[%c0_8, %c0_9] : memref<32x1xf32, #tpu.memory_space<vmem>>, vector<32x1xf32>
    %8 = vector.shape_cast %7 : vector<32x1xf32> to vector<32x1xf32>
    %9 = vector.broadcast %8 : vector<32x1xf32> to vector<32x16xf32>
    %10 = arith.mulf %3, %6 : vector<32x32xf32>
    %11 = vector.shape_cast %10 : vector<32x32xf32> to vector<2x16x32xf32>
    %c0_10 = arith.constant 0 : index
    %c16 = arith.constant 16 : index
    %c0_11 = arith.constant 0 : index
    %12 = vector.load %arg10[%c0_10, %c16, %c0_11] : memref<2x48x32xf32, #tpu.memory_space<vmem>>, vector<2x16x32xf32>
    tpu.vector_store %arg10[%c0_10, %c16, %c0_11], %11 {strides = array<i32>} : memref<2x48x32xf32, #tpu.memory_space<vmem>>, vector<2x16x32xf32>,
    %c0_12 = arith.constant 0 : index
    %c15 = arith.constant 15 : index
    %c0_13 = arith.constant 0 : index
    %13 = vector.load %arg10[%c0_12, %c15, %c0_13] : memref<2x48x32xf32, #tpu.memory_space<vmem>>, vector<2x16x32xf32>
    %c0_14 = arith.constant 0 : index
    %c16_15 = arith.constant 16 : index
    %c0_16 = arith.constant 0 : index
    %14 = vector.load %arg10[%c0_14, %c16_15, %c0_16] : memref<2x48x32xf32, #tpu.memory_space<vmem>>, vector<2x16x32xf32>
    %c0_17 = arith.constant 0 : index
    %c17 = arith.constant 17 : index
    %c0_18 = arith.constant 0 : index
    %15 = vector.load %arg10[%c0_17, %c17, %c0_18] : memref<2x48x32xf32, #tpu.memory_space<vmem>>, vector<2x16x32xf32>
    %c0_19 = arith.constant 0 : index
    %c18 = arith.constant 18 : index
    %c0_20 = arith.constant 0 : index
    %16 = vector.load %arg10[%c0_19, %c18, %c0_20] : memref<2x48x32xf32, #tpu.memory_space<vmem>>, vector<2x16x32xf32>
    %17 = tpu.concatenate %13, %14, %15, %16 in 2 : vector<2x16x32xf32>, vector<2x16x32xf32>, vector<2x16x32xf32>, vector<2x16x32xf32> -> vector<2x16x128xf32>
    %18 = vector.shape_cast %17 : vector<2x16x128xf32> to vector<32x128xf32>
    %19 = arith.truncf %18 : vector<32x128xf32> to vector<32x128xbf16>
    %c0_21 = arith.constant 0 : index
    %c0_22 = arith.constant 0 : index
    %c0_23 = arith.constant 0 : index
    %20 = vector.load %arg3[%c0_21, %c0_22, %c0_23] : memref<36x128x32xbf16, #tpu.memory_space<vmem>>, vector<1x128x32xbf16>
    %21 = vector.shape_cast %20 : vector<1x128x32xbf16> to vector<128x32xbf16>
    %cst_24 = arith.constant dense<0.000000e+00> : vector<32x32xf32>
    %22 = tpu.matmul %19, %21, %cst_24 {dimension_numbers = #tpu.dot_dimension_numbers<[1], [0], [0], [1], [0, 0, 1, 1], [], []>} : vector<32x128xbf16>, vector<128x32xbf16>, vector<32x32xf32> -> vector<32x32xf32>
    %c0_25 = arith.constant 0 : index
    %c0_26 = arith.constant 0 : index
    %c0_27 = arith.constant 0 : index
    %23 = vector.load %arg4[%c0_25, %c0_26, %c0_27] : memref<36x3x32xf32, #tpu.memory_space<vmem>>, vector<1x1x32xf32>
    %24 = vector.shape_cast %23 : vector<1x1x32xf32> to vector<1x32xf32>
    %25 = vector.broadcast %24 : vector<1x32xf32> to vector<32x32xf32>
    %26 = arith.addf %22, %25 : vector<32x32xf32>
    %cst_28 = arith.constant 0.000000e+00 : f32
    %27 = vector.broadcast %cst_28 : f32 to vector<32x32xf32>
    %28 = arith.maximumf %26, %27 : vector<32x32xf32>
    %c0_29 = arith.constant 0 : index
    %c1 = arith.constant 1 : index
    %c0_30 = arith.constant 0 : index
    %29 = vector.load %arg4[%c0_29, %c1, %c0_30] : memref<36x3x32xf32, #tpu.memory_space<vmem>>, vector<1x1x32xf32>
    %30 = vector.shape_cast %29 : vector<1x1x32xf32> to vector<1x32xf32>
    %31 = vector.broadcast %30 : vector<1x32xf32> to vector<32x32xf32>
    %32 = arith.mulf %28, %31 : vector<32x32xf32>
    %c0_31 = arith.constant 0 : index
    %c2 = arith.constant 2 : index
    %c0_32 = arith.constant 0 : index
    %33 = vector.load %arg4[%c0_31, %c2, %c0_32] : memref<36x3x32xf32, #tpu.memory_space<vmem>>, vector<1x1x32xf32>
    %34 = vector.shape_cast %33 : vector<1x1x32xf32> to vector<1x32xf32>
    %35 = vector.broadcast %34 : vector<1x32xf32> to vector<32x32xf32>
    %36 = arith.addf %32, %35 : vector<32x32xf32>
    %37 = vector.shape_cast %36 : vector<32x32xf32> to vector<2x16x32xf32>
    %c0_33 = arith.constant 0 : index
    %c16_34 = arith.constant 16 : index
    %c0_35 = arith.constant 0 : index
    %38 = vector.load %arg10[%c0_33, %c16_34, %c0_35] : memref<2x48x32xf32, #tpu.memory_space<vmem>>, vector<2x16x32xf32>
    tpu.vector_store %arg10[%c0_33, %c16_34, %c0_35], %37 {strides = array<i32>} : memref<2x48x32xf32, #tpu.memory_space<vmem>>, vector<2x16x32xf32>,
    %c0_36 = arith.constant 0 : index
    %c15_37 = arith.constant 15 : index
    %c0_38 = arith.constant 0 : index
    %39 = vector.load %arg10[%c0_36, %c15_37, %c0_38] : memref<2x48x32xf32, #tpu.memory_space<vmem>>, vector<2x16x32xf32>
    %c0_39 = arith.constant 0 : index
    %c16_40 = arith.constant 16 : index
    %c0_41 = arith.constant 0 : index
    %40 = vector.load %arg10[%c0_39, %c16_40, %c0_41] : memref<2x48x32xf32, #tpu.memory_space<vmem>>, vector<2x16x32xf32>
    %c0_42 = arith.constant 0 : index
    %c17_43 = arith.constant 17 : index
    %c0_44 = arith.constant 0 : index
    %41 = vector.load %arg10[%c0_42, %c17_43, %c0_44] : memref<2x48x32xf32, #tpu.memory_space<vmem>>, vector<2x16x32xf32>
    %c0_45 = arith.constant 0 : index
    %c18_46 = arith.constant 18 : index
    %c0_47 = arith.constant 0 : index
    %42 = vector.load %arg10[%c0_45, %c18_46, %c0_47] : memref<2x48x32xf32, #tpu.memory_space<vmem>>, vector<2x16x32xf32>
    %43 = tpu.concatenate %39, %40, %41, %42 in 2 : vector<2x16x32xf32>, vector<2x16x32xf32>, vector<2x16x32xf32>, vector<2x16x32xf32> -> vector<2x16x128xf32>
    %44 = vector.shape_cast %43 : vector<2x16x128xf32> to vector<32x128xf32>
    %45 = arith.truncf %44 : vector<32x128xf32> to vector<32x128xbf16>
    %c1_48 = arith.constant 1 : index
    %c0_49 = arith.constant 0 : index
    %c0_50 = arith.constant 0 : index
    %46 = vector.load %arg3[%c1_48, %c0_49, %c0_50] : memref<36x128x32xbf16, #tpu.memory_space<vmem>>, vector<1x128x32xbf16>
    %47 = vector.shape_cast %46 : vector<1x128x32xbf16> to vector<128x32xbf16>
    %cst_51 = arith.constant dense<0.000000e+00> : vector<32x32xf32>
    %48 = tpu.matmul %45, %47, %cst_51 {dimension_numbers = #tpu.dot_dimension_numbers<[1], [0], [0], [1], [0, 0, 1, 1], [], []>} : vector<32x128xbf16>, vector<128x32xbf16>, vector<32x32xf32> -> vector<32x32xf32>
    %c1_52 = arith.constant 1 : index
    %c0_53 = arith.constant 0 : index
    %c0_54 = arith.constant 0 : index
    %49 = vector.load %arg4[%c1_52, %c0_53, %c0_54] : memref<36x3x32xf32, #tpu.memory_space<vmem>>, vector<1x1x32xf32>
    %50 = vector.shape_cast %49 : vector<1x1x32xf32> to vector<1x32xf32>
    %51 = vector.broadcast %50 : vector<1x32xf32> to vector<32x32xf32>
    %52 = arith.addf %48, %51 : vector<32x32xf32>
    %cst_55 = arith.constant 0.000000e+00 : f32
    %53 = vector.broadcast %cst_55 : f32 to vector<32x32xf32>
    %54 = arith.maximumf %52, %53 : vector<32x32xf32>
    %c1_56 = arith.constant 1 : index
    %c1_57 = arith.constant 1 : index
    %c0_58 = arith.constant 0 : index
    %55 = vector.load %arg4[%c1_56, %c1_57, %c0_58] : memref<36x3x32xf32, #tpu.memory_space<vmem>>, vector<1x1x32xf32>
    %56 = vector.shape_cast %55 : vector<1x1x32xf32> to vector<1x32xf32>
    %57 = vector.broadcast %56 : vector<1x32xf32> to vector<32x32xf32>
    %58 = arith.mulf %54, %57 : vector<32x32xf32>
    %c1_59 = arith.constant 1 : index
    %c2_60 = arith.constant 2 : index
    %c0_61 = arith.constant 0 : index
    %59 = vector.load %arg4[%c1_59, %c2_60, %c0_61] : memref<36x3x32xf32, #tpu.memory_space<vmem>>, vector<1x1x32xf32>
    %60 = vector.shape_cast %59 : vector<1x1x32xf32> to vector<1x32xf32>
    %61 = vector.broadcast %60 : vector<1x32xf32> to vector<32x32xf32>
    %62 = arith.addf %58, %61 : vector<32x32xf32>
    %63 = arith.addf %62, %10 : vector<32x32xf32>
    %64 = arith.mulf %63, %6 : vector<32x32xf32>
    %65 = vector.shape_cast %64 : vector<32x32xf32> to vector<2x16x32xf32>
    %c0_62 = arith.constant 0 : index
    %c16_63 = arith.constant 16 : index
    %c0_64 = arith.constant 0 : index
    %66 = vector.load %arg10[%c0_62, %c16_63, %c0_64] : memref<2x48x32xf32, #tpu.memory_space<vmem>>, vector<2x16x32xf32>
    tpu.vector_store %arg10[%c0_62, %c16_63, %c0_64], %65 {strides = array<i32>} : memref<2x48x32xf32, #tpu.memory_space<vmem>>, vector<2x16x32xf32>,
    %c0_65 = arith.constant 0 : index
    %c13 = arith.constant 13 : index
    %c0_66 = arith.constant 0 : index
    %67 = vector.load %arg10[%c0_65, %c13, %c0_66] : memref<2x48x32xf32, #tpu.memory_space<vmem>>, vector<2x16x32xf32>
    %c0_67 = arith.constant 0 : index
    %c15_68 = arith.constant 15 : index
    %c0_69 = arith.constant 0 : index
    %68 = vector.load %arg10[%c0_67, %c15_68, %c0_69] : memref<2x48x32xf32, #tpu.memory_space<vmem>>, vector<2x16x32xf32>
    %c0_70 = arith.constant 0 : index
    %c17_71 = arith.constant 17 : index
    %c0_72 = arith.constant 0 : index
    %69 = vector.load %arg10[%c0_70, %c17_71, %c0_72] : memref<2x48x32xf32, #tpu.memory_space<vmem>>, vector<2x16x32xf32>
    %c0_73 = arith.constant 0 : index
    %c19 = arith.constant 19 : index
    %c0_74 = arith.constant 0 : index
    %70 = vector.load %arg10[%c0_73, %c19, %c0_74] : memref<2x48x32xf32, #tpu.memory_space<vmem>>, vector<2x16x32xf32>
    %71 = tpu.concatenate %67, %68, %69, %70 in 2 : vector<2x16x32xf32>, vector<2x16x32xf32>, vector<2x16x32xf32>, vector<2x16x32xf32> -> vector<2x16x128xf32>
    %72 = vector.shape_cast %71 : vector<2x16x128xf32> to vector<32x128xf32>
    %73 = arith.truncf %72 : vector<32x128xf32> to vector<32x128xbf16>
    %c2_75 = arith.constant 2 : index
    %c0_76 = arith.constant 0 : index
    %c0_77 = arith.constant 0 : index
    %74 = vector.load %arg3[%c2_75, %c0_76, %c0_77] : memref<36x128x32xbf16, #tpu.memory_space<vmem>>, vector<1x128x32xbf16>
    %75 = vector.shape_cast %74 : vector<1x128x32xbf16> to vector<128x32xbf16>
    %cst_78 = arith.constant dense<0.000000e+00> : vector<32x32xf32>
    %76 = tpu.matmul %73, %75, %cst_78 {dimension_numbers = #tpu.dot_dimension_numbers<[1], [0], [0], [1], [0, 0, 1, 1], [], []>} : vector<32x128xbf16>, vector<128x32xbf16>, vector<32x32xf32> -> vector<32x32xf32>
    %c2_79 = arith.constant 2 : index
    %c0_80 = arith.constant 0 : index
    %c0_81 = arith.constant 0 : index
    %77 = vector.load %arg4[%c2_79, %c0_80, %c0_81] : memref<36x3x32xf32, #tpu.memory_space<vmem>>, vector<1x1x32xf32>
    %78 = vector.shape_cast %77 : vector<1x1x32xf32> to vector<1x32xf32>
    %79 = vector.broadcast %78 : vector<1x32xf32> to vector<32x32xf32>
    %80 = arith.addf %76, %79 : vector<32x32xf32>
    %cst_82 = arith.constant 0.000000e+00 : f32
    %81 = vector.broadcast %cst_82 : f32 to vector<32x32xf32>
    %82 = arith.maximumf %80, %81 : vector<32x32xf32>
    %c2_83 = arith.constant 2 : index
    %c1_84 = arith.constant 1 : index
    %c0_85 = arith.constant 0 : index
    %83 = vector.load %arg4[%c2_83, %c1_84, %c0_85] : memref<36x3x32xf32, #tpu.memory_space<vmem>>, vector<1x1x32xf32>
    %84 = vector.shape_cast %83 : vector<1x1x32xf32> to vector<1x32xf32>
    %85 = vector.broadcast %84 : vector<1x32xf32> to vector<32x32xf32>
    %86 = arith.mulf %82, %85 : vector<32x32xf32>
    %c2_86 = arith.constant 2 : index
    %c2_87 = arith.constant 2 : index
    %c0_88 = arith.constant 0 : index
    %87 = vector.load %arg4[%c2_86, %c2_87, %c0_88] : memref<36x3x32xf32, #tpu.memory_space<vmem>>, vector<1x1x32xf32>
    %88 = vector.shape_cast %87 : vector<1x1x32xf32> to vector<1x32xf32>
    %89 = vector.broadcast %88 : vector<1x32xf32> to vector<32x32xf32>
    %90 = arith.addf %86, %89 : vector<32x32xf32>
    %91 = vector.shape_cast %90 : vector<32x32xf32> to vector<2x16x32xf32>
    %c0_89 = arith.constant 0 : index
    %c16_90 = arith.constant 16 : index
    %c0_91 = arith.constant 0 : index
    %92 = vector.load %arg10[%c0_89, %c16_90, %c0_91] : memref<2x48x32xf32, #tpu.memory_space<vmem>>, vector<2x16x32xf32>
    tpu.vector_store %arg10[%c0_89, %c16_90, %c0_91], %91 {strides = array<i32>} : memref<2x48x32xf32, #tpu.memory_space<vmem>>, vector<2x16x32xf32>,
    %c0_92 = arith.constant 0 : index
    %c13_93 = arith.constant 13 : index
    %c0_94 = arith.constant 0 : index
    %93 = vector.load %arg10[%c0_92, %c13_93, %c0_94] : memref<2x48x32xf32, #tpu.memory_space<vmem>>, vector<2x16x32xf32>
    %c0_95 = arith.constant 0 : index
    %c15_96 = arith.constant 15 : index
    %c0_97 = arith.constant 0 : index
    %94 = vector.load %arg10[%c0_95, %c15_96, %c0_97] : memref<2x48x32xf32, #tpu.memory_space<vmem>>, vector<2x16x32xf32>
    %c0_98 = arith.constant 0 : index
    %c17_99 = arith.constant 17 : index
    %c0_100 = arith.constant 0 : index
    %95 = vector.load %arg10[%c0_98, %c17_99, %c0_100] : memref<2x48x32xf32, #tpu.memory_space<vmem>>, vector<2x16x32xf32>
    %c0_101 = arith.constant 0 : index
    %c19_102 = arith.constant 19 : index
    %c0_103 = arith.constant 0 : index
    %96 = vector.load %arg10[%c0_101, %c19_102, %c0_103] : memref<2x48x32xf32, #tpu.memory_space<vmem>>, vector<2x16x32xf32>
    %97 = tpu.concatenate %93, %94, %95, %96 in 2 : vector<2x16x32xf32>, vector<2x16x32xf32>, vector<2x16x32xf32>, vector<2x16x32xf32> -> vector<2x16x128xf32>
    %98 = vector.shape_cast %97 : vector<2x16x128xf32> to vector<32x128xf32>
    %99 = arith.truncf %98 : vector<32x128xf32> to vector<32x128xbf16>
    %c3 = arith.constant 3 : index
    %c0_104 = arith.constant 0 : index
    %c0_105 = arith.constant 0 : index
    %100 = vector.load %arg3[%c3, %c0_104, %c0_105] : memref<36x128x32xbf16, #tpu.memory_space<vmem>>, vector<1x128x32xbf16>
    %101 = vector.shape_cast %100 : vector<1x128x32xbf16> to vector<128x32xbf16>
    %cst_106 = arith.constant dense<0.000000e+00> : vector<32x32xf32>
    %102 = tpu.matmul %99, %101, %cst_106 {dimension_numbers = #tpu.dot_dimension_numbers<[1], [0], [0], [1], [0, 0, 1, 1], [], []>} : vector<32x128xbf16>, vector<128x32xbf16>, vector<32x32xf32> -> vector<32x32xf32>
    %c3_107 = arith.constant 3 : index
    %c0_108 = arith.constant 0 : index
    %c0_109 = arith.constant 0 : index
    %103 = vector.load %arg4[%c3_107, %c0_108, %c0_109] : memref<36x3x32xf32, #tpu.memory_space<vmem>>, vector<1x1x32xf32>
    %104 = vector.shape_cast %103 : vector<1x1x32xf32> to vector<1x32xf32>
    %105 = vector.broadcast %104 : vector<1x32xf32> to vector<32x32xf32>
    %106 = arith.addf %102, %105 : vector<32x32xf32>
    %cst_110 = arith.constant 0.000000e+00 : f32
    %107 = vector.broadcast %cst_110 : f32 to vector<32x32xf32>
    %108 = arith.maximumf %106, %107 : vector<32x32xf32>
    %c3_111 = arith.constant 3 : index
    %c1_112 = arith.constant 1 : index
    %c0_113 = arith.constant 0 : index
    %109 = vector.load %arg4[%c3_111, %c1_112, %c0_113] : memref<36x3x32xf32, #tpu.memory_space<vmem>>, vector<1x1x32xf32>
    %110 = vector.shape_cast %109 : vector<1x1x32xf32> to vector<1x32xf32>
    %111 = vector.broadcast %110 : vector<1x32xf32> to vector<32x32xf32>
    %112 = arith.mulf %108, %111 : vector<32x32xf32>
    %c3_114 = arith.constant 3 : index
    %c2_115 = arith.constant 2 : index
    %c0_116 = arith.constant 0 : index
    %113 = vector.load %arg4[%c3_114, %c2_115, %c0_116] : memref<36x3x32xf32, #tpu.memory_space<vmem>>, vector<1x1x32xf32>
    %114 = vector.shape_cast %113 : vector<1x1x32xf32> to vector<1x32xf32>
    %115 = vector.broadcast %114 : vector<1x32xf32> to vector<32x32xf32>
    %116 = arith.addf %112, %115 : vector<32x32xf32>
    %117 = arith.addf %116, %64 : vector<32x32xf32>
    %118 = arith.mulf %117, %6 : vector<32x32xf32>
    %119 = vector.shape_cast %118 : vector<32x32xf32> to vector<2x16x32xf32>
    %c0_117 = arith.constant 0 : index
    %c16_118 = arith.constant 16 : index
    %c0_119 = arith.constant 0 : index
    %120 = vector.load %arg10[%c0_117, %c16_118, %c0_119] : memref<2x48x32xf32, #tpu.memory_space<vmem>>, vector<2x16x32xf32>
    tpu.vector_store %arg10[%c0_117, %c16_118, %c0_119], %119 {strides = array<i32>} : memref<2x48x32xf32, #tpu.memory_space<vmem>>, vector<2x16x32xf32>,
    %c0_120 = arith.constant 0 : index
    %c10 = arith.constant 10 : index
    %c0_121 = arith.constant 0 : index
    %121 = vector.load %arg10[%c0_120, %c10, %c0_121] : memref<2x48x32xf32, #tpu.memory_space<vmem>>, vector<2x16x32xf32>
    %c0_122 = arith.constant 0 : index
    %c14 = arith.constant 14 : index
    %c0_123 = arith.constant 0 : index
    %122 = vector.load %arg10[%c0_122, %c14, %c0_123] : memref<2x48x32xf32, #tpu.memory_space<vmem>>, vector<2x16x32xf32>
    %c0_124 = arith.constant 0 : index
    %c18_125 = arith.constant 18 : index
    %c0_126 = arith.constant 0 : index
    %123 = vector.load %arg10[%c0_124, %c18_125, %c0_126] : memref<2x48x32xf32, #tpu.memory_space<vmem>>, vector<2x16x32xf32>
    %c0_127 = arith.constant 0 : index
    %c22 = arith.constant 22 : index
    %c0_128 = arith.constant 0 : index
    %124 = vector.load %arg10[%c0_127, %c22, %c0_128] : memref<2x48x32xf32, #tpu.memory_space<vmem>>, vector<2x16x32xf32>
    %125 = tpu.concatenate %121, %122, %123, %124 in 2 : vector<2x16x32xf32>, vector<2x16x32xf32>, vector<2x16x32xf32>, vector<2x16x32xf32> -> vector<2x16x128xf32>
    %126 = vector.shape_cast %125 : vector<2x16x128xf32> to vector<32x128xf32>
    %127 = arith.truncf %126 : vector<32x128xf32> to vector<32x128xbf16>
    %c4 = arith.constant 4 : index
    %c0_129 = arith.constant 0 : index
    %c0_130 = arith.constant 0 : index
    %128 = vector.load %arg3[%c4, %c0_129, %c0_130] : memref<36x128x32xbf16, #tpu.memory_space<vmem>>, vector<1x128x32xbf16>
    %129 = vector.shape_cast %128 : vector<1x128x32xbf16> to vector<128x32xbf16>
    %cst_131 = arith.constant dense<0.000000e+00> : vector<32x32xf32>
    %130 = tpu.matmul %127, %129, %cst_131 {dimension_numbers = #tpu.dot_dimension_numbers<[1], [0], [0], [1], [0, 0, 1, 1], [], []>} : vector<32x128xbf16>, vector<128x32xbf16>, vector<32x32xf32> -> vector<32x32xf32>
    %c4_132 = arith.constant 4 : index
    %c0_133 = arith.constant 0 : index
    %c0_134 = arith.constant 0 : index
    %131 = vector.load %arg4[%c4_132, %c0_133, %c0_134] : memref<36x3x32xf32, #tpu.memory_space<vmem>>, vector<1x1x32xf32>
    %132 = vector.shape_cast %131 : vector<1x1x32xf32> to vector<1x32xf32>
    %133 = vector.broadcast %132 : vector<1x32xf32> to vector<32x32xf32>
    %134 = arith.addf %130, %133 : vector<32x32xf32>
    %cst_135 = arith.constant 0.000000e+00 : f32
    %135 = vector.broadcast %cst_135 : f32 to vector<32x32xf32>
    %136 = arith.maximumf %134, %135 : vector<32x32xf32>
    %c4_136 = arith.constant 4 : index
    %c1_137 = arith.constant 1 : index
    %c0_138 = arith.constant 0 : index
    %137 = vector.load %arg4[%c4_136, %c1_137, %c0_138] : memref<36x3x32xf32, #tpu.memory_space<vmem>>, vector<1x1x32xf32>
    %138 = vector.shape_cast %137 : vector<1x1x32xf32> to vector<1x32xf32>
    %139 = vector.broadcast %138 : vector<1x32xf32> to vector<32x32xf32>
    %140 = arith.mulf %136, %139 : vector<32x32xf32>
    %c4_139 = arith.constant 4 : index
    %c2_140 = arith.constant 2 : index
    %c0_141 = arith.constant 0 : index
    %141 = vector.load %arg4[%c4_139, %c2_140, %c0_141] : memref<36x3x32xf32, #tpu.memory_space<vmem>>, vector<1x1x32xf32>
    %142 = vector.shape_cast %141 : vector<1x1x32xf32> to vector<1x32xf32>
    %143 = vector.broadcast %142 : vector<1x32xf32> to vector<32x32xf32>
    %144 = arith.addf %140, %143 : vector<32x32xf32>
    %145 = vector.shape_cast %144 : vector<32x32xf32> to vector<2x16x32xf32>
    %c0_142 = arith.constant 0 : index
    %c16_143 = arith.constant 16 : index
    %c0_144 = arith.constant 0 : index
    %146 = vector.load %arg10[%c0_142, %c16_143, %c0_144] : memref<2x48x32xf32, #tpu.memory_space<vmem>>, vector<2x16x32xf32>
    tpu.vector_store %arg10[%c0_142, %c16_143, %c0_144], %145 {strides = array<i32>} : memref<2x48x32xf32, #tpu.memory_space<vmem>>, vector<2x16x32xf32>,
    %c0_145 = arith.constant 0 : index
    %c10_146 = arith.constant 10 : index
    %c0_147 = arith.constant 0 : index
    %147 = vector.load %arg10[%c0_145, %c10_146, %c0_147] : memref<2x48x32xf32, #tpu.memory_space<vmem>>, vector<2x16x32xf32>
    %c0_148 = arith.constant 0 : index
    %c14_149 = arith.constant 14 : index
    %c0_150 = arith.constant 0 : index
    %148 = vector.load %arg10[%c0_148, %c14_149, %c0_150] : memref<2x48x32xf32, #tpu.memory_space<vmem>>, vector<2x16x32xf32>
    %c0_151 = arith.constant 0 : index
    %c18_152 = arith.constant 18 : index
    %c0_153 = arith.constant 0 : index
    %149 = vector.load %arg10[%c0_151, %c18_152, %c0_153] : memref<2x48x32xf32, #tpu.memory_space<vmem>>, vector<2x16x32xf32>
    %c0_154 = arith.constant 0 : index
    %c22_155 = arith.constant 22 : index
    %c0_156 = arith.constant 0 : index
    %150 = vector.load %arg10[%c0_154, %c22_155, %c0_156] : memref<2x48x32xf32, #tpu.memory_space<vmem>>, vector<2x16x32xf32>
    %151 = tpu.concatenate %147, %148, %149, %150 in 2 : vector<2x16x32xf32>, vector<2x16x32xf32>, vector<2x16x32xf32>, vector<2x16x32xf32> -> vector<2x16x128xf32>
    %152 = vector.shape_cast %151 : vector<2x16x128xf32> to vector<32x128xf32>
    %153 = arith.truncf %152 : vector<32x128xf32> to vector<32x128xbf16>
    %c5 = arith.constant 5 : index
    %c0_157 = arith.constant 0 : index
    %c0_158 = arith.constant 0 : index
    %154 = vector.load %arg3[%c5, %c0_157, %c0_158] : memref<36x128x32xbf16, #tpu.memory_space<vmem>>, vector<1x128x32xbf16>
    %155 = vector.shape_cast %154 : vector<1x128x32xbf16> to vector<128x32xbf16>
    %cst_159 = arith.constant dense<0.000000e+00> : vector<32x32xf32>
    %156 = tpu.matmul %153, %155, %cst_159 {dimension_numbers = #tpu.dot_dimension_numbers<[1], [0], [0], [1], [0, 0, 1, 1], [], []>} : vector<32x128xbf16>, vector<128x32xbf16>, vector<32x32xf32> -> vector<32x32xf32>
    %c5_160 = arith.constant 5 : index
    %c0_161 = arith.constant 0 : index
    %c0_162 = arith.constant 0 : index
    %157 = vector.load %arg4[%c5_160, %c0_161, %c0_162] : memref<36x3x32xf32, #tpu.memory_space<vmem>>, vector<1x1x32xf32>
    %158 = vector.shape_cast %157 : vector<1x1x32xf32> to vector<1x32xf32>
    %159 = vector.broadcast %158 : vector<1x32xf32> to vector<32x32xf32>
    %160 = arith.addf %156, %159 : vector<32x32xf32>
    %cst_163 = arith.constant 0.000000e+00 : f32
    %161 = vector.broadcast %cst_163 : f32 to vector<32x32xf32>
    %162 = arith.maximumf %160, %161 : vector<32x32xf32>
    %c5_164 = arith.constant 5 : index
    %c1_165 = arith.constant 1 : index
    %c0_166 = arith.constant 0 : index
    %163 = vector.load %arg4[%c5_164, %c1_165, %c0_166] : memref<36x3x32xf32, #tpu.memory_space<vmem>>, vector<1x1x32xf32>
    %164 = vector.shape_cast %163 : vector<1x1x32xf32> to vector<1x32xf32>
    %165 = vector.broadcast %164 : vector<1x32xf32> to vector<32x32xf32>
    %166 = arith.mulf %162, %165 : vector<32x32xf32>
    %c5_167 = arith.constant 5 : index
    %c2_168 = arith.constant 2 : index
    %c0_169 = arith.constant 0 : index
    %167 = vector.load %arg4[%c5_167, %c2_168, %c0_169] : memref<36x3x32xf32, #tpu.memory_space<vmem>>, vector<1x1x32xf32>
    %168 = vector.shape_cast %167 : vector<1x1x32xf32> to vector<1x32xf32>
    %169 = vector.broadcast %168 : vector<1x32xf32> to vector<32x32xf32>
    %170 = arith.addf %166, %169 : vector<32x32xf32>
    %171 = arith.addf %170, %118 : vector<32x32xf32>
    %172 = arith.mulf %171, %6 : vector<32x32xf32>
    %173 = vector.shape_cast %172 : vector<32x32xf32> to vector<2x16x32xf32>
    %c0_170 = arith.constant 0 : index
    %c16_171 = arith.constant 16 : index
    %c0_172 = arith.constant 0 : index
    %174 = vector.load %arg10[%c0_170, %c16_171, %c0_172] : memref<2x48x32xf32, #tpu.memory_space<vmem>>, vector<2x16x32xf32>
    tpu.vector_store %arg10[%c0_170, %c16_171, %c0_172], %173 {strides = array<i32>} : memref<2x48x32xf32, #tpu.memory_space<vmem>>, vector<2x16x32xf32>,
    %c0_173 = arith.constant 0 : index
    %c4_174 = arith.constant 4 : index
    %c0_175 = arith.constant 0 : index
    %175 = vector.load %arg10[%c0_173, %c4_174, %c0_175] : memref<2x48x32xf32, #tpu.memory_space<vmem>>, vector<2x16x32xf32>
    %c0_176 = arith.constant 0 : index
    %c12 = arith.constant 12 : index
    %c0_177 = arith.constant 0 : index
    %176 = vector.load %arg10[%c0_176, %c12, %c0_177] : memref<2x48x32xf32, #tpu.memory_space<vmem>>, vector<2x16x32xf32>
    %c0_178 = arith.constant 0 : index
    %c20 = arith.constant 20 : index
    %c0_179 = arith.constant 0 : index
    %177 = vector.load %arg10[%c0_178, %c20, %c0_179] : memref<2x48x32xf32, #tpu.memory_space<vmem>>, vector<2x16x32xf32>
    %c0_180 = arith.constant 0 : index
    %c28 = arith.constant 28 : index
    %c0_181 = arith.constant 0 : index
    %178 = vector.load %arg10[%c0_180, %c28, %c0_181] : memref<2x48x32xf32, #tpu.memory_space<vmem>>, vector<2x16x32xf32>
    %179 = tpu.concatenate %175, %176, %177, %178 in 2 : vector<2x16x32xf32>, vector<2x16x32xf32>, vector<2x16x32xf32>, vector<2x16x32xf32> -> vector<2x16x128xf32>
    %180 = vector.shape_cast %179 : vector<2x16x128xf32> to vector<32x128xf32>
    %181 = arith.truncf %180 : vector<32x128xf32> to vector<32x128xbf16>
    %c6 = arith.constant 6 : index
    %c0_182 = arith.constant 0 : index
    %c0_183 = arith.constant 0 : index
    %182 = vector.load %arg3[%c6, %c0_182, %c0_183] : memref<36x128x32xbf16, #tpu.memory_space<vmem>>, vector<1x128x32xbf16>
    %183 = vector.shape_cast %182 : vector<1x128x32xbf16> to vector<128x32xbf16>
    %cst_184 = arith.constant dense<0.000000e+00> : vector<32x32xf32>
    %184 = tpu.matmul %181, %183, %cst_184 {dimension_numbers = #tpu.dot_dimension_numbers<[1], [0], [0], [1], [0, 0, 1, 1], [], []>} : vector<32x128xbf16>, vector<128x32xbf16>, vector<32x32xf32> -> vector<32x32xf32>
    %c6_185 = arith.constant 6 : index
    %c0_186 = arith.constant 0 : index
    %c0_187 = arith.constant 0 : index
    %185 = vector.load %arg4[%c6_185, %c0_186, %c0_187] : memref<36x3x32xf32, #tpu.memory_space<vmem>>, vector<1x1x32xf32>
    %186 = vector.shape_cast %185 : vector<1x1x32xf32> to vector<1x32xf32>
    %187 = vector.broadcast %186 : vector<1x32xf32> to vector<32x32xf32>
    %188 = arith.addf %184, %187 : vector<32x32xf32>
    %cst_188 = arith.constant 0.000000e+00 : f32
    %189 = vector.broadcast %cst_188 : f32 to vector<32x32xf32>
    %190 = arith.maximumf %188, %189 : vector<32x32xf32>
    %c6_189 = arith.constant 6 : index
    %c1_190 = arith.constant 1 : index
    %c0_191 = arith.constant 0 : index
    %191 = vector.load %arg4[%c6_189, %c1_190, %c0_191] : memref<36x3x32xf32, #tpu.memory_space<vmem>>, vector<1x1x32xf32>
    %192 = vector.shape_cast %191 : vector<1x1x32xf32> to vector<1x32xf32>
    %193 = vector.broadcast %192 : vector<1x32xf32> to vector<32x32xf32>
    %194 = arith.mulf %190, %193 : vector<32x32xf32>
    %c6_192 = arith.constant 6 : index
    %c2_193 = arith.constant 2 : index
    %c0_194 = arith.constant 0 : index
    %195 = vector.load %arg4[%c6_192, %c2_193, %c0_194] : memref<36x3x32xf32, #tpu.memory_space<vmem>>, vector<1x1x32xf32>
    %196 = vector.shape_cast %195 : vector<1x1x32xf32> to vector<1x32xf32>
    %197 = vector.broadcast %196 : vector<1x32xf32> to vector<32x32xf32>
    %198 = arith.addf %194, %197 : vector<32x32xf32>
    %199 = vector.shape_cast %198 : vector<32x32xf32> to vector<2x16x32xf32>
    %c0_195 = arith.constant 0 : index
    %c16_196 = arith.constant 16 : index
    %c0_197 = arith.constant 0 : index
    %200 = vector.load %arg10[%c0_195, %c16_196, %c0_197] : memref<2x48x32xf32, #tpu.memory_space<vmem>>, vector<2x16x32xf32>
    tpu.vector_store %arg10[%c0_195, %c16_196, %c0_197], %199 {strides = array<i32>} : memref<2x48x32xf32, #tpu.memory_space<vmem>>, vector<2x16x32xf32>,
    %c0_198 = arith.constant 0 : index
    %c4_199 = arith.constant 4 : index
    %c0_200 = arith.constant 0 : index
    %201 = vector.load %arg10[%c0_198, %c4_199, %c0_200] : memref<2x48x32xf32, #tpu.memory_space<vmem>>, vector<2x16x32xf32>
    %c0_201 = arith.constant 0 : index
    %c12_202 = arith.constant 12 : index
    %c0_203 = arith.constant 0 : index
    %202 = vector.load %arg10[%c0_201, %c12_202, %c0_203] : memref<2x48x32xf32, #tpu.memory_space<vmem>>, vector<2x16x32xf32>
    %c0_204 = arith.constant 0 : index
    %c20_205 = arith.constant 20 : index
    %c0_206 = arith.constant 0 : index
    %203 = vector.load %arg10[%c0_204, %c20_205, %c0_206] : memref<2x48x32xf32, #tpu.memory_space<vmem>>, vector<2x16x32xf32>
    %c0_207 = arith.constant 0 : index
    %c28_208 = arith.constant 28 : index
    %c0_209 = arith.constant 0 : index
    %204 = vector.load %arg10[%c0_207, %c28_208, %c0_209] : memref<2x48x32xf32, #tpu.memory_space<vmem>>, vector<2x16x32xf32>
    %205 = tpu.concatenate %201, %202, %203, %204 in 2 : vector<2x16x32xf32>, vector<2x16x32xf32>, vector<2x16x32xf32>, vector<2x16x32xf32> -> vector<2x16x128xf32>
    %206 = vector.shape_cast %205 : vector<2x16x128xf32> to vector<32x128xf32>
    %207 = arith.truncf %206 : vector<32x128xf32> to vector<32x128xbf16>
    %c7 = arith.constant 7 : index
    %c0_210 = arith.constant 0 : index
    %c0_211 = arith.constant 0 : index
    %208 = vector.load %arg3[%c7, %c0_210, %c0_211] : memref<36x128x32xbf16, #tpu.memory_space<vmem>>, vector<1x128x32xbf16>
    %209 = vector.shape_cast %208 : vector<1x128x32xbf16> to vector<128x32xbf16>
    %cst_212 = arith.constant dense<0.000000e+00> : vector<32x32xf32>
    %210 = tpu.matmul %207, %209, %cst_212 {dimension_numbers = #tpu.dot_dimension_numbers<[1], [0], [0], [1], [0, 0, 1, 1], [], []>} : vector<32x128xbf16>, vector<128x32xbf16>, vector<32x32xf32> -> vector<32x32xf32>
    %c7_213 = arith.constant 7 : index
    %c0_214 = arith.constant 0 : index
    %c0_215 = arith.constant 0 : index
    %211 = vector.load %arg4[%c7_213, %c0_214, %c0_215] : memref<36x3x32xf32, #tpu.memory_space<vmem>>, vector<1x1x32xf32>
    %212 = vector.shape_cast %211 : vector<1x1x32xf32> to vector<1x32xf32>
    %213 = vector.broadcast %212 : vector<1x32xf32> to vector<32x32xf32>
    %214 = arith.addf %210, %213 : vector<32x32xf32>
    %cst_216 = arith.constant 0.000000e+00 : f32
    %215 = vector.broadcast %cst_216 : f32 to vector<32x32xf32>
    %216 = arith.maximumf %214, %215 : vector<32x32xf32>
    %c7_217 = arith.constant 7 : index
    %c1_218 = arith.constant 1 : index
    %c0_219 = arith.constant 0 : index
    %217 = vector.load %arg4[%c7_217, %c1_218, %c0_219] : memref<36x3x32xf32, #tpu.memory_space<vmem>>, vector<1x1x32xf32>
    %218 = vector.shape_cast %217 : vector<1x1x32xf32> to vector<1x32xf32>
    %219 = vector.broadcast %218 : vector<1x32xf32> to vector<32x32xf32>
    %220 = arith.mulf %216, %219 : vector<32x32xf32>
    %c7_220 = arith.constant 7 : index
    %c2_221 = arith.constant 2 : index
    %c0_222 = arith.constant 0 : index
    %221 = vector.load %arg4[%c7_220, %c2_221, %c0_222] : memref<36x3x32xf32, #tpu.memory_space<vmem>>, vector<1x1x32xf32>
    %222 = vector.shape_cast %221 : vector<1x1x32xf32> to vector<1x32xf32>
    %223 = vector.broadcast %222 : vector<1x32xf32> to vector<32x32xf32>
    %224 = arith.addf %220, %223 : vector<32x32xf32>
    %225 = arith.addf %224, %172 : vector<32x32xf32>
    %226 = arith.mulf %225, %6 : vector<32x32xf32>
    %227 = vector.shape_cast %226 : vector<32x32xf32> to vector<2x16x32xf32>
    %c0_223 = arith.constant 0 : index
    %c16_224 = arith.constant 16 : index
    %c0_225 = arith.constant 0 : index
    %228 = vector.load %arg10[%c0_223, %c16_224, %c0_225] : memref<2x48x32xf32, #tpu.memory_space<vmem>>, vector<2x16x32xf32>
    tpu.vector_store %arg10[%c0_223, %c16_224, %c0_225], %227 {strides = array<i32>} : memref<2x48x32xf32, #tpu.memory_space<vmem>>, vector<2x16x32xf32>,
    %c0_226 = arith.constant 0 : index
    %c15_227 = arith.constant 15 : index
    %c0_228 = arith.constant 0 : index
    %229 = vector.load %arg10[%c0_226, %c15_227, %c0_228] : memref<2x48x32xf32, #tpu.memory_space<vmem>>, vector<2x16x32xf32>
    %c0_229 = arith.constant 0 : index
    %c16_230 = arith.constant 16 : index
    %c0_231 = arith.constant 0 : index
    %230 = vector.load %arg10[%c0_229, %c16_230, %c0_231] : memref<2x48x32xf32, #tpu.memory_space<vmem>>, vector<2x16x32xf32>
    %c0_232 = arith.constant 0 : index
    %c17_233 = arith.constant 17 : index
    %c0_234 = arith.constant 0 : index
    %231 = vector.load %arg10[%c0_232, %c17_233, %c0_234] : memref<2x48x32xf32, #tpu.memory_space<vmem>>, vector<2x16x32xf32>
    %c0_235 = arith.constant 0 : index
    %c18_236 = arith.constant 18 : index
    %c0_237 = arith.constant 0 : index
    %232 = vector.load %arg10[%c0_235, %c18_236, %c0_237] : memref<2x48x32xf32, #tpu.memory_space<vmem>>, vector<2x16x32xf32>
    %233 = tpu.concatenate %229, %230, %231, %232 in 2 : vector<2x16x32xf32>, vector<2x16x32xf32>, vector<2x16x32xf32>, vector<2x16x32xf32> -> vector<2x16x128xf32>
    %234 = vector.shape_cast %233 : vector<2x16x128xf32> to vector<32x128xf32>
    %235 = arith.truncf %234 : vector<32x128xf32> to vector<32x128xbf16>
    %c8 = arith.constant 8 : index
    %c0_238 = arith.constant 0 : index
    %c0_239 = arith.constant 0 : index
    %236 = vector.load %arg3[%c8, %c0_238, %c0_239] : memref<36x128x32xbf16, #tpu.memory_space<vmem>>, vector<1x128x32xbf16>
    %237 = vector.shape_cast %236 : vector<1x128x32xbf16> to vector<128x32xbf16>
    %cst_240 = arith.constant dense<0.000000e+00> : vector<32x32xf32>
    %238 = tpu.matmul %235, %237, %cst_240 {dimension_numbers = #tpu.dot_dimension_numbers<[1], [0], [0], [1], [0, 0, 1, 1], [], []>} : vector<32x128xbf16>, vector<128x32xbf16>, vector<32x32xf32> -> vector<32x32xf32>
    %c8_241 = arith.constant 8 : index
    %c0_242 = arith.constant 0 : index
    %c0_243 = arith.constant 0 : index
    %239 = vector.load %arg4[%c8_241, %c0_242, %c0_243] : memref<36x3x32xf32, #tpu.memory_space<vmem>>, vector<1x1x32xf32>
    %240 = vector.shape_cast %239 : vector<1x1x32xf32> to vector<1x32xf32>
    %241 = vector.broadcast %240 : vector<1x32xf32> to vector<32x32xf32>
    %242 = arith.addf %238, %241 : vector<32x32xf32>
    %cst_244 = arith.constant 0.000000e+00 : f32
    %243 = vector.broadcast %cst_244 : f32 to vector<32x32xf32>
    %244 = arith.maximumf %242, %243 : vector<32x32xf32>
    %c8_245 = arith.constant 8 : index
    %c1_246 = arith.constant 1 : index
    %c0_247 = arith.constant 0 : index
    %245 = vector.load %arg4[%c8_245, %c1_246, %c0_247] : memref<36x3x32xf32, #tpu.memory_space<vmem>>, vector<1x1x32xf32>
    %246 = vector.shape_cast %245 : vector<1x1x32xf32> to vector<1x32xf32>
    %247 = vector.broadcast %246 : vector<1x32xf32> to vector<32x32xf32>
    %248 = arith.mulf %244, %247 : vector<32x32xf32>
    %c8_248 = arith.constant 8 : index
    %c2_249 = arith.constant 2 : index
    %c0_250 = arith.constant 0 : index
    %249 = vector.load %arg4[%c8_248, %c2_249, %c0_250] : memref<36x3x32xf32, #tpu.memory_space<vmem>>, vector<1x1x32xf32>
    %250 = vector.shape_cast %249 : vector<1x1x32xf32> to vector<1x32xf32>
    %251 = vector.broadcast %250 : vector<1x32xf32> to vector<32x32xf32>
    %252 = arith.addf %248, %251 : vector<32x32xf32>
    %253 = vector.shape_cast %252 : vector<32x32xf32> to vector<2x16x32xf32>
    %c0_251 = arith.constant 0 : index
    %c16_252 = arith.constant 16 : index
    %c0_253 = arith.constant 0 : index
    %254 = vector.load %arg10[%c0_251, %c16_252, %c0_253] : memref<2x48x32xf32, #tpu.memory_space<vmem>>, vector<2x16x32xf32>
    tpu.vector_store %arg10[%c0_251, %c16_252, %c0_253], %253 {strides = array<i32>} : memref<2x48x32xf32, #tpu.memory_space<vmem>>, vector<2x16x32xf32>,
    %c0_254 = arith.constant 0 : index
    %c15_255 = arith.constant 15 : index
    %c0_256 = arith.constant 0 : index
    %255 = vector.load %arg10[%c0_254, %c15_255, %c0_256] : memref<2x48x32xf32, #tpu.memory_space<vmem>>, vector<2x16x32xf32>
    %c0_257 = arith.constant 0 : index
    %c16_258 = arith.constant 16 : index
    %c0_259 = arith.constant 0 : index
    %256 = vector.load %arg10[%c0_257, %c16_258, %c0_259] : memref<2x48x32xf32, #tpu.memory_space<vmem>>, vector<2x16x32xf32>
    %c0_260 = arith.constant 0 : index
    %c17_261 = arith.constant 17 : index
    %c0_262 = arith.constant 0 : index
    %257 = vector.load %arg10[%c0_260, %c17_261, %c0_262] : memref<2x48x32xf32, #tpu.memory_space<vmem>>, vector<2x16x32xf32>
    %c0_263 = arith.constant 0 : index
    %c18_264 = arith.constant 18 : index
    %c0_265 = arith.constant 0 : index
    %258 = vector.load %arg10[%c0_263, %c18_264, %c0_265] : memref<2x48x32xf32, #tpu.memory_space<vmem>>, vector<2x16x32xf32>
    %259 = tpu.concatenate %255, %256, %257, %258 in 2 : vector<2x16x32xf32>, vector<2x16x32xf32>, vector<2x16x32xf32>, vector<2x16x32xf32> -> vector<2x16x128xf32>
    %260 = vector.shape_cast %259 : vector<2x16x128xf32> to vector<32x128xf32>
    %261 = arith.truncf %260 : vector<32x128xf32> to vector<32x128xbf16>
    %c9 = arith.constant 9 : index
    %c0_266 = arith.constant 0 : index
    %c0_267 = arith.constant 0 : index
    %262 = vector.load %arg3[%c9, %c0_266, %c0_267] : memref<36x128x32xbf16, #tpu.memory_space<vmem>>, vector<1x128x32xbf16>
    %263 = vector.shape_cast %262 : vector<1x128x32xbf16> to vector<128x32xbf16>
    %cst_268 = arith.constant dense<0.000000e+00> : vector<32x32xf32>
    %264 = tpu.matmul %261, %263, %cst_268 {dimension_numbers = #tpu.dot_dimension_numbers<[1], [0], [0], [1], [0, 0, 1, 1], [], []>} : vector<32x128xbf16>, vector<128x32xbf16>, vector<32x32xf32> -> vector<32x32xf32>
    %c9_269 = arith.constant 9 : index
    %c0_270 = arith.constant 0 : index
    %c0_271 = arith.constant 0 : index
    %265 = vector.load %arg4[%c9_269, %c0_270, %c0_271] : memref<36x3x32xf32, #tpu.memory_space<vmem>>, vector<1x1x32xf32>
    %266 = vector.shape_cast %265 : vector<1x1x32xf32> to vector<1x32xf32>
    %267 = vector.broadcast %266 : vector<1x32xf32> to vector<32x32xf32>
    %268 = arith.addf %264, %267 : vector<32x32xf32>
    %cst_272 = arith.constant 0.000000e+00 : f32
    %269 = vector.broadcast %cst_272 : f32 to vector<32x32xf32>
    %270 = arith.maximumf %268, %269 : vector<32x32xf32>
    %c9_273 = arith.constant 9 : index
    %c1_274 = arith.constant 1 : index
    %c0_275 = arith.constant 0 : index
    %271 = vector.load %arg4[%c9_273, %c1_274, %c0_275] : memref<36x3x32xf32, #tpu.memory_space<vmem>>, vector<1x1x32xf32>
    %272 = vector.shape_cast %271 : vector<1x1x32xf32> to vector<1x32xf32>
    %273 = vector.broadcast %272 : vector<1x32xf32> to vector<32x32xf32>
    %274 = arith.mulf %270, %273 : vector<32x32xf32>
    %c9_276 = arith.constant 9 : index
    %c2_277 = arith.constant 2 : index
    %c0_278 = arith.constant 0 : index
    %275 = vector.load %arg4[%c9_276, %c2_277, %c0_278] : memref<36x3x32xf32, #tpu.memory_space<vmem>>, vector<1x1x32xf32>
    %276 = vector.shape_cast %275 : vector<1x1x32xf32> to vector<1x32xf32>
    %277 = vector.broadcast %276 : vector<1x32xf32> to vector<32x32xf32>
    %278 = arith.addf %274, %277 : vector<32x32xf32>
    %279 = arith.addf %278, %226 : vector<32x32xf32>
    %280 = arith.mulf %279, %6 : vector<32x32xf32>
    %281 = vector.shape_cast %280 : vector<32x32xf32> to vector<2x16x32xf32>
    %c0_279 = arith.constant 0 : index
    %c16_280 = arith.constant 16 : index
    %c0_281 = arith.constant 0 : index
    %282 = vector.load %arg10[%c0_279, %c16_280, %c0_281] : memref<2x48x32xf32, #tpu.memory_space<vmem>>, vector<2x16x32xf32>
    tpu.vector_store %arg10[%c0_279, %c16_280, %c0_281], %281 {strides = array<i32>} : memref<2x48x32xf32, #tpu.memory_space<vmem>>, vector<2x16x32xf32>,
    %c0_282 = arith.constant 0 : index
    %c13_283 = arith.constant 13 : index
    %c0_284 = arith.constant 0 : index
    %283 = vector.load %arg10[%c0_282, %c13_283, %c0_284] : memref<2x48x32xf32, #tpu.memory_space<vmem>>, vector<2x16x32xf32>
    %c0_285 = arith.constant 0 : index
    %c15_286 = arith.constant 15 : index
    %c0_287 = arith.constant 0 : index
    %284 = vector.load %arg10[%c0_285, %c15_286, %c0_287] : memref<2x48x32xf32, #tpu.memory_space<vmem>>, vector<2x16x32xf32>
    %c0_288 = arith.constant 0 : index
    %c17_289 = arith.constant 17 : index
    %c0_290 = arith.constant 0 : index
    %285 = vector.load %arg10[%c0_288, %c17_289, %c0_290] : memref<2x48x32xf32, #tpu.memory_space<vmem>>, vector<2x16x32xf32>
    %c0_291 = arith.constant 0 : index
    %c19_292 = arith.constant 19 : index
    %c0_293 = arith.constant 0 : index
    %286 = vector.load %arg10[%c0_291, %c19_292, %c0_293] : memref<2x48x32xf32, #tpu.memory_space<vmem>>, vector<2x16x32xf32>
    %287 = tpu.concatenate %283, %284, %285, %286 in 2 : vector<2x16x32xf32>, vector<2x16x32xf32>, vector<2x16x32xf32>, vector<2x16x32xf32> -> vector<2x16x128xf32>
    %288 = vector.shape_cast %287 : vector<2x16x128xf32> to vector<32x128xf32>
    %289 = arith.truncf %288 : vector<32x128xf32> to vector<32x128xbf16>
    %c10_294 = arith.constant 10 : index
    %c0_295 = arith.constant 0 : index
    %c0_296 = arith.constant 0 : index
    %290 = vector.load %arg3[%c10_294, %c0_295, %c0_296] : memref<36x128x32xbf16, #tpu.memory_space<vmem>>, vector<1x128x32xbf16>
    %291 = vector.shape_cast %290 : vector<1x128x32xbf16> to vector<128x32xbf16>
    %cst_297 = arith.constant dense<0.000000e+00> : vector<32x32xf32>
    %292 = tpu.matmul %289, %291, %cst_297 {dimension_numbers = #tpu.dot_dimension_numbers<[1], [0], [0], [1], [0, 0, 1, 1], [], []>} : vector<32x128xbf16>, vector<128x32xbf16>, vector<32x32xf32> -> vector<32x32xf32>
    %c10_298 = arith.constant 10 : index
    %c0_299 = arith.constant 0 : index
    %c0_300 = arith.constant 0 : index
    %293 = vector.load %arg4[%c10_298, %c0_299, %c0_300] : memref<36x3x32xf32, #tpu.memory_space<vmem>>, vector<1x1x32xf32>
    %294 = vector.shape_cast %293 : vector<1x1x32xf32> to vector<1x32xf32>
    %295 = vector.broadcast %294 : vector<1x32xf32> to vector<32x32xf32>
    %296 = arith.addf %292, %295 : vector<32x32xf32>
    %cst_301 = arith.constant 0.000000e+00 : f32
    %297 = vector.broadcast %cst_301 : f32 to vector<32x32xf32>
    %298 = arith.maximumf %296, %297 : vector<32x32xf32>
    %c10_302 = arith.constant 10 : index
    %c1_303 = arith.constant 1 : index
    %c0_304 = arith.constant 0 : index
    %299 = vector.load %arg4[%c10_302, %c1_303, %c0_304] : memref<36x3x32xf32, #tpu.memory_space<vmem>>, vector<1x1x32xf32>
    %300 = vector.shape_cast %299 : vector<1x1x32xf32> to vector<1x32xf32>
    %301 = vector.broadcast %300 : vector<1x32xf32> to vector<32x32xf32>
    %302 = arith.mulf %298, %301 : vector<32x32xf32>
    %c10_305 = arith.constant 10 : index
    %c2_306 = arith.constant 2 : index
    %c0_307 = arith.constant 0 : index
    %303 = vector.load %arg4[%c10_305, %c2_306, %c0_307] : memref<36x3x32xf32, #tpu.memory_space<vmem>>, vector<1x1x32xf32>
    %304 = vector.shape_cast %303 : vector<1x1x32xf32> to vector<1x32xf32>
    %305 = vector.broadcast %304 : vector<1x32xf32> to vector<32x32xf32>
    %306 = arith.addf %302, %305 : vector<32x32xf32>
    %307 = vector.shape_cast %306 : vector<32x32xf32> to vector<2x16x32xf32>
    %c0_308 = arith.constant 0 : index
    %c16_309 = arith.constant 16 : index
    %c0_310 = arith.constant 0 : index
    %308 = vector.load %arg10[%c0_308, %c16_309, %c0_310] : memref<2x48x32xf32, #tpu.memory_space<vmem>>, vector<2x16x32xf32>
    tpu.vector_store %arg10[%c0_308, %c16_309, %c0_310], %307 {strides = array<i32>} : memref<2x48x32xf32, #tpu.memory_space<vmem>>, vector<2x16x32xf32>,
    %c0_311 = arith.constant 0 : index
    %c13_312 = arith.constant 13 : index
    %c0_313 = arith.constant 0 : index
    %309 = vector.load %arg10[%c0_311, %c13_312, %c0_313] : memref<2x48x32xf32, #tpu.memory_space<vmem>>, vector<2x16x32xf32>
    %c0_314 = arith.constant 0 : index
    %c15_315 = arith.constant 15 : index
    %c0_316 = arith.constant 0 : index
    %310 = vector.load %arg10[%c0_314, %c15_315, %c0_316] : memref<2x48x32xf32, #tpu.memory_space<vmem>>, vector<2x16x32xf32>
    %c0_317 = arith.constant 0 : index
    %c17_318 = arith.constant 17 : index
    %c0_319 = arith.constant 0 : index
    %311 = vector.load %arg10[%c0_317, %c17_318, %c0_319] : memref<2x48x32xf32, #tpu.memory_space<vmem>>, vector<2x16x32xf32>
    %c0_320 = arith.constant 0 : index
    %c19_321 = arith.constant 19 : index
    %c0_322 = arith.constant 0 : index
    %312 = vector.load %arg10[%c0_320, %c19_321, %c0_322] : memref<2x48x32xf32, #tpu.memory_space<vmem>>, vector<2x16x32xf32>
    %313 = tpu.concatenate %309, %310, %311, %312 in 2 : vector<2x16x32xf32>, vector<2x16x32xf32>, vector<2x16x32xf32>, vector<2x16x32xf32> -> vector<2x16x128xf32>
    %314 = vector.shape_cast %313 : vector<2x16x128xf32> to vector<32x128xf32>
    %315 = arith.truncf %314 : vector<32x128xf32> to vector<32x128xbf16>
    %c11 = arith.constant 11 : index
    %c0_323 = arith.constant 0 : index
    %c0_324 = arith.constant 0 : index
    %316 = vector.load %arg3[%c11, %c0_323, %c0_324] : memref<36x128x32xbf16, #tpu.memory_space<vmem>>, vector<1x128x32xbf16>
    %317 = vector.shape_cast %316 : vector<1x128x32xbf16> to vector<128x32xbf16>
    %cst_325 = arith.constant dense<0.000000e+00> : vector<32x32xf32>
    %318 = tpu.matmul %315, %317, %cst_325 {dimension_numbers = #tpu.dot_dimension_numbers<[1], [0], [0], [1], [0, 0, 1, 1], [], []>} : vector<32x128xbf16>, vector<128x32xbf16>, vector<32x32xf32> -> vector<32x32xf32>
    %c11_326 = arith.constant 11 : index
    %c0_327 = arith.constant 0 : index
    %c0_328 = arith.constant 0 : index
    %319 = vector.load %arg4[%c11_326, %c0_327, %c0_328] : memref<36x3x32xf32, #tpu.memory_space<vmem>>, vector<1x1x32xf32>
    %320 = vector.shape_cast %319 : vector<1x1x32xf32> to vector<1x32xf32>
    %321 = vector.broadcast %320 : vector<1x32xf32> to vector<32x32xf32>
    %322 = arith.addf %318, %321 : vector<32x32xf32>
    %cst_329 = arith.constant 0.000000e+00 : f32
    %323 = vector.broadcast %cst_329 : f32 to vector<32x32xf32>
    %324 = arith.maximumf %322, %323 : vector<32x32xf32>
    %c11_330 = arith.constant 11 : index
    %c1_331 = arith.constant 1 : index
    %c0_332 = arith.constant 0 : index
    %325 = vector.load %arg4[%c11_330, %c1_331, %c0_332] : memref<36x3x32xf32, #tpu.memory_space<vmem>>, vector<1x1x32xf32>
    %326 = vector.shape_cast %325 : vector<1x1x32xf32> to vector<1x32xf32>
    %327 = vector.broadcast %326 : vector<1x32xf32> to vector<32x32xf32>
    %328 = arith.mulf %324, %327 : vector<32x32xf32>
    %c11_333 = arith.constant 11 : index
    %c2_334 = arith.constant 2 : index
    %c0_335 = arith.constant 0 : index
    %329 = vector.load %arg4[%c11_333, %c2_334, %c0_335] : memref<36x3x32xf32, #tpu.memory_space<vmem>>, vector<1x1x32xf32>
    %330 = vector.shape_cast %329 : vector<1x1x32xf32> to vector<1x32xf32>
    %331 = vector.broadcast %330 : vector<1x32xf32> to vector<32x32xf32>
    %332 = arith.addf %328, %331 : vector<32x32xf32>
    %333 = arith.addf %332, %280 : vector<32x32xf32>
    %334 = arith.mulf %333, %6 : vector<32x32xf32>
    %335 = vector.shape_cast %334 : vector<32x32xf32> to vector<2x16x32xf32>
    %c0_336 = arith.constant 0 : index
    %c16_337 = arith.constant 16 : index
    %c0_338 = arith.constant 0 : index
    %336 = vector.load %arg10[%c0_336, %c16_337, %c0_338] : memref<2x48x32xf32, #tpu.memory_space<vmem>>, vector<2x16x32xf32>
    tpu.vector_store %arg10[%c0_336, %c16_337, %c0_338], %335 {strides = array<i32>} : memref<2x48x32xf32, #tpu.memory_space<vmem>>, vector<2x16x32xf32>,
    %c0_339 = arith.constant 0 : index
    %c10_340 = arith.constant 10 : index
    %c0_341 = arith.constant 0 : index
    %337 = vector.load %arg10[%c0_339, %c10_340, %c0_341] : memref<2x48x32xf32, #tpu.memory_space<vmem>>, vector<2x16x32xf32>
    %c0_342 = arith.constant 0 : index
    %c14_343 = arith.constant 14 : index
    %c0_344 = arith.constant 0 : index
    %338 = vector.load %arg10[%c0_342, %c14_343, %c0_344] : memref<2x48x32xf32, #tpu.memory_space<vmem>>, vector<2x16x32xf32>
    %c0_345 = arith.constant 0 : index
    %c18_346 = arith.constant 18 : index
    %c0_347 = arith.constant 0 : index
    %339 = vector.load %arg10[%c0_345, %c18_346, %c0_347] : memref<2x48x32xf32, #tpu.memory_space<vmem>>, vector<2x16x32xf32>
    %c0_348 = arith.constant 0 : index
    %c22_349 = arith.constant 22 : index
    %c0_350 = arith.constant 0 : index
    %340 = vector.load %arg10[%c0_348, %c22_349, %c0_350] : memref<2x48x32xf32, #tpu.memory_space<vmem>>, vector<2x16x32xf32>
    %341 = tpu.concatenate %337, %338, %339, %340 in 2 : vector<2x16x32xf32>, vector<2x16x32xf32>, vector<2x16x32xf32>, vector<2x16x32xf32> -> vector<2x16x128xf32>
    %342 = vector.shape_cast %341 : vector<2x16x128xf32> to vector<32x128xf32>
    %343 = arith.truncf %342 : vector<32x128xf32> to vector<32x128xbf16>
    %c12_351 = arith.constant 12 : index
    %c0_352 = arith.constant 0 : index
    %c0_353 = arith.constant 0 : index
    %344 = vector.load %arg3[%c12_351, %c0_352, %c0_353] : memref<36x128x32xbf16, #tpu.memory_space<vmem>>, vector<1x128x32xbf16>
    %345 = vector.shape_cast %344 : vector<1x128x32xbf16> to vector<128x32xbf16>
    %cst_354 = arith.constant dense<0.000000e+00> : vector<32x32xf32>
    %346 = tpu.matmul %343, %345, %cst_354 {dimension_numbers = #tpu.dot_dimension_numbers<[1], [0], [0], [1], [0, 0, 1, 1], [], []>} : vector<32x128xbf16>, vector<128x32xbf16>, vector<32x32xf32> -> vector<32x32xf32>
    %c12_355 = arith.constant 12 : index
    %c0_356 = arith.constant 0 : index
    %c0_357 = arith.constant 0 : index
    %347 = vector.load %arg4[%c12_355, %c0_356, %c0_357] : memref<36x3x32xf32, #tpu.memory_space<vmem>>, vector<1x1x32xf32>
    %348 = vector.shape_cast %347 : vector<1x1x32xf32> to vector<1x32xf32>
    %349 = vector.broadcast %348 : vector<1x32xf32> to vector<32x32xf32>
    %350 = arith.addf %346, %349 : vector<32x32xf32>
    %cst_358 = arith.constant 0.000000e+00 : f32
    %351 = vector.broadcast %cst_358 : f32 to vector<32x32xf32>
    %352 = arith.maximumf %350, %351 : vector<32x32xf32>
    %c12_359 = arith.constant 12 : index
    %c1_360 = arith.constant 1 : index
    %c0_361 = arith.constant 0 : index
    %353 = vector.load %arg4[%c12_359, %c1_360, %c0_361] : memref<36x3x32xf32, #tpu.memory_space<vmem>>, vector<1x1x32xf32>
    %354 = vector.shape_cast %353 : vector<1x1x32xf32> to vector<1x32xf32>
    %355 = vector.broadcast %354 : vector<1x32xf32> to vector<32x32xf32>
    %356 = arith.mulf %352, %355 : vector<32x32xf32>
    %c12_362 = arith.constant 12 : index
    %c2_363 = arith.constant 2 : index
    %c0_364 = arith.constant 0 : index
    %357 = vector.load %arg4[%c12_362, %c2_363, %c0_364] : memref<36x3x32xf32, #tpu.memory_space<vmem>>, vector<1x1x32xf32>
    %358 = vector.shape_cast %357 : vector<1x1x32xf32> to vector<1x32xf32>
    %359 = vector.broadcast %358 : vector<1x32xf32> to vector<32x32xf32>
    %360 = arith.addf %356, %359 : vector<32x32xf32>
    %361 = vector.shape_cast %360 : vector<32x32xf32> to vector<2x16x32xf32>
    %c0_365 = arith.constant 0 : index
    %c16_366 = arith.constant 16 : index
    %c0_367 = arith.constant 0 : index
    %362 = vector.load %arg10[%c0_365, %c16_366, %c0_367] : memref<2x48x32xf32, #tpu.memory_space<vmem>>, vector<2x16x32xf32>
    tpu.vector_store %arg10[%c0_365, %c16_366, %c0_367], %361 {strides = array<i32>} : memref<2x48x32xf32, #tpu.memory_space<vmem>>, vector<2x16x32xf32>,
    %c0_368 = arith.constant 0 : index
    %c10_369 = arith.constant 10 : index
    %c0_370 = arith.constant 0 : index
    %363 = vector.load %arg10[%c0_368, %c10_369, %c0_370] : memref<2x48x32xf32, #tpu.memory_space<vmem>>, vector<2x16x32xf32>
    %c0_371 = arith.constant 0 : index
    %c14_372 = arith.constant 14 : index
    %c0_373 = arith.constant 0 : index
    %364 = vector.load %arg10[%c0_371, %c14_372, %c0_373] : memref<2x48x32xf32, #tpu.memory_space<vmem>>, vector<2x16x32xf32>
    %c0_374 = arith.constant 0 : index
    %c18_375 = arith.constant 18 : index
    %c0_376 = arith.constant 0 : index
    %365 = vector.load %arg10[%c0_374, %c18_375, %c0_376] : memref<2x48x32xf32, #tpu.memory_space<vmem>>, vector<2x16x32xf32>
    %c0_377 = arith.constant 0 : index
    %c22_378 = arith.constant 22 : index
    %c0_379 = arith.constant 0 : index
    %366 = vector.load %arg10[%c0_377, %c22_378, %c0_379] : memref<2x48x32xf32, #tpu.memory_space<vmem>>, vector<2x16x32xf32>
    %367 = tpu.concatenate %363, %364, %365, %366 in 2 : vector<2x16x32xf32>, vector<2x16x32xf32>, vector<2x16x32xf32>, vector<2x16x32xf32> -> vector<2x16x128xf32>
    %368 = vector.shape_cast %367 : vector<2x16x128xf32> to vector<32x128xf32>
    %369 = arith.truncf %368 : vector<32x128xf32> to vector<32x128xbf16>
    %c13_380 = arith.constant 13 : index
    %c0_381 = arith.constant 0 : index
    %c0_382 = arith.constant 0 : index
    %370 = vector.load %arg3[%c13_380, %c0_381, %c0_382] : memref<36x128x32xbf16, #tpu.memory_space<vmem>>, vector<1x128x32xbf16>
    %371 = vector.shape_cast %370 : vector<1x128x32xbf16> to vector<128x32xbf16>
    %cst_383 = arith.constant dense<0.000000e+00> : vector<32x32xf32>
    %372 = tpu.matmul %369, %371, %cst_383 {dimension_numbers = #tpu.dot_dimension_numbers<[1], [0], [0], [1], [0, 0, 1, 1], [], []>} : vector<32x128xbf16>, vector<128x32xbf16>, vector<32x32xf32> -> vector<32x32xf32>
    %c13_384 = arith.constant 13 : index
    %c0_385 = arith.constant 0 : index
    %c0_386 = arith.constant 0 : index
    %373 = vector.load %arg4[%c13_384, %c0_385, %c0_386] : memref<36x3x32xf32, #tpu.memory_space<vmem>>, vector<1x1x32xf32>
    %374 = vector.shape_cast %373 : vector<1x1x32xf32> to vector<1x32xf32>
    %375 = vector.broadcast %374 : vector<1x32xf32> to vector<32x32xf32>
    %376 = arith.addf %372, %375 : vector<32x32xf32>
    %cst_387 = arith.constant 0.000000e+00 : f32
    %377 = vector.broadcast %cst_387 : f32 to vector<32x32xf32>
    %378 = arith.maximumf %376, %377 : vector<32x32xf32>
    %c13_388 = arith.constant 13 : index
    %c1_389 = arith.constant 1 : index
    %c0_390 = arith.constant 0 : index
    %379 = vector.load %arg4[%c13_388, %c1_389, %c0_390] : memref<36x3x32xf32, #tpu.memory_space<vmem>>, vector<1x1x32xf32>
    %380 = vector.shape_cast %379 : vector<1x1x32xf32> to vector<1x32xf32>
    %381 = vector.broadcast %380 : vector<1x32xf32> to vector<32x32xf32>
    %382 = arith.mulf %378, %381 : vector<32x32xf32>
    %c13_391 = arith.constant 13 : index
    %c2_392 = arith.constant 2 : index
    %c0_393 = arith.constant 0 : index
    %383 = vector.load %arg4[%c13_391, %c2_392, %c0_393] : memref<36x3x32xf32, #tpu.memory_space<vmem>>, vector<1x1x32xf32>
    %384 = vector.shape_cast %383 : vector<1x1x32xf32> to vector<1x32xf32>
    %385 = vector.broadcast %384 : vector<1x32xf32> to vector<32x32xf32>
    %386 = arith.addf %382, %385 : vector<32x32xf32>
    %387 = arith.addf %386, %334 : vector<32x32xf32>
    %388 = arith.mulf %387, %6 : vector<32x32xf32>
    %389 = vector.shape_cast %388 : vector<32x32xf32> to vector<2x16x32xf32>
    %c0_394 = arith.constant 0 : index
    %c16_395 = arith.constant 16 : index
    %c0_396 = arith.constant 0 : index
    %390 = vector.load %arg10[%c0_394, %c16_395, %c0_396] : memref<2x48x32xf32, #tpu.memory_space<vmem>>, vector<2x16x32xf32>
    tpu.vector_store %arg10[%c0_394, %c16_395, %c0_396], %389 {strides = array<i32>} : memref<2x48x32xf32, #tpu.memory_space<vmem>>, vector<2x16x32xf32>,
    %c0_397 = arith.constant 0 : index
    %c4_398 = arith.constant 4 : index
    %c0_399 = arith.constant 0 : index
    %391 = vector.load %arg10[%c0_397, %c4_398, %c0_399] : memref<2x48x32xf32, #tpu.memory_space<vmem>>, vector<2x16x32xf32>
    %c0_400 = arith.constant 0 : index
    %c12_401 = arith.constant 12 : index
    %c0_402 = arith.constant 0 : index
    %392 = vector.load %arg10[%c0_400, %c12_401, %c0_402] : memref<2x48x32xf32, #tpu.memory_space<vmem>>, vector<2x16x32xf32>
    %c0_403 = arith.constant 0 : index
    %c20_404 = arith.constant 20 : index
    %c0_405 = arith.constant 0 : index
    %393 = vector.load %arg10[%c0_403, %c20_404, %c0_405] : memref<2x48x32xf32, #tpu.memory_space<vmem>>, vector<2x16x32xf32>
    %c0_406 = arith.constant 0 : index
    %c28_407 = arith.constant 28 : index
    %c0_408 = arith.constant 0 : index
    %394 = vector.load %arg10[%c0_406, %c28_407, %c0_408] : memref<2x48x32xf32, #tpu.memory_space<vmem>>, vector<2x16x32xf32>
    %395 = tpu.concatenate %391, %392, %393, %394 in 2 : vector<2x16x32xf32>, vector<2x16x32xf32>, vector<2x16x32xf32>, vector<2x16x32xf32> -> vector<2x16x128xf32>
    %396 = vector.shape_cast %395 : vector<2x16x128xf32> to vector<32x128xf32>
    %397 = arith.truncf %396 : vector<32x128xf32> to vector<32x128xbf16>
    %c14_409 = arith.constant 14 : index
    %c0_410 = arith.constant 0 : index
    %c0_411 = arith.constant 0 : index
    %398 = vector.load %arg3[%c14_409, %c0_410, %c0_411] : memref<36x128x32xbf16, #tpu.memory_space<vmem>>, vector<1x128x32xbf16>
    %399 = vector.shape_cast %398 : vector<1x128x32xbf16> to vector<128x32xbf16>
    %cst_412 = arith.constant dense<0.000000e+00> : vector<32x32xf32>
    %400 = tpu.matmul %397, %399, %cst_412 {dimension_numbers = #tpu.dot_dimension_numbers<[1], [0], [0], [1], [0, 0, 1, 1], [], []>} : vector<32x128xbf16>, vector<128x32xbf16>, vector<32x32xf32> -> vector<32x32xf32>
    %c14_413 = arith.constant 14 : index
    %c0_414 = arith.constant 0 : index
    %c0_415 = arith.constant 0 : index
    %401 = vector.load %arg4[%c14_413, %c0_414, %c0_415] : memref<36x3x32xf32, #tpu.memory_space<vmem>>, vector<1x1x32xf32>
    %402 = vector.shape_cast %401 : vector<1x1x32xf32> to vector<1x32xf32>
    %403 = vector.broadcast %402 : vector<1x32xf32> to vector<32x32xf32>
    %404 = arith.addf %400, %403 : vector<32x32xf32>
    %cst_416 = arith.constant 0.000000e+00 : f32
    %405 = vector.broadcast %cst_416 : f32 to vector<32x32xf32>
    %406 = arith.maximumf %404, %405 : vector<32x32xf32>
    %c14_417 = arith.constant 14 : index
    %c1_418 = arith.constant 1 : index
    %c0_419 = arith.constant 0 : index
    %407 = vector.load %arg4[%c14_417, %c1_418, %c0_419] : memref<36x3x32xf32, #tpu.memory_space<vmem>>, vector<1x1x32xf32>
    %408 = vector.shape_cast %407 : vector<1x1x32xf32> to vector<1x32xf32>
    %409 = vector.broadcast %408 : vector<1x32xf32> to vector<32x32xf32>
    %410 = arith.mulf %406, %409 : vector<32x32xf32>
    %c14_420 = arith.constant 14 : index
    %c2_421 = arith.constant 2 : index
    %c0_422 = arith.constant 0 : index
    %411 = vector.load %arg4[%c14_420, %c2_421, %c0_422] : memref<36x3x32xf32, #tpu.memory_space<vmem>>, vector<1x1x32xf32>
    %412 = vector.shape_cast %411 : vector<1x1x32xf32> to vector<1x32xf32>
    %413 = vector.broadcast %412 : vector<1x32xf32> to vector<32x32xf32>
    %414 = arith.addf %410, %413 : vector<32x32xf32>
    %415 = vector.shape_cast %414 : vector<32x32xf32> to vector<2x16x32xf32>
    %c0_423 = arith.constant 0 : index
    %c16_424 = arith.constant 16 : index
    %c0_425 = arith.constant 0 : index
    %416 = vector.load %arg10[%c0_423, %c16_424, %c0_425] : memref<2x48x32xf32, #tpu.memory_space<vmem>>, vector<2x16x32xf32>
    tpu.vector_store %arg10[%c0_423, %c16_424, %c0_425], %415 {strides = array<i32>} : memref<2x48x32xf32, #tpu.memory_space<vmem>>, vector<2x16x32xf32>,
    %c0_426 = arith.constant 0 : index
    %c4_427 = arith.constant 4 : index
    %c0_428 = arith.constant 0 : index
    %417 = vector.load %arg10[%c0_426, %c4_427, %c0_428] : memref<2x48x32xf32, #tpu.memory_space<vmem>>, vector<2x16x32xf32>
    %c0_429 = arith.constant 0 : index
    %c12_430 = arith.constant 12 : index
    %c0_431 = arith.constant 0 : index
    %418 = vector.load %arg10[%c0_429, %c12_430, %c0_431] : memref<2x48x32xf32, #tpu.memory_space<vmem>>, vector<2x16x32xf32>
    %c0_432 = arith.constant 0 : index
    %c20_433 = arith.constant 20 : index
    %c0_434 = arith.constant 0 : index
    %419 = vector.load %arg10[%c0_432, %c20_433, %c0_434] : memref<2x48x32xf32, #tpu.memory_space<vmem>>, vector<2x16x32xf32>
    %c0_435 = arith.constant 0 : index
    %c28_436 = arith.constant 28 : index
    %c0_437 = arith.constant 0 : index
    %420 = vector.load %arg10[%c0_435, %c28_436, %c0_437] : memref<2x48x32xf32, #tpu.memory_space<vmem>>, vector<2x16x32xf32>
    %421 = tpu.concatenate %417, %418, %419, %420 in 2 : vector<2x16x32xf32>, vector<2x16x32xf32>, vector<2x16x32xf32>, vector<2x16x32xf32> -> vector<2x16x128xf32>
    %422 = vector.shape_cast %421 : vector<2x16x128xf32> to vector<32x128xf32>
    %423 = arith.truncf %422 : vector<32x128xf32> to vector<32x128xbf16>
    %c15_438 = arith.constant 15 : index
    %c0_439 = arith.constant 0 : index
    %c0_440 = arith.constant 0 : index
    %424 = vector.load %arg3[%c15_438, %c0_439, %c0_440] : memref<36x128x32xbf16, #tpu.memory_space<vmem>>, vector<1x128x32xbf16>
    %425 = vector.shape_cast %424 : vector<1x128x32xbf16> to vector<128x32xbf16>
    %cst_441 = arith.constant dense<0.000000e+00> : vector<32x32xf32>
    %426 = tpu.matmul %423, %425, %cst_441 {dimension_numbers = #tpu.dot_dimension_numbers<[1], [0], [0], [1], [0, 0, 1, 1], [], []>} : vector<32x128xbf16>, vector<128x32xbf16>, vector<32x32xf32> -> vector<32x32xf32>
    %c15_442 = arith.constant 15 : index
    %c0_443 = arith.constant 0 : index
    %c0_444 = arith.constant 0 : index
    %427 = vector.load %arg4[%c15_442, %c0_443, %c0_444] : memref<36x3x32xf32, #tpu.memory_space<vmem>>, vector<1x1x32xf32>
    %428 = vector.shape_cast %427 : vector<1x1x32xf32> to vector<1x32xf32>
    %429 = vector.broadcast %428 : vector<1x32xf32> to vector<32x32xf32>
    %430 = arith.addf %426, %429 : vector<32x32xf32>
    %cst_445 = arith.constant 0.000000e+00 : f32
    %431 = vector.broadcast %cst_445 : f32 to vector<32x32xf32>
    %432 = arith.maximumf %430, %431 : vector<32x32xf32>
    %c15_446 = arith.constant 15 : index
    %c1_447 = arith.constant 1 : index
    %c0_448 = arith.constant 0 : index
    %433 = vector.load %arg4[%c15_446, %c1_447, %c0_448] : memref<36x3x32xf32, #tpu.memory_space<vmem>>, vector<1x1x32xf32>
    %434 = vector.shape_cast %433 : vector<1x1x32xf32> to vector<1x32xf32>
    %435 = vector.broadcast %434 : vector<1x32xf32> to vector<32x32xf32>
    %436 = arith.mulf %432, %435 : vector<32x32xf32>
    %c15_449 = arith.constant 15 : index
    %c2_450 = arith.constant 2 : index
    %c0_451 = arith.constant 0 : index
    %437 = vector.load %arg4[%c15_449, %c2_450, %c0_451] : memref<36x3x32xf32, #tpu.memory_space<vmem>>, vector<1x1x32xf32>
    %438 = vector.shape_cast %437 : vector<1x1x32xf32> to vector<1x32xf32>
    %439 = vector.broadcast %438 : vector<1x32xf32> to vector<32x32xf32>
    %440 = arith.addf %436, %439 : vector<32x32xf32>
    %441 = arith.addf %440, %388 : vector<32x32xf32>
    %442 = arith.mulf %441, %6 : vector<32x32xf32>
    %443 = vector.shape_cast %442 : vector<32x32xf32> to vector<2x16x32xf32>
    %c0_452 = arith.constant 0 : index
    %c16_453 = arith.constant 16 : index
    %c0_454 = arith.constant 0 : index
    %444 = vector.load %arg10[%c0_452, %c16_453, %c0_454] : memref<2x48x32xf32, #tpu.memory_space<vmem>>, vector<2x16x32xf32>
    tpu.vector_store %arg10[%c0_452, %c16_453, %c0_454], %443 {strides = array<i32>} : memref<2x48x32xf32, #tpu.memory_space<vmem>>, vector<2x16x32xf32>,
    %c0_455 = arith.constant 0 : index
    %c15_456 = arith.constant 15 : index
    %c0_457 = arith.constant 0 : index
    %445 = vector.load %arg10[%c0_455, %c15_456, %c0_457] : memref<2x48x32xf32, #tpu.memory_space<vmem>>, vector<2x16x32xf32>
    %c0_458 = arith.constant 0 : index
    %c16_459 = arith.constant 16 : index
    %c0_460 = arith.constant 0 : index
    %446 = vector.load %arg10[%c0_458, %c16_459, %c0_460] : memref<2x48x32xf32, #tpu.memory_space<vmem>>, vector<2x16x32xf32>
    %c0_461 = arith.constant 0 : index
    %c17_462 = arith.constant 17 : index
    %c0_463 = arith.constant 0 : index
    %447 = vector.load %arg10[%c0_461, %c17_462, %c0_463] : memref<2x48x32xf32, #tpu.memory_space<vmem>>, vector<2x16x32xf32>
    %c0_464 = arith.constant 0 : index
    %c18_465 = arith.constant 18 : index
    %c0_466 = arith.constant 0 : index
    %448 = vector.load %arg10[%c0_464, %c18_465, %c0_466] : memref<2x48x32xf32, #tpu.memory_space<vmem>>, vector<2x16x32xf32>
    %449 = tpu.concatenate %445, %446, %447, %448 in 2 : vector<2x16x32xf32>, vector<2x16x32xf32>, vector<2x16x32xf32>, vector<2x16x32xf32> -> vector<2x16x128xf32>
    %450 = vector.shape_cast %449 : vector<2x16x128xf32> to vector<32x128xf32>
    %451 = arith.truncf %450 : vector<32x128xf32> to vector<32x128xbf16>
    %c16_467 = arith.constant 16 : index
    %c0_468 = arith.constant 0 : index
    %c0_469 = arith.constant 0 : index
    %452 = vector.load %arg3[%c16_467, %c0_468, %c0_469] : memref<36x128x32xbf16, #tpu.memory_space<vmem>>, vector<1x128x32xbf16>
    %453 = vector.shape_cast %452 : vector<1x128x32xbf16> to vector<128x32xbf16>
    %cst_470 = arith.constant dense<0.000000e+00> : vector<32x32xf32>
    %454 = tpu.matmul %451, %453, %cst_470 {dimension_numbers = #tpu.dot_dimension_numbers<[1], [0], [0], [1], [0, 0, 1, 1], [], []>} : vector<32x128xbf16>, vector<128x32xbf16>, vector<32x32xf32> -> vector<32x32xf32>
    %c16_471 = arith.constant 16 : index
    %c0_472 = arith.constant 0 : index
    %c0_473 = arith.constant 0 : index
    %455 = vector.load %arg4[%c16_471, %c0_472, %c0_473] : memref<36x3x32xf32, #tpu.memory_space<vmem>>, vector<1x1x32xf32>
    %456 = vector.shape_cast %455 : vector<1x1x32xf32> to vector<1x32xf32>
    %457 = vector.broadcast %456 : vector<1x32xf32> to vector<32x32xf32>
    %458 = arith.addf %454, %457 : vector<32x32xf32>
    %cst_474 = arith.constant 0.000000e+00 : f32
    %459 = vector.broadcast %cst_474 : f32 to vector<32x32xf32>
    %460 = arith.maximumf %458, %459 : vector<32x32xf32>
    %c16_475 = arith.constant 16 : index
    %c1_476 = arith.constant 1 : index
    %c0_477 = arith.constant 0 : index
    %461 = vector.load %arg4[%c16_475, %c1_476, %c0_477] : memref<36x3x32xf32, #tpu.memory_space<vmem>>, vector<1x1x32xf32>
    %462 = vector.shape_cast %461 : vector<1x1x32xf32> to vector<1x32xf32>
    %463 = vector.broadcast %462 : vector<1x32xf32> to vector<32x32xf32>
    %464 = arith.mulf %460, %463 : vector<32x32xf32>
    %c16_478 = arith.constant 16 : index
    %c2_479 = arith.constant 2 : index
    %c0_480 = arith.constant 0 : index
    %465 = vector.load %arg4[%c16_478, %c2_479, %c0_480] : memref<36x3x32xf32, #tpu.memory_space<vmem>>, vector<1x1x32xf32>
    %466 = vector.shape_cast %465 : vector<1x1x32xf32> to vector<1x32xf32>
    %467 = vector.broadcast %466 : vector<1x32xf32> to vector<32x32xf32>
    %468 = arith.addf %464, %467 : vector<32x32xf32>
    %469 = vector.shape_cast %468 : vector<32x32xf32> to vector<2x16x32xf32>
    %c0_481 = arith.constant 0 : index
    %c16_482 = arith.constant 16 : index
    %c0_483 = arith.constant 0 : index
    %470 = vector.load %arg10[%c0_481, %c16_482, %c0_483] : memref<2x48x32xf32, #tpu.memory_space<vmem>>, vector<2x16x32xf32>
    tpu.vector_store %arg10[%c0_481, %c16_482, %c0_483], %469 {strides = array<i32>} : memref<2x48x32xf32, #tpu.memory_space<vmem>>, vector<2x16x32xf32>,
    %c0_484 = arith.constant 0 : index
    %c15_485 = arith.constant 15 : index
    %c0_486 = arith.constant 0 : index
    %471 = vector.load %arg10[%c0_484, %c15_485, %c0_486] : memref<2x48x32xf32, #tpu.memory_space<vmem>>, vector<2x16x32xf32>
    %c0_487 = arith.constant 0 : index
    %c16_488 = arith.constant 16 : index
    %c0_489 = arith.constant 0 : index
    %472 = vector.load %arg10[%c0_487, %c16_488, %c0_489] : memref<2x48x32xf32, #tpu.memory_space<vmem>>, vector<2x16x32xf32>
    %c0_490 = arith.constant 0 : index
    %c17_491 = arith.constant 17 : index
    %c0_492 = arith.constant 0 : index
    %473 = vector.load %arg10[%c0_490, %c17_491, %c0_492] : memref<2x48x32xf32, #tpu.memory_space<vmem>>, vector<2x16x32xf32>
    %c0_493 = arith.constant 0 : index
    %c18_494 = arith.constant 18 : index
    %c0_495 = arith.constant 0 : index
    %474 = vector.load %arg10[%c0_493, %c18_494, %c0_495] : memref<2x48x32xf32, #tpu.memory_space<vmem>>, vector<2x16x32xf32>
    %475 = tpu.concatenate %471, %472, %473, %474 in 2 : vector<2x16x32xf32>, vector<2x16x32xf32>, vector<2x16x32xf32>, vector<2x16x32xf32> -> vector<2x16x128xf32>
    %476 = vector.shape_cast %475 : vector<2x16x128xf32> to vector<32x128xf32>
    %477 = arith.truncf %476 : vector<32x128xf32> to vector<32x128xbf16>
    %c17_496 = arith.constant 17 : index
    %c0_497 = arith.constant 0 : index
    %c0_498 = arith.constant 0 : index
    %478 = vector.load %arg3[%c17_496, %c0_497, %c0_498] : memref<36x128x32xbf16, #tpu.memory_space<vmem>>, vector<1x128x32xbf16>
    %479 = vector.shape_cast %478 : vector<1x128x32xbf16> to vector<128x32xbf16>
    %cst_499 = arith.constant dense<0.000000e+00> : vector<32x32xf32>
    %480 = tpu.matmul %477, %479, %cst_499 {dimension_numbers = #tpu.dot_dimension_numbers<[1], [0], [0], [1], [0, 0, 1, 1], [], []>} : vector<32x128xbf16>, vector<128x32xbf16>, vector<32x32xf32> -> vector<32x32xf32>
    %c17_500 = arith.constant 17 : index
    %c0_501 = arith.constant 0 : index
    %c0_502 = arith.constant 0 : index
    %481 = vector.load %arg4[%c17_500, %c0_501, %c0_502] : memref<36x3x32xf32, #tpu.memory_space<vmem>>, vector<1x1x32xf32>
    %482 = vector.shape_cast %481 : vector<1x1x32xf32> to vector<1x32xf32>
    %483 = vector.broadcast %482 : vector<1x32xf32> to vector<32x32xf32>
    %484 = arith.addf %480, %483 : vector<32x32xf32>
    %cst_503 = arith.constant 0.000000e+00 : f32
    %485 = vector.broadcast %cst_503 : f32 to vector<32x32xf32>
    %486 = arith.maximumf %484, %485 : vector<32x32xf32>
    %c17_504 = arith.constant 17 : index
    %c1_505 = arith.constant 1 : index
    %c0_506 = arith.constant 0 : index
    %487 = vector.load %arg4[%c17_504, %c1_505, %c0_506] : memref<36x3x32xf32, #tpu.memory_space<vmem>>, vector<1x1x32xf32>
    %488 = vector.shape_cast %487 : vector<1x1x32xf32> to vector<1x32xf32>
    %489 = vector.broadcast %488 : vector<1x32xf32> to vector<32x32xf32>
    %490 = arith.mulf %486, %489 : vector<32x32xf32>
    %c17_507 = arith.constant 17 : index
    %c2_508 = arith.constant 2 : index
    %c0_509 = arith.constant 0 : index
    %491 = vector.load %arg4[%c17_507, %c2_508, %c0_509] : memref<36x3x32xf32, #tpu.memory_space<vmem>>, vector<1x1x32xf32>
    %492 = vector.shape_cast %491 : vector<1x1x32xf32> to vector<1x32xf32>
    %493 = vector.broadcast %492 : vector<1x32xf32> to vector<32x32xf32>
    %494 = arith.addf %490, %493 : vector<32x32xf32>
    %495 = arith.addf %494, %442 : vector<32x32xf32>
    %496 = arith.mulf %495, %6 : vector<32x32xf32>
    %497 = vector.shape_cast %496 : vector<32x32xf32> to vector<2x16x32xf32>
    %c0_510 = arith.constant 0 : index
    %c16_511 = arith.constant 16 : index
    %c0_512 = arith.constant 0 : index
    %498 = vector.load %arg10[%c0_510, %c16_511, %c0_512] : memref<2x48x32xf32, #tpu.memory_space<vmem>>, vector<2x16x32xf32>
    tpu.vector_store %arg10[%c0_510, %c16_511, %c0_512], %497 {strides = array<i32>} : memref<2x48x32xf32, #tpu.memory_space<vmem>>, vector<2x16x32xf32>,
    %c0_513 = arith.constant 0 : index
    %c13_514 = arith.constant 13 : index
    %c0_515 = arith.constant 0 : index
    %499 = vector.load %arg10[%c0_513, %c13_514, %c0_515] : memref<2x48x32xf32, #tpu.memory_space<vmem>>, vector<2x16x32xf32>
    %c0_516 = arith.constant 0 : index
    %c15_517 = arith.constant 15 : index
    %c0_518 = arith.constant 0 : index
    %500 = vector.load %arg10[%c0_516, %c15_517, %c0_518] : memref<2x48x32xf32, #tpu.memory_space<vmem>>, vector<2x16x32xf32>
    %c0_519 = arith.constant 0 : index
    %c17_520 = arith.constant 17 : index
    %c0_521 = arith.constant 0 : index
    %501 = vector.load %arg10[%c0_519, %c17_520, %c0_521] : memref<2x48x32xf32, #tpu.memory_space<vmem>>, vector<2x16x32xf32>
    %c0_522 = arith.constant 0 : index
    %c19_523 = arith.constant 19 : index
    %c0_524 = arith.constant 0 : index
    %502 = vector.load %arg10[%c0_522, %c19_523, %c0_524] : memref<2x48x32xf32, #tpu.memory_space<vmem>>, vector<2x16x32xf32>
    %503 = tpu.concatenate %499, %500, %501, %502 in 2 : vector<2x16x32xf32>, vector<2x16x32xf32>, vector<2x16x32xf32>, vector<2x16x32xf32> -> vector<2x16x128xf32>
    %504 = vector.shape_cast %503 : vector<2x16x128xf32> to vector<32x128xf32>
    %505 = arith.truncf %504 : vector<32x128xf32> to vector<32x128xbf16>
    %c18_525 = arith.constant 18 : index
    %c0_526 = arith.constant 0 : index
    %c0_527 = arith.constant 0 : index
    %506 = vector.load %arg3[%c18_525, %c0_526, %c0_527] : memref<36x128x32xbf16, #tpu.memory_space<vmem>>, vector<1x128x32xbf16>
    %507 = vector.shape_cast %506 : vector<1x128x32xbf16> to vector<128x32xbf16>
    %cst_528 = arith.constant dense<0.000000e+00> : vector<32x32xf32>
    %508 = tpu.matmul %505, %507, %cst_528 {dimension_numbers = #tpu.dot_dimension_numbers<[1], [0], [0], [1], [0, 0, 1, 1], [], []>} : vector<32x128xbf16>, vector<128x32xbf16>, vector<32x32xf32> -> vector<32x32xf32>
    %c18_529 = arith.constant 18 : index
    %c0_530 = arith.constant 0 : index
    %c0_531 = arith.constant 0 : index
    %509 = vector.load %arg4[%c18_529, %c0_530, %c0_531] : memref<36x3x32xf32, #tpu.memory_space<vmem>>, vector<1x1x32xf32>
    %510 = vector.shape_cast %509 : vector<1x1x32xf32> to vector<1x32xf32>
    %511 = vector.broadcast %510 : vector<1x32xf32> to vector<32x32xf32>
    %512 = arith.addf %508, %511 : vector<32x32xf32>
    %cst_532 = arith.constant 0.000000e+00 : f32
    %513 = vector.broadcast %cst_532 : f32 to vector<32x32xf32>
    %514 = arith.maximumf %512, %513 : vector<32x32xf32>
    %c18_533 = arith.constant 18 : index
    %c1_534 = arith.constant 1 : index
    %c0_535 = arith.constant 0 : index
    %515 = vector.load %arg4[%c18_533, %c1_534, %c0_535] : memref<36x3x32xf32, #tpu.memory_space<vmem>>, vector<1x1x32xf32>
    %516 = vector.shape_cast %515 : vector<1x1x32xf32> to vector<1x32xf32>
    %517 = vector.broadcast %516 : vector<1x32xf32> to vector<32x32xf32>
    %518 = arith.mulf %514, %517 : vector<32x32xf32>
    %c18_536 = arith.constant 18 : index
    %c2_537 = arith.constant 2 : index
    %c0_538 = arith.constant 0 : index
    %519 = vector.load %arg4[%c18_536, %c2_537, %c0_538] : memref<36x3x32xf32, #tpu.memory_space<vmem>>, vector<1x1x32xf32>
    %520 = vector.shape_cast %519 : vector<1x1x32xf32> to vector<1x32xf32>
    %521 = vector.broadcast %520 : vector<1x32xf32> to vector<32x32xf32>
    %522 = arith.addf %518, %521 : vector<32x32xf32>
    %523 = vector.shape_cast %522 : vector<32x32xf32> to vector<2x16x32xf32>
    %c0_539 = arith.constant 0 : index
    %c16_540 = arith.constant 16 : index
    %c0_541 = arith.constant 0 : index
    %524 = vector.load %arg10[%c0_539, %c16_540, %c0_541] : memref<2x48x32xf32, #tpu.memory_space<vmem>>, vector<2x16x32xf32>
    tpu.vector_store %arg10[%c0_539, %c16_540, %c0_541], %523 {strides = array<i32>} : memref<2x48x32xf32, #tpu.memory_space<vmem>>, vector<2x16x32xf32>,
    %c0_542 = arith.constant 0 : index
    %c13_543 = arith.constant 13 : index
    %c0_544 = arith.constant 0 : index
    %525 = vector.load %arg10[%c0_542, %c13_543, %c0_544] : memref<2x48x32xf32, #tpu.memory_space<vmem>>, vector<2x16x32xf32>
    %c0_545 = arith.constant 0 : index
    %c15_546 = arith.constant 15 : index
    %c0_547 = arith.constant 0 : index
    %526 = vector.load %arg10[%c0_545, %c15_546, %c0_547] : memref<2x48x32xf32, #tpu.memory_space<vmem>>, vector<2x16x32xf32>
    %c0_548 = arith.constant 0 : index
    %c17_549 = arith.constant 17 : index
    %c0_550 = arith.constant 0 : index
    %527 = vector.load %arg10[%c0_548, %c17_549, %c0_550] : memref<2x48x32xf32, #tpu.memory_space<vmem>>, vector<2x16x32xf32>
    %c0_551 = arith.constant 0 : index
    %c19_552 = arith.constant 19 : index
    %c0_553 = arith.constant 0 : index
    %528 = vector.load %arg10[%c0_551, %c19_552, %c0_553] : memref<2x48x32xf32, #tpu.memory_space<vmem>>, vector<2x16x32xf32>
    %529 = tpu.concatenate %525, %526, %527, %528 in 2 : vector<2x16x32xf32>, vector<2x16x32xf32>, vector<2x16x32xf32>, vector<2x16x32xf32> -> vector<2x16x128xf32>
    %530 = vector.shape_cast %529 : vector<2x16x128xf32> to vector<32x128xf32>
    %531 = arith.truncf %530 : vector<32x128xf32> to vector<32x128xbf16>
    %c19_554 = arith.constant 19 : index
    %c0_555 = arith.constant 0 : index
    %c0_556 = arith.constant 0 : index
    %532 = vector.load %arg3[%c19_554, %c0_555, %c0_556] : memref<36x128x32xbf16, #tpu.memory_space<vmem>>, vector<1x128x32xbf16>
    %533 = vector.shape_cast %532 : vector<1x128x32xbf16> to vector<128x32xbf16>
    %cst_557 = arith.constant dense<0.000000e+00> : vector<32x32xf32>
    %534 = tpu.matmul %531, %533, %cst_557 {dimension_numbers = #tpu.dot_dimension_numbers<[1], [0], [0], [1], [0, 0, 1, 1], [], []>} : vector<32x128xbf16>, vector<128x32xbf16>, vector<32x32xf32> -> vector<32x32xf32>
    %c19_558 = arith.constant 19 : index
    %c0_559 = arith.constant 0 : index
    %c0_560 = arith.constant 0 : index
    %535 = vector.load %arg4[%c19_558, %c0_559, %c0_560] : memref<36x3x32xf32, #tpu.memory_space<vmem>>, vector<1x1x32xf32>
    %536 = vector.shape_cast %535 : vector<1x1x32xf32> to vector<1x32xf32>
    %537 = vector.broadcast %536 : vector<1x32xf32> to vector<32x32xf32>
    %538 = arith.addf %534, %537 : vector<32x32xf32>
    %cst_561 = arith.constant 0.000000e+00 : f32
    %539 = vector.broadcast %cst_561 : f32 to vector<32x32xf32>
    %540 = arith.maximumf %538, %539 : vector<32x32xf32>
    %c19_562 = arith.constant 19 : index
    %c1_563 = arith.constant 1 : index
    %c0_564 = arith.constant 0 : index
    %541 = vector.load %arg4[%c19_562, %c1_563, %c0_564] : memref<36x3x32xf32, #tpu.memory_space<vmem>>, vector<1x1x32xf32>
    %542 = vector.shape_cast %541 : vector<1x1x32xf32> to vector<1x32xf32>
    %543 = vector.broadcast %542 : vector<1x32xf32> to vector<32x32xf32>
    %544 = arith.mulf %540, %543 : vector<32x32xf32>
    %c19_565 = arith.constant 19 : index
    %c2_566 = arith.constant 2 : index
    %c0_567 = arith.constant 0 : index
    %545 = vector.load %arg4[%c19_565, %c2_566, %c0_567] : memref<36x3x32xf32, #tpu.memory_space<vmem>>, vector<1x1x32xf32>
    %546 = vector.shape_cast %545 : vector<1x1x32xf32> to vector<1x32xf32>
    %547 = vector.broadcast %546 : vector<1x32xf32> to vector<32x32xf32>
    %548 = arith.addf %544, %547 : vector<32x32xf32>
    %549 = arith.addf %548, %496 : vector<32x32xf32>
    %550 = arith.mulf %549, %6 : vector<32x32xf32>
    %551 = vector.shape_cast %550 : vector<32x32xf32> to vector<2x16x32xf32>
    %c0_568 = arith.constant 0 : index
    %c16_569 = arith.constant 16 : index
    %c0_570 = arith.constant 0 : index
    %552 = vector.load %arg10[%c0_568, %c16_569, %c0_570] : memref<2x48x32xf32, #tpu.memory_space<vmem>>, vector<2x16x32xf32>
    tpu.vector_store %arg10[%c0_568, %c16_569, %c0_570], %551 {strides = array<i32>} : memref<2x48x32xf32, #tpu.memory_space<vmem>>, vector<2x16x32xf32>,
    %c0_571 = arith.constant 0 : index
    %c10_572 = arith.constant 10 : index
    %c0_573 = arith.constant 0 : index
    %553 = vector.load %arg10[%c0_571, %c10_572, %c0_573] : memref<2x48x32xf32, #tpu.memory_space<vmem>>, vector<2x16x32xf32>
    %c0_574 = arith.constant 0 : index
    %c14_575 = arith.constant 14 : index
    %c0_576 = arith.constant 0 : index
    %554 = vector.load %arg10[%c0_574, %c14_575, %c0_576] : memref<2x48x32xf32, #tpu.memory_space<vmem>>, vector<2x16x32xf32>
    %c0_577 = arith.constant 0 : index
    %c18_578 = arith.constant 18 : index
    %c0_579 = arith.constant 0 : index
    %555 = vector.load %arg10[%c0_577, %c18_578, %c0_579] : memref<2x48x32xf32, #tpu.memory_space<vmem>>, vector<2x16x32xf32>
    %c0_580 = arith.constant 0 : index
    %c22_581 = arith.constant 22 : index
    %c0_582 = arith.constant 0 : index
    %556 = vector.load %arg10[%c0_580, %c22_581, %c0_582] : memref<2x48x32xf32, #tpu.memory_space<vmem>>, vector<2x16x32xf32>
    %557 = tpu.concatenate %553, %554, %555, %556 in 2 : vector<2x16x32xf32>, vector<2x16x32xf32>, vector<2x16x32xf32>, vector<2x16x32xf32> -> vector<2x16x128xf32>
    %558 = vector.shape_cast %557 : vector<2x16x128xf32> to vector<32x128xf32>
    %559 = arith.truncf %558 : vector<32x128xf32> to vector<32x128xbf16>
    %c20_583 = arith.constant 20 : index
    %c0_584 = arith.constant 0 : index
    %c0_585 = arith.constant 0 : index
    %560 = vector.load %arg3[%c20_583, %c0_584, %c0_585] : memref<36x128x32xbf16, #tpu.memory_space<vmem>>, vector<1x128x32xbf16>
    %561 = vector.shape_cast %560 : vector<1x128x32xbf16> to vector<128x32xbf16>
    %cst_586 = arith.constant dense<0.000000e+00> : vector<32x32xf32>
    %562 = tpu.matmul %559, %561, %cst_586 {dimension_numbers = #tpu.dot_dimension_numbers<[1], [0], [0], [1], [0, 0, 1, 1], [], []>} : vector<32x128xbf16>, vector<128x32xbf16>, vector<32x32xf32> -> vector<32x32xf32>
    %c20_587 = arith.constant 20 : index
    %c0_588 = arith.constant 0 : index
    %c0_589 = arith.constant 0 : index
    %563 = vector.load %arg4[%c20_587, %c0_588, %c0_589] : memref<36x3x32xf32, #tpu.memory_space<vmem>>, vector<1x1x32xf32>
    %564 = vector.shape_cast %563 : vector<1x1x32xf32> to vector<1x32xf32>
    %565 = vector.broadcast %564 : vector<1x32xf32> to vector<32x32xf32>
    %566 = arith.addf %562, %565 : vector<32x32xf32>
    %cst_590 = arith.constant 0.000000e+00 : f32
    %567 = vector.broadcast %cst_590 : f32 to vector<32x32xf32>
    %568 = arith.maximumf %566, %567 : vector<32x32xf32>
    %c20_591 = arith.constant 20 : index
    %c1_592 = arith.constant 1 : index
    %c0_593 = arith.constant 0 : index
    %569 = vector.load %arg4[%c20_591, %c1_592, %c0_593] : memref<36x3x32xf32, #tpu.memory_space<vmem>>, vector<1x1x32xf32>
    %570 = vector.shape_cast %569 : vector<1x1x32xf32> to vector<1x32xf32>
    %571 = vector.broadcast %570 : vector<1x32xf32> to vector<32x32xf32>
    %572 = arith.mulf %568, %571 : vector<32x32xf32>
    %c20_594 = arith.constant 20 : index
    %c2_595 = arith.constant 2 : index
    %c0_596 = arith.constant 0 : index
    %573 = vector.load %arg4[%c20_594, %c2_595, %c0_596] : memref<36x3x32xf32, #tpu.memory_space<vmem>>, vector<1x1x32xf32>
    %574 = vector.shape_cast %573 : vector<1x1x32xf32> to vector<1x32xf32>
    %575 = vector.broadcast %574 : vector<1x32xf32> to vector<32x32xf32>
    %576 = arith.addf %572, %575 : vector<32x32xf32>
    %577 = vector.shape_cast %576 : vector<32x32xf32> to vector<2x16x32xf32>
    %c0_597 = arith.constant 0 : index
    %c16_598 = arith.constant 16 : index
    %c0_599 = arith.constant 0 : index
    %578 = vector.load %arg10[%c0_597, %c16_598, %c0_599] : memref<2x48x32xf32, #tpu.memory_space<vmem>>, vector<2x16x32xf32>
    tpu.vector_store %arg10[%c0_597, %c16_598, %c0_599], %577 {strides = array<i32>} : memref<2x48x32xf32, #tpu.memory_space<vmem>>, vector<2x16x32xf32>,
    %c0_600 = arith.constant 0 : index
    %c10_601 = arith.constant 10 : index
    %c0_602 = arith.constant 0 : index
    %579 = vector.load %arg10[%c0_600, %c10_601, %c0_602] : memref<2x48x32xf32, #tpu.memory_space<vmem>>, vector<2x16x32xf32>
    %c0_603 = arith.constant 0 : index
    %c14_604 = arith.constant 14 : index
    %c0_605 = arith.constant 0 : index
    %580 = vector.load %arg10[%c0_603, %c14_604, %c0_605] : memref<2x48x32xf32, #tpu.memory_space<vmem>>, vector<2x16x32xf32>
    %c0_606 = arith.constant 0 : index
    %c18_607 = arith.constant 18 : index
    %c0_608 = arith.constant 0 : index
    %581 = vector.load %arg10[%c0_606, %c18_607, %c0_608] : memref<2x48x32xf32, #tpu.memory_space<vmem>>, vector<2x16x32xf32>
    %c0_609 = arith.constant 0 : index
    %c22_610 = arith.constant 22 : index
    %c0_611 = arith.constant 0 : index
    %582 = vector.load %arg10[%c0_609, %c22_610, %c0_611] : memref<2x48x32xf32, #tpu.memory_space<vmem>>, vector<2x16x32xf32>
    %583 = tpu.concatenate %579, %580, %581, %582 in 2 : vector<2x16x32xf32>, vector<2x16x32xf32>, vector<2x16x32xf32>, vector<2x16x32xf32> -> vector<2x16x128xf32>
    %584 = vector.shape_cast %583 : vector<2x16x128xf32> to vector<32x128xf32>
    %585 = arith.truncf %584 : vector<32x128xf32> to vector<32x128xbf16>
    %c21 = arith.constant 21 : index
    %c0_612 = arith.constant 0 : index
    %c0_613 = arith.constant 0 : index
    %586 = vector.load %arg3[%c21, %c0_612, %c0_613] : memref<36x128x32xbf16, #tpu.memory_space<vmem>>, vector<1x128x32xbf16>
    %587 = vector.shape_cast %586 : vector<1x128x32xbf16> to vector<128x32xbf16>
    %cst_614 = arith.constant dense<0.000000e+00> : vector<32x32xf32>
    %588 = tpu.matmul %585, %587, %cst_614 {dimension_numbers = #tpu.dot_dimension_numbers<[1], [0], [0], [1], [0, 0, 1, 1], [], []>} : vector<32x128xbf16>, vector<128x32xbf16>, vector<32x32xf32> -> vector<32x32xf32>
    %c21_615 = arith.constant 21 : index
    %c0_616 = arith.constant 0 : index
    %c0_617 = arith.constant 0 : index
    %589 = vector.load %arg4[%c21_615, %c0_616, %c0_617] : memref<36x3x32xf32, #tpu.memory_space<vmem>>, vector<1x1x32xf32>
    %590 = vector.shape_cast %589 : vector<1x1x32xf32> to vector<1x32xf32>
    %591 = vector.broadcast %590 : vector<1x32xf32> to vector<32x32xf32>
    %592 = arith.addf %588, %591 : vector<32x32xf32>
    %cst_618 = arith.constant 0.000000e+00 : f32
    %593 = vector.broadcast %cst_618 : f32 to vector<32x32xf32>
    %594 = arith.maximumf %592, %593 : vector<32x32xf32>
    %c21_619 = arith.constant 21 : index
    %c1_620 = arith.constant 1 : index
    %c0_621 = arith.constant 0 : index
    %595 = vector.load %arg4[%c21_619, %c1_620, %c0_621] : memref<36x3x32xf32, #tpu.memory_space<vmem>>, vector<1x1x32xf32>
    %596 = vector.shape_cast %595 : vector<1x1x32xf32> to vector<1x32xf32>
    %597 = vector.broadcast %596 : vector<1x32xf32> to vector<32x32xf32>
    %598 = arith.mulf %594, %597 : vector<32x32xf32>
    %c21_622 = arith.constant 21 : index
    %c2_623 = arith.constant 2 : index
    %c0_624 = arith.constant 0 : index
    %599 = vector.load %arg4[%c21_622, %c2_623, %c0_624] : memref<36x3x32xf32, #tpu.memory_space<vmem>>, vector<1x1x32xf32>
    %600 = vector.shape_cast %599 : vector<1x1x32xf32> to vector<1x32xf32>
    %601 = vector.broadcast %600 : vector<1x32xf32> to vector<32x32xf32>
    %602 = arith.addf %598, %601 : vector<32x32xf32>
    %603 = arith.addf %602, %550 : vector<32x32xf32>
    %604 = arith.mulf %603, %6 : vector<32x32xf32>
    %605 = vector.shape_cast %604 : vector<32x32xf32> to vector<2x16x32xf32>
    %c0_625 = arith.constant 0 : index
    %c16_626 = arith.constant 16 : index
    %c0_627 = arith.constant 0 : index
    %606 = vector.load %arg10[%c0_625, %c16_626, %c0_627] : memref<2x48x32xf32, #tpu.memory_space<vmem>>, vector<2x16x32xf32>
    tpu.vector_store %arg10[%c0_625, %c16_626, %c0_627], %605 {strides = array<i32>} : memref<2x48x32xf32, #tpu.memory_space<vmem>>, vector<2x16x32xf32>,
    %c0_628 = arith.constant 0 : index
    %c4_629 = arith.constant 4 : index
    %c0_630 = arith.constant 0 : index
    %607 = vector.load %arg10[%c0_628, %c4_629, %c0_630] : memref<2x48x32xf32, #tpu.memory_space<vmem>>, vector<2x16x32xf32>
    %c0_631 = arith.constant 0 : index
    %c12_632 = arith.constant 12 : index
    %c0_633 = arith.constant 0 : index
    %608 = vector.load %arg10[%c0_631, %c12_632, %c0_633] : memref<2x48x32xf32, #tpu.memory_space<vmem>>, vector<2x16x32xf32>
    %c0_634 = arith.constant 0 : index
    %c20_635 = arith.constant 20 : index
    %c0_636 = arith.constant 0 : index
    %609 = vector.load %arg10[%c0_634, %c20_635, %c0_636] : memref<2x48x32xf32, #tpu.memory_space<vmem>>, vector<2x16x32xf32>
    %c0_637 = arith.constant 0 : index
    %c28_638 = arith.constant 28 : index
    %c0_639 = arith.constant 0 : index
    %610 = vector.load %arg10[%c0_637, %c28_638, %c0_639] : memref<2x48x32xf32, #tpu.memory_space<vmem>>, vector<2x16x32xf32>
    %611 = tpu.concatenate %607, %608, %609, %610 in 2 : vector<2x16x32xf32>, vector<2x16x32xf32>, vector<2x16x32xf32>, vector<2x16x32xf32> -> vector<2x16x128xf32>
    %612 = vector.shape_cast %611 : vector<2x16x128xf32> to vector<32x128xf32>
    %613 = arith.truncf %612 : vector<32x128xf32> to vector<32x128xbf16>
    %c22_640 = arith.constant 22 : index
    %c0_641 = arith.constant 0 : index
    %c0_642 = arith.constant 0 : index
    %614 = vector.load %arg3[%c22_640, %c0_641, %c0_642] : memref<36x128x32xbf16, #tpu.memory_space<vmem>>, vector<1x128x32xbf16>
    %615 = vector.shape_cast %614 : vector<1x128x32xbf16> to vector<128x32xbf16>
    %cst_643 = arith.constant dense<0.000000e+00> : vector<32x32xf32>
    %616 = tpu.matmul %613, %615, %cst_643 {dimension_numbers = #tpu.dot_dimension_numbers<[1], [0], [0], [1], [0, 0, 1, 1], [], []>} : vector<32x128xbf16>, vector<128x32xbf16>, vector<32x32xf32> -> vector<32x32xf32>
    %c22_644 = arith.constant 22 : index
    %c0_645 = arith.constant 0 : index
    %c0_646 = arith.constant 0 : index
    %617 = vector.load %arg4[%c22_644, %c0_645, %c0_646] : memref<36x3x32xf32, #tpu.memory_space<vmem>>, vector<1x1x32xf32>
    %618 = vector.shape_cast %617 : vector<1x1x32xf32> to vector<1x32xf32>
    %619 = vector.broadcast %618 : vector<1x32xf32> to vector<32x32xf32>
    %620 = arith.addf %616, %619 : vector<32x32xf32>
    %cst_647 = arith.constant 0.000000e+00 : f32
    %621 = vector.broadcast %cst_647 : f32 to vector<32x32xf32>
    %622 = arith.maximumf %620, %621 : vector<32x32xf32>
    %c22_648 = arith.constant 22 : index
    %c1_649 = arith.constant 1 : index
    %c0_650 = arith.constant 0 : index
    %623 = vector.load %arg4[%c22_648, %c1_649, %c0_650] : memref<36x3x32xf32, #tpu.memory_space<vmem>>, vector<1x1x32xf32>
    %624 = vector.shape_cast %623 : vector<1x1x32xf32> to vector<1x32xf32>
    %625 = vector.broadcast %624 : vector<1x32xf32> to vector<32x32xf32>
    %626 = arith.mulf %622, %625 : vector<32x32xf32>
    %c22_651 = arith.constant 22 : index
    %c2_652 = arith.constant 2 : index
    %c0_653 = arith.constant 0 : index
    %627 = vector.load %arg4[%c22_651, %c2_652, %c0_653] : memref<36x3x32xf32, #tpu.memory_space<vmem>>, vector<1x1x32xf32>
    %628 = vector.shape_cast %627 : vector<1x1x32xf32> to vector<1x32xf32>
    %629 = vector.broadcast %628 : vector<1x32xf32> to vector<32x32xf32>
    %630 = arith.addf %626, %629 : vector<32x32xf32>
    %631 = vector.shape_cast %630 : vector<32x32xf32> to vector<2x16x32xf32>
    %c0_654 = arith.constant 0 : index
    %c16_655 = arith.constant 16 : index
    %c0_656 = arith.constant 0 : index
    %632 = vector.load %arg10[%c0_654, %c16_655, %c0_656] : memref<2x48x32xf32, #tpu.memory_space<vmem>>, vector<2x16x32xf32>
    tpu.vector_store %arg10[%c0_654, %c16_655, %c0_656], %631 {strides = array<i32>} : memref<2x48x32xf32, #tpu.memory_space<vmem>>, vector<2x16x32xf32>,
    %c0_657 = arith.constant 0 : index
    %c4_658 = arith.constant 4 : index
    %c0_659 = arith.constant 0 : index
    %633 = vector.load %arg10[%c0_657, %c4_658, %c0_659] : memref<2x48x32xf32, #tpu.memory_space<vmem>>, vector<2x16x32xf32>
    %c0_660 = arith.constant 0 : index
    %c12_661 = arith.constant 12 : index
    %c0_662 = arith.constant 0 : index
    %634 = vector.load %arg10[%c0_660, %c12_661, %c0_662] : memref<2x48x32xf32, #tpu.memory_space<vmem>>, vector<2x16x32xf32>
    %c0_663 = arith.constant 0 : index
    %c20_664 = arith.constant 20 : index
    %c0_665 = arith.constant 0 : index
    %635 = vector.load %arg10[%c0_663, %c20_664, %c0_665] : memref<2x48x32xf32, #tpu.memory_space<vmem>>, vector<2x16x32xf32>
    %c0_666 = arith.constant 0 : index
    %c28_667 = arith.constant 28 : index
    %c0_668 = arith.constant 0 : index
    %636 = vector.load %arg10[%c0_666, %c28_667, %c0_668] : memref<2x48x32xf32, #tpu.memory_space<vmem>>, vector<2x16x32xf32>
    %637 = tpu.concatenate %633, %634, %635, %636 in 2 : vector<2x16x32xf32>, vector<2x16x32xf32>, vector<2x16x32xf32>, vector<2x16x32xf32> -> vector<2x16x128xf32>
    %638 = vector.shape_cast %637 : vector<2x16x128xf32> to vector<32x128xf32>
    %639 = arith.truncf %638 : vector<32x128xf32> to vector<32x128xbf16>
    %c23 = arith.constant 23 : index
    %c0_669 = arith.constant 0 : index
    %c0_670 = arith.constant 0 : index
    %640 = vector.load %arg3[%c23, %c0_669, %c0_670] : memref<36x128x32xbf16, #tpu.memory_space<vmem>>, vector<1x128x32xbf16>
    %641 = vector.shape_cast %640 : vector<1x128x32xbf16> to vector<128x32xbf16>
    %cst_671 = arith.constant dense<0.000000e+00> : vector<32x32xf32>
    %642 = tpu.matmul %639, %641, %cst_671 {dimension_numbers = #tpu.dot_dimension_numbers<[1], [0], [0], [1], [0, 0, 1, 1], [], []>} : vector<32x128xbf16>, vector<128x32xbf16>, vector<32x32xf32> -> vector<32x32xf32>
    %c23_672 = arith.constant 23 : index
    %c0_673 = arith.constant 0 : index
    %c0_674 = arith.constant 0 : index
    %643 = vector.load %arg4[%c23_672, %c0_673, %c0_674] : memref<36x3x32xf32, #tpu.memory_space<vmem>>, vector<1x1x32xf32>
    %644 = vector.shape_cast %643 : vector<1x1x32xf32> to vector<1x32xf32>
    %645 = vector.broadcast %644 : vector<1x32xf32> to vector<32x32xf32>
    %646 = arith.addf %642, %645 : vector<32x32xf32>
    %cst_675 = arith.constant 0.000000e+00 : f32
    %647 = vector.broadcast %cst_675 : f32 to vector<32x32xf32>
    %648 = arith.maximumf %646, %647 : vector<32x32xf32>
    %c23_676 = arith.constant 23 : index
    %c1_677 = arith.constant 1 : index
    %c0_678 = arith.constant 0 : index
    %649 = vector.load %arg4[%c23_676, %c1_677, %c0_678] : memref<36x3x32xf32, #tpu.memory_space<vmem>>, vector<1x1x32xf32>
    %650 = vector.shape_cast %649 : vector<1x1x32xf32> to vector<1x32xf32>
    %651 = vector.broadcast %650 : vector<1x32xf32> to vector<32x32xf32>
    %652 = arith.mulf %648, %651 : vector<32x32xf32>
    %c23_679 = arith.constant 23 : index
    %c2_680 = arith.constant 2 : index
    %c0_681 = arith.constant 0 : index
    %653 = vector.load %arg4[%c23_679, %c2_680, %c0_681] : memref<36x3x32xf32, #tpu.memory_space<vmem>>, vector<1x1x32xf32>
    %654 = vector.shape_cast %653 : vector<1x1x32xf32> to vector<1x32xf32>
    %655 = vector.broadcast %654 : vector<1x32xf32> to vector<32x32xf32>
    %656 = arith.addf %652, %655 : vector<32x32xf32>
    %657 = arith.addf %656, %604 : vector<32x32xf32>
    %658 = arith.mulf %657, %6 : vector<32x32xf32>
    %659 = vector.shape_cast %658 : vector<32x32xf32> to vector<2x16x32xf32>
    %c0_682 = arith.constant 0 : index
    %c16_683 = arith.constant 16 : index
    %c0_684 = arith.constant 0 : index
    %660 = vector.load %arg10[%c0_682, %c16_683, %c0_684] : memref<2x48x32xf32, #tpu.memory_space<vmem>>, vector<2x16x32xf32>
    tpu.vector_store %arg10[%c0_682, %c16_683, %c0_684], %659 {strides = array<i32>} : memref<2x48x32xf32, #tpu.memory_space<vmem>>, vector<2x16x32xf32>,
    %c0_685 = arith.constant 0 : index
    %c15_686 = arith.constant 15 : index
    %c0_687 = arith.constant 0 : index
    %661 = vector.load %arg10[%c0_685, %c15_686, %c0_687] : memref<2x48x32xf32, #tpu.memory_space<vmem>>, vector<2x16x32xf32>
    %c0_688 = arith.constant 0 : index
    %c16_689 = arith.constant 16 : index
    %c0_690 = arith.constant 0 : index
    %662 = vector.load %arg10[%c0_688, %c16_689, %c0_690] : memref<2x48x32xf32, #tpu.memory_space<vmem>>, vector<2x16x32xf32>
    %c0_691 = arith.constant 0 : index
    %c17_692 = arith.constant 17 : index
    %c0_693 = arith.constant 0 : index
    %663 = vector.load %arg10[%c0_691, %c17_692, %c0_693] : memref<2x48x32xf32, #tpu.memory_space<vmem>>, vector<2x16x32xf32>
    %c0_694 = arith.constant 0 : index
    %c18_695 = arith.constant 18 : index
    %c0_696 = arith.constant 0 : index
    %664 = vector.load %arg10[%c0_694, %c18_695, %c0_696] : memref<2x48x32xf32, #tpu.memory_space<vmem>>, vector<2x16x32xf32>
    %665 = tpu.concatenate %661, %662, %663, %664 in 2 : vector<2x16x32xf32>, vector<2x16x32xf32>, vector<2x16x32xf32>, vector<2x16x32xf32> -> vector<2x16x128xf32>
    %666 = vector.shape_cast %665 : vector<2x16x128xf32> to vector<32x128xf32>
    %667 = arith.truncf %666 : vector<32x128xf32> to vector<32x128xbf16>
    %c24 = arith.constant 24 : index
    %c0_697 = arith.constant 0 : index
    %c0_698 = arith.constant 0 : index
    %668 = vector.load %arg3[%c24, %c0_697, %c0_698] : memref<36x128x32xbf16, #tpu.memory_space<vmem>>, vector<1x128x32xbf16>
    %669 = vector.shape_cast %668 : vector<1x128x32xbf16> to vector<128x32xbf16>
    %cst_699 = arith.constant dense<0.000000e+00> : vector<32x32xf32>
    %670 = tpu.matmul %667, %669, %cst_699 {dimension_numbers = #tpu.dot_dimension_numbers<[1], [0], [0], [1], [0, 0, 1, 1], [], []>} : vector<32x128xbf16>, vector<128x32xbf16>, vector<32x32xf32> -> vector<32x32xf32>
    %c24_700 = arith.constant 24 : index
    %c0_701 = arith.constant 0 : index
    %c0_702 = arith.constant 0 : index
    %671 = vector.load %arg4[%c24_700, %c0_701, %c0_702] : memref<36x3x32xf32, #tpu.memory_space<vmem>>, vector<1x1x32xf32>
    %672 = vector.shape_cast %671 : vector<1x1x32xf32> to vector<1x32xf32>
    %673 = vector.broadcast %672 : vector<1x32xf32> to vector<32x32xf32>
    %674 = arith.addf %670, %673 : vector<32x32xf32>
    %cst_703 = arith.constant 0.000000e+00 : f32
    %675 = vector.broadcast %cst_703 : f32 to vector<32x32xf32>
    %676 = arith.maximumf %674, %675 : vector<32x32xf32>
    %c24_704 = arith.constant 24 : index
    %c1_705 = arith.constant 1 : index
    %c0_706 = arith.constant 0 : index
    %677 = vector.load %arg4[%c24_704, %c1_705, %c0_706] : memref<36x3x32xf32, #tpu.memory_space<vmem>>, vector<1x1x32xf32>
    %678 = vector.shape_cast %677 : vector<1x1x32xf32> to vector<1x32xf32>
    %679 = vector.broadcast %678 : vector<1x32xf32> to vector<32x32xf32>
    %680 = arith.mulf %676, %679 : vector<32x32xf32>
    %c24_707 = arith.constant 24 : index
    %c2_708 = arith.constant 2 : index
    %c0_709 = arith.constant 0 : index
    %681 = vector.load %arg4[%c24_707, %c2_708, %c0_709] : memref<36x3x32xf32, #tpu.memory_space<vmem>>, vector<1x1x32xf32>
    %682 = vector.shape_cast %681 : vector<1x1x32xf32> to vector<1x32xf32>
    %683 = vector.broadcast %682 : vector<1x32xf32> to vector<32x32xf32>
    %684 = arith.addf %680, %683 : vector<32x32xf32>
    %685 = vector.shape_cast %684 : vector<32x32xf32> to vector<2x16x32xf32>
    %c0_710 = arith.constant 0 : index
    %c16_711 = arith.constant 16 : index
    %c0_712 = arith.constant 0 : index
    %686 = vector.load %arg10[%c0_710, %c16_711, %c0_712] : memref<2x48x32xf32, #tpu.memory_space<vmem>>, vector<2x16x32xf32>
    tpu.vector_store %arg10[%c0_710, %c16_711, %c0_712], %685 {strides = array<i32>} : memref<2x48x32xf32, #tpu.memory_space<vmem>>, vector<2x16x32xf32>,
    %c0_713 = arith.constant 0 : index
    %c15_714 = arith.constant 15 : index
    %c0_715 = arith.constant 0 : index
    %687 = vector.load %arg10[%c0_713, %c15_714, %c0_715] : memref<2x48x32xf32, #tpu.memory_space<vmem>>, vector<2x16x32xf32>
    %c0_716 = arith.constant 0 : index
    %c16_717 = arith.constant 16 : index
    %c0_718 = arith.constant 0 : index
    %688 = vector.load %arg10[%c0_716, %c16_717, %c0_718] : memref<2x48x32xf32, #tpu.memory_space<vmem>>, vector<2x16x32xf32>
    %c0_719 = arith.constant 0 : index
    %c17_720 = arith.constant 17 : index
    %c0_721 = arith.constant 0 : index
    %689 = vector.load %arg10[%c0_719, %c17_720, %c0_721] : memref<2x48x32xf32, #tpu.memory_space<vmem>>, vector<2x16x32xf32>
    %c0_722 = arith.constant 0 : index
    %c18_723 = arith.constant 18 : index
    %c0_724 = arith.constant 0 : index
    %690 = vector.load %arg10[%c0_722, %c18_723, %c0_724] : memref<2x48x32xf32, #tpu.memory_space<vmem>>, vector<2x16x32xf32>
    %691 = tpu.concatenate %687, %688, %689, %690 in 2 : vector<2x16x32xf32>, vector<2x16x32xf32>, vector<2x16x32xf32>, vector<2x16x32xf32> -> vector<2x16x128xf32>
    %692 = vector.shape_cast %691 : vector<2x16x128xf32> to vector<32x128xf32>
    %693 = arith.truncf %692 : vector<32x128xf32> to vector<32x128xbf16>
    %c25 = arith.constant 25 : index
    %c0_725 = arith.constant 0 : index
    %c0_726 = arith.constant 0 : index
    %694 = vector.load %arg3[%c25, %c0_725, %c0_726] : memref<36x128x32xbf16, #tpu.memory_space<vmem>>, vector<1x128x32xbf16>
    %695 = vector.shape_cast %694 : vector<1x128x32xbf16> to vector<128x32xbf16>
    %cst_727 = arith.constant dense<0.000000e+00> : vector<32x32xf32>
    %696 = tpu.matmul %693, %695, %cst_727 {dimension_numbers = #tpu.dot_dimension_numbers<[1], [0], [0], [1], [0, 0, 1, 1], [], []>} : vector<32x128xbf16>, vector<128x32xbf16>, vector<32x32xf32> -> vector<32x32xf32>
    %c25_728 = arith.constant 25 : index
    %c0_729 = arith.constant 0 : index
    %c0_730 = arith.constant 0 : index
    %697 = vector.load %arg4[%c25_728, %c0_729, %c0_730] : memref<36x3x32xf32, #tpu.memory_space<vmem>>, vector<1x1x32xf32>
    %698 = vector.shape_cast %697 : vector<1x1x32xf32> to vector<1x32xf32>
    %699 = vector.broadcast %698 : vector<1x32xf32> to vector<32x32xf32>
    %700 = arith.addf %696, %699 : vector<32x32xf32>
    %cst_731 = arith.constant 0.000000e+00 : f32
    %701 = vector.broadcast %cst_731 : f32 to vector<32x32xf32>
    %702 = arith.maximumf %700, %701 : vector<32x32xf32>
    %c25_732 = arith.constant 25 : index
    %c1_733 = arith.constant 1 : index
    %c0_734 = arith.constant 0 : index
    %703 = vector.load %arg4[%c25_732, %c1_733, %c0_734] : memref<36x3x32xf32, #tpu.memory_space<vmem>>, vector<1x1x32xf32>
    %704 = vector.shape_cast %703 : vector<1x1x32xf32> to vector<1x32xf32>
    %705 = vector.broadcast %704 : vector<1x32xf32> to vector<32x32xf32>
    %706 = arith.mulf %702, %705 : vector<32x32xf32>
    %c25_735 = arith.constant 25 : index
    %c2_736 = arith.constant 2 : index
    %c0_737 = arith.constant 0 : index
    %707 = vector.load %arg4[%c25_735, %c2_736, %c0_737] : memref<36x3x32xf32, #tpu.memory_space<vmem>>, vector<1x1x32xf32>
    %708 = vector.shape_cast %707 : vector<1x1x32xf32> to vector<1x32xf32>
    %709 = vector.broadcast %708 : vector<1x32xf32> to vector<32x32xf32>
    %710 = arith.addf %706, %709 : vector<32x32xf32>
    %711 = arith.addf %710, %658 : vector<32x32xf32>
    %712 = arith.mulf %711, %6 : vector<32x32xf32>
    %713 = vector.shape_cast %712 : vector<32x32xf32> to vector<2x16x32xf32>
    %c0_738 = arith.constant 0 : index
    %c16_739 = arith.constant 16 : index
    %c0_740 = arith.constant 0 : index
    %714 = vector.load %arg10[%c0_738, %c16_739, %c0_740] : memref<2x48x32xf32, #tpu.memory_space<vmem>>, vector<2x16x32xf32>
    tpu.vector_store %arg10[%c0_738, %c16_739, %c0_740], %713 {strides = array<i32>} : memref<2x48x32xf32, #tpu.memory_space<vmem>>, vector<2x16x32xf32>,
    %c0_741 = arith.constant 0 : index
    %c13_742 = arith.constant 13 : index
    %c0_743 = arith.constant 0 : index
    %715 = vector.load %arg10[%c0_741, %c13_742, %c0_743] : memref<2x48x32xf32, #tpu.memory_space<vmem>>, vector<2x16x32xf32>
    %c0_744 = arith.constant 0 : index
    %c15_745 = arith.constant 15 : index
    %c0_746 = arith.constant 0 : index
    %716 = vector.load %arg10[%c0_744, %c15_745, %c0_746] : memref<2x48x32xf32, #tpu.memory_space<vmem>>, vector<2x16x32xf32>
    %c0_747 = arith.constant 0 : index
    %c17_748 = arith.constant 17 : index
    %c0_749 = arith.constant 0 : index
    %717 = vector.load %arg10[%c0_747, %c17_748, %c0_749] : memref<2x48x32xf32, #tpu.memory_space<vmem>>, vector<2x16x32xf32>
    %c0_750 = arith.constant 0 : index
    %c19_751 = arith.constant 19 : index
    %c0_752 = arith.constant 0 : index
    %718 = vector.load %arg10[%c0_750, %c19_751, %c0_752] : memref<2x48x32xf32, #tpu.memory_space<vmem>>, vector<2x16x32xf32>
    %719 = tpu.concatenate %715, %716, %717, %718 in 2 : vector<2x16x32xf32>, vector<2x16x32xf32>, vector<2x16x32xf32>, vector<2x16x32xf32> -> vector<2x16x128xf32>
    %720 = vector.shape_cast %719 : vector<2x16x128xf32> to vector<32x128xf32>
    %721 = arith.truncf %720 : vector<32x128xf32> to vector<32x128xbf16>
    %c26 = arith.constant 26 : index
    %c0_753 = arith.constant 0 : index
    %c0_754 = arith.constant 0 : index
    %722 = vector.load %arg3[%c26, %c0_753, %c0_754] : memref<36x128x32xbf16, #tpu.memory_space<vmem>>, vector<1x128x32xbf16>
    %723 = vector.shape_cast %722 : vector<1x128x32xbf16> to vector<128x32xbf16>
    %cst_755 = arith.constant dense<0.000000e+00> : vector<32x32xf32>
    %724 = tpu.matmul %721, %723, %cst_755 {dimension_numbers = #tpu.dot_dimension_numbers<[1], [0], [0], [1], [0, 0, 1, 1], [], []>} : vector<32x128xbf16>, vector<128x32xbf16>, vector<32x32xf32> -> vector<32x32xf32>
    %c26_756 = arith.constant 26 : index
    %c0_757 = arith.constant 0 : index
    %c0_758 = arith.constant 0 : index
    %725 = vector.load %arg4[%c26_756, %c0_757, %c0_758] : memref<36x3x32xf32, #tpu.memory_space<vmem>>, vector<1x1x32xf32>
    %726 = vector.shape_cast %725 : vector<1x1x32xf32> to vector<1x32xf32>
    %727 = vector.broadcast %726 : vector<1x32xf32> to vector<32x32xf32>
    %728 = arith.addf %724, %727 : vector<32x32xf32>
    %cst_759 = arith.constant 0.000000e+00 : f32
    %729 = vector.broadcast %cst_759 : f32 to vector<32x32xf32>
    %730 = arith.maximumf %728, %729 : vector<32x32xf32>
    %c26_760 = arith.constant 26 : index
    %c1_761 = arith.constant 1 : index
    %c0_762 = arith.constant 0 : index
    %731 = vector.load %arg4[%c26_760, %c1_761, %c0_762] : memref<36x3x32xf32, #tpu.memory_space<vmem>>, vector<1x1x32xf32>
    %732 = vector.shape_cast %731 : vector<1x1x32xf32> to vector<1x32xf32>
    %733 = vector.broadcast %732 : vector<1x32xf32> to vector<32x32xf32>
    %734 = arith.mulf %730, %733 : vector<32x32xf32>
    %c26_763 = arith.constant 26 : index
    %c2_764 = arith.constant 2 : index
    %c0_765 = arith.constant 0 : index
    %735 = vector.load %arg4[%c26_763, %c2_764, %c0_765] : memref<36x3x32xf32, #tpu.memory_space<vmem>>, vector<1x1x32xf32>
    %736 = vector.shape_cast %735 : vector<1x1x32xf32> to vector<1x32xf32>
    %737 = vector.broadcast %736 : vector<1x32xf32> to vector<32x32xf32>
    %738 = arith.addf %734, %737 : vector<32x32xf32>
    %739 = vector.shape_cast %738 : vector<32x32xf32> to vector<2x16x32xf32>
    %c0_766 = arith.constant 0 : index
    %c16_767 = arith.constant 16 : index
    %c0_768 = arith.constant 0 : index
    %740 = vector.load %arg10[%c0_766, %c16_767, %c0_768] : memref<2x48x32xf32, #tpu.memory_space<vmem>>, vector<2x16x32xf32>
    tpu.vector_store %arg10[%c0_766, %c16_767, %c0_768], %739 {strides = array<i32>} : memref<2x48x32xf32, #tpu.memory_space<vmem>>, vector<2x16x32xf32>,
    %c0_769 = arith.constant 0 : index
    %c13_770 = arith.constant 13 : index
    %c0_771 = arith.constant 0 : index
    %741 = vector.load %arg10[%c0_769, %c13_770, %c0_771] : memref<2x48x32xf32, #tpu.memory_space<vmem>>, vector<2x16x32xf32>
    %c0_772 = arith.constant 0 : index
    %c15_773 = arith.constant 15 : index
    %c0_774 = arith.constant 0 : index
    %742 = vector.load %arg10[%c0_772, %c15_773, %c0_774] : memref<2x48x32xf32, #tpu.memory_space<vmem>>, vector<2x16x32xf32>
    %c0_775 = arith.constant 0 : index
    %c17_776 = arith.constant 17 : index
    %c0_777 = arith.constant 0 : index
    %743 = vector.load %arg10[%c0_775, %c17_776, %c0_777] : memref<2x48x32xf32, #tpu.memory_space<vmem>>, vector<2x16x32xf32>
    %c0_778 = arith.constant 0 : index
    %c19_779 = arith.constant 19 : index
    %c0_780 = arith.constant 0 : index
    %744 = vector.load %arg10[%c0_778, %c19_779, %c0_780] : memref<2x48x32xf32, #tpu.memory_space<vmem>>, vector<2x16x32xf32>
    %745 = tpu.concatenate %741, %742, %743, %744 in 2 : vector<2x16x32xf32>, vector<2x16x32xf32>, vector<2x16x32xf32>, vector<2x16x32xf32> -> vector<2x16x128xf32>
    %746 = vector.shape_cast %745 : vector<2x16x128xf32> to vector<32x128xf32>
    %747 = arith.truncf %746 : vector<32x128xf32> to vector<32x128xbf16>
    %c27 = arith.constant 27 : index
    %c0_781 = arith.constant 0 : index
    %c0_782 = arith.constant 0 : index
    %748 = vector.load %arg3[%c27, %c0_781, %c0_782] : memref<36x128x32xbf16, #tpu.memory_space<vmem>>, vector<1x128x32xbf16>
    %749 = vector.shape_cast %748 : vector<1x128x32xbf16> to vector<128x32xbf16>
    %cst_783 = arith.constant dense<0.000000e+00> : vector<32x32xf32>
    %750 = tpu.matmul %747, %749, %cst_783 {dimension_numbers = #tpu.dot_dimension_numbers<[1], [0], [0], [1], [0, 0, 1, 1], [], []>} : vector<32x128xbf16>, vector<128x32xbf16>, vector<32x32xf32> -> vector<32x32xf32>
    %c27_784 = arith.constant 27 : index
    %c0_785 = arith.constant 0 : index
    %c0_786 = arith.constant 0 : index
    %751 = vector.load %arg4[%c27_784, %c0_785, %c0_786] : memref<36x3x32xf32, #tpu.memory_space<vmem>>, vector<1x1x32xf32>
    %752 = vector.shape_cast %751 : vector<1x1x32xf32> to vector<1x32xf32>
    %753 = vector.broadcast %752 : vector<1x32xf32> to vector<32x32xf32>
    %754 = arith.addf %750, %753 : vector<32x32xf32>
    %cst_787 = arith.constant 0.000000e+00 : f32
    %755 = vector.broadcast %cst_787 : f32 to vector<32x32xf32>
    %756 = arith.maximumf %754, %755 : vector<32x32xf32>
    %c27_788 = arith.constant 27 : index
    %c1_789 = arith.constant 1 : index
    %c0_790 = arith.constant 0 : index
    %757 = vector.load %arg4[%c27_788, %c1_789, %c0_790] : memref<36x3x32xf32, #tpu.memory_space<vmem>>, vector<1x1x32xf32>
    %758 = vector.shape_cast %757 : vector<1x1x32xf32> to vector<1x32xf32>
    %759 = vector.broadcast %758 : vector<1x32xf32> to vector<32x32xf32>
    %760 = arith.mulf %756, %759 : vector<32x32xf32>
    %c27_791 = arith.constant 27 : index
    %c2_792 = arith.constant 2 : index
    %c0_793 = arith.constant 0 : index
    %761 = vector.load %arg4[%c27_791, %c2_792, %c0_793] : memref<36x3x32xf32, #tpu.memory_space<vmem>>, vector<1x1x32xf32>
    %762 = vector.shape_cast %761 : vector<1x1x32xf32> to vector<1x32xf32>
    %763 = vector.broadcast %762 : vector<1x32xf32> to vector<32x32xf32>
    %764 = arith.addf %760, %763 : vector<32x32xf32>
    %765 = arith.addf %764, %712 : vector<32x32xf32>
    %766 = arith.mulf %765, %6 : vector<32x32xf32>
    %767 = vector.shape_cast %766 : vector<32x32xf32> to vector<2x16x32xf32>
    %c0_794 = arith.constant 0 : index
    %c16_795 = arith.constant 16 : index
    %c0_796 = arith.constant 0 : index
    %768 = vector.load %arg10[%c0_794, %c16_795, %c0_796] : memref<2x48x32xf32, #tpu.memory_space<vmem>>, vector<2x16x32xf32>
    tpu.vector_store %arg10[%c0_794, %c16_795, %c0_796], %767 {strides = array<i32>} : memref<2x48x32xf32, #tpu.memory_space<vmem>>, vector<2x16x32xf32>,
    %c0_797 = arith.constant 0 : index
    %c10_798 = arith.constant 10 : index
    %c0_799 = arith.constant 0 : index
    %769 = vector.load %arg10[%c0_797, %c10_798, %c0_799] : memref<2x48x32xf32, #tpu.memory_space<vmem>>, vector<2x16x32xf32>
    %c0_800 = arith.constant 0 : index
    %c14_801 = arith.constant 14 : index
    %c0_802 = arith.constant 0 : index
    %770 = vector.load %arg10[%c0_800, %c14_801, %c0_802] : memref<2x48x32xf32, #tpu.memory_space<vmem>>, vector<2x16x32xf32>
    %c0_803 = arith.constant 0 : index
    %c18_804 = arith.constant 18 : index
    %c0_805 = arith.constant 0 : index
    %771 = vector.load %arg10[%c0_803, %c18_804, %c0_805] : memref<2x48x32xf32, #tpu.memory_space<vmem>>, vector<2x16x32xf32>
    %c0_806 = arith.constant 0 : index
    %c22_807 = arith.constant 22 : index
    %c0_808 = arith.constant 0 : index
    %772 = vector.load %arg10[%c0_806, %c22_807, %c0_808] : memref<2x48x32xf32, #tpu.memory_space<vmem>>, vector<2x16x32xf32>
    %773 = tpu.concatenate %769, %770, %771, %772 in 2 : vector<2x16x32xf32>, vector<2x16x32xf32>, vector<2x16x32xf32>, vector<2x16x32xf32> -> vector<2x16x128xf32>
    %774 = vector.shape_cast %773 : vector<2x16x128xf32> to vector<32x128xf32>
    %775 = arith.truncf %774 : vector<32x128xf32> to vector<32x128xbf16>
    %c28_809 = arith.constant 28 : index
    %c0_810 = arith.constant 0 : index
    %c0_811 = arith.constant 0 : index
    %776 = vector.load %arg3[%c28_809, %c0_810, %c0_811] : memref<36x128x32xbf16, #tpu.memory_space<vmem>>, vector<1x128x32xbf16>
    %777 = vector.shape_cast %776 : vector<1x128x32xbf16> to vector<128x32xbf16>
    %cst_812 = arith.constant dense<0.000000e+00> : vector<32x32xf32>
    %778 = tpu.matmul %775, %777, %cst_812 {dimension_numbers = #tpu.dot_dimension_numbers<[1], [0], [0], [1], [0, 0, 1, 1], [], []>} : vector<32x128xbf16>, vector<128x32xbf16>, vector<32x32xf32> -> vector<32x32xf32>
    %c28_813 = arith.constant 28 : index
    %c0_814 = arith.constant 0 : index
    %c0_815 = arith.constant 0 : index
    %779 = vector.load %arg4[%c28_813, %c0_814, %c0_815] : memref<36x3x32xf32, #tpu.memory_space<vmem>>, vector<1x1x32xf32>
    %780 = vector.shape_cast %779 : vector<1x1x32xf32> to vector<1x32xf32>
    %781 = vector.broadcast %780 : vector<1x32xf32> to vector<32x32xf32>
    %782 = arith.addf %778, %781 : vector<32x32xf32>
    %cst_816 = arith.constant 0.000000e+00 : f32
    %783 = vector.broadcast %cst_816 : f32 to vector<32x32xf32>
    %784 = arith.maximumf %782, %783 : vector<32x32xf32>
    %c28_817 = arith.constant 28 : index
    %c1_818 = arith.constant 1 : index
    %c0_819 = arith.constant 0 : index
    %785 = vector.load %arg4[%c28_817, %c1_818, %c0_819] : memref<36x3x32xf32, #tpu.memory_space<vmem>>, vector<1x1x32xf32>
    %786 = vector.shape_cast %785 : vector<1x1x32xf32> to vector<1x32xf32>
    %787 = vector.broadcast %786 : vector<1x32xf32> to vector<32x32xf32>
    %788 = arith.mulf %784, %787 : vector<32x32xf32>
    %c28_820 = arith.constant 28 : index
    %c2_821 = arith.constant 2 : index
    %c0_822 = arith.constant 0 : index
    %789 = vector.load %arg4[%c28_820, %c2_821, %c0_822] : memref<36x3x32xf32, #tpu.memory_space<vmem>>, vector<1x1x32xf32>
    %790 = vector.shape_cast %789 : vector<1x1x32xf32> to vector<1x32xf32>
    %791 = vector.broadcast %790 : vector<1x32xf32> to vector<32x32xf32>
    %792 = arith.addf %788, %791 : vector<32x32xf32>
    %793 = vector.shape_cast %792 : vector<32x32xf32> to vector<2x16x32xf32>
    %c0_823 = arith.constant 0 : index
    %c16_824 = arith.constant 16 : index
    %c0_825 = arith.constant 0 : index
    %794 = vector.load %arg10[%c0_823, %c16_824, %c0_825] : memref<2x48x32xf32, #tpu.memory_space<vmem>>, vector<2x16x32xf32>
    tpu.vector_store %arg10[%c0_823, %c16_824, %c0_825], %793 {strides = array<i32>} : memref<2x48x32xf32, #tpu.memory_space<vmem>>, vector<2x16x32xf32>,
    %c0_826 = arith.constant 0 : index
    %c10_827 = arith.constant 10 : index
    %c0_828 = arith.constant 0 : index
    %795 = vector.load %arg10[%c0_826, %c10_827, %c0_828] : memref<2x48x32xf32, #tpu.memory_space<vmem>>, vector<2x16x32xf32>
    %c0_829 = arith.constant 0 : index
    %c14_830 = arith.constant 14 : index
    %c0_831 = arith.constant 0 : index
    %796 = vector.load %arg10[%c0_829, %c14_830, %c0_831] : memref<2x48x32xf32, #tpu.memory_space<vmem>>, vector<2x16x32xf32>
    %c0_832 = arith.constant 0 : index
    %c18_833 = arith.constant 18 : index
    %c0_834 = arith.constant 0 : index
    %797 = vector.load %arg10[%c0_832, %c18_833, %c0_834] : memref<2x48x32xf32, #tpu.memory_space<vmem>>, vector<2x16x32xf32>
    %c0_835 = arith.constant 0 : index
    %c22_836 = arith.constant 22 : index
    %c0_837 = arith.constant 0 : index
    %798 = vector.load %arg10[%c0_835, %c22_836, %c0_837] : memref<2x48x32xf32, #tpu.memory_space<vmem>>, vector<2x16x32xf32>
    %799 = tpu.concatenate %795, %796, %797, %798 in 2 : vector<2x16x32xf32>, vector<2x16x32xf32>, vector<2x16x32xf32>, vector<2x16x32xf32> -> vector<2x16x128xf32>
    %800 = vector.shape_cast %799 : vector<2x16x128xf32> to vector<32x128xf32>
    %801 = arith.truncf %800 : vector<32x128xf32> to vector<32x128xbf16>
    %c29 = arith.constant 29 : index
    %c0_838 = arith.constant 0 : index
    %c0_839 = arith.constant 0 : index
    %802 = vector.load %arg3[%c29, %c0_838, %c0_839] : memref<36x128x32xbf16, #tpu.memory_space<vmem>>, vector<1x128x32xbf16>
    %803 = vector.shape_cast %802 : vector<1x128x32xbf16> to vector<128x32xbf16>
    %cst_840 = arith.constant dense<0.000000e+00> : vector<32x32xf32>
    %804 = tpu.matmul %801, %803, %cst_840 {dimension_numbers = #tpu.dot_dimension_numbers<[1], [0], [0], [1], [0, 0, 1, 1], [], []>} : vector<32x128xbf16>, vector<128x32xbf16>, vector<32x32xf32> -> vector<32x32xf32>
    %c29_841 = arith.constant 29 : index
    %c0_842 = arith.constant 0 : index
    %c0_843 = arith.constant 0 : index
    %805 = vector.load %arg4[%c29_841, %c0_842, %c0_843] : memref<36x3x32xf32, #tpu.memory_space<vmem>>, vector<1x1x32xf32>
    %806 = vector.shape_cast %805 : vector<1x1x32xf32> to vector<1x32xf32>
    %807 = vector.broadcast %806 : vector<1x32xf32> to vector<32x32xf32>
    %808 = arith.addf %804, %807 : vector<32x32xf32>
    %cst_844 = arith.constant 0.000000e+00 : f32
    %809 = vector.broadcast %cst_844 : f32 to vector<32x32xf32>
    %810 = arith.maximumf %808, %809 : vector<32x32xf32>
    %c29_845 = arith.constant 29 : index
    %c1_846 = arith.constant 1 : index
    %c0_847 = arith.constant 0 : index
    %811 = vector.load %arg4[%c29_845, %c1_846, %c0_847] : memref<36x3x32xf32, #tpu.memory_space<vmem>>, vector<1x1x32xf32>
    %812 = vector.shape_cast %811 : vector<1x1x32xf32> to vector<1x32xf32>
    %813 = vector.broadcast %812 : vector<1x32xf32> to vector<32x32xf32>
    %814 = arith.mulf %810, %813 : vector<32x32xf32>
    %c29_848 = arith.constant 29 : index
    %c2_849 = arith.constant 2 : index
    %c0_850 = arith.constant 0 : index
    %815 = vector.load %arg4[%c29_848, %c2_849, %c0_850] : memref<36x3x32xf32, #tpu.memory_space<vmem>>, vector<1x1x32xf32>
    %816 = vector.shape_cast %815 : vector<1x1x32xf32> to vector<1x32xf32>
    %817 = vector.broadcast %816 : vector<1x32xf32> to vector<32x32xf32>
    %818 = arith.addf %814, %817 : vector<32x32xf32>
    %819 = arith.addf %818, %766 : vector<32x32xf32>
    %820 = arith.mulf %819, %6 : vector<32x32xf32>
    %821 = vector.shape_cast %820 : vector<32x32xf32> to vector<2x16x32xf32>
    %c0_851 = arith.constant 0 : index
    %c16_852 = arith.constant 16 : index
    %c0_853 = arith.constant 0 : index
    %822 = vector.load %arg10[%c0_851, %c16_852, %c0_853] : memref<2x48x32xf32, #tpu.memory_space<vmem>>, vector<2x16x32xf32>
    tpu.vector_store %arg10[%c0_851, %c16_852, %c0_853], %821 {strides = array<i32>} : memref<2x48x32xf32, #tpu.memory_space<vmem>>, vector<2x16x32xf32>,
    %c0_854 = arith.constant 0 : index
    %c4_855 = arith.constant 4 : index
    %c0_856 = arith.constant 0 : index
    %823 = vector.load %arg10[%c0_854, %c4_855, %c0_856] : memref<2x48x32xf32, #tpu.memory_space<vmem>>, vector<2x16x32xf32>
    %c0_857 = arith.constant 0 : index
    %c12_858 = arith.constant 12 : index
    %c0_859 = arith.constant 0 : index
    %824 = vector.load %arg10[%c0_857, %c12_858, %c0_859] : memref<2x48x32xf32, #tpu.memory_space<vmem>>, vector<2x16x32xf32>
    %c0_860 = arith.constant 0 : index
    %c20_861 = arith.constant 20 : index
    %c0_862 = arith.constant 0 : index
    %825 = vector.load %arg10[%c0_860, %c20_861, %c0_862] : memref<2x48x32xf32, #tpu.memory_space<vmem>>, vector<2x16x32xf32>
    %c0_863 = arith.constant 0 : index
    %c28_864 = arith.constant 28 : index
    %c0_865 = arith.constant 0 : index
    %826 = vector.load %arg10[%c0_863, %c28_864, %c0_865] : memref<2x48x32xf32, #tpu.memory_space<vmem>>, vector<2x16x32xf32>
    %827 = tpu.concatenate %823, %824, %825, %826 in 2 : vector<2x16x32xf32>, vector<2x16x32xf32>, vector<2x16x32xf32>, vector<2x16x32xf32> -> vector<2x16x128xf32>
    %828 = vector.shape_cast %827 : vector<2x16x128xf32> to vector<32x128xf32>
    %829 = arith.truncf %828 : vector<32x128xf32> to vector<32x128xbf16>
    %c30 = arith.constant 30 : index
    %c0_866 = arith.constant 0 : index
    %c0_867 = arith.constant 0 : index
    %830 = vector.load %arg3[%c30, %c0_866, %c0_867] : memref<36x128x32xbf16, #tpu.memory_space<vmem>>, vector<1x128x32xbf16>
    %831 = vector.shape_cast %830 : vector<1x128x32xbf16> to vector<128x32xbf16>
    %cst_868 = arith.constant dense<0.000000e+00> : vector<32x32xf32>
    %832 = tpu.matmul %829, %831, %cst_868 {dimension_numbers = #tpu.dot_dimension_numbers<[1], [0], [0], [1], [0, 0, 1, 1], [], []>} : vector<32x128xbf16>, vector<128x32xbf16>, vector<32x32xf32> -> vector<32x32xf32>
    %c30_869 = arith.constant 30 : index
    %c0_870 = arith.constant 0 : index
    %c0_871 = arith.constant 0 : index
    %833 = vector.load %arg4[%c30_869, %c0_870, %c0_871] : memref<36x3x32xf32, #tpu.memory_space<vmem>>, vector<1x1x32xf32>
    %834 = vector.shape_cast %833 : vector<1x1x32xf32> to vector<1x32xf32>
    %835 = vector.broadcast %834 : vector<1x32xf32> to vector<32x32xf32>
    %836 = arith.addf %832, %835 : vector<32x32xf32>
    %cst_872 = arith.constant 0.000000e+00 : f32
    %837 = vector.broadcast %cst_872 : f32 to vector<32x32xf32>
    %838 = arith.maximumf %836, %837 : vector<32x32xf32>
    %c30_873 = arith.constant 30 : index
    %c1_874 = arith.constant 1 : index
    %c0_875 = arith.constant 0 : index
    %839 = vector.load %arg4[%c30_873, %c1_874, %c0_875] : memref<36x3x32xf32, #tpu.memory_space<vmem>>, vector<1x1x32xf32>
    %840 = vector.shape_cast %839 : vector<1x1x32xf32> to vector<1x32xf32>
    %841 = vector.broadcast %840 : vector<1x32xf32> to vector<32x32xf32>
    %842 = arith.mulf %838, %841 : vector<32x32xf32>
    %c30_876 = arith.constant 30 : index
    %c2_877 = arith.constant 2 : index
    %c0_878 = arith.constant 0 : index
    %843 = vector.load %arg4[%c30_876, %c2_877, %c0_878] : memref<36x3x32xf32, #tpu.memory_space<vmem>>, vector<1x1x32xf32>
    %844 = vector.shape_cast %843 : vector<1x1x32xf32> to vector<1x32xf32>
    %845 = vector.broadcast %844 : vector<1x32xf32> to vector<32x32xf32>
    %846 = arith.addf %842, %845 : vector<32x32xf32>
    %847 = vector.shape_cast %846 : vector<32x32xf32> to vector<2x16x32xf32>
    %c0_879 = arith.constant 0 : index
    %c16_880 = arith.constant 16 : index
    %c0_881 = arith.constant 0 : index
    %848 = vector.load %arg10[%c0_879, %c16_880, %c0_881] : memref<2x48x32xf32, #tpu.memory_space<vmem>>, vector<2x16x32xf32>
    tpu.vector_store %arg10[%c0_879, %c16_880, %c0_881], %847 {strides = array<i32>} : memref<2x48x32xf32, #tpu.memory_space<vmem>>, vector<2x16x32xf32>,
    %c0_882 = arith.constant 0 : index
    %c4_883 = arith.constant 4 : index
    %c0_884 = arith.constant 0 : index
    %849 = vector.load %arg10[%c0_882, %c4_883, %c0_884] : memref<2x48x32xf32, #tpu.memory_space<vmem>>, vector<2x16x32xf32>
    %c0_885 = arith.constant 0 : index
    %c12_886 = arith.constant 12 : index
    %c0_887 = arith.constant 0 : index
    %850 = vector.load %arg10[%c0_885, %c12_886, %c0_887] : memref<2x48x32xf32, #tpu.memory_space<vmem>>, vector<2x16x32xf32>
    %c0_888 = arith.constant 0 : index
    %c20_889 = arith.constant 20 : index
    %c0_890 = arith.constant 0 : index
    %851 = vector.load %arg10[%c0_888, %c20_889, %c0_890] : memref<2x48x32xf32, #tpu.memory_space<vmem>>, vector<2x16x32xf32>
    %c0_891 = arith.constant 0 : index
    %c28_892 = arith.constant 28 : index
    %c0_893 = arith.constant 0 : index
    %852 = vector.load %arg10[%c0_891, %c28_892, %c0_893] : memref<2x48x32xf32, #tpu.memory_space<vmem>>, vector<2x16x32xf32>
    %853 = tpu.concatenate %849, %850, %851, %852 in 2 : vector<2x16x32xf32>, vector<2x16x32xf32>, vector<2x16x32xf32>, vector<2x16x32xf32> -> vector<2x16x128xf32>
    %854 = vector.shape_cast %853 : vector<2x16x128xf32> to vector<32x128xf32>
    %855 = arith.truncf %854 : vector<32x128xf32> to vector<32x128xbf16>
    %c31 = arith.constant 31 : index
    %c0_894 = arith.constant 0 : index
    %c0_895 = arith.constant 0 : index
    %856 = vector.load %arg3[%c31, %c0_894, %c0_895] : memref<36x128x32xbf16, #tpu.memory_space<vmem>>, vector<1x128x32xbf16>
    %857 = vector.shape_cast %856 : vector<1x128x32xbf16> to vector<128x32xbf16>
    %cst_896 = arith.constant dense<0.000000e+00> : vector<32x32xf32>
    %858 = tpu.matmul %855, %857, %cst_896 {dimension_numbers = #tpu.dot_dimension_numbers<[1], [0], [0], [1], [0, 0, 1, 1], [], []>} : vector<32x128xbf16>, vector<128x32xbf16>, vector<32x32xf32> -> vector<32x32xf32>
    %c31_897 = arith.constant 31 : index
    %c0_898 = arith.constant 0 : index
    %c0_899 = arith.constant 0 : index
    %859 = vector.load %arg4[%c31_897, %c0_898, %c0_899] : memref<36x3x32xf32, #tpu.memory_space<vmem>>, vector<1x1x32xf32>
    %860 = vector.shape_cast %859 : vector<1x1x32xf32> to vector<1x32xf32>
    %861 = vector.broadcast %860 : vector<1x32xf32> to vector<32x32xf32>
    %862 = arith.addf %858, %861 : vector<32x32xf32>
    %cst_900 = arith.constant 0.000000e+00 : f32
    %863 = vector.broadcast %cst_900 : f32 to vector<32x32xf32>
    %864 = arith.maximumf %862, %863 : vector<32x32xf32>
    %c31_901 = arith.constant 31 : index
    %c1_902 = arith.constant 1 : index
    %c0_903 = arith.constant 0 : index
    %865 = vector.load %arg4[%c31_901, %c1_902, %c0_903] : memref<36x3x32xf32, #tpu.memory_space<vmem>>, vector<1x1x32xf32>
    %866 = vector.shape_cast %865 : vector<1x1x32xf32> to vector<1x32xf32>
    %867 = vector.broadcast %866 : vector<1x32xf32> to vector<32x32xf32>
    %868 = arith.mulf %864, %867 : vector<32x32xf32>
    %c31_904 = arith.constant 31 : index
    %c2_905 = arith.constant 2 : index
    %c0_906 = arith.constant 0 : index
    %869 = vector.load %arg4[%c31_904, %c2_905, %c0_906] : memref<36x3x32xf32, #tpu.memory_space<vmem>>, vector<1x1x32xf32>
    %870 = vector.shape_cast %869 : vector<1x1x32xf32> to vector<1x32xf32>
    %871 = vector.broadcast %870 : vector<1x32xf32> to vector<32x32xf32>
    %872 = arith.addf %868, %871 : vector<32x32xf32>
    %873 = arith.addf %872, %820 : vector<32x32xf32>
    %874 = arith.mulf %873, %6 : vector<32x32xf32>
    %875 = vector.shape_cast %874 : vector<32x32xf32> to vector<2x16x32xf32>
    %c0_907 = arith.constant 0 : index
    %c16_908 = arith.constant 16 : index
    %c0_909 = arith.constant 0 : index
    %876 = vector.load %arg10[%c0_907, %c16_908, %c0_909] : memref<2x48x32xf32, #tpu.memory_space<vmem>>, vector<2x16x32xf32>
    tpu.vector_store %arg10[%c0_907, %c16_908, %c0_909], %875 {strides = array<i32>} : memref<2x48x32xf32, #tpu.memory_space<vmem>>, vector<2x16x32xf32>,
    %c0_910 = arith.constant 0 : index
    %c15_911 = arith.constant 15 : index
    %c0_912 = arith.constant 0 : index
    %877 = vector.load %arg10[%c0_910, %c15_911, %c0_912] : memref<2x48x32xf32, #tpu.memory_space<vmem>>, vector<2x16x32xf32>
    %c0_913 = arith.constant 0 : index
    %c16_914 = arith.constant 16 : index
    %c0_915 = arith.constant 0 : index
    %878 = vector.load %arg10[%c0_913, %c16_914, %c0_915] : memref<2x48x32xf32, #tpu.memory_space<vmem>>, vector<2x16x32xf32>
    %c0_916 = arith.constant 0 : index
    %c17_917 = arith.constant 17 : index
    %c0_918 = arith.constant 0 : index
    %879 = vector.load %arg10[%c0_916, %c17_917, %c0_918] : memref<2x48x32xf32, #tpu.memory_space<vmem>>, vector<2x16x32xf32>
    %c0_919 = arith.constant 0 : index
    %c18_920 = arith.constant 18 : index
    %c0_921 = arith.constant 0 : index
    %880 = vector.load %arg10[%c0_919, %c18_920, %c0_921] : memref<2x48x32xf32, #tpu.memory_space<vmem>>, vector<2x16x32xf32>
    %881 = tpu.concatenate %877, %878, %879, %880 in 2 : vector<2x16x32xf32>, vector<2x16x32xf32>, vector<2x16x32xf32>, vector<2x16x32xf32> -> vector<2x16x128xf32>
    %882 = vector.shape_cast %881 : vector<2x16x128xf32> to vector<32x128xf32>
    %883 = arith.truncf %882 : vector<32x128xf32> to vector<32x128xbf16>
    %c32_922 = arith.constant 32 : index
    %c0_923 = arith.constant 0 : index
    %c0_924 = arith.constant 0 : index
    %884 = vector.load %arg3[%c32_922, %c0_923, %c0_924] : memref<36x128x32xbf16, #tpu.memory_space<vmem>>, vector<1x128x32xbf16>
    %885 = vector.shape_cast %884 : vector<1x128x32xbf16> to vector<128x32xbf16>
    %cst_925 = arith.constant dense<0.000000e+00> : vector<32x32xf32>
    %886 = tpu.matmul %883, %885, %cst_925 {dimension_numbers = #tpu.dot_dimension_numbers<[1], [0], [0], [1], [0, 0, 1, 1], [], []>} : vector<32x128xbf16>, vector<128x32xbf16>, vector<32x32xf32> -> vector<32x32xf32>
    %c32_926 = arith.constant 32 : index
    %c0_927 = arith.constant 0 : index
    %c0_928 = arith.constant 0 : index
    %887 = vector.load %arg4[%c32_926, %c0_927, %c0_928] : memref<36x3x32xf32, #tpu.memory_space<vmem>>, vector<1x1x32xf32>
    %888 = vector.shape_cast %887 : vector<1x1x32xf32> to vector<1x32xf32>
    %889 = vector.broadcast %888 : vector<1x32xf32> to vector<32x32xf32>
    %890 = arith.addf %886, %889 : vector<32x32xf32>
    %cst_929 = arith.constant 0.000000e+00 : f32
    %891 = vector.broadcast %cst_929 : f32 to vector<32x32xf32>
    %892 = arith.maximumf %890, %891 : vector<32x32xf32>
    %c32_930 = arith.constant 32 : index
    %c1_931 = arith.constant 1 : index
    %c0_932 = arith.constant 0 : index
    %893 = vector.load %arg4[%c32_930, %c1_931, %c0_932] : memref<36x3x32xf32, #tpu.memory_space<vmem>>, vector<1x1x32xf32>
    %894 = vector.shape_cast %893 : vector<1x1x32xf32> to vector<1x32xf32>
    %895 = vector.broadcast %894 : vector<1x32xf32> to vector<32x32xf32>
    %896 = arith.mulf %892, %895 : vector<32x32xf32>
    %c32_933 = arith.constant 32 : index
    %c2_934 = arith.constant 2 : index
    %c0_935 = arith.constant 0 : index
    %897 = vector.load %arg4[%c32_933, %c2_934, %c0_935] : memref<36x3x32xf32, #tpu.memory_space<vmem>>, vector<1x1x32xf32>
    %898 = vector.shape_cast %897 : vector<1x1x32xf32> to vector<1x32xf32>
    %899 = vector.broadcast %898 : vector<1x32xf32> to vector<32x32xf32>
    %900 = arith.addf %896, %899 : vector<32x32xf32>
    %901 = vector.shape_cast %900 : vector<32x32xf32> to vector<2x16x32xf32>
    %c0_936 = arith.constant 0 : index
    %c16_937 = arith.constant 16 : index
    %c0_938 = arith.constant 0 : index
    %902 = vector.load %arg10[%c0_936, %c16_937, %c0_938] : memref<2x48x32xf32, #tpu.memory_space<vmem>>, vector<2x16x32xf32>
    tpu.vector_store %arg10[%c0_936, %c16_937, %c0_938], %901 {strides = array<i32>} : memref<2x48x32xf32, #tpu.memory_space<vmem>>, vector<2x16x32xf32>,
    %c0_939 = arith.constant 0 : index
    %c15_940 = arith.constant 15 : index
    %c0_941 = arith.constant 0 : index
    %903 = vector.load %arg10[%c0_939, %c15_940, %c0_941] : memref<2x48x32xf32, #tpu.memory_space<vmem>>, vector<2x16x32xf32>
    %c0_942 = arith.constant 0 : index
    %c16_943 = arith.constant 16 : index
    %c0_944 = arith.constant 0 : index
    %904 = vector.load %arg10[%c0_942, %c16_943, %c0_944] : memref<2x48x32xf32, #tpu.memory_space<vmem>>, vector<2x16x32xf32>
    %c0_945 = arith.constant 0 : index
    %c17_946 = arith.constant 17 : index
    %c0_947 = arith.constant 0 : index
    %905 = vector.load %arg10[%c0_945, %c17_946, %c0_947] : memref<2x48x32xf32, #tpu.memory_space<vmem>>, vector<2x16x32xf32>
    %c0_948 = arith.constant 0 : index
    %c18_949 = arith.constant 18 : index
    %c0_950 = arith.constant 0 : index
    %906 = vector.load %arg10[%c0_948, %c18_949, %c0_950] : memref<2x48x32xf32, #tpu.memory_space<vmem>>, vector<2x16x32xf32>
    %907 = tpu.concatenate %903, %904, %905, %906 in 2 : vector<2x16x32xf32>, vector<2x16x32xf32>, vector<2x16x32xf32>, vector<2x16x32xf32> -> vector<2x16x128xf32>
    %908 = vector.shape_cast %907 : vector<2x16x128xf32> to vector<32x128xf32>
    %909 = arith.truncf %908 : vector<32x128xf32> to vector<32x128xbf16>
    %c33 = arith.constant 33 : index
    %c0_951 = arith.constant 0 : index
    %c0_952 = arith.constant 0 : index
    %910 = vector.load %arg3[%c33, %c0_951, %c0_952] : memref<36x128x32xbf16, #tpu.memory_space<vmem>>, vector<1x128x32xbf16>
    %911 = vector.shape_cast %910 : vector<1x128x32xbf16> to vector<128x32xbf16>
    %cst_953 = arith.constant dense<0.000000e+00> : vector<32x32xf32>
    %912 = tpu.matmul %909, %911, %cst_953 {dimension_numbers = #tpu.dot_dimension_numbers<[1], [0], [0], [1], [0, 0, 1, 1], [], []>} : vector<32x128xbf16>, vector<128x32xbf16>, vector<32x32xf32> -> vector<32x32xf32>
    %c33_954 = arith.constant 33 : index
    %c0_955 = arith.constant 0 : index
    %c0_956 = arith.constant 0 : index
    %913 = vector.load %arg4[%c33_954, %c0_955, %c0_956] : memref<36x3x32xf32, #tpu.memory_space<vmem>>, vector<1x1x32xf32>
    %914 = vector.shape_cast %913 : vector<1x1x32xf32> to vector<1x32xf32>
    %915 = vector.broadcast %914 : vector<1x32xf32> to vector<32x32xf32>
    %916 = arith.addf %912, %915 : vector<32x32xf32>
    %cst_957 = arith.constant 0.000000e+00 : f32
    %917 = vector.broadcast %cst_957 : f32 to vector<32x32xf32>
    %918 = arith.maximumf %916, %917 : vector<32x32xf32>
    %c33_958 = arith.constant 33 : index
    %c1_959 = arith.constant 1 : index
    %c0_960 = arith.constant 0 : index
    %919 = vector.load %arg4[%c33_958, %c1_959, %c0_960] : memref<36x3x32xf32, #tpu.memory_space<vmem>>, vector<1x1x32xf32>
    %920 = vector.shape_cast %919 : vector<1x1x32xf32> to vector<1x32xf32>
    %921 = vector.broadcast %920 : vector<1x32xf32> to vector<32x32xf32>
    %922 = arith.mulf %918, %921 : vector<32x32xf32>
    %c33_961 = arith.constant 33 : index
    %c2_962 = arith.constant 2 : index
    %c0_963 = arith.constant 0 : index
    %923 = vector.load %arg4[%c33_961, %c2_962, %c0_963] : memref<36x3x32xf32, #tpu.memory_space<vmem>>, vector<1x1x32xf32>
    %924 = vector.shape_cast %923 : vector<1x1x32xf32> to vector<1x32xf32>
    %925 = vector.broadcast %924 : vector<1x32xf32> to vector<32x32xf32>
    %926 = arith.addf %922, %925 : vector<32x32xf32>
    %927 = arith.addf %926, %874 : vector<32x32xf32>
    %928 = arith.mulf %927, %6 : vector<32x32xf32>
    %929 = arith.truncf %928 : vector<32x32xf32> to vector<32x32xbf16>
    %c0_964 = arith.constant 0 : index
    %c0_965 = arith.constant 0 : index
    %930 = vector.load %arg5[%c0_964, %c0_965] : memref<32x32xbf16, #tpu.memory_space<vmem>>, vector<32x32xbf16>
    %cst_966 = arith.constant dense<0.000000e+00> : vector<32x32xf32>
    %931 = tpu.matmul %929, %930, %cst_966 {dimension_numbers = #tpu.dot_dimension_numbers<[1], [0], [0], [1], [0, 0, 1, 1], [], []>} : vector<32x32xbf16>, vector<32x32xbf16>, vector<32x32xf32> -> vector<32x32xf32>
    %c0_967 = arith.constant 0 : index
    %c0_968 = arith.constant 0 : index
    %932 = vector.load %arg6[%c0_967, %c0_968] : memref<1x32xf32, #tpu.memory_space<vmem>>, vector<1x32xf32>
    %933 = vector.broadcast %932 : vector<1x32xf32> to vector<32x32xf32>
    %934 = arith.addf %931, %933 : vector<32x32xf32>
    %935 = arith.addf %934, %3 : vector<32x32xf32>
    %936 = vector.shape_cast %935 : vector<32x32xf32> to vector<2x16x32xf32>
    %c0_969 = arith.constant 0 : index
    %c16_970 = arith.constant 16 : index
    %c0_971 = arith.constant 0 : index
    %937 = vector.load %arg10[%c0_969, %c16_970, %c0_971] : memref<2x48x32xf32, #tpu.memory_space<vmem>>, vector<2x16x32xf32>
    tpu.vector_store %arg10[%c0_969, %c16_970, %c0_971], %936 {strides = array<i32>} : memref<2x48x32xf32, #tpu.memory_space<vmem>>, vector<2x16x32xf32>,
    %c0_972 = arith.constant 0 : index
    %c15_973 = arith.constant 15 : index
    %c0_974 = arith.constant 0 : index
    %938 = vector.load %arg10[%c0_972, %c15_973, %c0_974] : memref<2x48x32xf32, #tpu.memory_space<vmem>>, vector<2x16x32xf32>
    %c0_975 = arith.constant 0 : index
    %c16_976 = arith.constant 16 : index
    %c0_977 = arith.constant 0 : index
    %939 = vector.load %arg10[%c0_975, %c16_976, %c0_977] : memref<2x48x32xf32, #tpu.memory_space<vmem>>, vector<2x16x32xf32>
    %c0_978 = arith.constant 0 : index
    %c17_979 = arith.constant 17 : index
    %c0_980 = arith.constant 0 : index
    %940 = vector.load %arg10[%c0_978, %c17_979, %c0_980] : memref<2x48x32xf32, #tpu.memory_space<vmem>>, vector<2x16x32xf32>
    %c0_981 = arith.constant 0 : index
    %c18_982 = arith.constant 18 : index
    %c0_983 = arith.constant 0 : index
    %941 = vector.load %arg10[%c0_981, %c18_982, %c0_983] : memref<2x48x32xf32, #tpu.memory_space<vmem>>, vector<2x16x32xf32>
    %942 = tpu.concatenate %938, %939, %940, %941 in 2 : vector<2x16x32xf32>, vector<2x16x32xf32>, vector<2x16x32xf32>, vector<2x16x32xf32> -> vector<2x16x128xf32>
    %943 = vector.shape_cast %942 : vector<2x16x128xf32> to vector<32x128xf32>
    %944 = arith.truncf %943 : vector<32x128xf32> to vector<32x128xbf16>
    %c34 = arith.constant 34 : index
    %c0_984 = arith.constant 0 : index
    %c0_985 = arith.constant 0 : index
    %945 = vector.load %arg3[%c34, %c0_984, %c0_985] : memref<36x128x32xbf16, #tpu.memory_space<vmem>>, vector<1x128x32xbf16>
    %946 = vector.shape_cast %945 : vector<1x128x32xbf16> to vector<128x32xbf16>
    %cst_986 = arith.constant dense<0.000000e+00> : vector<32x32xf32>
    %947 = tpu.matmul %944, %946, %cst_986 {dimension_numbers = #tpu.dot_dimension_numbers<[1], [0], [0], [1], [0, 0, 1, 1], [], []>} : vector<32x128xbf16>, vector<128x32xbf16>, vector<32x32xf32> -> vector<32x32xf32>
    %c34_987 = arith.constant 34 : index
    %c0_988 = arith.constant 0 : index
    %c0_989 = arith.constant 0 : index
    %948 = vector.load %arg4[%c34_987, %c0_988, %c0_989] : memref<36x3x32xf32, #tpu.memory_space<vmem>>, vector<1x1x32xf32>
    %949 = vector.shape_cast %948 : vector<1x1x32xf32> to vector<1x32xf32>
    %950 = vector.broadcast %949 : vector<1x32xf32> to vector<32x32xf32>
    %951 = arith.addf %947, %950 : vector<32x32xf32>
    %cst_990 = arith.constant 0.000000e+00 : f32
    %952 = vector.broadcast %cst_990 : f32 to vector<32x32xf32>
    %953 = arith.maximumf %951, %952 : vector<32x32xf32>
    %c34_991 = arith.constant 34 : index
    %c1_992 = arith.constant 1 : index
    %c0_993 = arith.constant 0 : index
    %954 = vector.load %arg4[%c34_991, %c1_992, %c0_993] : memref<36x3x32xf32, #tpu.memory_space<vmem>>, vector<1x1x32xf32>
    %955 = vector.shape_cast %954 : vector<1x1x32xf32> to vector<1x32xf32>
    %956 = vector.broadcast %955 : vector<1x32xf32> to vector<32x32xf32>
    %957 = arith.mulf %953, %956 : vector<32x32xf32>
    %c34_994 = arith.constant 34 : index
    %c2_995 = arith.constant 2 : index
    %c0_996 = arith.constant 0 : index
    %958 = vector.load %arg4[%c34_994, %c2_995, %c0_996] : memref<36x3x32xf32, #tpu.memory_space<vmem>>, vector<1x1x32xf32>
    %959 = vector.shape_cast %958 : vector<1x1x32xf32> to vector<1x32xf32>
    %960 = vector.broadcast %959 : vector<1x32xf32> to vector<32x32xf32>
    %961 = arith.addf %957, %960 : vector<32x32xf32>
    %962 = vector.shape_cast %961 : vector<32x32xf32> to vector<2x16x32xf32>
    %c0_997 = arith.constant 0 : index
    %c16_998 = arith.constant 16 : index
    %c0_999 = arith.constant 0 : index
    %963 = vector.load %arg10[%c0_997, %c16_998, %c0_999] : memref<2x48x32xf32, #tpu.memory_space<vmem>>, vector<2x16x32xf32>
    tpu.vector_store %arg10[%c0_997, %c16_998, %c0_999], %962 {strides = array<i32>} : memref<2x48x32xf32, #tpu.memory_space<vmem>>, vector<2x16x32xf32>,
    %c0_1000 = arith.constant 0 : index
    %c15_1001 = arith.constant 15 : index
    %c0_1002 = arith.constant 0 : index
    %964 = vector.load %arg10[%c0_1000, %c15_1001, %c0_1002] : memref<2x48x32xf32, #tpu.memory_space<vmem>>, vector<2x16x32xf32>
    %c0_1003 = arith.constant 0 : index
    %c16_1004 = arith.constant 16 : index
    %c0_1005 = arith.constant 0 : index
    %965 = vector.load %arg10[%c0_1003, %c16_1004, %c0_1005] : memref<2x48x32xf32, #tpu.memory_space<vmem>>, vector<2x16x32xf32>
    %c0_1006 = arith.constant 0 : index
    %c17_1007 = arith.constant 17 : index
    %c0_1008 = arith.constant 0 : index
    %966 = vector.load %arg10[%c0_1006, %c17_1007, %c0_1008] : memref<2x48x32xf32, #tpu.memory_space<vmem>>, vector<2x16x32xf32>
    %c0_1009 = arith.constant 0 : index
    %c18_1010 = arith.constant 18 : index
    %c0_1011 = arith.constant 0 : index
    %967 = vector.load %arg10[%c0_1009, %c18_1010, %c0_1011] : memref<2x48x32xf32, #tpu.memory_space<vmem>>, vector<2x16x32xf32>
    %968 = tpu.concatenate %964, %965, %966, %967 in 2 : vector<2x16x32xf32>, vector<2x16x32xf32>, vector<2x16x32xf32>, vector<2x16x32xf32> -> vector<2x16x128xf32>
    %969 = vector.shape_cast %968 : vector<2x16x128xf32> to vector<32x128xf32>
    %970 = arith.truncf %969 : vector<32x128xf32> to vector<32x128xbf16>
    %c35 = arith.constant 35 : index
    %c0_1012 = arith.constant 0 : index
    %c0_1013 = arith.constant 0 : index
    %971 = vector.load %arg3[%c35, %c0_1012, %c0_1013] : memref<36x128x32xbf16, #tpu.memory_space<vmem>>, vector<1x128x32xbf16>
    %972 = vector.shape_cast %971 : vector<1x128x32xbf16> to vector<128x32xbf16>
    %cst_1014 = arith.constant dense<0.000000e+00> : vector<32x32xf32>
    %973 = tpu.matmul %970, %972, %cst_1014 {dimension_numbers = #tpu.dot_dimension_numbers<[1], [0], [0], [1], [0, 0, 1, 1], [], []>} : vector<32x128xbf16>, vector<128x32xbf16>, vector<32x32xf32> -> vector<32x32xf32>
    %c35_1015 = arith.constant 35 : index
    %c0_1016 = arith.constant 0 : index
    %c0_1017 = arith.constant 0 : index
    %974 = vector.load %arg4[%c35_1015, %c0_1016, %c0_1017] : memref<36x3x32xf32, #tpu.memory_space<vmem>>, vector<1x1x32xf32>
    %975 = vector.shape_cast %974 : vector<1x1x32xf32> to vector<1x32xf32>
    %976 = vector.broadcast %975 : vector<1x32xf32> to vector<32x32xf32>
    %977 = arith.addf %973, %976 : vector<32x32xf32>
    %cst_1018 = arith.constant 0.000000e+00 : f32
    %978 = vector.broadcast %cst_1018 : f32 to vector<32x32xf32>
    %979 = arith.maximumf %977, %978 : vector<32x32xf32>
    %c35_1019 = arith.constant 35 : index
    %c1_1020 = arith.constant 1 : index
    %c0_1021 = arith.constant 0 : index
    %980 = vector.load %arg4[%c35_1019, %c1_1020, %c0_1021] : memref<36x3x32xf32, #tpu.memory_space<vmem>>, vector<1x1x32xf32>
    %981 = vector.shape_cast %980 : vector<1x1x32xf32> to vector<1x32xf32>
    %982 = vector.broadcast %981 : vector<1x32xf32> to vector<32x32xf32>
    %983 = arith.mulf %979, %982 : vector<32x32xf32>
    %c35_1022 = arith.constant 35 : index
    %c2_1023 = arith.constant 2 : index
    %c0_1024 = arith.constant 0 : index
    %984 = vector.load %arg4[%c35_1022, %c2_1023, %c0_1024] : memref<36x3x32xf32, #tpu.memory_space<vmem>>, vector<1x1x32xf32>
    %985 = vector.shape_cast %984 : vector<1x1x32xf32> to vector<1x32xf32>
    %986 = vector.broadcast %985 : vector<1x32xf32> to vector<32x32xf32>
    %987 = arith.addf %983, %986 : vector<32x32xf32>
    %988 = arith.truncf %987 : vector<32x32xf32> to vector<32x32xbf16>
    %c0_1025 = arith.constant 0 : index
    %c0_1026 = arith.constant 0 : index
    %989 = vector.load %arg7[%c0_1025, %c0_1026] : memref<32x16xbf16, #tpu.memory_space<vmem>>, vector<32x16xbf16>
    %cst_1027 = arith.constant dense<0.000000e+00> : vector<32x16xf32>
    %990 = tpu.matmul %988, %989, %cst_1027 {dimension_numbers = #tpu.dot_dimension_numbers<[1], [0], [0], [1], [0, 0, 1, 1], [], []>} : vector<32x32xbf16>, vector<32x16xbf16>, vector<32x16xf32> -> vector<32x16xf32>
    %c0_1028 = arith.constant 0 : index
    %c0_1029 = arith.constant 0 : index
    %991 = vector.load %arg8[%c0_1028, %c0_1029] : memref<1x16xf32, #tpu.memory_space<vmem>>, vector<1x16xf32>
    %992 = vector.broadcast %991 : vector<1x16xf32> to vector<32x16xf32>
    %993 = arith.addf %990, %992 : vector<32x16xf32>
    %994 = arith.mulf %993, %9 : vector<32x16xf32>
    %c0_1030 = arith.constant 0 : index
    %c0_1031 = arith.constant 0 : index
    %995 = vector.load %arg9[%c0_1030, %c0_1031] : memref<32x16xf32, #tpu.memory_space<vmem>>, vector<32x16xf32>
    tpu.vector_store %arg9[%c0_1030, %c0_1031], %994 {strides = array<i32>} : memref<32x16xf32, #tpu.memory_space<vmem>>, vector<32x16xf32>,
    return
  }
  func.func @transform_0(%arg0: i32) -> (i32, i32) {
    %c0_i32 = arith.constant 0 : i32
    %c0_i32_0 = arith.constant 0 : i32
    return %arg0, %c0_i32 : i32, i32
  }
  func.func @transform_1(%arg0: i32) -> (i32, i32) {
    %c0_i32 = arith.constant 0 : i32
    %c0_i32_0 = arith.constant 0 : i32
    return %arg0, %c0_i32 : i32, i32
  }
  func.func @transform_2(%arg0: i32) -> (i32, i32, i32) {
    %c0_i32 = arith.constant 0 : i32
    %c0_i32_0 = arith.constant 0 : i32
    %c0_i32_1 = arith.constant 0 : i32
    %c0_i32_2 = arith.constant 0 : i32
    return %c0_i32, %c0_i32_0, %c0_i32_1 : i32, i32, i32
  }
  func.func @transform_3(%arg0: i32) -> (i32, i32, i32) {
    %c0_i32 = arith.constant 0 : i32
    %c0_i32_0 = arith.constant 0 : i32
    %c0_i32_1 = arith.constant 0 : i32
    %c0_i32_2 = arith.constant 0 : i32
    return %c0_i32, %c0_i32_0, %c0_i32_1 : i32, i32, i32
  }
  func.func @transform_4(%arg0: i32) -> (i32, i32) {
    %c0_i32 = arith.constant 0 : i32
    %c0_i32_0 = arith.constant 0 : i32
    %c0_i32_1 = arith.constant 0 : i32
    return %c0_i32, %c0_i32_0 : i32, i32
  }
  func.func @transform_5(%arg0: i32) -> (i32, i32) {
    %c0_i32 = arith.constant 0 : i32
    %c0_i32_0 = arith.constant 0 : i32
    %c0_i32_1 = arith.constant 0 : i32
    return %c0_i32, %c0_i32_0 : i32, i32
  }
  func.func @transform_6(%arg0: i32) -> (i32, i32) {
    %c0_i32 = arith.constant 0 : i32
    %c0_i32_0 = arith.constant 0 : i32
    %c0_i32_1 = arith.constant 0 : i32
    return %c0_i32, %c0_i32_0 : i32, i32
  }
  func.func @transform_7(%arg0: i32) -> (i32, i32) {
    %c0_i32 = arith.constant 0 : i32
    %c0_i32_0 = arith.constant 0 : i32
    %c0_i32_1 = arith.constant 0 : i32
    return %c0_i32, %c0_i32_0 : i32, i32
  }
  func.func @transform_8(%arg0: i32) -> (i32, i32) {
    %c0_i32 = arith.constant 0 : i32
    %c0_i32_0 = arith.constant 0 : i32
    return %arg0, %c0_i32 : i32, i32
  }
}

</mosaic_0001>

<bundles_post_ra>
// kernel: tpu_custom_call.1
= control target key start
LH: loop header
LB: loop body
LE: loop exit
PB: predicated region body
PF: predicated region fallthrough
CT: control target
= control target key end

     0   :  { %vm30_vm0 = vcmask 261120   ;;  %v11878_v0 = vmov 0   ;;  %v11879_v3 = vmov 0.0   ;;  %s11880_s12 = smov 32   ;;  %s11881_s15 = smov 64   ;;  %vm143_vm1 = vcmask 523264   ;;  %s14406_s1 = inlined_call_operand.vmem [shape: f32[32,1], index: 1, kind: input, shape index: {}]   ;;  %s14407_s2 = inlined_call_operand.vmem [shape: bf16[36,128,32], index: 2, kind: input, shape index: {}]   ;;  %s14408_s0 = inlined_call_operand.vmem [shape: f32[32,32], index: 0, kind: input, shape index: {}]   ;;  %s14409_s3 = inlined_call_operand.vmem [shape: f32[36,3,32], index: 3, kind: input, shape index: {}]   ;;  %s14410_s4 = inlined_call_operand.vmem [shape: bf16[32,32], index: 4, kind: input, shape index: {}]   ;;  %s14411_s5 = inlined_call_operand.vmem [shape: f32[1,32], index: 5, kind: input, shape index: {}]   ;;  %s14412_s6 = inlined_call_operand.vmem [shape: bf16[32,16], index: 6, kind: input, shape index: {}]   ;;  %s14413_s7 = inlined_call_operand.vmem [shape: f32[1,16], index: 7, kind: input, shape index: {}]   ;;  %s14414_s8 = inlined_call_operand.vmem [shape: f32[32,16], index: 8, kind: output, shape index: {}]  }
   0x1   :  { %10501 = vset.pattern.permute.xlu1 %v11878_v0  ;;  %10500 = vset.pattern.permute.xlu0 %v11878_v0  ;;  %v45_v1 = vld [vmem:[%s14406_s1 + $0x10] sm:$0xff]  ;;  %v43_v2 = vld [vmem:[%s14406_s1] sm:$0xff]  ;;  %34 = vst.msk [vmem:[#allocation2 + $0x38] sm:$0xff] %vm30_vm0, %v11879_v3  ;;  %37 = vst.msk [vmem:[#allocation2 + $0x50] sm:$0xff] %vm30_vm0, %v11879_v3  ;;  %s11882_s16 = smov 96   ;;  %vm148_vm2 = vcmask 785408  }
   0x2   :  { %31 = vst.msk [vmem:[#allocation2] sm:$0xff] %vm30_vm0, %v11879_v3  ;;  %32 = vst.msk [vmem:[#allocation2 + $0x8] sm:$0xff] %vm30_vm0, %v11879_v3  ;;  %59 = vperm.xlu1 %10501, %v45_v1   ;;  %49 = vperm.xlu0 %10500, %v43_v2   ;;  %v46_v4 = vld [vmem:[%s14406_s1 + $0x18] sm:$0xff]  ;;  %v44_v5 = vld [vmem:[%s14406_s1 + $0x8] sm:$0xff]  ;;  %vm8311_vm3 = vcmask 130048  }
   0x3   :  { %33 = vst.msk [vmem:[#allocation2 + $0x30] sm:$0xff] %vm30_vm0, %v11879_v3  ;;  %35 = vst.msk [vmem:[#allocation2 + $0x20] sm:$0xff] %vm30_vm0, %v11879_v3  ;;  %v11582_v6 = vld [vmem:[%s14407_s2 + $0x38] sm:$0xff]   ;;  %v11583_v7 = vld [vmem:[%s14407_s2 + $0x30] sm:$0xff]  }
   0x4   :  { %36 = vst.msk [vmem:[#allocation2 + $0x28] sm:$0xff] %vm30_vm0, %v11879_v3  ;;  %38 = vst.msk [vmem:[#allocation2 + $0x58] sm:$0xff] %vm30_vm0, %v11879_v3  ;;  %9759 = vmatprep.subr.bf16.mxu0 %v11582_v6  ;;  %v11584_v8 = vld [vmem:[%s14407_s2 + $0x28] sm:$0xff]   ;;  %v11585_v9 = vld [vmem:[%s14407_s2 + $0x20] sm:$0xff]  }
   0x5   :  { %9760 = vmatpush3.bf16.msra.mxu0 %v11582_v6  ;;  %v11586_v10 = vld [vmem:[%s14407_s2 + $0x18] sm:$0xff]   ;;  %v41_v11 = vld [vmem:[%s14408_s0 + $0x10] sm:$0xff]  ;;  %v39_v12 = vld [vmem:[%s14408_s0] sm:$0xff] }
   0x6   :  { %64 = vperm.xlu1 %10501, %v46_v4   ;;  %54 = vperm.xlu0 %10500, %v44_v5   ;;  %v42_v15 = vld [vmem:[%s14408_s0 + $0x18] sm:$0xff]  ;;  %v40_v16 = vld [vmem:[%s14408_s0 + $0x8] sm:$0xff]  ;;  %v11587_v23 = vld [vmem:[%s14407_s2 + $0x10] sm:$0xff]  }
   0x7   :  { %9761 = vmatprep.subr.bf16.mxu0 %v11583_v7  ;;  %v11588_v24 = vld [vmem:[%s14407_s2 + $0x8] sm:$0xff]   ;;  %v11589_v37 = vld [vmem:[%s14407_s2] sm:$0xff]  }
   0x9   :  { %9762 = vmatpush3.bf16.msra.mxu0 %v11583_v7 }
   0xa   :  { %9763 = vmatprep.subr.bf16.mxu0 %v11584_v8 }
   0xd   :  { %9764 = vmatpush3.bf16.msra.mxu0 %v11584_v8 }
   0xe   :  { %9765 = vmatprep.subr.bf16.mxu0 %v11585_v9 }
  0x11   :  { %9766 = vmatpush3.bf16.msra.mxu0 %v11585_v9 }
  0x12   :  { %9767 = vmatprep.subr.bf16.mxu0 %v11586_v10 }
  0x15   :  { %9768 = vmatpush3.bf16.msra.mxu0 %v11586_v10 }
  0x16   :  { %9769 = vmatprep.subr.bf16.mxu0 %v11587_v23 }
  0x19   :  { %9770 = vmatpush3.bf16.msra.mxu0 %v11587_v23 }
  0x1a   :  { %9771 = vmatprep.subr.bf16.mxu0 %v11588_v24 }
  0x1d   :  { %9772 = vmatpush3.bf16.msra.mxu0 %v11588_v24  ;;  %v11590_v24 = vld [vmem:[%s14407_s2 + $0x78] sm:$0xff]  }
  0x1e   :  { %9773 = vmatprep.subr.bf16.mxu0 %v11589_v37  ;;  %9779 = vmatprep.subr.bf16.mxu1 %v11590_v24 }
  0x1f   :  { %9780 = vmatpush3.bf16.msra.mxu1 %v11590_v24 }
  0x21   :  { %9774 = vmatpush3.bf16.msra.mxu0 %v11589_v37 }
  0x7d   :  { %v11969_v13 = vpop.permute.xlu1 %59  ;;  %v11971_v14 = vpop.permute.xlu0 %49 }
  0x7e   :  { %v11980_v17 = vmul.f32 %v11969_v13, %v41_v11  ;;  %v11983_v18 = vmul.f32 %v11971_v14, %v39_v12 }
  0x80   :  { %73 = vst.msk [vmem:[#allocation2 + $0x40] sm:$0xff] %vm30_vm0, %v11980_v17  ;;  %71 = vst.msk [vmem:[#allocation2 + $0x10] sm:$0xff] %vm30_vm0, %v11983_v18 }
  0x81   :  { %v11989_v19 = vpop.permute.xlu1 %64  ;;  %v11991_v20 = vpop.permute.xlu0 %54 }
  0x82   :  { %v11994_v21 = vmul.f32 %v11989_v19, %v42_v15  ;;  %v11997_v22 = vmul.f32 %v11991_v20, %v40_v16 }
  0x84   :  { %74 = vst.msk [vmem:[#allocation2 + $0x48] sm:$0xff] %vm30_vm0, %v11994_v21  ;;  %72 = vst.msk [vmem:[#allocation2 + $0x18] sm:$0xff] %vm30_vm0, %v11997_v22 }
  0x87   :  { %v81_v25 = vld [vmem:[#allocation2 + $0x40] sm:$0xff]  ;;  %v79_v28 = vld [vmem:[#allocation2 + $0x10] sm:$0xff] }
  0x88   :  { %v77_v54 = vld [vmem:[#allocation2 + $0x3f] sm:$0xff]  ;;  %v75_v59 = vld [vmem:[#allocation2 + $0xf] sm:$0xff] }
  0x8b   :  { %v82_v26 = vld [vmem:[#allocation2 + $0x48] sm:$0xff]  ;;  %v80_v31 = vld [vmem:[#allocation2 + $0x18] sm:$0xff] }
  0x8c   :  { %v10507_v27 = vpack.i.bf16 %v82_v26, %v81_v25  ;;  %v85_v29 = vld [vmem:[#allocation2 + $0x41] sm:$0xff]  ;;  %v86_v30 = vld [vmem:[#allocation2 + $0x49] sm:$0xff]  ;;  %v83_v32 = vld [vmem:[#allocation2 + $0x11] sm:$0xff]  ;;  %v10502_v34 = vpack.i.bf16 %v80_v31, %v79_v28 }
  0x8d   :  { %v84_v33 = vld [vmem:[#allocation2 + $0x19] sm:$0xff]  ;;  %v89_v35 = vld [vmem:[#allocation2 + $0x42] sm:$0xff]  ;;  %v90_v36 = vld [vmem:[#allocation2 + $0x4a] sm:$0xff]  ;;  %v10517_v38 = vpack.i.bf16 %v86_v30, %v85_v29 }
  0x8e   :  { %10508 = vrot.lane.b32.xlu1 %v10507_v27, %s11880_s12  ;;  %10503 = vrot.lane.b32.xlu0 %v10502_v34, %s11880_s12  ;;  %v87_v39 = vld [vmem:[#allocation2 + $0x12] sm:$0xff]  ;;  %v88_v40 = vld [vmem:[#allocation2 + $0x1a] sm:$0xff]  ;;  %v10512_v41 = vpack.i.bf16 %v84_v33, %v83_v32  ;;  %v10527_v42 = vpack.i.bf16 %v90_v36, %v89_v35  ;;  %v78_v55 = vld [vmem:[#allocation2 + $0x47] sm:$0xff] }
  0x8f   :  { %v10522_v43 = vpack.i.bf16 %v88_v40, %v87_v39  ;;  %v76_v60 = vld [vmem:[#allocation2 + $0x17] sm:$0xff]  ;;  %v11592_v26 = vld [vmem:[%s14407_s2 + $0x68] sm:$0xff]   ;;  %v11593_v27 = vld [vmem:[%s14407_s2 + $0x60] sm:$0xff]  }
  0x90   :  { %v11591_v25 = vld [vmem:[%s14407_s2 + $0x70] sm:$0xff]   ;;  %v8320_v28 = vld [vmem:[%s14409_s3] ss:$0 sm:$0xff]  ;;  %v8329_v31 = vld [vmem:[%s14409_s3 + $0x1] ss:$0 sm:$0xff] }
  0x91   :  { %9781 = vmatprep.subr.bf16.mxu1 %v11591_v25  ;;  %v8330_v35 = vld [vmem:[%s14409_s3 + $0x2] ss:$0 sm:$0xff] }
  0x92   :  { %10518 = vrot.lane.b32.xlu1 %v10517_v38, %s11881_s15  ;;  %10513 = vrot.lane.b32.xlu0 %v10512_v41, %s11881_s15 }
  0x93   :  { %9782 = vmatpush3.bf16.msra.mxu1 %v11591_v25 }
  0x94   :  { %9783 = vmatprep.subr.bf16.mxu1 %v11592_v26 }
  0x96   :  { %10528 = vrot.lane.b32.xlu1 %v10527_v42, %s11882_s16  ;;  %10523 = vrot.lane.b32.xlu0 %v10522_v43, %s11882_s16 }
  0x97   :  { %9784 = vmatpush3.bf16.msra.mxu1 %v11592_v26 }
  0x98   :  { %9785 = vmatprep.subr.bf16.mxu1 %v11593_v27 }
  0x9b   :  { %9786 = vmatpush3.bf16.msra.mxu1 %v11593_v27 }
 0x100   :  { %v10509_v44 = vpop.permute.xlu1 %10508  ;;  %v10504_v45 = vpop.permute.xlu0 %10503 }
 0x101   :  { %v10511_v47 = vunpack.i.h.bf16 %v10509_v44  ;;  %v10510_v48 = vunpack.i.l.bf16 %v10509_v44  ;;  %v10506_v49 = vunpack.i.h.bf16 %v10504_v45  ;;  %v10505_v50 = vunpack.i.l.bf16 %v10504_v45 }
 0x103   :  { %v141_v61 = vsel %vm30_vm0, %v77_v54, %v10510_v48  ;;  %v142_v62 = vsel %vm30_vm0, %v78_v55, %v10511_v47  ;;  %v139_v2 = vsel %vm30_vm0, %v75_v59, %v10505_v50  ;;  %v140_v3 = vsel %vm30_vm0, %v76_v60, %v10506_v49  ;;  %v11594_v48 = vld [vmem:[%s14407_s2 + $0x58] sm:$0xff]  }
 0x104   :  { %v10519_v46 = vpop.permute.xlu1 %10518  ;;  %v10514_v53 = vpop.permute.xlu0 %10513  ;;  %9787 = vmatprep.subr.bf16.mxu1 %v11594_v48 }
 0x105   :  { %v10521_v51 = vunpack.i.h.bf16 %v10519_v46  ;;  %v10520_v52 = vunpack.i.l.bf16 %v10519_v46  ;;  %v10516_v56 = vunpack.i.h.bf16 %v10514_v53  ;;  %v10515_v57 = vunpack.i.l.bf16 %v10514_v53  ;;  %9788 = vmatpush3.bf16.msra.mxu1 %v11594_v48  ;;  %v11596_v53 = vld [vmem:[%s14407_s2 + $0x48] sm:$0xff]  }
 0x107   :  { %v146_v4 = vsel %vm143_vm1, %v141_v61, %v10520_v52  ;;  %v147_v5 = vsel %vm143_vm1, %v142_v62, %v10521_v51  ;;  %v144_v10 = vsel %vm143_vm1, %v139_v2, %v10515_v57  ;;  %v145_v11 = vsel %vm143_vm1, %v140_v3, %v10516_v56  ;;  %v11595_v52 = vld [vmem:[%s14407_s2 + $0x50] sm:$0xff]  }
 0x108   :  { %v10529_v58 = vpop.permute.xlu1 %10528  ;;  %v10524_v1 = vpop.permute.xlu0 %10523  ;;  %9789 = vmatprep.subr.bf16.mxu1 %v11595_v52 }
 0x109   :  { %v10531_v63 = vunpack.i.h.bf16 %v10529_v58  ;;  %v10530_v0 = vunpack.i.l.bf16 %v10529_v58  ;;  %v10526_v6 = vunpack.i.h.bf16 %v10524_v1  ;;  %v10525_v7 = vunpack.i.l.bf16 %v10524_v1  ;;  %9790 = vmatpush3.bf16.msra.mxu1 %v11595_v52 }
 0x10a   :  { %9791 = vmatprep.subr.bf16.mxu1 %v11596_v53 }
 0x10b   :  { %v151_v8 = vsel %vm148_vm2, %v146_v4, %v10530_v0  ;;  %v152_v9 = vsel %vm148_vm2, %v147_v5, %v10531_v63  ;;  %v149_v12 = vsel %vm148_vm2, %v144_v10, %v10525_v7  ;;  %v150_v15 = vsel %vm148_vm2, %v145_v11, %v10526_v6  ;;  %v11597_v0 = vld [vmem:[%s14407_s2 + $0x40] sm:$0xff]  }
 0x10c   :  { %v154_v16 = vpack.c.bf16 %v152_v9, %v151_v8  ;;  %v153_v23 = vpack.c.bf16 %v150_v15, %v149_v12 }
 0x10d   :  { %9792 = vmatpush3.bf16.msra.mxu1 %v11596_v53  ;;  %v11598_v53 = vld [vmem:[%s14407_s2 + $0xb8] sm:$0xff]  }
 0x10e   :  { %9775 = vmatprep.mubr.bf16.mxu0 %v153_v23  ;;  %9793 = vmatprep.subr.bf16.mxu1 %v11597_v0 }
 0x10f   :  { %9776 = vmatmul.mubr.bf16.vlgmr.msra.gmra.mxu0 %v154_v16  ;;  %9799 = vmatprep.subr.bf16.mxu0 %v11598_v53 }
 0x110   :  { %9800 = vmatpush3.bf16.msra.mxu0 %v11598_v53 }
 0x111   :  { %9794 = vmatpush3.bf16.msra.mxu1 %v11597_v0  ;;  %v8360_v0 = vld [vmem:[%s14409_s3 + $0x6] ss:$0 sm:$0xff] }
 0x1cf   :  { %v9777_v29 = vpop.f32.mrf.mxu0 }
 0x1d0   :  { %v267_v30 = vadd.f32 %v9777_v29, %v8320_v28 }
 0x1d1   :  { %v258_v32 = vpop.f32.mrf.mxu0 }
 0x1d2   :  { %v275_v33 = vmax.f32 %v267_v30, 0.0  ;;  %v259_v34 = vadd.f32 %v8320_v28, %v258_v32 }
 0x1d3   :  { %v9778_v36 = vpop.f32.mrf.mxu0 }
 0x1d4   :  { %v284_v37 = vmul.f32 %v8329_v31, %v275_v33  ;;  %v273_v38 = vmax.f32 %v259_v34, 0.0  ;;  %v270_v39 = vadd.f32 %v9778_v36, %v8320_v28 }
 0x1d5   :  { %v261_v40 = vpop.f32.mrf.mxu0 }
 0x1d6   :  { %v293_v41 = vadd.f32 %v8330_v35, %v284_v37  ;;  %v282_v42 = vmul.f32 %v8329_v31, %v273_v38  ;;  %v276_v43 = vmax.f32 %v270_v39, 0.0  ;;  %v262_v44 = vadd.f32 %v8320_v28, %v261_v40 }
 0x1d8   :  { %297 = vst.msk [vmem:[#allocation2 + $0x40] sm:$0xff] %vm30_vm0, %v293_v41  ;;  %v291_v45 = vadd.f32 %v8330_v35, %v282_v42  ;;  %v285_v46 = vmul.f32 %v8329_v31, %v276_v43  ;;  %v274_v47 = vmax.f32 %v262_v44, 0.0 }
 0x1da   :  { %295 = vst.msk [vmem:[#allocation2 + $0x10] sm:$0xff] %vm30_vm0, %v291_v45  ;;  %v294_v49 = vadd.f32 %v8330_v35, %v285_v46  ;;  %v283_v50 = vmul.f32 %v8329_v31, %v274_v47 }
 0x1dc   :  { %298 = vst.msk [vmem:[#allocation2 + $0x48] sm:$0xff] %vm30_vm0, %v294_v49  ;;  %v292_v51 = vadd.f32 %v8330_v35, %v283_v50 }
 0x1de   :  { %296 = vst.msk [vmem:[#allocation2 + $0x18] sm:$0xff] %vm30_vm0, %v292_v51 }
 0x1df   :  { %v305_v54 = vld [vmem:[#allocation2 + $0x40] sm:$0xff] }
 0x1e0   :  { %v301_v27 = vld [vmem:[#allocation2 + $0x3f] sm:$0xff] }
 0x1e1   :  { %v303_v57 = vld [vmem:[#allocation2 + $0x10] sm:$0xff] }
 0x1e2   :  { %v299_v32 = vld [vmem:[#allocation2 + $0xf] sm:$0xff] }
 0x1e3   :  { %v306_v55 = vld [vmem:[#allocation2 + $0x48] sm:$0xff] }
 0x1e4   :  { %v10532_v56 = vpack.i.bf16 %v306_v55, %v305_v54  ;;  %v309_v58 = vld [vmem:[#allocation2 + $0x41] sm:$0xff]  ;;  %v310_v59 = vld [vmem:[#allocation2 + $0x49] sm:$0xff] }
 0x1e5   :  { %v304_v60 = vld [vmem:[#allocation2 + $0x18] sm:$0xff]  ;;  %v10537_v1 = vpack.i.bf16 %v310_v59, %v309_v58  ;;  %v313_v2 = vld [vmem:[#allocation2 + $0x42] sm:$0xff]  ;;  %v314_v3 = vld [vmem:[#allocation2 + $0x4a] sm:$0xff] }
 0x1e6   :  { %10533 = vrot.lane.b32.xlu1 %v10532_v56, %s11880_s12  ;;  %v10542_v61 = vpack.i.bf16 %v304_v60, %v303_v57  ;;  %v307_v62 = vld [vmem:[#allocation2 + $0x11] sm:$0xff]  ;;  %v308_v63 = vld [vmem:[#allocation2 + $0x19] sm:$0xff]  ;;  %v10557_v7 = vpack.i.bf16 %v314_v3, %v313_v2  ;;  %v302_v31 = vld [vmem:[#allocation2 + $0x47] sm:$0xff] }
 0x1e7   :  { %v10547_v4 = vpack.i.bf16 %v308_v63, %v307_v62  ;;  %v311_v5 = vld [vmem:[#allocation2 + $0x12] sm:$0xff]  ;;  %v312_v6 = vld [vmem:[#allocation2 + $0x1a] sm:$0xff]  ;;  %v11600_v55 = vld [vmem:[%s14407_s2 + $0xa8] sm:$0xff]  }
 0x1e8   :  { %10543 = vrot.lane.b32.xlu0 %v10542_v61, %s11880_s12  ;;  %v10552_v8 = vpack.i.bf16 %v312_v6, %v311_v5  ;;  %v300_v33 = vld [vmem:[#allocation2 + $0x17] sm:$0xff]  ;;  %v11601_v56 = vld [vmem:[%s14407_s2 + $0xa0] sm:$0xff]  }
 0x1e9   :  { %v11599_v54 = vld [vmem:[%s14407_s2 + $0xb0] sm:$0xff]   ;;  %v8348_v57 = vld [vmem:[%s14409_s3 + $0x4] ss:$0 sm:$0xff]  ;;  %v8358_v60 = vld [vmem:[%s14409_s3 + $0x5] ss:$0 sm:$0xff] }
 0x1ea   :  { %10538 = vrot.lane.b32.xlu1 %v10537_v1, %s11881_s15  ;;  %9801 = vmatprep.subr.bf16.mxu0 %v11599_v54 }
 0x1eb   :  { %9802 = vmatpush3.bf16.msra.mxu0 %v11599_v54 }
 0x1ec   :  { %10548 = vrot.lane.b32.xlu0 %v10547_v4, %s11881_s15  ;;  %9803 = vmatprep.subr.bf16.mxu0 %v11600_v55 }
 0x1ee   :  { %10558 = vrot.lane.b32.xlu1 %v10557_v7, %s11882_s16 }
 0x1ef   :  { %9804 = vmatpush3.bf16.msra.mxu0 %v11600_v55 }
 0x1f0   :  { %10553 = vrot.lane.b32.xlu0 %v10552_v8, %s11882_s16  ;;  %9805 = vmatprep.subr.bf16.mxu0 %v11601_v56 }
 0x1f3   :  { %9806 = vmatpush3.bf16.msra.mxu0 %v11601_v56 }
 0x258   :  { %v10534_v9 = vpop.permute.xlu1 %10533 }
 0x259   :  { %v10536_v12 = vunpack.i.h.bf16 %v10534_v9  ;;  %v10535_v15 = vunpack.i.l.bf16 %v10534_v9 }
 0x25a   :  { %v10544_v10 = vpop.permute.xlu0 %10543 }
 0x25b   :  { %v10546_v16 = vunpack.i.h.bf16 %v10544_v10  ;;  %v10545_v23 = vunpack.i.l.bf16 %v10544_v10  ;;  %v365_v36 = vsel %vm30_vm0, %v301_v27, %v10535_v15  ;;  %v366_v37 = vsel %vm30_vm0, %v302_v31, %v10536_v12 }
 0x25c   :  { %v10539_v11 = vpop.permute.xlu1 %10538 }
 0x25d   :  { %v10541_v25 = vunpack.i.h.bf16 %v10539_v11  ;;  %v10540_v26 = vunpack.i.l.bf16 %v10539_v11  ;;  %v363_v39 = vsel %vm30_vm0, %v299_v32, %v10545_v23  ;;  %v364_v40 = vsel %vm30_vm0, %v300_v33, %v10546_v16 }
 0x25e   :  { %v10549_v24 = vpop.permute.xlu0 %10548 }
 0x25f   :  { %v10551_v28 = vunpack.i.h.bf16 %v10549_v24  ;;  %v10550_v29 = vunpack.i.l.bf16 %v10549_v24  ;;  %v369_v43 = vsel %vm143_vm1, %v365_v36, %v10540_v26  ;;  %v370_v44 = vsel %vm143_vm1, %v366_v37, %v10541_v25 }
 0x260   :  { %v10559_v30 = vpop.permute.xlu1 %10558 }
 0x261   :  { %v10561_v34 = vunpack.i.h.bf16 %v10559_v30  ;;  %v10560_v35 = vunpack.i.l.bf16 %v10559_v30  ;;  %v367_v45 = vsel %vm143_vm1, %v363_v39, %v10550_v29  ;;  %v368_v46 = vsel %vm143_vm1, %v364_v40, %v10551_v28  ;;  %v11603_v30 = vld [vmem:[%s14407_s2 + $0x90] sm:$0xff]  }
 0x262   :  { %v10554_v38 = vpop.permute.xlu0 %10553 }
 0x263   :  { %v10556_v41 = vunpack.i.h.bf16 %v10554_v38  ;;  %v10555_v42 = vunpack.i.l.bf16 %v10554_v38  ;;  %v373_v47 = vsel %vm148_vm2, %v369_v43, %v10560_v35  ;;  %v374_v48 = vsel %vm148_vm2, %v370_v44, %v10561_v34 }
 0x264   :  { %v376_v52 = vpack.c.bf16 %v374_v48, %v373_v47 }
 0x265   :  { %v371_v49 = vsel %vm148_vm2, %v367_v45, %v10555_v42  ;;  %v372_v50 = vsel %vm148_vm2, %v368_v46, %v10556_v41  ;;  %v11605_v41 = vld [vmem:[%s14407_s2 + $0x80] sm:$0xff]  }
 0x266   :  { %v375_v51 = vpack.c.bf16 %v372_v50, %v371_v49 }
 0x268   :  { %9795 = vmatprep.mubr.bf16.mxu1 %v375_v51 }
 0x269   :  { %9796 = vmatmul.mubr.bf16.vlgmr.msra.gmra.mxu1 %v376_v52 }
 0x329   :  { %v9797_v58 = vpop.f32.mrf.mxu1 }
 0x32a   :  { %v491_v59 = vadd.f32 %v9797_v58, %v8348_v57 }
 0x32b   :  { %v482_v61 = vpop.f32.mrf.mxu1 }
 0x32c   :  { %v499_v62 = vmax.f32 %v491_v59, 0.0  ;;  %v483_v63 = vadd.f32 %v8348_v57, %v482_v61 }
 0x32d   :  { %v9798_v1 = vpop.f32.mrf.mxu1 }
 0x32e   :  { %v508_v2 = vmul.f32 %v8358_v60, %v499_v62  ;;  %v497_v3 = vmax.f32 %v483_v63, 0.0  ;;  %v494_v4 = vadd.f32 %v9798_v1, %v8348_v57 }
 0x32f   :  { %v485_v5 = vpop.f32.mrf.mxu1 }
 0x330   :  { %v517_v6 = vadd.f32 %v8360_v0, %v508_v2  ;;  %v506_v7 = vmul.f32 %v8358_v60, %v497_v3  ;;  %v500_v8 = vmax.f32 %v494_v4, 0.0  ;;  %v486_v9 = vadd.f32 %v8348_v57, %v485_v5 }
 0x332   :  { %v521_v10 = vadd.f32 %v517_v6, %v11980_v17  ;;  %v515_v11 = vadd.f32 %v8360_v0, %v506_v7  ;;  %v509_v12 = vmul.f32 %v8358_v60, %v500_v8  ;;  %v498_v15 = vmax.f32 %v486_v9, 0.0  ;;  %v11602_v17 = vld [vmem:[%s14407_s2 + $0x98] sm:$0xff]  }
 0x333   :  { %9807 = vmatprep.subr.bf16.mxu0 %v11602_v17 }
 0x334   :  { %v12108_v16 = vmul.f32 %v521_v10, %v11969_v13  ;;  %v519_v23 = vadd.f32 %v515_v11, %v11983_v18  ;;  %v518_v24 = vadd.f32 %v8360_v0, %v509_v12  ;;  %v507_v25 = vmul.f32 %v8358_v60, %v498_v15  ;;  %9808 = vmatpush3.bf16.msra.mxu0 %v11602_v17 }
 0x335   :  { %9809 = vmatprep.subr.bf16.mxu0 %v11603_v30 }
 0x336   :  { %529 = vst.msk [vmem:[#allocation2 + $0x40] sm:$0xff] %vm30_vm0, %v12108_v16  ;;  %v12114_v26 = vmul.f32 %v519_v23, %v11971_v14  ;;  %v522_v27 = vadd.f32 %v518_v24, %v11994_v21  ;;  %v516_v28 = vadd.f32 %v8360_v0, %v507_v25 }
 0x338   :  { %527 = vst.msk [vmem:[#allocation2 + $0x10] sm:$0xff] %vm30_vm0, %v12114_v26  ;;  %v12123_v18 = vmul.f32 %v522_v27, %v11989_v19  ;;  %v520_v29 = vadd.f32 %v516_v28, %v11997_v22  ;;  %9810 = vmatpush3.bf16.msra.mxu0 %v11603_v30  ;;  %v11604_v22 = vld [vmem:[%s14407_s2 + $0x88] sm:$0xff]  }
 0x339   :  { %9811 = vmatprep.subr.bf16.mxu0 %v11604_v22 }
 0x33a   :  { %530 = vst.msk [vmem:[#allocation2 + $0x48] sm:$0xff] %vm30_vm0, %v12123_v18  ;;  %v12129_v21 = vmul.f32 %v520_v29, %v11991_v20 }
 0x33c   :  { %528 = vst.msk [vmem:[#allocation2 + $0x18] sm:$0xff] %vm30_vm0, %v12129_v21  ;;  %9812 = vmatpush3.bf16.msra.mxu0 %v11604_v22  ;;  %v11606_v22 = vld [vmem:[%s14407_s2 + $0xf8] sm:$0xff]  }
 0x33d   :  { %v537_v31 = vld [vmem:[#allocation2 + $0x3f] sm:$0xff]  ;;  %9813 = vmatprep.subr.bf16.mxu0 %v11605_v41  ;;  %9819 = vmatprep.subr.bf16.mxu1 %v11606_v22 }
 0x33e   :  { %v533_v60 = vld [vmem:[#allocation2 + $0x3d] sm:$0xff]  ;;  %9820 = vmatpush3.bf16.msra.mxu1 %v11606_v22 }
 0x33f   :  { %v535_v33 = vld [vmem:[#allocation2 + $0xf] sm:$0xff] }
 0x340   :  { %9814 = vmatpush3.bf16.msra.mxu0 %v11605_v41  ;;  %v531_v0 = vld [vmem:[#allocation2 + $0xd] sm:$0xff]  ;;  %v8390_v41 = vld [vmem:[%s14409_s3 + $0xa] ss:$0 sm:$0xff] }
 0x341   :  { %v538_v32 = vld [vmem:[#allocation2 + $0x47] sm:$0xff] }
 0x342   :  { %v10562_v34 = vpack.i.bf16 %v538_v32, %v537_v31  ;;  %v541_v35 = vld [vmem:[#allocation2 + $0x41] sm:$0xff]  ;;  %v542_v36 = vld [vmem:[#allocation2 + $0x49] sm:$0xff] }
 0x343   :  { %v536_v37 = vld [vmem:[#allocation2 + $0x17] sm:$0xff]  ;;  %v10567_v42 = vpack.i.bf16 %v542_v36, %v541_v35  ;;  %v545_v43 = vld [vmem:[#allocation2 + $0x43] sm:$0xff]  ;;  %v546_v44 = vld [vmem:[#allocation2 + $0x4b] sm:$0xff] }
 0x344   :  { %10563 = vrot.lane.b32.xlu1 %v10562_v34, %s11880_s12  ;;  %v10572_v38 = vpack.i.bf16 %v536_v37, %v535_v33  ;;  %v539_v39 = vld [vmem:[#allocation2 + $0x11] sm:$0xff]  ;;  %v540_v40 = vld [vmem:[#allocation2 + $0x19] sm:$0xff]  ;;  %v10587_v48 = vpack.i.bf16 %v546_v44, %v545_v43  ;;  %v534_v1 = vld [vmem:[#allocation2 + $0x45] sm:$0xff] }
 0x345   :  { %v10577_v45 = vpack.i.bf16 %v540_v40, %v539_v39  ;;  %v543_v46 = vld [vmem:[#allocation2 + $0x13] sm:$0xff]  ;;  %v544_v47 = vld [vmem:[#allocation2 + $0x1b] sm:$0xff]  ;;  %v11608_v32 = vld [vmem:[%s14407_s2 + $0xe8] sm:$0xff]  }
 0x346   :  { %10573 = vrot.lane.b32.xlu0 %v10572_v38, %s11880_s12  ;;  %v10582_v49 = vpack.i.bf16 %v544_v47, %v543_v46  ;;  %v532_v2 = vld [vmem:[#allocation2 + $0x15] sm:$0xff]  ;;  %v11609_v33 = vld [vmem:[%s14407_s2 + $0xe0] sm:$0xff]   ;;  %v8378_v34 = vld [vmem:[%s14409_s3 + $0x8] ss:$0 sm:$0xff] }
 0x347   :  { %v11607_v31 = vld [vmem:[%s14407_s2 + $0xf0] sm:$0xff]   ;;  %v8388_v37 = vld [vmem:[%s14409_s3 + $0x9] ss:$0 sm:$0xff] }
 0x348   :  { %10568 = vrot.lane.b32.xlu1 %v10567_v42, %s11881_s15  ;;  %9821 = vmatprep.subr.bf16.mxu1 %v11607_v31 }
 0x349   :  { %9822 = vmatpush3.bf16.msra.mxu1 %v11607_v31 }
 0x34a   :  { %10578 = vrot.lane.b32.xlu0 %v10577_v45, %s11881_s15  ;;  %9823 = vmatprep.subr.bf16.mxu1 %v11608_v32 }
 0x34c   :  { %10588 = vrot.lane.b32.xlu1 %v10587_v48, %s11882_s16 }
 0x34d   :  { %9824 = vmatpush3.bf16.msra.mxu1 %v11608_v32 }
 0x34e   :  { %10583 = vrot.lane.b32.xlu0 %v10582_v49, %s11882_s16  ;;  %9825 = vmatprep.subr.bf16.mxu1 %v11609_v33 }
 0x351   :  { %9826 = vmatpush3.bf16.msra.mxu1 %v11609_v33 }
 0x3b6   :  { %v10564_v50 = vpop.permute.xlu1 %10563 }
 0x3b7   :  { %v10566_v53 = vunpack.i.h.bf16 %v10564_v50  ;;  %v10565_v54 = vunpack.i.l.bf16 %v10564_v50 }
 0x3b8   :  { %v10574_v51 = vpop.permute.xlu0 %10573 }
 0x3b9   :  { %v10576_v55 = vunpack.i.h.bf16 %v10574_v51  ;;  %v10575_v56 = vunpack.i.l.bf16 %v10574_v51  ;;  %v597_v5 = vsel %vm30_vm0, %v533_v60, %v10565_v54  ;;  %v598_v6 = vsel %vm30_vm0, %v534_v1, %v10566_v53  ;;  %v11610_v54 = vld [vmem:[%s14407_s2 + $0xd8] sm:$0xff]  }
 0x3ba   :  { %v10569_v52 = vpop.permute.xlu1 %10568  ;;  %9827 = vmatprep.subr.bf16.mxu1 %v11610_v54 }
 0x3bb   :  { %v10571_v58 = vunpack.i.h.bf16 %v10569_v52  ;;  %v10570_v59 = vunpack.i.l.bf16 %v10569_v52  ;;  %v595_v7 = vsel %vm30_vm0, %v531_v0, %v10575_v56  ;;  %v596_v8 = vsel %vm30_vm0, %v532_v2, %v10576_v55  ;;  %9828 = vmatpush3.bf16.msra.mxu1 %v11610_v54 }
 0x3bc   :  { %v10579_v57 = vpop.permute.xlu0 %10578 }
 0x3bd   :  { %v10581_v61 = vunpack.i.h.bf16 %v10579_v57  ;;  %v10580_v62 = vunpack.i.l.bf16 %v10579_v57  ;;  %v601_v10 = vsel %vm143_vm1, %v597_v5, %v10570_v59  ;;  %v602_v11 = vsel %vm143_vm1, %v598_v6, %v10571_v58  ;;  %v11611_v58 = vld [vmem:[%s14407_s2 + $0xd0] sm:$0xff]   ;;  %v11612_v59 = vld [vmem:[%s14407_s2 + $0xc8] sm:$0xff]   ;;  %v11613_v6 = vld [vmem:[%s14407_s2 + $0xc0] sm:$0xff]  }
 0x3be   :  { %v10589_v63 = vpop.permute.xlu1 %10588  ;;  %9829 = vmatprep.subr.bf16.mxu1 %v11611_v58 }
 0x3bf   :  { %v10591_v3 = vunpack.i.h.bf16 %v10589_v63  ;;  %v10590_v4 = vunpack.i.l.bf16 %v10589_v63  ;;  %v599_v25 = vsel %vm143_vm1, %v595_v7, %v10580_v62  ;;  %v600_v27 = vsel %vm143_vm1, %v596_v8, %v10581_v61  ;;  %9830 = vmatpush3.bf16.msra.mxu1 %v11611_v58 }
 0x3c0   :  { %v10584_v9 = vpop.permute.xlu0 %10583  ;;  %9831 = vmatprep.subr.bf16.mxu1 %v11612_v59 }
 0x3c1   :  { %v10586_v12 = vunpack.i.h.bf16 %v10584_v9  ;;  %v10585_v15 = vunpack.i.l.bf16 %v10584_v9  ;;  %v605_v23 = vsel %vm148_vm2, %v601_v10, %v10590_v4  ;;  %v606_v24 = vsel %vm148_vm2, %v602_v11, %v10591_v3 }
 0x3c2   :  { %v608_v30 = vpack.c.bf16 %v606_v24, %v605_v23 }
 0x3c3   :  { %v603_v28 = vsel %vm148_vm2, %v599_v25, %v10585_v15  ;;  %v604_v17 = vsel %vm148_vm2, %v600_v27, %v10586_v12  ;;  %9832 = vmatpush3.bf16.msra.mxu1 %v11612_v59  ;;  %v11614_v59 = vld [vmem:[%s14407_s2 + $0x138] sm:$0xff]  }
 0x3c4   :  { %v607_v29 = vpack.c.bf16 %v604_v17, %v603_v28  ;;  %9833 = vmatprep.subr.bf16.mxu1 %v11613_v6  ;;  %9839 = vmatprep.subr.bf16.mxu0 %v11614_v59 }
 0x3c6   :  { %9815 = vmatprep.mubr.bf16.mxu0 %v607_v29 }
 0x3c7   :  { %9816 = vmatmul.mubr.bf16.vlgmr.msra.gmra.mxu0 %v608_v30  ;;  %9834 = vmatpush3.bf16.msra.mxu1 %v11613_v6  ;;  %v8420_v6 = vld [vmem:[%s14409_s3 + $0xe] ss:$0 sm:$0xff] }
 0x3c8   :  { %9840 = vmatpush3.bf16.msra.mxu0 %v11614_v59 }
 0x487   :  { %v9817_v35 = vpop.f32.mrf.mxu0 }
 0x488   :  { %v723_v36 = vadd.f32 %v9817_v35, %v8378_v34 }
 0x489   :  { %v714_v38 = vpop.f32.mrf.mxu0 }
 0x48a   :  { %v731_v39 = vmax.f32 %v723_v36, 0.0  ;;  %v715_v40 = vadd.f32 %v8378_v34, %v714_v38 }
 0x48b   :  { %v9818_v42 = vpop.f32.mrf.mxu0 }
 0x48c   :  { %v740_v43 = vmul.f32 %v8388_v37, %v731_v39  ;;  %v729_v44 = vmax.f32 %v715_v40, 0.0  ;;  %v726_v45 = vadd.f32 %v9818_v42, %v8378_v34 }
 0x48d   :  { %v717_v46 = vpop.f32.mrf.mxu0 }
 0x48e   :  { %v749_v47 = vadd.f32 %v8390_v41, %v740_v43  ;;  %v738_v48 = vmul.f32 %v8388_v37, %v729_v44  ;;  %v732_v49 = vmax.f32 %v726_v45, 0.0  ;;  %v718_v50 = vadd.f32 %v8378_v34, %v717_v46 }
 0x490   :  { %753 = vst.msk [vmem:[#allocation2 + $0x40] sm:$0xff] %vm30_vm0, %v749_v47  ;;  %v747_v51 = vadd.f32 %v8390_v41, %v738_v48  ;;  %v741_v52 = vmul.f32 %v8388_v37, %v732_v49  ;;  %v730_v53 = vmax.f32 %v718_v50, 0.0 }
 0x492   :  { %751 = vst.msk [vmem:[#allocation2 + $0x10] sm:$0xff] %vm30_vm0, %v747_v51  ;;  %v750_v55 = vadd.f32 %v8390_v41, %v741_v52  ;;  %v739_v56 = vmul.f32 %v8388_v37, %v730_v53 }
 0x494   :  { %754 = vst.msk [vmem:[#allocation2 + $0x48] sm:$0xff] %vm30_vm0, %v750_v55  ;;  %v748_v57 = vadd.f32 %v8390_v41, %v739_v56 }
 0x496   :  { %752 = vst.msk [vmem:[#allocation2 + $0x18] sm:$0xff] %vm30_vm0, %v748_v57 }
 0x497   :  { %v761_v60 = vld [vmem:[#allocation2 + $0x3f] sm:$0xff] }
 0x498   :  { %v757_v33 = vld [vmem:[#allocation2 + $0x3d] sm:$0xff] }
 0x499   :  { %v759_v62 = vld [vmem:[#allocation2 + $0xf] sm:$0xff] }
 0x49a   :  { %v755_v37 = vld [vmem:[#allocation2 + $0xd] sm:$0xff] }
 0x49b   :  { %v762_v61 = vld [vmem:[#allocation2 + $0x47] sm:$0xff] }
 0x49c   :  { %v10592_v63 = vpack.i.bf16 %v762_v61, %v761_v60  ;;  %v765_v0 = vld [vmem:[#allocation2 + $0x41] sm:$0xff]  ;;  %v766_v1 = vld [vmem:[#allocation2 + $0x49] sm:$0xff] }
 0x49d   :  { %v760_v2 = vld [vmem:[#allocation2 + $0x17] sm:$0xff]  ;;  %v10597_v7 = vpack.i.bf16 %v766_v1, %v765_v0  ;;  %v769_v8 = vld [vmem:[#allocation2 + $0x43] sm:$0xff]  ;;  %v770_v9 = vld [vmem:[#allocation2 + $0x4b] sm:$0xff] }
 0x49e   :  { %10593 = vrot.lane.b32.xlu1 %v10592_v63, %s11880_s12  ;;  %v10602_v3 = vpack.i.bf16 %v760_v2, %v759_v62  ;;  %v763_v4 = vld [vmem:[#allocation2 + $0x11] sm:$0xff]  ;;  %v764_v5 = vld [vmem:[#allocation2 + $0x19] sm:$0xff]  ;;  %v10617_v15 = vpack.i.bf16 %v770_v9, %v769_v8  ;;  %v758_v38 = vld [vmem:[#allocation2 + $0x45] sm:$0xff] }
 0x49f   :  { %v10607_v10 = vpack.i.bf16 %v764_v5, %v763_v4  ;;  %v767_v11 = vld [vmem:[#allocation2 + $0x13] sm:$0xff]  ;;  %v768_v12 = vld [vmem:[#allocation2 + $0x1b] sm:$0xff]  ;;  %v11616_v61 = vld [vmem:[%s14407_s2 + $0x128] sm:$0xff]  }
 0x4a0   :  { %10603 = vrot.lane.b32.xlu0 %v10602_v3, %s11880_s12  ;;  %v10612_v23 = vpack.i.bf16 %v768_v12, %v767_v11  ;;  %v756_v39 = vld [vmem:[#allocation2 + $0x15] sm:$0xff]  ;;  %v11617_v62 = vld [vmem:[%s14407_s2 + $0x120] sm:$0xff]   ;;  %v8408_v63 = vld [vmem:[%s14409_s3 + $0xc] ss:$0 sm:$0xff] }
 0x4a1   :  { %v11615_v60 = vld [vmem:[%s14407_s2 + $0x130] sm:$0xff]   ;;  %v8418_v2 = vld [vmem:[%s14409_s3 + $0xd] ss:$0 sm:$0xff] }
 0x4a2   :  { %10598 = vrot.lane.b32.xlu1 %v10597_v7, %s11881_s15  ;;  %9841 = vmatprep.subr.bf16.mxu0 %v11615_v60 }
 0x4a3   :  { %9842 = vmatpush3.bf16.msra.mxu0 %v11615_v60 }
 0x4a4   :  { %10608 = vrot.lane.b32.xlu0 %v10607_v10, %s11881_s15  ;;  %9843 = vmatprep.subr.bf16.mxu0 %v11616_v61 }
 0x4a6   :  { %10618 = vrot.lane.b32.xlu1 %v10617_v15, %s11882_s16 }
 0x4a7   :  { %9844 = vmatpush3.bf16.msra.mxu0 %v11616_v61 }
 0x4a8   :  { %10613 = vrot.lane.b32.xlu0 %v10612_v23, %s11882_s16  ;;  %9845 = vmatprep.subr.bf16.mxu0 %v11617_v62 }
 0x4ab   :  { %9846 = vmatpush3.bf16.msra.mxu0 %v11617_v62 }
 0x510   :  { %v10594_v24 = vpop.permute.xlu1 %10593 }
 0x511   :  { %v10596_v28 = vunpack.i.h.bf16 %v10594_v24  ;;  %v10595_v17 = vunpack.i.l.bf16 %v10594_v24 }
 0x512   :  { %v10604_v25 = vpop.permute.xlu0 %10603 }
 0x513   :  { %v10606_v29 = vunpack.i.h.bf16 %v10604_v25  ;;  %v10605_v30 = vunpack.i.l.bf16 %v10604_v25  ;;  %v821_v42 = vsel %vm30_vm0, %v757_v33, %v10595_v17  ;;  %v822_v43 = vsel %vm30_vm0, %v758_v38, %v10596_v28 }
 0x514   :  { %v10599_v27 = vpop.permute.xlu1 %10598 }
 0x515   :  { %v10601_v31 = vunpack.i.h.bf16 %v10599_v27  ;;  %v10600_v32 = vunpack.i.l.bf16 %v10599_v27  ;;  %v819_v44 = vsel %vm30_vm0, %v755_v37, %v10605_v30  ;;  %v820_v45 = vsel %vm30_vm0, %v756_v39, %v10606_v29 }
 0x516   :  { %v10609_v22 = vpop.permute.xlu0 %10608 }
 0x517   :  { %v10611_v34 = vunpack.i.h.bf16 %v10609_v22  ;;  %v10610_v35 = vunpack.i.l.bf16 %v10609_v22  ;;  %v825_v47 = vsel %vm143_vm1, %v821_v42, %v10600_v32  ;;  %v826_v48 = vsel %vm143_vm1, %v822_v43, %v10601_v31 }
 0x518   :  { %v10619_v36 = vpop.permute.xlu1 %10618 }
 0x519   :  { %v10621_v40 = vunpack.i.h.bf16 %v10619_v36  ;;  %v10620_v41 = vunpack.i.l.bf16 %v10619_v36  ;;  %v823_v53 = vsel %vm143_vm1, %v819_v44, %v10610_v35  ;;  %v824_v54 = vsel %vm143_vm1, %v820_v45, %v10611_v34  ;;  %v11619_v36 = vld [vmem:[%s14407_s2 + $0x110] sm:$0xff]  }
 0x51a   :  { %v10614_v46 = vpop.permute.xlu0 %10613 }
 0x51b   :  { %v10616_v49 = vunpack.i.h.bf16 %v10614_v46  ;;  %v10615_v50 = vunpack.i.l.bf16 %v10614_v46  ;;  %v829_v51 = vsel %vm148_vm2, %v825_v47, %v10620_v41  ;;  %v830_v52 = vsel %vm148_vm2, %v826_v48, %v10621_v40  ;;  %v11621_v41 = vld [vmem:[%s14407_s2 + $0x100] sm:$0xff]  }
 0x51c   :  { %v832_v58 = vpack.c.bf16 %v830_v52, %v829_v51 }
 0x51d   :  { %v827_v55 = vsel %vm148_vm2, %v823_v53, %v10615_v50  ;;  %v828_v56 = vsel %vm148_vm2, %v824_v54, %v10616_v49 }
 0x51e   :  { %v831_v57 = vpack.c.bf16 %v828_v56, %v827_v55 }
 0x520   :  { %9835 = vmatprep.mubr.bf16.mxu1 %v831_v57 }
 0x521   :  { %9836 = vmatmul.mubr.bf16.vlgmr.msra.gmra.mxu1 %v832_v58 }
 0x5e1   :  { %v9837_v0 = vpop.f32.mrf.mxu1 }
 0x5e2   :  { %v947_v1 = vadd.f32 %v9837_v0, %v8408_v63 }
 0x5e3   :  { %v938_v3 = vpop.f32.mrf.mxu1 }
 0x5e4   :  { %v955_v4 = vmax.f32 %v947_v1, 0.0  ;;  %v939_v5 = vadd.f32 %v8408_v63, %v938_v3 }
 0x5e5   :  { %v9838_v7 = vpop.f32.mrf.mxu1 }
 0x5e6   :  { %v964_v8 = vmul.f32 %v8418_v2, %v955_v4  ;;  %v953_v9 = vmax.f32 %v939_v5, 0.0  ;;  %v950_v10 = vadd.f32 %v9838_v7, %v8408_v63 }
 0x5e7   :  { %v941_v11 = vpop.f32.mrf.mxu1 }
 0x5e8   :  { %v973_v12 = vadd.f32 %v8420_v6, %v964_v8  ;;  %v962_v15 = vmul.f32 %v8418_v2, %v953_v9  ;;  %v956_v23 = vmax.f32 %v950_v10, 0.0  ;;  %v942_v24 = vadd.f32 %v8408_v63, %v941_v11 }
 0x5ea   :  { %v977_v25 = vadd.f32 %v973_v12, %v12108_v16  ;;  %v971_v27 = vadd.f32 %v8420_v6, %v962_v15  ;;  %v965_v28 = vmul.f32 %v8418_v2, %v956_v23  ;;  %v954_v17 = vmax.f32 %v942_v24, 0.0  ;;  %v11618_v16 = vld [vmem:[%s14407_s2 + $0x118] sm:$0xff]  }
 0x5eb   :  { %9847 = vmatprep.subr.bf16.mxu0 %v11618_v16 }
 0x5ec   :  { %v12238_v29 = vmul.f32 %v977_v25, %v11969_v13  ;;  %v975_v30 = vadd.f32 %v971_v27, %v12114_v26  ;;  %v974_v22 = vadd.f32 %v8420_v6, %v965_v28  ;;  %v963_v31 = vmul.f32 %v8418_v2, %v954_v17  ;;  %9848 = vmatpush3.bf16.msra.mxu0 %v11618_v16  ;;  %v11623_v16 = vld [vmem:[%s14407_s2 + $0x170] sm:$0xff]  }
 0x5ed   :  { %9849 = vmatprep.subr.bf16.mxu0 %v11619_v36 }
 0x5ee   :  { %985 = vst.msk [vmem:[#allocation2 + $0x40] sm:$0xff] %vm30_vm0, %v12238_v29  ;;  %v12244_v32 = vmul.f32 %v975_v30, %v11971_v14  ;;  %v978_v33 = vadd.f32 %v974_v22, %v12123_v18  ;;  %v972_v34 = vadd.f32 %v8420_v6, %v963_v31 }
 0x5f0   :  { %983 = vst.msk [vmem:[#allocation2 + $0x10] sm:$0xff] %vm30_vm0, %v12244_v32  ;;  %v12253_v26 = vmul.f32 %v978_v33, %v11989_v19  ;;  %v976_v35 = vadd.f32 %v972_v34, %v12129_v21  ;;  %9850 = vmatpush3.bf16.msra.mxu0 %v11619_v36  ;;  %v11620_v21 = vld [vmem:[%s14407_s2 + $0x108] sm:$0xff]   ;;  %v11622_v34 = vld [vmem:[%s14407_s2 + $0x178] sm:$0xff]   ;;  %v11625_v36 = vld [vmem:[%s14407_s2 + $0x160] sm:$0xff]  }
 0x5f1   :  { %9851 = vmatprep.subr.bf16.mxu0 %v11620_v21  ;;  %9859 = vmatprep.subr.bf16.mxu1 %v11622_v34 }
 0x5f2   :  { %986 = vst.msk [vmem:[#allocation2 + $0x48] sm:$0xff] %vm30_vm0, %v12253_v26  ;;  %v12259_v18 = vmul.f32 %v976_v35, %v11991_v20  ;;  %9860 = vmatpush3.bf16.msra.mxu1 %v11622_v34  ;;  %v11624_v35 = vld [vmem:[%s14407_s2 + $0x168] sm:$0xff]  }
 0x5f3   :  { %9861 = vmatprep.subr.bf16.mxu1 %v11623_v16 }
 0x5f4   :  { %984 = vst.msk [vmem:[#allocation2 + $0x18] sm:$0xff] %vm30_vm0, %v12259_v18  ;;  %9852 = vmatpush3.bf16.msra.mxu0 %v11620_v21  ;;  %v8438_v21 = vld [vmem:[%s14409_s3 + $0x10] ss:$0 sm:$0xff] }
 0x5f5   :  { %v993_v38 = vld [vmem:[#allocation2 + $0x3e] sm:$0xff]  ;;  %9853 = vmatprep.subr.bf16.mxu0 %v11621_v41 }
 0x5f6   :  { %v989_v3 = vld [vmem:[#allocation2 + $0x3a] sm:$0xff]  ;;  %9862 = vmatpush3.bf16.msra.mxu1 %v11623_v16 }
 0x5f7   :  { %v991_v40 = vld [vmem:[#allocation2 + $0xe] sm:$0xff]  ;;  %9863 = vmatprep.subr.bf16.mxu1 %v11624_v35 }
 0x5f8   :  { %9854 = vmatpush3.bf16.msra.mxu0 %v11621_v41  ;;  %v987_v4 = vld [vmem:[#allocation2 + $0xa] sm:$0xff] }
 0x5f9   :  { %v994_v37 = vld [vmem:[#allocation2 + $0x46] sm:$0xff]  ;;  %v998_v49 = vld [vmem:[#allocation2 + $0x4e] sm:$0xff] }
 0x5fa   :  { %v10622_v39 = vpack.i.bf16 %v994_v37, %v993_v38  ;;  %v990_v42 = vld [vmem:[#allocation2 + $0x42] sm:$0xff]  ;;  %v996_v44 = vld [vmem:[#allocation2 + $0x4a] sm:$0xff]  ;;  %v10647_v52 = vpack.i.bf16 %v998_v49, %v994_v37  ;;  %9864 = vmatpush3.bf16.msra.mxu1 %v11624_v35 }
 0x5fb   :  { %v992_v43 = vld [vmem:[#allocation2 + $0x16] sm:$0xff]  ;;  %v10627_v48 = vpack.i.bf16 %v996_v44, %v990_v42  ;;  %v997_v51 = vld [vmem:[#allocation2 + $0x1e] sm:$0xff]  ;;  %9865 = vmatprep.subr.bf16.mxu1 %v11625_v36 }
 0x5fc   :  { %10623 = vrot.lane.b32.xlu1 %v10622_v39, %s11880_s12  ;;  %v10632_v45 = vpack.i.bf16 %v992_v43, %v991_v40  ;;  %v988_v46 = vld [vmem:[#allocation2 + $0x12] sm:$0xff]  ;;  %v995_v47 = vld [vmem:[#allocation2 + $0x1a] sm:$0xff]  ;;  %v10642_v53 = vpack.i.bf16 %v997_v51, %v992_v43  ;;  %v8448_v39 = vld [vmem:[%s14409_s3 + $0x11] ss:$0 sm:$0xff] }
 0x5fd   :  { %v10637_v50 = vpack.i.bf16 %v995_v47, %v988_v46  ;;  %v8450_v43 = vld [vmem:[%s14409_s3 + $0x12] ss:$0 sm:$0xff] }
 0x5fe   :  { %10633 = vrot.lane.b32.xlu0 %v10632_v45, %s11880_s12  ;;  %9866 = vmatpush3.bf16.msra.mxu1 %v11625_v36 }
 0x600   :  { %10628 = vrot.lane.b32.xlu1 %v10627_v48, %s11881_s15 }
 0x602   :  { %10638 = vrot.lane.b32.xlu0 %v10637_v50, %s11881_s15 }
 0x604   :  { %10648 = vrot.lane.b32.xlu1 %v10647_v52, %s11882_s16 }
 0x606   :  { %10643 = vrot.lane.b32.xlu0 %v10642_v53, %s11882_s16 }
 0x66e   :  { %v10624_v54 = vpop.permute.xlu1 %10623 }
 0x66f   :  { %v10626_v57 = vunpack.i.h.bf16 %v10624_v54  ;;  %v10625_v58 = vunpack.i.l.bf16 %v10624_v54 }
 0x670   :  { %v10634_v55 = vpop.permute.xlu0 %10633 }
 0x671   :  { %v10636_v59 = vunpack.i.h.bf16 %v10634_v55  ;;  %v10635_v60 = vunpack.i.l.bf16 %v10634_v55  ;;  %v1047_v7 = vsel %vm30_vm0, %v989_v3, %v10625_v58  ;;  %v1048_v8 = vsel %vm30_vm0, %v990_v42, %v10626_v57 }
 0x672   :  { %v10629_v56 = vpop.permute.xlu1 %10628 }
 0x673   :  { %v10631_v62 = vunpack.i.h.bf16 %v10629_v56  ;;  %v10630_v63 = vunpack.i.l.bf16 %v10629_v56  ;;  %v1045_v9 = vsel %vm30_vm0, %v987_v4, %v10635_v60  ;;  %v1046_v10 = vsel %vm30_vm0, %v988_v46, %v10636_v59  ;;  %v11626_v56 = vld [vmem:[%s14407_s2 + $0x158] sm:$0xff]   ;;  %v11627_v60 = vld [vmem:[%s14407_s2 + $0x150] sm:$0xff]  }
 0x674   :  { %v10639_v61 = vpop.permute.xlu0 %10638  ;;  %9867 = vmatprep.subr.bf16.mxu1 %v11626_v56 }
 0x675   :  { %v10641_v0 = vunpack.i.h.bf16 %v10639_v61  ;;  %v10640_v1 = vunpack.i.l.bf16 %v10639_v61  ;;  %v1051_v12 = vsel %vm143_vm1, %v1047_v7, %v10630_v63  ;;  %v1052_v15 = vsel %vm143_vm1, %v1048_v8, %v10631_v62  ;;  %9868 = vmatpush3.bf16.msra.mxu1 %v11626_v56  ;;  %v11628_v61 = vld [vmem:[%s14407_s2 + $0x148] sm:$0xff]  }
 0x676   :  { %v10649_v2 = vpop.permute.xlu1 %10648  ;;  %9869 = vmatprep.subr.bf16.mxu1 %v11627_v60 }
 0x677   :  { %v10651_v5 = vunpack.i.h.bf16 %v10649_v2  ;;  %v10650_v6 = vunpack.i.l.bf16 %v10649_v2  ;;  %v1049_v28 = vsel %vm143_vm1, %v1045_v9, %v10640_v1  ;;  %v1050_v17 = vsel %vm143_vm1, %v1046_v10, %v10641_v0  ;;  %v11629_v2 = vld [vmem:[%s14407_s2 + $0x140] sm:$0xff]  }
 0x678   :  { %v10644_v11 = vpop.permute.xlu0 %10643 }
 0x679   :  { %v10646_v23 = vunpack.i.h.bf16 %v10644_v11  ;;  %v10645_v24 = vunpack.i.l.bf16 %v10644_v11  ;;  %v1055_v25 = vsel %vm148_vm2, %v1051_v12, %v10650_v6  ;;  %v1056_v27 = vsel %vm148_vm2, %v1052_v15, %v10651_v5  ;;  %9870 = vmatpush3.bf16.msra.mxu1 %v11627_v60  ;;  %v11633_v60 = vld [vmem:[%s14407_s2 + $0x1a0] sm:$0xff]  }
 0x67a   :  { %v1058_v33 = vpack.c.bf16 %v1056_v27, %v1055_v25  ;;  %9871 = vmatprep.subr.bf16.mxu1 %v11628_v61 }
 0x67b   :  { %v1053_v30 = vsel %vm148_vm2, %v1049_v28, %v10645_v24  ;;  %v1054_v22 = vsel %vm148_vm2, %v1050_v17, %v10646_v23 }
 0x67c   :  { %v1057_v31 = vpack.c.bf16 %v1054_v22, %v1053_v30 }
 0x67d   :  { %9872 = vmatpush3.bf16.msra.mxu1 %v11628_v61  ;;  %v8468_v61 = vld [vmem:[%s14409_s3 + $0x14] ss:$0 sm:$0xff] }
 0x67e   :  { %9855 = vmatprep.mubr.bf16.mxu0 %v1057_v31  ;;  %9873 = vmatprep.subr.bf16.mxu1 %v11629_v2 }
 0x67f   :  { %9856 = vmatmul.mubr.bf16.vlgmr.msra.gmra.mxu0 %v1058_v33 }
 0x681   :  { %9874 = vmatpush3.bf16.msra.mxu1 %v11629_v2 }
 0x73f   :  { %v9857_v37 = vpop.f32.mrf.mxu0 }
 0x740   :  { %v1173_v38 = vadd.f32 %v9857_v37, %v8438_v21 }
 0x741   :  { %v1164_v40 = vpop.f32.mrf.mxu0 }
 0x742   :  { %v1181_v41 = vmax.f32 %v1173_v38, 0.0  ;;  %v1165_v42 = vadd.f32 %v8438_v21, %v1164_v40 }
 0x743   :  { %v9858_v44 = vpop.f32.mrf.mxu0 }
 0x744   :  { %v1190_v45 = vmul.f32 %v8448_v39, %v1181_v41  ;;  %v1179_v46 = vmax.f32 %v1165_v42, 0.0  ;;  %v1176_v47 = vadd.f32 %v9858_v44, %v8438_v21 }
 0x745   :  { %v1167_v48 = vpop.f32.mrf.mxu0 }
 0x746   :  { %v1199_v49 = vadd.f32 %v8450_v43, %v1190_v45  ;;  %v1188_v50 = vmul.f32 %v8448_v39, %v1179_v46  ;;  %v1182_v51 = vmax.f32 %v1176_v47, 0.0  ;;  %v1168_v52 = vadd.f32 %v8438_v21, %v1167_v48 }
 0x748   :  { %1203 = vst.msk [vmem:[#allocation2 + $0x40] sm:$0xff] %vm30_vm0, %v1199_v49  ;;  %v1197_v53 = vadd.f32 %v8450_v43, %v1188_v50  ;;  %v1191_v54 = vmul.f32 %v8448_v39, %v1182_v51  ;;  %v1180_v55 = vmax.f32 %v1168_v52, 0.0 }
 0x74a   :  { %1201 = vst.msk [vmem:[#allocation2 + $0x10] sm:$0xff] %vm30_vm0, %v1197_v53  ;;  %v1200_v57 = vadd.f32 %v8450_v43, %v1191_v54  ;;  %v1189_v58 = vmul.f32 %v8448_v39, %v1180_v55 }
 0x74c   :  { %1204 = vst.msk [vmem:[#allocation2 + $0x48] sm:$0xff] %vm30_vm0, %v1200_v57  ;;  %v1198_v59 = vadd.f32 %v8450_v43, %v1189_v58  ;;  %v11630_v57 = vld [vmem:[%s14407_s2 + $0x1b8] sm:$0xff]   ;;  %v11631_v58 = vld [vmem:[%s14407_s2 + $0x1b0] sm:$0xff]  }
 0x74d   :  { %9879 = vmatprep.subr.bf16.mxu0 %v11630_v57 }
 0x74e   :  { %1202 = vst.msk [vmem:[#allocation2 + $0x18] sm:$0xff] %vm30_vm0, %v1198_v59  ;;  %9880 = vmatpush3.bf16.msra.mxu0 %v11630_v57  ;;  %v11632_v59 = vld [vmem:[%s14407_s2 + $0x1a8] sm:$0xff]  }
 0x74f   :  { %v1211_v62 = vld [vmem:[#allocation2 + $0x3e] sm:$0xff]  ;;  %9881 = vmatprep.subr.bf16.mxu0 %v11631_v58 }
 0x750   :  { %v1207_v21 = vld [vmem:[#allocation2 + $0x3a] sm:$0xff] }
 0x751   :  { %v1209_v1 = vld [vmem:[#allocation2 + $0xe] sm:$0xff] }
 0x752   :  { %v1205_v37 = vld [vmem:[#allocation2 + $0xa] sm:$0xff]  ;;  %9882 = vmatpush3.bf16.msra.mxu0 %v11631_v58  ;;  %v12414_v58 = vld [vmem:[#allocation2 + $0x34] sm:$0xff] }
 0x753   :  { %v1212_v63 = vld [vmem:[#allocation2 + $0x46] sm:$0xff]  ;;  %v1216_v10 = vld [vmem:[#allocation2 + $0x4e] sm:$0xff]  ;;  %9883 = vmatprep.subr.bf16.mxu0 %v11632_v59 }
 0x754   :  { %v10652_v0 = vpack.i.bf16 %v1212_v63, %v1211_v62  ;;  %v1208_v3 = vld [vmem:[#allocation2 + $0x42] sm:$0xff]  ;;  %v1214_v5 = vld [vmem:[#allocation2 + $0x4a] sm:$0xff]  ;;  %v10677_v15 = vpack.i.bf16 %v1216_v10, %v1212_v63 }
 0x755   :  { %v1210_v4 = vld [vmem:[#allocation2 + $0x16] sm:$0xff]  ;;  %v10657_v9 = vpack.i.bf16 %v1214_v5, %v1208_v3  ;;  %v1215_v12 = vld [vmem:[#allocation2 + $0x1e] sm:$0xff] }
 0x756   :  { %10653 = vrot.lane.b32.xlu1 %v10652_v0, %s11880_s12  ;;  %v10662_v6 = vpack.i.bf16 %v1210_v4, %v1209_v1  ;;  %v1206_v7 = vld [vmem:[#allocation2 + $0x12] sm:$0xff]  ;;  %v1213_v8 = vld [vmem:[#allocation2 + $0x1a] sm:$0xff]  ;;  %v10672_v23 = vpack.i.bf16 %v1215_v12, %v1210_v4  ;;  %9884 = vmatpush3.bf16.msra.mxu0 %v11632_v59  ;;  %v12416_v59 = vld [vmem:[#allocation2 + $0x4] sm:$0xff] }
 0x757   :  { %v10667_v11 = vpack.i.bf16 %v1213_v8, %v1206_v7  ;;  %9885 = vmatprep.subr.bf16.mxu0 %v11633_v60  ;;  %v8478_v0 = vld [vmem:[%s14409_s3 + $0x15] ss:$0 sm:$0xff]  ;;  %v8480_v4 = vld [vmem:[%s14409_s3 + $0x16] ss:$0 sm:$0xff] }
 0x758   :  { %10663 = vrot.lane.b32.xlu0 %v10662_v6, %s11880_s12 }
 0x75a   :  { %10658 = vrot.lane.b32.xlu1 %v10657_v9, %s11881_s15  ;;  %9886 = vmatpush3.bf16.msra.mxu0 %v11633_v60 }
 0x75c   :  { %10668 = vrot.lane.b32.xlu0 %v10667_v11, %s11881_s15 }
 0x75e   :  { %10678 = vrot.lane.b32.xlu1 %v10677_v15, %s11882_s16 }
 0x760   :  { %10673 = vrot.lane.b32.xlu0 %v10672_v23, %s11882_s16 }
 0x7c8   :  { %v10654_v24 = vpop.permute.xlu1 %10653 }
 0x7c9   :  { %v10656_v28 = vunpack.i.h.bf16 %v10654_v24  ;;  %v10655_v17 = vunpack.i.l.bf16 %v10654_v24 }
 0x7ca   :  { %v10664_v25 = vpop.permute.xlu0 %10663 }
 0x7cb   :  { %v10666_v30 = vunpack.i.h.bf16 %v10664_v25  ;;  %v10665_v22 = vunpack.i.l.bf16 %v10664_v25  ;;  %v1265_v40 = vsel %vm30_vm0, %v1207_v21, %v10655_v17  ;;  %v1266_v41 = vsel %vm30_vm0, %v1208_v3, %v10656_v28 }
 0x7cc   :  { %v10659_v27 = vpop.permute.xlu1 %10658 }
 0x7cd   :  { %v10661_v33 = vunpack.i.h.bf16 %v10659_v27  ;;  %v10660_v34 = vunpack.i.l.bf16 %v10659_v27  ;;  %v1263_v42 = vsel %vm30_vm0, %v1205_v37, %v10665_v22  ;;  %v1264_v43 = vsel %vm30_vm0, %v1206_v7, %v10666_v30  ;;  %v11637_v37 = vld [vmem:[%s14407_s2 + $0x180] sm:$0xff]  }
 0x7ce   :  { %v10669_v31 = vpop.permute.xlu0 %10668 }
 0x7cf   :  { %v10671_v16 = vunpack.i.h.bf16 %v10669_v31  ;;  %v10670_v35 = vunpack.i.l.bf16 %v10669_v31  ;;  %v1269_v45 = vsel %vm143_vm1, %v1265_v40, %v10660_v34  ;;  %v1270_v46 = vsel %vm143_vm1, %v1266_v41, %v10661_v33 }
 0x7d0   :  { %v10679_v36 = vpop.permute.xlu1 %10678 }
 0x7d1   :  { %v10681_v38 = vunpack.i.h.bf16 %v10679_v36  ;;  %v10680_v39 = vunpack.i.l.bf16 %v10679_v36  ;;  %v1267_v51 = vsel %vm143_vm1, %v1263_v42, %v10670_v35  ;;  %v1268_v52 = vsel %vm143_vm1, %v1264_v43, %v10671_v16  ;;  %v11635_v35 = vld [vmem:[%s14407_s2 + $0x190] sm:$0xff]  }
 0x7d2   :  { %v10674_v44 = vpop.permute.xlu0 %10673 }
 0x7d3   :  { %v10676_v47 = vunpack.i.h.bf16 %v10674_v44  ;;  %v10675_v48 = vunpack.i.l.bf16 %v10674_v44  ;;  %v1273_v49 = vsel %vm148_vm2, %v1269_v45, %v10680_v39  ;;  %v1274_v50 = vsel %vm148_vm2, %v1270_v46, %v10681_v38  ;;  %v12404_v45 = vld [vmem:[#allocation2 + $0x54] sm:$0xff] }
 0x7d4   :  { %v1276_v56 = vpack.c.bf16 %v1274_v50, %v1273_v49 }
 0x7d5   :  { %v1271_v53 = vsel %vm148_vm2, %v1267_v51, %v10675_v48  ;;  %v1272_v54 = vsel %vm148_vm2, %v1268_v52, %v10676_v47  ;;  %v12407_v47 = vld [vmem:[#allocation2 + $0x24] sm:$0xff] }
 0x7d6   :  { %v1275_v55 = vpack.c.bf16 %v1272_v54, %v1271_v53 }
 0x7d8   :  { %9875 = vmatprep.mubr.bf16.mxu1 %v1275_v55 }
 0x7d9   :  { %9876 = vmatmul.mubr.bf16.vlgmr.msra.gmra.mxu1 %v1276_v56 }
 0x899   :  { %v9877_v62 = vpop.f32.mrf.mxu1 }
 0x89a   :  { %v1391_v63 = vadd.f32 %v9877_v62, %v8468_v61 }
 0x89b   :  { %v1382_v1 = vpop.f32.mrf.mxu1 }
 0x89c   :  { %v1399_v2 = vmax.f32 %v1391_v63, 0.0  ;;  %v1383_v3 = vadd.f32 %v8468_v61, %v1382_v1 }
 0x89d   :  { %v9878_v5 = vpop.f32.mrf.mxu1 }
 0x89e   :  { %v1408_v6 = vmul.f32 %v8478_v0, %v1399_v2  ;;  %v1397_v7 = vmax.f32 %v1383_v3, 0.0  ;;  %v1394_v8 = vadd.f32 %v9878_v5, %v8468_v61 }
 0x89f   :  { %v1385_v9 = vpop.f32.mrf.mxu1 }
 0x8a0   :  { %v1417_v10 = vadd.f32 %v8480_v4, %v1408_v6  ;;  %v1406_v11 = vmul.f32 %v8478_v0, %v1397_v7  ;;  %v1400_v12 = vmax.f32 %v1394_v8, 0.0  ;;  %v1386_v15 = vadd.f32 %v8468_v61, %v1385_v9 }
 0x8a2   :  { %v1421_v23 = vadd.f32 %v1417_v10, %v12238_v29  ;;  %v1415_v24 = vadd.f32 %v8480_v4, %v1406_v11  ;;  %v1409_v25 = vmul.f32 %v8478_v0, %v1400_v12  ;;  %v1398_v27 = vmax.f32 %v1386_v15, 0.0  ;;  %v11634_v29 = vld [vmem:[%s14407_s2 + $0x198] sm:$0xff]  }
 0x8a3   :  { %9887 = vmatprep.subr.bf16.mxu0 %v11634_v29 }
 0x8a4   :  { %v12368_v28 = vmul.f32 %v1421_v23, %v11969_v13  ;;  %v1419_v17 = vadd.f32 %v1415_v24, %v12244_v32  ;;  %v1418_v30 = vadd.f32 %v8480_v4, %v1409_v25  ;;  %v1407_v22 = vmul.f32 %v8478_v0, %v1398_v27  ;;  %9888 = vmatpush3.bf16.msra.mxu0 %v11634_v29  ;;  %v11641_v29 = vld [vmem:[%s14407_s2 + $0x1e0] sm:$0xff]  }
 0x8a5   :  { %9889 = vmatprep.subr.bf16.mxu0 %v11635_v35 }
 0x8a6   :  { %1429 = vst.msk [vmem:[#allocation2 + $0x40] sm:$0xff] %vm30_vm0, %v12368_v28  ;;  %v12374_v31 = vmul.f32 %v1419_v17, %v11971_v14  ;;  %v1422_v33 = vadd.f32 %v1418_v30, %v12253_v26  ;;  %v1416_v34 = vadd.f32 %v8480_v4, %v1407_v22  ;;  %v11638_v22 = vld [vmem:[%s14407_s2 + $0x1f8] sm:$0xff]  }
 0x8a7   :  { %9899 = vmatprep.subr.bf16.mxu1 %v11638_v22 }
 0x8a8   :  { %1427 = vst.msk [vmem:[#allocation2 + $0x10] sm:$0xff] %vm30_vm0, %v12374_v31  ;;  %v12383_v32 = vmul.f32 %v1422_v33, %v11989_v19  ;;  %v1420_v16 = vadd.f32 %v1416_v34, %v12259_v18  ;;  %9890 = vmatpush3.bf16.msra.mxu0 %v11635_v35  ;;  %v11636_v18 = vld [vmem:[%s14407_s2 + $0x188] sm:$0xff]   ;;  %v11639_v33 = vld [vmem:[%s14407_s2 + $0x1f0] sm:$0xff]   ;;  %9900 = vmatpush3.bf16.msra.mxu1 %v11638_v22 }
 0x8a9   :  { %9891 = vmatprep.subr.bf16.mxu0 %v11636_v18  ;;  %9901 = vmatprep.subr.bf16.mxu1 %v11639_v33  ;;  %v11640_v34 = vld [vmem:[%s14407_s2 + $0x1e8] sm:$0xff]  }
 0x8aa   :  { %1430 = vst.msk [vmem:[#allocation2 + $0x48] sm:$0xff] %vm30_vm0, %v12383_v32  ;;  %v12389_v26 = vmul.f32 %v1420_v16, %v11991_v20  ;;  %v8498_v16 = vld [vmem:[%s14409_s3 + $0x18] ss:$0 sm:$0xff] }
 0x8ac   :  { %1428 = vst.msk [vmem:[#allocation2 + $0x18] sm:$0xff] %vm30_vm0, %v12389_v26  ;;  %9892 = vmatpush3.bf16.msra.mxu0 %v11636_v18  ;;  %9902 = vmatpush3.bf16.msra.mxu1 %v11639_v33 }
 0x8ad   :  { %v1434_v36 = vld [vmem:[#allocation2 + $0x3c] sm:$0xff]  ;;  %9893 = vmatprep.subr.bf16.mxu0 %v11637_v37  ;;  %9903 = vmatprep.subr.bf16.mxu1 %v11640_v34 }
 0x8af   :  { %v1432_v39 = vld [vmem:[#allocation2 + $0xc] sm:$0xff] }
 0x8b0   :  { %9894 = vmatpush3.bf16.msra.mxu0 %v11637_v37  ;;  %9904 = vmatpush3.bf16.msra.mxu1 %v11640_v34 }
 0x8b1   :  { %v1436_v21 = vld [vmem:[#allocation2 + $0x44] sm:$0xff]  ;;  %v1438_v41 = vld [vmem:[#allocation2 + $0x4c] sm:$0xff]  ;;  %9905 = vmatprep.subr.bf16.mxu1 %v11641_v29 }
 0x8b2   :  { %v10682_v38 = vpack.i.bf16 %v1436_v21, %v1434_v36  ;;  %v10687_v44 = vpack.i.bf16 %v1438_v41, %v1436_v21  ;;  %v10707_v48 = vpack.i.bf16 %v12404_v45, %v1438_v41 }
 0x8b3   :  { %v1435_v40 = vld [vmem:[#allocation2 + $0x14] sm:$0xff]  ;;  %v1437_v43 = vld [vmem:[#allocation2 + $0x1c] sm:$0xff] }
 0x8b4   :  { %10683 = vrot.lane.b32.xlu1 %v10682_v38, %s11880_s12  ;;  %v10692_v42 = vpack.i.bf16 %v1435_v40, %v1432_v39  ;;  %v10697_v46 = vpack.i.bf16 %v1437_v43, %v1435_v40  ;;  %v10702_v49 = vpack.i.bf16 %v12407_v47, %v1437_v43  ;;  %9906 = vmatpush3.bf16.msra.mxu1 %v11641_v29 }
 0x8b6   :  { %10693 = vrot.lane.b32.xlu0 %v10692_v42, %s11880_s12 }
 0x8b8   :  { %10688 = vrot.lane.b32.xlu1 %v10687_v44, %s11881_s15 }
 0x8ba   :  { %10698 = vrot.lane.b32.xlu0 %v10697_v46, %s11881_s15 }
 0x8bc   :  { %10708 = vrot.lane.b32.xlu1 %v10707_v48, %s11882_s16 }
 0x8be   :  { %10703 = vrot.lane.b32.xlu0 %v10702_v49, %s11882_s16 }
 0x926   :  { %v10684_v50 = vpop.permute.xlu1 %10683 }
 0x927   :  { %v10686_v53 = vunpack.i.h.bf16 %v10684_v50  ;;  %v10685_v54 = vunpack.i.l.bf16 %v10684_v50 }
 0x928   :  { %v10694_v51 = vpop.permute.xlu0 %10693 }
 0x929   :  { %v10696_v55 = vunpack.i.h.bf16 %v10694_v51  ;;  %v10695_v56 = vunpack.i.l.bf16 %v10694_v51  ;;  %v1488_v3 = vsel %vm30_vm0, %v1434_v36, %v10686_v53  ;;  %v1487_v4 = vsel %vm30_vm0, %v12414_v58, %v10685_v54  ;;  %v8508_v36 = vld [vmem:[%s14409_s3 + $0x19] ss:$0 sm:$0xff] }
 0x92a   :  { %v10689_v52 = vpop.permute.xlu1 %10688  ;;  %v11642_v54 = vld [vmem:[%s14407_s2 + $0x1d8] sm:$0xff]  }
 0x92b   :  { %v10691_v60 = vunpack.i.h.bf16 %v10689_v52  ;;  %v10690_v61 = vunpack.i.l.bf16 %v10689_v52  ;;  %v1486_v5 = vsel %vm30_vm0, %v1432_v39, %v10696_v55  ;;  %v1485_v6 = vsel %vm30_vm0, %v12416_v59, %v10695_v56  ;;  %v8510_v39 = vld [vmem:[%s14409_s3 + $0x1a] ss:$0 sm:$0xff]  ;;  %9907 = vmatprep.subr.bf16.mxu1 %v11642_v54 }
 0x92c   :  { %v10699_v57 = vpop.permute.xlu0 %10698  ;;  %9908 = vmatpush3.bf16.msra.mxu1 %v11642_v54 }
 0x92d   :  { %v10701_v62 = vunpack.i.h.bf16 %v10699_v57  ;;  %v10700_v63 = vunpack.i.l.bf16 %v10699_v57  ;;  %v1491_v8 = vsel %vm143_vm1, %v1487_v4, %v10690_v61  ;;  %v1492_v9 = vsel %vm143_vm1, %v1488_v3, %v10691_v60  ;;  %v11643_v60 = vld [vmem:[%s14407_s2 + $0x1d0] sm:$0xff]   ;;  %v11644_v61 = vld [vmem:[%s14407_s2 + $0x1c8] sm:$0xff]  }
 0x92e   :  { %v10709_v0 = vpop.permute.xlu1 %10708  ;;  %9909 = vmatprep.subr.bf16.mxu1 %v11643_v60 }
 0x92f   :  { %v10711_v1 = vunpack.i.h.bf16 %v10709_v0  ;;  %v10710_v2 = vunpack.i.l.bf16 %v10709_v0  ;;  %v1489_v23 = vsel %vm143_vm1, %v1485_v6, %v10700_v63  ;;  %v1490_v24 = vsel %vm143_vm1, %v1486_v5, %v10701_v62  ;;  %v11645_v0 = vld [vmem:[%s14407_s2 + $0x1c0] sm:$0xff]  }
 0x930   :  { %v10704_v7 = vpop.permute.xlu0 %10703  ;;  %9910 = vmatpush3.bf16.msra.mxu1 %v11643_v60 }
 0x931   :  { %v10706_v10 = vunpack.i.h.bf16 %v10704_v7  ;;  %v10705_v11 = vunpack.i.l.bf16 %v10704_v7  ;;  %v1495_v12 = vsel %vm148_vm2, %v1491_v8, %v10710_v2  ;;  %v1496_v15 = vsel %vm148_vm2, %v1492_v9, %v10711_v1  ;;  %9911 = vmatprep.subr.bf16.mxu1 %v11644_v61 }
 0x932   :  { %v1498_v30 = vpack.c.bf16 %v1496_v15, %v1495_v12 }
 0x933   :  { %v1493_v25 = vsel %vm148_vm2, %v1489_v23, %v10705_v11  ;;  %v1494_v27 = vsel %vm148_vm2, %v1490_v24, %v10706_v10 }
 0x934   :  { %v1497_v17 = vpack.c.bf16 %v1494_v27, %v1493_v25  ;;  %9912 = vmatpush3.bf16.msra.mxu1 %v11644_v61 }
 0x935   :  { %9913 = vmatprep.subr.bf16.mxu1 %v11645_v0 }
 0x936   :  { %9895 = vmatprep.mubr.bf16.mxu0 %v1497_v17 }
 0x937   :  { %9896 = vmatmul.mubr.bf16.vlgmr.msra.gmra.mxu0 %v1498_v30 }
 0x938   :  { %9914 = vmatpush3.bf16.msra.mxu1 %v11645_v0 }
 0x9f7   :  { %v9897_v35 = vpop.f32.mrf.mxu0 }
 0x9f8   :  { %v1613_v18 = vadd.f32 %v9897_v35, %v8498_v16 }
 0x9f9   :  { %v1604_v21 = vpop.f32.mrf.mxu0 }
 0x9fa   :  { %v1621_v37 = vmax.f32 %v1613_v18, 0.0  ;;  %v1605_v38 = vadd.f32 %v8498_v16, %v1604_v21 }
 0x9fb   :  { %v9898_v40 = vpop.f32.mrf.mxu0 }
 0x9fc   :  { %v1630_v41 = vmul.f32 %v8508_v36, %v1621_v37  ;;  %v1619_v42 = vmax.f32 %v1605_v38, 0.0  ;;  %v1616_v43 = vadd.f32 %v9898_v40, %v8498_v16 }
 0x9fd   :  { %v1607_v44 = vpop.f32.mrf.mxu0 }
 0x9fe   :  { %v1639_v46 = vadd.f32 %v8510_v39, %v1630_v41  ;;  %v1628_v48 = vmul.f32 %v8508_v36, %v1619_v42  ;;  %v1622_v49 = vmax.f32 %v1616_v43, 0.0  ;;  %v1608_v50 = vadd.f32 %v8498_v16, %v1607_v44 }
 0xa00   :  { %1643 = vst.msk [vmem:[#allocation2 + $0x40] sm:$0xff] %vm30_vm0, %v1639_v46  ;;  %v1637_v51 = vadd.f32 %v8510_v39, %v1628_v48  ;;  %v1631_v52 = vmul.f32 %v8508_v36, %v1622_v49  ;;  %v1620_v53 = vmax.f32 %v1608_v50, 0.0  ;;  %v11646_v49 = vld [vmem:[%s14407_s2 + $0x238] sm:$0xff]   ;;  %v11647_v50 = vld [vmem:[%s14407_s2 + $0x230] sm:$0xff]  }
 0xa01   :  { %9919 = vmatprep.subr.bf16.mxu0 %v11646_v49 }
 0xa02   :  { %1641 = vst.msk [vmem:[#allocation2 + $0x10] sm:$0xff] %vm30_vm0, %v1637_v51  ;;  %v1640_v55 = vadd.f32 %v8510_v39, %v1631_v52  ;;  %v1629_v56 = vmul.f32 %v8508_v36, %v1620_v53  ;;  %9920 = vmatpush3.bf16.msra.mxu0 %v11646_v49  ;;  %v11648_v51 = vld [vmem:[%s14407_s2 + $0x228] sm:$0xff]   ;;  %v11649_v52 = vld [vmem:[%s14407_s2 + $0x220] sm:$0xff]   ;;  %v8528_v53 = vld [vmem:[%s14409_s3 + $0x1c] ss:$0 sm:$0xff] }
 0xa03   :  { %9921 = vmatprep.subr.bf16.mxu0 %v11647_v50 }
 0xa04   :  { %1644 = vst.msk [vmem:[#allocation2 + $0x48] sm:$0xff] %vm30_vm0, %v1640_v55  ;;  %v1638_v57 = vadd.f32 %v8510_v39, %v1629_v56  ;;  %v8538_v56 = vld [vmem:[%s14409_s3 + $0x1d] ss:$0 sm:$0xff] }
 0xa06   :  { %1642 = vst.msk [vmem:[#allocation2 + $0x18] sm:$0xff] %vm30_vm0, %v1638_v57  ;;  %9922 = vmatpush3.bf16.msra.mxu0 %v11647_v50 }
 0xa07   :  { %v1648_v62 = vld [vmem:[#allocation2 + $0x3c] sm:$0xff]  ;;  %9923 = vmatprep.subr.bf16.mxu0 %v11648_v51 }
 0xa09   :  { %v1646_v2 = vld [vmem:[#allocation2 + $0xc] sm:$0xff] }
 0xa0a   :  { %9924 = vmatpush3.bf16.msra.mxu0 %v11648_v51 }
 0xa0b   :  { %v1650_v63 = vld [vmem:[#allocation2 + $0x44] sm:$0xff]  ;;  %v1652_v4 = vld [vmem:[#allocation2 + $0x4c] sm:$0xff]  ;;  %9925 = vmatprep.subr.bf16.mxu0 %v11649_v52 }
 0xa0c   :  { %v10712_v1 = vpack.i.bf16 %v1650_v63, %v1648_v62  ;;  %v10717_v7 = vpack.i.bf16 %v1652_v4, %v1650_v63  ;;  %v10737_v9 = vpack.i.bf16 %v12404_v45, %v1652_v4 }
 0xa0d   :  { %v1649_v3 = vld [vmem:[#allocation2 + $0x14] sm:$0xff]  ;;  %v1651_v6 = vld [vmem:[#allocation2 + $0x1c] sm:$0xff] }
 0xa0e   :  { %10713 = vrot.lane.b32.xlu1 %v10712_v1, %s11880_s12  ;;  %v10722_v5 = vpack.i.bf16 %v1649_v3, %v1646_v2  ;;  %v10727_v8 = vpack.i.bf16 %v1651_v6, %v1649_v3  ;;  %v10732_v10 = vpack.i.bf16 %v12407_v47, %v1651_v6  ;;  %9926 = vmatpush3.bf16.msra.mxu0 %v11649_v52 }
 0xa10   :  { %10723 = vrot.lane.b32.xlu0 %v10722_v5, %s11880_s12 }
 0xa12   :  { %10718 = vrot.lane.b32.xlu1 %v10717_v7, %s11881_s15 }
 0xa14   :  { %10728 = vrot.lane.b32.xlu0 %v10727_v8, %s11881_s15 }
 0xa16   :  { %10738 = vrot.lane.b32.xlu1 %v10737_v9, %s11882_s16 }
 0xa18   :  { %10733 = vrot.lane.b32.xlu0 %v10732_v10, %s11882_s16 }
 0xa80   :  { %v10714_v11 = vpop.permute.xlu1 %10713 }
 0xa81   :  { %v10716_v23 = vunpack.i.h.bf16 %v10714_v11  ;;  %v10715_v24 = vunpack.i.l.bf16 %v10714_v11 }
 0xa82   :  { %v10724_v12 = vpop.permute.xlu0 %10723 }
 0xa83   :  { %v10726_v25 = vunpack.i.h.bf16 %v10724_v12  ;;  %v10725_v27 = vunpack.i.l.bf16 %v10724_v12  ;;  %v1702_v35 = vsel %vm30_vm0, %v1648_v62, %v10716_v23  ;;  %v1701_v47 = vsel %vm30_vm0, %v12414_v58, %v10715_v24  ;;  %v8540_v62 = vld [vmem:[%s14409_s3 + $0x1e] ss:$0 sm:$0xff] }
 0xa84   :  { %v10719_v15 = vpop.permute.xlu1 %10718 }
 0xa85   :  { %v10721_v30 = vunpack.i.h.bf16 %v10719_v15  ;;  %v10720_v22 = vunpack.i.l.bf16 %v10719_v15  ;;  %v1700_v18 = vsel %vm30_vm0, %v1646_v2, %v10726_v25  ;;  %v1699_v36 = vsel %vm30_vm0, %v12416_v59, %v10725_v27 }
 0xa86   :  { %v10729_v17 = vpop.permute.xlu0 %10728 }
 0xa87   :  { %v10731_v33 = vunpack.i.h.bf16 %v10729_v17  ;;  %v10730_v34 = vunpack.i.l.bf16 %v10729_v17  ;;  %v1705_v37 = vsel %vm143_vm1, %v1701_v47, %v10720_v22  ;;  %v1706_v38 = vsel %vm143_vm1, %v1702_v35, %v10721_v30  ;;  %v11651_v22 = vld [vmem:[%s14407_s2 + $0x210] sm:$0xff]  }
 0xa88   :  { %v10739_v29 = vpop.permute.xlu1 %10738 }
 0xa89   :  { %v10741_v45 = vunpack.i.h.bf16 %v10739_v29  ;;  %v10740_v16 = vunpack.i.l.bf16 %v10739_v29  ;;  %v1703_v43 = vsel %vm143_vm1, %v1699_v36, %v10730_v34  ;;  %v1704_v58 = vsel %vm143_vm1, %v1700_v18, %v10731_v33 }
 0xa8a   :  { %v10734_v21 = vpop.permute.xlu0 %10733 }
 0xa8b   :  { %v10736_v39 = vunpack.i.h.bf16 %v10734_v21  ;;  %v10735_v40 = vunpack.i.l.bf16 %v10734_v21  ;;  %v1709_v41 = vsel %vm148_vm2, %v1705_v37, %v10740_v16  ;;  %v1710_v42 = vsel %vm148_vm2, %v1706_v38, %v10741_v45  ;;  %v11653_v37 = vld [vmem:[%s14407_s2 + $0x200] sm:$0xff]  }
 0xa8c   :  { %v1712_v48 = vpack.c.bf16 %v1710_v42, %v1709_v41 }
 0xa8d   :  { %v1707_v44 = vsel %vm148_vm2, %v1703_v43, %v10735_v40  ;;  %v1708_v46 = vsel %vm148_vm2, %v1704_v58, %v10736_v39 }
 0xa8e   :  { %v1711_v59 = vpack.c.bf16 %v1708_v46, %v1707_v44 }
 0xa90   :  { %9915 = vmatprep.mubr.bf16.mxu1 %v1711_v59 }
 0xa91   :  { %9916 = vmatmul.mubr.bf16.vlgmr.msra.gmra.mxu1 %v1712_v48 }
 0xb51   :  { %v9917_v54 = vpop.f32.mrf.mxu1 }
 0xb52   :  { %v1827_v55 = vadd.f32 %v9917_v54, %v8528_v53 }
 0xb53   :  { %v1818_v57 = vpop.f32.mrf.mxu1 }
 0xb54   :  { %v1835_v60 = vmax.f32 %v1827_v55, 0.0  ;;  %v1819_v61 = vadd.f32 %v8528_v53, %v1818_v57 }
 0xb55   :  { %v9918_v63 = vpop.f32.mrf.mxu1 }
 0xb56   :  { %v1844_v0 = vmul.f32 %v8538_v56, %v1835_v60  ;;  %v1833_v1 = vmax.f32 %v1819_v61, 0.0  ;;  %v1830_v2 = vadd.f32 %v9918_v63, %v8528_v53 }
 0xb57   :  { %v1821_v3 = vpop.f32.mrf.mxu1 }
 0xb58   :  { %v1853_v4 = vadd.f32 %v8540_v62, %v1844_v0  ;;  %v1842_v5 = vmul.f32 %v8538_v56, %v1833_v1  ;;  %v1836_v6 = vmax.f32 %v1830_v2, 0.0  ;;  %v1822_v7 = vadd.f32 %v8528_v53, %v1821_v3 }
 0xb5a   :  { %v1857_v8 = vadd.f32 %v1853_v4, %v12368_v28  ;;  %v1851_v9 = vadd.f32 %v8540_v62, %v1842_v5  ;;  %v1845_v10 = vmul.f32 %v8538_v56, %v1836_v6  ;;  %v1834_v11 = vmax.f32 %v1822_v7, 0.0  ;;  %v11650_v28 = vld [vmem:[%s14407_s2 + $0x218] sm:$0xff]  }
 0xb5b   :  { %9927 = vmatprep.subr.bf16.mxu0 %v11650_v28 }
 0xb5c   :  { %v12514_v12 = vmul.f32 %v1857_v8, %v11969_v13  ;;  %v1855_v15 = vadd.f32 %v1851_v9, %v12374_v31  ;;  %v1854_v23 = vadd.f32 %v8540_v62, %v1845_v10  ;;  %v1843_v24 = vmul.f32 %v8538_v56, %v1834_v11  ;;  %9928 = vmatpush3.bf16.msra.mxu0 %v11650_v28 }
 0xb5d   :  { %9929 = vmatprep.subr.bf16.mxu0 %v11651_v22 }
 0xb5e   :  { %1865 = vst.msk [vmem:[#allocation2 + $0x40] sm:$0xff] %vm30_vm0, %v12514_v12  ;;  %v12520_v25 = vmul.f32 %v1855_v15, %v11971_v14  ;;  %v1858_v27 = vadd.f32 %v1854_v23, %v12383_v32  ;;  %v1852_v17 = vadd.f32 %v8540_v62, %v1843_v24 }
 0xb60   :  { %1863 = vst.msk [vmem:[#allocation2 + $0x10] sm:$0xff] %vm30_vm0, %v12520_v25  ;;  %v12529_v31 = vmul.f32 %v1858_v27, %v11989_v19  ;;  %v1856_v30 = vadd.f32 %v1852_v17, %v12389_v26  ;;  %9930 = vmatpush3.bf16.msra.mxu0 %v11651_v22  ;;  %v11652_v26 = vld [vmem:[%s14407_s2 + $0x208] sm:$0xff]  }
 0xb61   :  { %9931 = vmatprep.subr.bf16.mxu0 %v11652_v26 }
 0xb62   :  { %1866 = vst.msk [vmem:[#allocation2 + $0x48] sm:$0xff] %vm30_vm0, %v12529_v31  ;;  %v12535_v32 = vmul.f32 %v1856_v30, %v11991_v20 }
 0xb64   :  { %1864 = vst.msk [vmem:[#allocation2 + $0x18] sm:$0xff] %vm30_vm0, %v12535_v32  ;;  %9932 = vmatpush3.bf16.msra.mxu0 %v11652_v26  ;;  %v11654_v26 = vld [vmem:[%s14407_s2 + $0x278] sm:$0xff]  }
 0xb65   :  { %v1873_v33 = vld [vmem:[#allocation2 + $0x40] sm:$0xff]  ;;  %9933 = vmatprep.subr.bf16.mxu0 %v11653_v37  ;;  %9939 = vmatprep.subr.bf16.mxu1 %v11654_v26 }
 0xb66   :  { %v1869_v56 = vld [vmem:[#allocation2 + $0x3f] sm:$0xff]  ;;  %9940 = vmatpush3.bf16.msra.mxu1 %v11654_v26 }
 0xb67   :  { %v1871_v45 = vld [vmem:[#allocation2 + $0x10] sm:$0xff] }
 0xb68   :  { %9934 = vmatpush3.bf16.msra.mxu0 %v11653_v37  ;;  %v1867_v63 = vld [vmem:[#allocation2 + $0xf] sm:$0xff]  ;;  %v8570_v37 = vld [vmem:[%s14409_s3 + $0x22] ss:$0 sm:$0xff] }
 0xb69   :  { %v1874_v34 = vld [vmem:[#allocation2 + $0x48] sm:$0xff] }
 0xb6a   :  { %v10742_v29 = vpack.i.bf16 %v1874_v34, %v1873_v33  ;;  %v1877_v16 = vld [vmem:[#allocation2 + $0x41] sm:$0xff]  ;;  %v1878_v35 = vld [vmem:[#allocation2 + $0x49] sm:$0xff] }
 0xb6b   :  { %v1872_v47 = vld [vmem:[#allocation2 + $0x18] sm:$0xff]  ;;  %v10747_v38 = vpack.i.bf16 %v1878_v35, %v1877_v16  ;;  %v1881_v39 = vld [vmem:[#allocation2 + $0x42] sm:$0xff]  ;;  %v1882_v40 = vld [vmem:[#allocation2 + $0x4a] sm:$0xff] }
 0xb6c   :  { %10743 = vrot.lane.b32.xlu1 %v10742_v29, %s11880_s12  ;;  %v10752_v18 = vpack.i.bf16 %v1872_v47, %v1871_v45  ;;  %v1875_v36 = vld [vmem:[#allocation2 + $0x11] sm:$0xff]  ;;  %v1876_v21 = vld [vmem:[#allocation2 + $0x19] sm:$0xff]  ;;  %v10767_v58 = vpack.i.bf16 %v1882_v40, %v1881_v39  ;;  %v1870_v62 = vld [vmem:[#allocation2 + $0x47] sm:$0xff] }
 0xb6d   :  { %v10757_v41 = vpack.i.bf16 %v1876_v21, %v1875_v36  ;;  %v1879_v42 = vld [vmem:[#allocation2 + $0x12] sm:$0xff]  ;;  %v1880_v43 = vld [vmem:[#allocation2 + $0x1a] sm:$0xff]  ;;  %v11656_v34 = vld [vmem:[%s14407_s2 + $0x268] sm:$0xff]  }
 0xb6e   :  { %10753 = vrot.lane.b32.xlu0 %v10752_v18, %s11880_s12  ;;  %v10762_v44 = vpack.i.bf16 %v1880_v43, %v1879_v42  ;;  %v1868_v0 = vld [vmem:[#allocation2 + $0x17] sm:$0xff]  ;;  %v11657_v29 = vld [vmem:[%s14407_s2 + $0x260] sm:$0xff]  }
 0xb6f   :  { %v11655_v33 = vld [vmem:[%s14407_s2 + $0x270] sm:$0xff]   ;;  %v8558_v45 = vld [vmem:[%s14409_s3 + $0x20] ss:$0 sm:$0xff]  ;;  %v8568_v47 = vld [vmem:[%s14409_s3 + $0x21] ss:$0 sm:$0xff] }
 0xb70   :  { %10748 = vrot.lane.b32.xlu1 %v10747_v38, %s11881_s15  ;;  %9941 = vmatprep.subr.bf16.mxu1 %v11655_v33 }
 0xb71   :  { %9942 = vmatpush3.bf16.msra.mxu1 %v11655_v33 }
 0xb72   :  { %10758 = vrot.lane.b32.xlu0 %v10757_v41, %s11881_s15  ;;  %9943 = vmatprep.subr.bf16.mxu1 %v11656_v34 }
 0xb74   :  { %10768 = vrot.lane.b32.xlu1 %v10767_v58, %s11882_s16 }
 0xb75   :  { %9944 = vmatpush3.bf16.msra.mxu1 %v11656_v34 }
 0xb76   :  { %10763 = vrot.lane.b32.xlu0 %v10762_v44, %s11882_s16  ;;  %9945 = vmatprep.subr.bf16.mxu1 %v11657_v29 }
 0xb79   :  { %9946 = vmatpush3.bf16.msra.mxu1 %v11657_v29 }
 0xbde   :  { %v10744_v46 = vpop.permute.xlu1 %10743 }
 0xbdf   :  { %v10746_v49 = vunpack.i.h.bf16 %v10744_v46  ;;  %v10745_v50 = vunpack.i.l.bf16 %v10744_v46 }
 0xbe0   :  { %v10754_v59 = vpop.permute.xlu0 %10753 }
 0xbe1   :  { %v10756_v51 = vunpack.i.h.bf16 %v10754_v59  ;;  %v10755_v52 = vunpack.i.l.bf16 %v10754_v59  ;;  %v1933_v3 = vsel %vm30_vm0, %v1869_v56, %v10745_v50  ;;  %v1934_v4 = vsel %vm30_vm0, %v1870_v62, %v10746_v49  ;;  %v11658_v50 = vld [vmem:[%s14407_s2 + $0x258] sm:$0xff]  }
 0xbe2   :  { %v10749_v48 = vpop.permute.xlu1 %10748  ;;  %9947 = vmatprep.subr.bf16.mxu1 %v11658_v50 }
 0xbe3   :  { %v10751_v54 = vunpack.i.h.bf16 %v10749_v48  ;;  %v10750_v55 = vunpack.i.l.bf16 %v10749_v48  ;;  %v1931_v5 = vsel %vm30_vm0, %v1867_v63, %v10755_v52  ;;  %v1932_v6 = vsel %vm30_vm0, %v1868_v0, %v10756_v51  ;;  %9948 = vmatpush3.bf16.msra.mxu1 %v11658_v50 }
 0xbe4   :  { %v10759_v53 = vpop.permute.xlu0 %10758 }
 0xbe5   :  { %v10761_v57 = vunpack.i.h.bf16 %v10759_v53  ;;  %v10760_v60 = vunpack.i.l.bf16 %v10759_v53  ;;  %v1937_v8 = vsel %vm143_vm1, %v1933_v3, %v10750_v55  ;;  %v1938_v9 = vsel %vm143_vm1, %v1934_v4, %v10751_v54  ;;  %v11659_v54 = vld [vmem:[%s14407_s2 + $0x250] sm:$0xff]   ;;  %v11660_v55 = vld [vmem:[%s14407_s2 + $0x248] sm:$0xff]   ;;  %v11661_v4 = vld [vmem:[%s14407_s2 + $0x240] sm:$0xff]  }
 0xbe6   :  { %v10769_v61 = vpop.permute.xlu1 %10768  ;;  %9949 = vmatprep.subr.bf16.mxu1 %v11659_v54 }
 0xbe7   :  { %v10771_v1 = vunpack.i.h.bf16 %v10769_v61  ;;  %v10770_v2 = vunpack.i.l.bf16 %v10769_v61  ;;  %v1935_v24 = vsel %vm143_vm1, %v1931_v5, %v10760_v60  ;;  %v1936_v27 = vsel %vm143_vm1, %v1932_v6, %v10761_v57  ;;  %9950 = vmatpush3.bf16.msra.mxu1 %v11659_v54 }
 0xbe8   :  { %v10764_v7 = vpop.permute.xlu0 %10763  ;;  %9951 = vmatprep.subr.bf16.mxu1 %v11660_v55 }
 0xbe9   :  { %v10766_v10 = vunpack.i.h.bf16 %v10764_v7  ;;  %v10765_v11 = vunpack.i.l.bf16 %v10764_v7  ;;  %v1941_v15 = vsel %vm148_vm2, %v1937_v8, %v10770_v2  ;;  %v1942_v23 = vsel %vm148_vm2, %v1938_v9, %v10771_v1 }
 0xbea   :  { %v1944_v22 = vpack.c.bf16 %v1942_v23, %v1941_v15 }
 0xbeb   :  { %v1939_v17 = vsel %vm148_vm2, %v1935_v24, %v10765_v11  ;;  %v1940_v28 = vsel %vm148_vm2, %v1936_v27, %v10766_v10  ;;  %9952 = vmatpush3.bf16.msra.mxu1 %v11660_v55  ;;  %v11662_v55 = vld [vmem:[%s14407_s2 + $0x2b8] sm:$0xff]  }
 0xbec   :  { %v1943_v30 = vpack.c.bf16 %v1940_v28, %v1939_v17  ;;  %9953 = vmatprep.subr.bf16.mxu1 %v11661_v4  ;;  %9959 = vmatprep.subr.bf16.mxu0 %v11662_v55 }
 0xbee   :  { %9935 = vmatprep.mubr.bf16.mxu0 %v1943_v30 }
 0xbef   :  { %9936 = vmatmul.mubr.bf16.vlgmr.msra.gmra.mxu0 %v1944_v22  ;;  %9954 = vmatpush3.bf16.msra.mxu1 %v11661_v4  ;;  %v8600_v4 = vld [vmem:[%s14409_s3 + $0x26] ss:$0 sm:$0xff] }
 0xbf0   :  { %9960 = vmatpush3.bf16.msra.mxu0 %v11662_v55 }
 0xcaf   :  { %v9937_v16 = vpop.f32.mrf.mxu0 }
 0xcb0   :  { %v2059_v35 = vadd.f32 %v9937_v16, %v8558_v45 }
 0xcb1   :  { %v2050_v18 = vpop.f32.mrf.mxu0 }
 0xcb2   :  { %v2067_v36 = vmax.f32 %v2059_v35, 0.0  ;;  %v2051_v21 = vadd.f32 %v8558_v45, %v2050_v18 }
 0xcb3   :  { %v9938_v38 = vpop.f32.mrf.mxu0 }
 0xcb4   :  { %v2076_v39 = vmul.f32 %v8568_v47, %v2067_v36  ;;  %v2065_v40 = vmax.f32 %v2051_v21, 0.0  ;;  %v2062_v41 = vadd.f32 %v9938_v38, %v8558_v45 }
 0xcb5   :  { %v2053_v42 = vpop.f32.mrf.mxu0 }
 0xcb6   :  { %v2085_v43 = vadd.f32 %v8570_v37, %v2076_v39  ;;  %v2074_v58 = vmul.f32 %v8568_v47, %v2065_v40  ;;  %v2068_v44 = vmax.f32 %v2062_v41, 0.0  ;;  %v2054_v46 = vadd.f32 %v8558_v45, %v2053_v42 }
 0xcb8   :  { %2089 = vst.msk [vmem:[#allocation2 + $0x40] sm:$0xff] %vm30_vm0, %v2085_v43  ;;  %v2083_v59 = vadd.f32 %v8570_v37, %v2074_v58  ;;  %v2077_v48 = vmul.f32 %v8568_v47, %v2068_v44  ;;  %v2066_v49 = vmax.f32 %v2054_v46, 0.0 }
 0xcba   :  { %2087 = vst.msk [vmem:[#allocation2 + $0x10] sm:$0xff] %vm30_vm0, %v2083_v59  ;;  %v2086_v51 = vadd.f32 %v8570_v37, %v2077_v48  ;;  %v2075_v52 = vmul.f32 %v8568_v47, %v2066_v49 }
 0xcbc   :  { %2090 = vst.msk [vmem:[#allocation2 + $0x48] sm:$0xff] %vm30_vm0, %v2086_v51  ;;  %v2084_v53 = vadd.f32 %v8570_v37, %v2075_v52 }
 0xcbe   :  { %2088 = vst.msk [vmem:[#allocation2 + $0x18] sm:$0xff] %vm30_vm0, %v2084_v53 }
 0xcbf   :  { %v2097_v56 = vld [vmem:[#allocation2 + $0x40] sm:$0xff] }
 0xcc0   :  { %v2093_v29 = vld [vmem:[#allocation2 + $0x3f] sm:$0xff] }
 0xcc1   :  { %v2095_v61 = vld [vmem:[#allocation2 + $0x10] sm:$0xff] }
 0xcc2   :  { %v2091_v18 = vld [vmem:[#allocation2 + $0xf] sm:$0xff] }
 0xcc3   :  { %v2098_v57 = vld [vmem:[#allocation2 + $0x48] sm:$0xff] }
 0xcc4   :  { %v10772_v60 = vpack.i.bf16 %v2098_v57, %v2097_v56  ;;  %v2101_v62 = vld [vmem:[#allocation2 + $0x41] sm:$0xff]  ;;  %v2102_v63 = vld [vmem:[#allocation2 + $0x49] sm:$0xff] }
 0xcc5   :  { %v2096_v0 = vld [vmem:[#allocation2 + $0x18] sm:$0xff]  ;;  %v10777_v5 = vpack.i.bf16 %v2102_v63, %v2101_v62  ;;  %v2105_v6 = vld [vmem:[#allocation2 + $0x42] sm:$0xff]  ;;  %v2106_v7 = vld [vmem:[#allocation2 + $0x4a] sm:$0xff] }
 0xcc6   :  { %10773 = vrot.lane.b32.xlu1 %v10772_v60, %s11880_s12  ;;  %v10782_v1 = vpack.i.bf16 %v2096_v0, %v2095_v61  ;;  %v2099_v2 = vld [vmem:[#allocation2 + $0x11] sm:$0xff]  ;;  %v2100_v3 = vld [vmem:[#allocation2 + $0x19] sm:$0xff]  ;;  %v10797_v11 = vpack.i.bf16 %v2106_v7, %v2105_v6  ;;  %v2094_v47 = vld [vmem:[#allocation2 + $0x47] sm:$0xff] }
 0xcc7   :  { %v10787_v8 = vpack.i.bf16 %v2100_v3, %v2099_v2  ;;  %v2103_v9 = vld [vmem:[#allocation2 + $0x12] sm:$0xff]  ;;  %v2104_v10 = vld [vmem:[#allocation2 + $0x1a] sm:$0xff]  ;;  %v11664_v57 = vld [vmem:[%s14407_s2 + $0x2a8] sm:$0xff]  }
 0xcc8   :  { %10783 = vrot.lane.b32.xlu0 %v10782_v1, %s11880_s12  ;;  %v10792_v15 = vpack.i.bf16 %v2104_v10, %v2103_v9  ;;  %v2092_v36 = vld [vmem:[#allocation2 + $0x17] sm:$0xff]  ;;  %v11665_v60 = vld [vmem:[%s14407_s2 + $0x2a0] sm:$0xff]  }
 0xcc9   :  { %v11663_v56 = vld [vmem:[%s14407_s2 + $0x2b0] sm:$0xff]   ;;  %v8588_v61 = vld [vmem:[%s14409_s3 + $0x24] ss:$0 sm:$0xff]  ;;  %v8598_v0 = vld [vmem:[%s14409_s3 + $0x25] ss:$0 sm:$0xff] }
 0xcca   :  { %10778 = vrot.lane.b32.xlu1 %v10777_v5, %s11881_s15  ;;  %9961 = vmatprep.subr.bf16.mxu0 %v11663_v56 }
 0xccb   :  { %9962 = vmatpush3.bf16.msra.mxu0 %v11663_v56 }
 0xccc   :  { %10788 = vrot.lane.b32.xlu0 %v10787_v8, %s11881_s15  ;;  %9963 = vmatprep.subr.bf16.mxu0 %v11664_v57 }
 0xcce   :  { %10798 = vrot.lane.b32.xlu1 %v10797_v11, %s11882_s16 }
 0xccf   :  { %9964 = vmatpush3.bf16.msra.mxu0 %v11664_v57 }
 0xcd0   :  { %10793 = vrot.lane.b32.xlu0 %v10792_v15, %s11882_s16  ;;  %9965 = vmatprep.subr.bf16.mxu0 %v11665_v60 }
 0xcd3   :  { %9966 = vmatpush3.bf16.msra.mxu0 %v11665_v60 }
 0xd38   :  { %v10774_v23 = vpop.permute.xlu1 %10773 }
 0xd39   :  { %v10776_v17 = vunpack.i.h.bf16 %v10774_v23  ;;  %v10775_v28 = vunpack.i.l.bf16 %v10774_v23 }
 0xd3a   :  { %v10784_v24 = vpop.permute.xlu0 %10783 }
 0xd3b   :  { %v10786_v30 = vunpack.i.h.bf16 %v10784_v24  ;;  %v10785_v22 = vunpack.i.l.bf16 %v10784_v24  ;;  %v2157_v38 = vsel %vm30_vm0, %v2093_v29, %v10775_v28  ;;  %v2158_v39 = vsel %vm30_vm0, %v2094_v47, %v10776_v17 }
 0xd3c   :  { %v10779_v27 = vpop.permute.xlu1 %10778 }
 0xd3d   :  { %v10781_v33 = vunpack.i.h.bf16 %v10779_v27  ;;  %v10780_v34 = vunpack.i.l.bf16 %v10779_v27  ;;  %v2155_v40 = vsel %vm30_vm0, %v2091_v18, %v10785_v22  ;;  %v2156_v41 = vsel %vm30_vm0, %v2092_v36, %v10786_v30 }
 0xd3e   :  { %v10789_v26 = vpop.permute.xlu0 %10788 }
 0xd3f   :  { %v10791_v45 = vunpack.i.h.bf16 %v10789_v26  ;;  %v10790_v16 = vunpack.i.l.bf16 %v10789_v26  ;;  %v2161_v43 = vsel %vm143_vm1, %v2157_v38, %v10780_v34  ;;  %v2162_v58 = vsel %vm143_vm1, %v2158_v39, %v10781_v33 }
 0xd40   :  { %v10799_v35 = vpop.permute.xlu1 %10798 }
 0xd41   :  { %v10801_v21 = vunpack.i.h.bf16 %v10799_v35  ;;  %v10800_v37 = vunpack.i.l.bf16 %v10799_v35  ;;  %v2159_v49 = vsel %vm143_vm1, %v2155_v40, %v10790_v16  ;;  %v2160_v50 = vsel %vm143_vm1, %v2156_v41, %v10791_v45  ;;  %v11667_v35 = vld [vmem:[%s14407_s2 + $0x290] sm:$0xff]  }
 0xd42   :  { %v10794_v42 = vpop.permute.xlu0 %10793 }
 0xd43   :  { %v10796_v44 = vunpack.i.h.bf16 %v10794_v42  ;;  %v10795_v46 = vunpack.i.l.bf16 %v10794_v42  ;;  %v2165_v59 = vsel %vm148_vm2, %v2161_v43, %v10800_v37  ;;  %v2166_v48 = vsel %vm148_vm2, %v2162_v58, %v10801_v21  ;;  %v11669_v43 = vld [vmem:[%s14407_s2 + $0x280] sm:$0xff]  }
 0xd44   :  { %v2168_v54 = vpack.c.bf16 %v2166_v48, %v2165_v59 }
 0xd45   :  { %v2163_v51 = vsel %vm148_vm2, %v2159_v49, %v10795_v46  ;;  %v2164_v52 = vsel %vm148_vm2, %v2160_v50, %v10796_v44 }
 0xd46   :  { %v2167_v53 = vpack.c.bf16 %v2164_v52, %v2163_v51 }
 0xd48   :  { %9955 = vmatprep.mubr.bf16.mxu1 %v2167_v53 }
 0xd49   :  { %9956 = vmatmul.mubr.bf16.vlgmr.msra.gmra.mxu1 %v2168_v54 }
 0xe09   :  { %v9957_v62 = vpop.f32.mrf.mxu1 }
 0xe0a   :  { %v2283_v63 = vadd.f32 %v9957_v62, %v8588_v61 }
 0xe0b   :  { %v2274_v1 = vpop.f32.mrf.mxu1 }
 0xe0c   :  { %v2291_v2 = vmax.f32 %v2283_v63, 0.0  ;;  %v2275_v3 = vadd.f32 %v8588_v61, %v2274_v1 }
 0xe0d   :  { %v9958_v5 = vpop.f32.mrf.mxu1 }
 0xe0e   :  { %v2300_v6 = vmul.f32 %v8598_v0, %v2291_v2  ;;  %v2289_v7 = vmax.f32 %v2275_v3, 0.0  ;;  %v2286_v8 = vadd.f32 %v9958_v5, %v8588_v61 }
 0xe0f   :  { %v2277_v9 = vpop.f32.mrf.mxu1 }
 0xe10   :  { %v2309_v10 = vadd.f32 %v8600_v4, %v2300_v6  ;;  %v2298_v11 = vmul.f32 %v8598_v0, %v2289_v7  ;;  %v2292_v15 = vmax.f32 %v2286_v8, 0.0  ;;  %v2278_v23 = vadd.f32 %v8588_v61, %v2277_v9 }
 0xe12   :  { %v2313_v24 = vadd.f32 %v2309_v10, %v12514_v12  ;;  %v2307_v27 = vadd.f32 %v8600_v4, %v2298_v11  ;;  %v2301_v17 = vmul.f32 %v8598_v0, %v2292_v15  ;;  %v2290_v28 = vmax.f32 %v2278_v23, 0.0  ;;  %v11666_v12 = vld [vmem:[%s14407_s2 + $0x298] sm:$0xff]  }
 0xe13   :  { %9967 = vmatprep.subr.bf16.mxu0 %v11666_v12 }
 0xe14   :  { %v12644_v30 = vmul.f32 %v2313_v24, %v11969_v13  ;;  %v2311_v22 = vadd.f32 %v2307_v27, %v12520_v25  ;;  %v2310_v26 = vadd.f32 %v8600_v4, %v2301_v17  ;;  %v2299_v33 = vmul.f32 %v8598_v0, %v2290_v28  ;;  %9968 = vmatpush3.bf16.msra.mxu0 %v11666_v12 }
 0xe15   :  { %9969 = vmatprep.subr.bf16.mxu0 %v11667_v35 }
 0xe16   :  { %2321 = vst.msk [vmem:[#allocation2 + $0x40] sm:$0xff] %vm30_vm0, %v12644_v30  ;;  %v12650_v34 = vmul.f32 %v2311_v22, %v11971_v14  ;;  %v2314_v29 = vadd.f32 %v2310_v26, %v12529_v31  ;;  %v2308_v45 = vadd.f32 %v8600_v4, %v2299_v33 }
 0xe18   :  { %2319 = vst.msk [vmem:[#allocation2 + $0x10] sm:$0xff] %vm30_vm0, %v12650_v34  ;;  %v12659_v25 = vmul.f32 %v2314_v29, %v11989_v19  ;;  %v2312_v16 = vadd.f32 %v2308_v45, %v12535_v32  ;;  %9970 = vmatpush3.bf16.msra.mxu0 %v11667_v35  ;;  %v11668_v32 = vld [vmem:[%s14407_s2 + $0x288] sm:$0xff]  }
 0xe19   :  { %9971 = vmatprep.subr.bf16.mxu0 %v11668_v32 }
 0xe1a   :  { %2322 = vst.msk [vmem:[#allocation2 + $0x48] sm:$0xff] %vm30_vm0, %v12659_v25  ;;  %v12665_v31 = vmul.f32 %v2312_v16, %v11991_v20 }
 0xe1c   :  { %2320 = vst.msk [vmem:[#allocation2 + $0x18] sm:$0xff] %vm30_vm0, %v12665_v31  ;;  %9972 = vmatpush3.bf16.msra.mxu0 %v11668_v32  ;;  %v11670_v32 = vld [vmem:[%s14407_s2 + $0x2f8] sm:$0xff]  }
 0xe1d   :  { %v2329_v47 = vld [vmem:[#allocation2 + $0x3f] sm:$0xff]  ;;  %9973 = vmatprep.subr.bf16.mxu0 %v11669_v43  ;;  %9979 = vmatprep.subr.bf16.mxu1 %v11670_v32 }
 0xe1e   :  { %v2325_v0 = vld [vmem:[#allocation2 + $0x3d] sm:$0xff]  ;;  %9980 = vmatpush3.bf16.msra.mxu1 %v11670_v32 }
 0xe1f   :  { %v2327_v21 = vld [vmem:[#allocation2 + $0xf] sm:$0xff] }
 0xe20   :  { %9974 = vmatpush3.bf16.msra.mxu0 %v11669_v43  ;;  %v2323_v6 = vld [vmem:[#allocation2 + $0xd] sm:$0xff]  ;;  %v8630_v43 = vld [vmem:[%s14409_s3 + $0x2a] ss:$0 sm:$0xff] }
 0xe21   :  { %v2330_v18 = vld [vmem:[#allocation2 + $0x47] sm:$0xff] }
 0xe22   :  { %v10802_v36 = vpack.i.bf16 %v2330_v18, %v2329_v47  ;;  %v2333_v37 = vld [vmem:[#allocation2 + $0x41] sm:$0xff]  ;;  %v2334_v39 = vld [vmem:[#allocation2 + $0x49] sm:$0xff] }
 0xe23   :  { %v2328_v38 = vld [vmem:[#allocation2 + $0x17] sm:$0xff]  ;;  %v10807_v58 = vpack.i.bf16 %v2334_v39, %v2333_v37  ;;  %v2337_v44 = vld [vmem:[#allocation2 + $0x43] sm:$0xff]  ;;  %v2338_v46 = vld [vmem:[#allocation2 + $0x4b] sm:$0xff] }
 0xe24   :  { %10803 = vrot.lane.b32.xlu1 %v10802_v36, %s11880_s12  ;;  %v10812_v40 = vpack.i.bf16 %v2328_v38, %v2327_v21  ;;  %v2331_v41 = vld [vmem:[#allocation2 + $0x11] sm:$0xff]  ;;  %v2332_v42 = vld [vmem:[#allocation2 + $0x19] sm:$0xff]  ;;  %v10827_v50 = vpack.i.bf16 %v2338_v46, %v2337_v44  ;;  %v2326_v4 = vld [vmem:[#allocation2 + $0x45] sm:$0xff] }
 0xe25   :  { %v10817_v59 = vpack.i.bf16 %v2332_v42, %v2331_v41  ;;  %v2335_v48 = vld [vmem:[#allocation2 + $0x13] sm:$0xff]  ;;  %v2336_v49 = vld [vmem:[#allocation2 + $0x1b] sm:$0xff]  ;;  %v11672_v18 = vld [vmem:[%s14407_s2 + $0x2e8] sm:$0xff]  }
 0xe26   :  { %10813 = vrot.lane.b32.xlu0 %v10812_v40, %s11880_s12  ;;  %v10822_v51 = vpack.i.bf16 %v2336_v49, %v2335_v48  ;;  %v2324_v5 = vld [vmem:[#allocation2 + $0x15] sm:$0xff]  ;;  %v11673_v36 = vld [vmem:[%s14407_s2 + $0x2e0] sm:$0xff]   ;;  %v8618_v21 = vld [vmem:[%s14409_s3 + $0x28] ss:$0 sm:$0xff] }
 0xe27   :  { %v11671_v47 = vld [vmem:[%s14407_s2 + $0x2f0] sm:$0xff]   ;;  %v8628_v39 = vld [vmem:[%s14409_s3 + $0x29] ss:$0 sm:$0xff] }
 0xe28   :  { %10808 = vrot.lane.b32.xlu1 %v10807_v58, %s11881_s15  ;;  %9981 = vmatprep.subr.bf16.mxu1 %v11671_v47 }
 0xe29   :  { %9982 = vmatpush3.bf16.msra.mxu1 %v11671_v47 }
 0xe2a   :  { %10818 = vrot.lane.b32.xlu0 %v10817_v59, %s11881_s15  ;;  %9983 = vmatprep.subr.bf16.mxu1 %v11672_v18 }
 0xe2c   :  { %10828 = vrot.lane.b32.xlu1 %v10827_v50, %s11882_s16 }
 0xe2d   :  { %9984 = vmatpush3.bf16.msra.mxu1 %v11672_v18 }
 0xe2e   :  { %10823 = vrot.lane.b32.xlu0 %v10822_v51, %s11882_s16  ;;  %9985 = vmatprep.subr.bf16.mxu1 %v11673_v36 }
 0xe31   :  { %9986 = vmatpush3.bf16.msra.mxu1 %v11673_v36 }
 0xe96   :  { %v10804_v52 = vpop.permute.xlu1 %10803 }
 0xe97   :  { %v10806_v55 = vunpack.i.h.bf16 %v10804_v52  ;;  %v10805_v56 = vunpack.i.l.bf16 %v10804_v52 }
 0xe98   :  { %v10814_v53 = vpop.permute.xlu0 %10813 }
 0xe99   :  { %v10816_v57 = vunpack.i.h.bf16 %v10814_v53  ;;  %v10815_v60 = vunpack.i.l.bf16 %v10814_v53  ;;  %v2389_v9 = vsel %vm30_vm0, %v2325_v0, %v10805_v56  ;;  %v2390_v10 = vsel %vm30_vm0, %v2326_v4, %v10806_v55  ;;  %v11674_v56 = vld [vmem:[%s14407_s2 + $0x2d8] sm:$0xff]  }
 0xe9a   :  { %v10809_v54 = vpop.permute.xlu1 %10808  ;;  %9987 = vmatprep.subr.bf16.mxu1 %v11674_v56 }
 0xe9b   :  { %v10811_v62 = vunpack.i.h.bf16 %v10809_v54  ;;  %v10810_v63 = vunpack.i.l.bf16 %v10809_v54  ;;  %v2387_v11 = vsel %vm30_vm0, %v2323_v6, %v10815_v60  ;;  %v2388_v15 = vsel %vm30_vm0, %v2324_v5, %v10816_v57  ;;  %9988 = vmatpush3.bf16.msra.mxu1 %v11674_v56 }
 0xe9c   :  { %v10819_v61 = vpop.permute.xlu0 %10818 }
 0xe9d   :  { %v10821_v1 = vunpack.i.h.bf16 %v10819_v61  ;;  %v10820_v2 = vunpack.i.l.bf16 %v10819_v61  ;;  %v2393_v24 = vsel %vm143_vm1, %v2389_v9, %v10810_v63  ;;  %v2394_v27 = vsel %vm143_vm1, %v2390_v10, %v10811_v62  ;;  %v11675_v62 = vld [vmem:[%s14407_s2 + $0x2d0] sm:$0xff]   ;;  %v11676_v63 = vld [vmem:[%s14407_s2 + $0x2c8] sm:$0xff]   ;;  %v11677_v10 = vld [vmem:[%s14407_s2 + $0x2c0] sm:$0xff]  }
 0xe9e   :  { %v10829_v3 = vpop.permute.xlu1 %10828  ;;  %9989 = vmatprep.subr.bf16.mxu1 %v11675_v62 }
 0xe9f   :  { %v10831_v7 = vunpack.i.h.bf16 %v10829_v3  ;;  %v10830_v8 = vunpack.i.l.bf16 %v10829_v3  ;;  %v2391_v33 = vsel %vm143_vm1, %v2387_v11, %v10820_v2  ;;  %v2392_v29 = vsel %vm143_vm1, %v2388_v15, %v10821_v1  ;;  %9990 = vmatpush3.bf16.msra.mxu1 %v11675_v62 }
 0xea0   :  { %v10824_v23 = vpop.permute.xlu0 %10823  ;;  %9991 = vmatprep.subr.bf16.mxu1 %v11676_v63 }
 0xea1   :  { %v10826_v17 = vunpack.i.h.bf16 %v10824_v23  ;;  %v10825_v28 = vunpack.i.l.bf16 %v10824_v23  ;;  %v2397_v22 = vsel %vm148_vm2, %v2393_v24, %v10830_v8  ;;  %v2398_v26 = vsel %vm148_vm2, %v2394_v27, %v10831_v7 }
 0xea2   :  { %v2400_v35 = vpack.c.bf16 %v2398_v26, %v2397_v22 }
 0xea3   :  { %v2395_v45 = vsel %vm148_vm2, %v2391_v33, %v10825_v28  ;;  %v2396_v12 = vsel %vm148_vm2, %v2392_v29, %v10826_v17  ;;  %9992 = vmatpush3.bf16.msra.mxu1 %v11676_v63  ;;  %v11678_v63 = vld [vmem:[%s14407_s2 + $0x338] sm:$0xff]  }
 0xea4   :  { %v2399_v16 = vpack.c.bf16 %v2396_v12, %v2395_v45  ;;  %9993 = vmatprep.subr.bf16.mxu1 %v11677_v10  ;;  %9999 = vmatprep.subr.bf16.mxu0 %v11678_v63 }
 0xea6   :  { %9975 = vmatprep.mubr.bf16.mxu0 %v2399_v16 }
 0xea7   :  { %9976 = vmatmul.mubr.bf16.vlgmr.msra.gmra.mxu0 %v2400_v35  ;;  %9994 = vmatpush3.bf16.msra.mxu1 %v11677_v10  ;;  %v8660_v10 = vld [vmem:[%s14409_s3 + $0x2e] ss:$0 sm:$0xff] }
 0xea8   :  { %10000 = vmatpush3.bf16.msra.mxu0 %v11678_v63 }
 0xf67   :  { %v9977_v37 = vpop.f32.mrf.mxu0 }
 0xf68   :  { %v2515_v38 = vadd.f32 %v9977_v37, %v8618_v21 }
 0xf69   :  { %v2506_v40 = vpop.f32.mrf.mxu0 }
 0xf6a   :  { %v2523_v41 = vmax.f32 %v2515_v38, 0.0  ;;  %v2507_v42 = vadd.f32 %v8618_v21, %v2506_v40 }
 0xf6b   :  { %v9978_v58 = vpop.f32.mrf.mxu0 }
 0xf6c   :  { %v2532_v44 = vmul.f32 %v8628_v39, %v2523_v41  ;;  %v2521_v46 = vmax.f32 %v2507_v42, 0.0  ;;  %v2518_v59 = vadd.f32 %v9978_v58, %v8618_v21 }
 0xf6d   :  { %v2509_v48 = vpop.f32.mrf.mxu0 }
 0xf6e   :  { %v2541_v49 = vadd.f32 %v8630_v43, %v2532_v44  ;;  %v2530_v50 = vmul.f32 %v8628_v39, %v2521_v46  ;;  %v2524_v51 = vmax.f32 %v2518_v59, 0.0  ;;  %v2510_v52 = vadd.f32 %v8618_v21, %v2509_v48 }
 0xf70   :  { %2545 = vst.msk [vmem:[#allocation2 + $0x40] sm:$0xff] %vm30_vm0, %v2541_v49  ;;  %v2539_v53 = vadd.f32 %v8630_v43, %v2530_v50  ;;  %v2533_v54 = vmul.f32 %v8628_v39, %v2524_v51  ;;  %v2522_v55 = vmax.f32 %v2510_v52, 0.0 }
 0xf72   :  { %2543 = vst.msk [vmem:[#allocation2 + $0x10] sm:$0xff] %vm30_vm0, %v2539_v53  ;;  %v2542_v57 = vadd.f32 %v8630_v43, %v2533_v54  ;;  %v2531_v60 = vmul.f32 %v8628_v39, %v2522_v55 }
 0xf74   :  { %2546 = vst.msk [vmem:[#allocation2 + $0x48] sm:$0xff] %vm30_vm0, %v2542_v57  ;;  %v2540_v61 = vadd.f32 %v8630_v43, %v2531_v60 }
 0xf76   :  { %2544 = vst.msk [vmem:[#allocation2 + $0x18] sm:$0xff] %vm30_vm0, %v2540_v61 }
 0xf77   :  { %v2553_v0 = vld [vmem:[#allocation2 + $0x3f] sm:$0xff] }
 0xf78   :  { %v2549_v36 = vld [vmem:[#allocation2 + $0x3d] sm:$0xff] }
 0xf79   :  { %v2551_v3 = vld [vmem:[#allocation2 + $0xf] sm:$0xff] }
 0xf7a   :  { %v2547_v41 = vld [vmem:[#allocation2 + $0xd] sm:$0xff] }
 0xf7b   :  { %v2554_v1 = vld [vmem:[#allocation2 + $0x47] sm:$0xff] }
 0xf7c   :  { %v10832_v2 = vpack.i.bf16 %v2554_v1, %v2553_v0  ;;  %v2557_v4 = vld [vmem:[#allocation2 + $0x41] sm:$0xff]  ;;  %v2558_v6 = vld [vmem:[#allocation2 + $0x49] sm:$0xff] }
 0xf7d   :  { %v2552_v5 = vld [vmem:[#allocation2 + $0x17] sm:$0xff]  ;;  %v10837_v11 = vpack.i.bf16 %v2558_v6, %v2557_v4  ;;  %v2561_v15 = vld [vmem:[#allocation2 + $0x43] sm:$0xff]  ;;  %v2562_v23 = vld [vmem:[#allocation2 + $0x4b] sm:$0xff] }
 0xf7e   :  { %10833 = vrot.lane.b32.xlu1 %v10832_v2, %s11880_s12  ;;  %v10842_v7 = vpack.i.bf16 %v2552_v5, %v2551_v3  ;;  %v2555_v8 = vld [vmem:[#allocation2 + $0x11] sm:$0xff]  ;;  %v2556_v9 = vld [vmem:[#allocation2 + $0x19] sm:$0xff]  ;;  %v10857_v28 = vpack.i.bf16 %v2562_v23, %v2561_v15  ;;  %v2550_v39 = vld [vmem:[#allocation2 + $0x45] sm:$0xff] }
 0xf7f   :  { %v10847_v24 = vpack.i.bf16 %v2556_v9, %v2555_v8  ;;  %v2559_v27 = vld [vmem:[#allocation2 + $0x13] sm:$0xff]  ;;  %v2560_v17 = vld [vmem:[#allocation2 + $0x1b] sm:$0xff]  ;;  %v11680_v1 = vld [vmem:[%s14407_s2 + $0x328] sm:$0xff]  }
 0xf80   :  { %10843 = vrot.lane.b32.xlu0 %v10842_v7, %s11880_s12  ;;  %v10852_v22 = vpack.i.bf16 %v2560_v17, %v2559_v27  ;;  %v2548_v40 = vld [vmem:[#allocation2 + $0x15] sm:$0xff]  ;;  %v11681_v2 = vld [vmem:[%s14407_s2 + $0x320] sm:$0xff]   ;;  %v8648_v3 = vld [vmem:[%s14409_s3 + $0x2c] ss:$0 sm:$0xff] }
 0xf81   :  { %v11679_v0 = vld [vmem:[%s14407_s2 + $0x330] sm:$0xff]   ;;  %v8658_v6 = vld [vmem:[%s14409_s3 + $0x2d] ss:$0 sm:$0xff] }
 0xf82   :  { %10838 = vrot.lane.b32.xlu1 %v10837_v11, %s11881_s15  ;;  %10001 = vmatprep.subr.bf16.mxu0 %v11679_v0 }
 0xf83   :  { %10002 = vmatpush3.bf16.msra.mxu0 %v11679_v0 }
 0xf84   :  { %10848 = vrot.lane.b32.xlu0 %v10847_v24, %s11881_s15  ;;  %10003 = vmatprep.subr.bf16.mxu0 %v11680_v1 }
 0xf86   :  { %10858 = vrot.lane.b32.xlu1 %v10857_v28, %s11882_s16 }
 0xf87   :  { %10004 = vmatpush3.bf16.msra.mxu0 %v11680_v1 }
 0xf88   :  { %10853 = vrot.lane.b32.xlu0 %v10852_v22, %s11882_s16  ;;  %10005 = vmatprep.subr.bf16.mxu0 %v11681_v2 }
 0xf8b   :  { %10006 = vmatpush3.bf16.msra.mxu0 %v11681_v2 }
 0xff0   :  { %v10834_v26 = vpop.permute.xlu1 %10833 }
 0xff1   :  { %v10836_v45 = vunpack.i.h.bf16 %v10834_v26  ;;  %v10835_v12 = vunpack.i.l.bf16 %v10834_v26 }
 0xff2   :  { %v10844_v33 = vpop.permute.xlu0 %10843 }
 0xff3   :  { %v10846_v16 = vunpack.i.h.bf16 %v10844_v33  ;;  %v10845_v35 = vunpack.i.l.bf16 %v10844_v33  ;;  %v2613_v58 = vsel %vm30_vm0, %v2549_v36, %v10835_v12  ;;  %v2614_v44 = vsel %vm30_vm0, %v2550_v39, %v10836_v45 }
 0xff4   :  { %v10839_v29 = vpop.permute.xlu1 %10838 }
 0xff5   :  { %v10841_v47 = vunpack.i.h.bf16 %v10839_v29  ;;  %v10840_v18 = vunpack.i.l.bf16 %v10839_v29  ;;  %v2611_v46 = vsel %vm30_vm0, %v2547_v41, %v10845_v35  ;;  %v2612_v59 = vsel %vm30_vm0, %v2548_v40, %v10846_v16 }
 0xff6   :  { %v10849_v32 = vpop.permute.xlu0 %10848 }
 0xff7   :  { %v10851_v21 = vunpack.i.h.bf16 %v10849_v32  ;;  %v10850_v37 = vunpack.i.l.bf16 %v10849_v32  ;;  %v2617_v49 = vsel %vm143_vm1, %v2613_v58, %v10840_v18  ;;  %v2618_v50 = vsel %vm143_vm1, %v2614_v44, %v10841_v47 }
 0xff8   :  { %v10859_v38 = vpop.permute.xlu1 %10858 }
 0xff9   :  { %v10861_v42 = vunpack.i.h.bf16 %v10859_v38  ;;  %v10860_v43 = vunpack.i.l.bf16 %v10859_v38  ;;  %v2615_v55 = vsel %vm143_vm1, %v2611_v46, %v10850_v37  ;;  %v2616_v56 = vsel %vm143_vm1, %v2612_v59, %v10851_v21  ;;  %v11683_v38 = vld [vmem:[%s14407_s2 + $0x310] sm:$0xff]  }
 0xffa   :  { %v10854_v48 = vpop.permute.xlu0 %10853 }
 0xffb   :  { %v10856_v51 = vunpack.i.h.bf16 %v10854_v48  ;;  %v10855_v52 = vunpack.i.l.bf16 %v10854_v48  ;;  %v2621_v53 = vsel %vm148_vm2, %v2617_v49, %v10860_v43  ;;  %v2622_v54 = vsel %vm148_vm2, %v2618_v50, %v10861_v42  ;;  %v11685_v43 = vld [vmem:[%s14407_s2 + $0x300] sm:$0xff]  }
 0xffc   :  { %v2624_v62 = vpack.c.bf16 %v2622_v54, %v2621_v53 }
 0xffd   :  { %v2619_v57 = vsel %vm148_vm2, %v2615_v55, %v10855_v52  ;;  %v2620_v60 = vsel %vm148_vm2, %v2616_v56, %v10856_v51 }
 0xffe   :  { %v2623_v61 = vpack.c.bf16 %v2620_v60, %v2619_v57 }
0x1000   :  { %9995 = vmatprep.mubr.bf16.mxu1 %v2623_v61 }
0x1001   :  { %9996 = vmatmul.mubr.bf16.vlgmr.msra.gmra.mxu1 %v2624_v62 }
0x10c1   :  { %v9997_v4 = vpop.f32.mrf.mxu1 }
0x10c2   :  { %v2739_v5 = vadd.f32 %v9997_v4, %v8648_v3 }
0x10c3   :  { %v2730_v7 = vpop.f32.mrf.mxu1 }
0x10c4   :  { %v2747_v8 = vmax.f32 %v2739_v5, 0.0  ;;  %v2731_v9 = vadd.f32 %v8648_v3, %v2730_v7 }
0x10c5   :  { %v9998_v11 = vpop.f32.mrf.mxu1 }
0x10c6   :  { %v2756_v15 = vmul.f32 %v8658_v6, %v2747_v8  ;;  %v2745_v23 = vmax.f32 %v2731_v9, 0.0  ;;  %v2742_v24 = vadd.f32 %v9998_v11, %v8648_v3 }
0x10c7   :  { %v2733_v27 = vpop.f32.mrf.mxu1 }
0x10c8   :  { %v2765_v17 = vadd.f32 %v8660_v10, %v2756_v15  ;;  %v2754_v28 = vmul.f32 %v8658_v6, %v2745_v23  ;;  %v2748_v22 = vmax.f32 %v2742_v24, 0.0  ;;  %v2734_v26 = vadd.f32 %v8648_v3, %v2733_v27 }
0x10ca   :  { %v2769_v33 = vadd.f32 %v2765_v17, %v12644_v30  ;;  %v2763_v29 = vadd.f32 %v8660_v10, %v2754_v28  ;;  %v2757_v45 = vmul.f32 %v8658_v6, %v2748_v22  ;;  %v2746_v12 = vmax.f32 %v2734_v26, 0.0  ;;  %v11682_v30 = vld [vmem:[%s14407_s2 + $0x318] sm:$0xff]  }
0x10cb   :  { %10007 = vmatprep.subr.bf16.mxu0 %v11682_v30 }
0x10cc   :  { %v12774_v16 = vmul.f32 %v2769_v33, %v11969_v13  ;;  %v2767_v35 = vadd.f32 %v2763_v29, %v12650_v34  ;;  %v2766_v32 = vadd.f32 %v8660_v10, %v2757_v45  ;;  %v2755_v47 = vmul.f32 %v8658_v6, %v2746_v12  ;;  %10008 = vmatpush3.bf16.msra.mxu0 %v11682_v30  ;;  %v11687_v30 = vld [vmem:[%s14407_s2 + $0x370] sm:$0xff]  }
0x10cd   :  { %10009 = vmatprep.subr.bf16.mxu0 %v11683_v38 }
0x10ce   :  { %2777 = vst.msk [vmem:[#allocation2 + $0x40] sm:$0xff] %vm30_vm0, %v12774_v16  ;;  %v12780_v18 = vmul.f32 %v2767_v35, %v11971_v14  ;;  %v2770_v36 = vadd.f32 %v2766_v32, %v12659_v25  ;;  %v2764_v21 = vadd.f32 %v8660_v10, %v2755_v47 }
0x10d0   :  { %2775 = vst.msk [vmem:[#allocation2 + $0x10] sm:$0xff] %vm30_vm0, %v12780_v18  ;;  %v12789_v34 = vmul.f32 %v2770_v36, %v11989_v19  ;;  %v2768_v37 = vadd.f32 %v2764_v21, %v12665_v31  ;;  %10010 = vmatpush3.bf16.msra.mxu0 %v11683_v38  ;;  %v11684_v31 = vld [vmem:[%s14407_s2 + $0x308] sm:$0xff]   ;;  %v11686_v21 = vld [vmem:[%s14407_s2 + $0x378] sm:$0xff]   ;;  %v11689_v38 = vld [vmem:[%s14407_s2 + $0x360] sm:$0xff]  }
0x10d1   :  { %10011 = vmatprep.subr.bf16.mxu0 %v11684_v31  ;;  %10019 = vmatprep.subr.bf16.mxu1 %v11686_v21 }
0x10d2   :  { %2778 = vst.msk [vmem:[#allocation2 + $0x48] sm:$0xff] %vm30_vm0, %v12789_v34  ;;  %v12795_v25 = vmul.f32 %v2768_v37, %v11991_v20  ;;  %10020 = vmatpush3.bf16.msra.mxu1 %v11686_v21  ;;  %v11688_v37 = vld [vmem:[%s14407_s2 + $0x368] sm:$0xff]  }
0x10d3   :  { %10021 = vmatprep.subr.bf16.mxu1 %v11687_v30 }
0x10d4   :  { %2776 = vst.msk [vmem:[#allocation2 + $0x18] sm:$0xff] %vm30_vm0, %v12795_v25  ;;  %10012 = vmatpush3.bf16.msra.mxu0 %v11684_v31  ;;  %v8678_v31 = vld [vmem:[%s14409_s3 + $0x30] ss:$0 sm:$0xff] }
0x10d5   :  { %v2785_v39 = vld [vmem:[#allocation2 + $0x3e] sm:$0xff]  ;;  %10013 = vmatprep.subr.bf16.mxu0 %v11685_v43 }
0x10d6   :  { %v2781_v7 = vld [vmem:[#allocation2 + $0x3a] sm:$0xff]  ;;  %10022 = vmatpush3.bf16.msra.mxu1 %v11687_v30 }
0x10d7   :  { %v2783_v42 = vld [vmem:[#allocation2 + $0xe] sm:$0xff]  ;;  %10023 = vmatprep.subr.bf16.mxu1 %v11688_v37 }
0x10d8   :  { %10014 = vmatpush3.bf16.msra.mxu0 %v11685_v43  ;;  %v2779_v8 = vld [vmem:[#allocation2 + $0xa] sm:$0xff] }
0x10d9   :  { %v2786_v40 = vld [vmem:[#allocation2 + $0x46] sm:$0xff]  ;;  %v2790_v51 = vld [vmem:[#allocation2 + $0x4e] sm:$0xff] }
0x10da   :  { %v10862_v41 = vpack.i.bf16 %v2786_v40, %v2785_v39  ;;  %v2782_v58 = vld [vmem:[#allocation2 + $0x42] sm:$0xff]  ;;  %v2788_v46 = vld [vmem:[#allocation2 + $0x4a] sm:$0xff]  ;;  %v10887_v54 = vpack.i.bf16 %v2790_v51, %v2786_v40  ;;  %10024 = vmatpush3.bf16.msra.mxu1 %v11688_v37 }
0x10db   :  { %v2784_v44 = vld [vmem:[#allocation2 + $0x16] sm:$0xff]  ;;  %v10867_v50 = vpack.i.bf16 %v2788_v46, %v2782_v58  ;;  %v2789_v53 = vld [vmem:[#allocation2 + $0x1e] sm:$0xff]  ;;  %10025 = vmatprep.subr.bf16.mxu1 %v11689_v38 }
0x10dc   :  { %10863 = vrot.lane.b32.xlu1 %v10862_v41, %s11880_s12  ;;  %v10872_v59 = vpack.i.bf16 %v2784_v44, %v2783_v42  ;;  %v2780_v48 = vld [vmem:[#allocation2 + $0x12] sm:$0xff]  ;;  %v2787_v49 = vld [vmem:[#allocation2 + $0x1a] sm:$0xff]  ;;  %v10882_v55 = vpack.i.bf16 %v2789_v53, %v2784_v44  ;;  %v8688_v41 = vld [vmem:[%s14409_s3 + $0x31] ss:$0 sm:$0xff] }
0x10dd   :  { %v10877_v52 = vpack.i.bf16 %v2787_v49, %v2780_v48  ;;  %v8690_v44 = vld [vmem:[%s14409_s3 + $0x32] ss:$0 sm:$0xff] }
0x10de   :  { %10873 = vrot.lane.b32.xlu0 %v10872_v59, %s11880_s12  ;;  %10026 = vmatpush3.bf16.msra.mxu1 %v11689_v38 }
0x10e0   :  { %10868 = vrot.lane.b32.xlu1 %v10867_v50, %s11881_s15 }
0x10e2   :  { %10878 = vrot.lane.b32.xlu0 %v10877_v52, %s11881_s15 }
0x10e4   :  { %10888 = vrot.lane.b32.xlu1 %v10887_v54, %s11882_s16 }
0x10e6   :  { %10883 = vrot.lane.b32.xlu0 %v10882_v55, %s11882_s16 }
0x114e   :  { %v10864_v56 = vpop.permute.xlu1 %10863 }
0x114f   :  { %v10866_v61 = vunpack.i.h.bf16 %v10864_v56  ;;  %v10865_v62 = vunpack.i.l.bf16 %v10864_v56 }
0x1150   :  { %v10874_v57 = vpop.permute.xlu0 %10873 }
0x1151   :  { %v10876_v63 = vunpack.i.h.bf16 %v10874_v57  ;;  %v10875_v0 = vunpack.i.l.bf16 %v10874_v57  ;;  %v2839_v11 = vsel %vm30_vm0, %v2781_v7, %v10865_v62  ;;  %v2840_v15 = vsel %vm30_vm0, %v2782_v58, %v10866_v61 }
0x1152   :  { %v10869_v60 = vpop.permute.xlu1 %10868 }
0x1153   :  { %v10871_v2 = vunpack.i.h.bf16 %v10869_v60  ;;  %v10870_v3 = vunpack.i.l.bf16 %v10869_v60  ;;  %v2837_v23 = vsel %vm30_vm0, %v2779_v8, %v10875_v0  ;;  %v2838_v24 = vsel %vm30_vm0, %v2780_v48, %v10876_v63  ;;  %v11690_v60 = vld [vmem:[%s14407_s2 + $0x358] sm:$0xff]   ;;  %v11691_v0 = vld [vmem:[%s14407_s2 + $0x350] sm:$0xff]  }
0x1154   :  { %v10879_v1 = vpop.permute.xlu0 %10878  ;;  %10027 = vmatprep.subr.bf16.mxu1 %v11690_v60 }
0x1155   :  { %v10881_v4 = vunpack.i.h.bf16 %v10879_v1  ;;  %v10880_v5 = vunpack.i.l.bf16 %v10879_v1  ;;  %v2843_v17 = vsel %vm143_vm1, %v2839_v11, %v10870_v3  ;;  %v2844_v28 = vsel %vm143_vm1, %v2840_v15, %v10871_v2  ;;  %10028 = vmatpush3.bf16.msra.mxu1 %v11690_v60  ;;  %v11692_v1 = vld [vmem:[%s14407_s2 + $0x348] sm:$0xff]  }
0x1156   :  { %v10889_v6 = vpop.permute.xlu1 %10888  ;;  %10029 = vmatprep.subr.bf16.mxu1 %v11691_v0 }
0x1157   :  { %v10891_v9 = vunpack.i.h.bf16 %v10889_v6  ;;  %v10890_v10 = vunpack.i.l.bf16 %v10889_v6  ;;  %v2841_v45 = vsel %vm143_vm1, %v2837_v23, %v10880_v5  ;;  %v2842_v12 = vsel %vm143_vm1, %v2838_v24, %v10881_v4  ;;  %v11693_v6 = vld [vmem:[%s14407_s2 + $0x340] sm:$0xff]  }
0x1158   :  { %v10884_v27 = vpop.permute.xlu0 %10883 }
0x1159   :  { %v10886_v22 = vunpack.i.h.bf16 %v10884_v27  ;;  %v10885_v26 = vunpack.i.l.bf16 %v10884_v27  ;;  %v2847_v33 = vsel %vm148_vm2, %v2843_v17, %v10890_v10  ;;  %v2848_v29 = vsel %vm148_vm2, %v2844_v28, %v10891_v9  ;;  %10030 = vmatpush3.bf16.msra.mxu1 %v11691_v0  ;;  %v11697_v0 = vld [vmem:[%s14407_s2 + $0x3a0] sm:$0xff]  }
0x115a   :  { %v2850_v36 = vpack.c.bf16 %v2848_v29, %v2847_v33  ;;  %10031 = vmatprep.subr.bf16.mxu1 %v11692_v1 }
0x115b   :  { %v2845_v35 = vsel %vm148_vm2, %v2841_v45, %v10885_v26  ;;  %v2846_v32 = vsel %vm148_vm2, %v2842_v12, %v10886_v22 }
0x115c   :  { %v2849_v47 = vpack.c.bf16 %v2846_v32, %v2845_v35 }
0x115d   :  { %10032 = vmatpush3.bf16.msra.mxu1 %v11692_v1  ;;  %v8708_v1 = vld [vmem:[%s14409_s3 + $0x34] ss:$0 sm:$0xff] }
0x115e   :  { %10015 = vmatprep.mubr.bf16.mxu0 %v2849_v47  ;;  %10033 = vmatprep.subr.bf16.mxu1 %v11693_v6 }
0x115f   :  { %10016 = vmatmul.mubr.bf16.vlgmr.msra.gmra.mxu0 %v2850_v36 }
0x1161   :  { %10034 = vmatpush3.bf16.msra.mxu1 %v11693_v6 }
0x121f   :  { %v10017_v39 = vpop.f32.mrf.mxu0 }
0x1220   :  { %v2965_v40 = vadd.f32 %v10017_v39, %v8678_v31 }
0x1221   :  { %v2956_v42 = vpop.f32.mrf.mxu0 }
0x1222   :  { %v2973_v43 = vmax.f32 %v2965_v40, 0.0  ;;  %v2957_v58 = vadd.f32 %v8678_v31, %v2956_v42 }
0x1223   :  { %v10018_v46 = vpop.f32.mrf.mxu0 }
0x1224   :  { %v2982_v59 = vmul.f32 %v8688_v41, %v2973_v43  ;;  %v2971_v48 = vmax.f32 %v2957_v58, 0.0  ;;  %v2968_v49 = vadd.f32 %v10018_v46, %v8678_v31 }
0x1225   :  { %v2959_v50 = vpop.f32.mrf.mxu0 }
0x1226   :  { %v2991_v51 = vadd.f32 %v8690_v44, %v2982_v59  ;;  %v2980_v52 = vmul.f32 %v8688_v41, %v2971_v48  ;;  %v2974_v53 = vmax.f32 %v2968_v49, 0.0  ;;  %v2960_v54 = vadd.f32 %v8678_v31, %v2959_v50 }
0x1228   :  { %2995 = vst.msk [vmem:[#allocation2 + $0x40] sm:$0xff] %vm30_vm0, %v2991_v51  ;;  %v2989_v55 = vadd.f32 %v8690_v44, %v2980_v52  ;;  %v2983_v56 = vmul.f32 %v8688_v41, %v2974_v53  ;;  %v2972_v57 = vmax.f32 %v2960_v54, 0.0 }
0x122a   :  { %2993 = vst.msk [vmem:[#allocation2 + $0x10] sm:$0xff] %vm30_vm0, %v2989_v55  ;;  %v2992_v61 = vadd.f32 %v8690_v44, %v2983_v56  ;;  %v2981_v62 = vmul.f32 %v8688_v41, %v2972_v57 }
0x122c   :  { %2996 = vst.msk [vmem:[#allocation2 + $0x48] sm:$0xff] %vm30_vm0, %v2992_v61  ;;  %v2990_v63 = vadd.f32 %v8690_v44, %v2981_v62  ;;  %v11694_v61 = vld [vmem:[%s14407_s2 + $0x3b8] sm:$0xff]   ;;  %v11695_v62 = vld [vmem:[%s14407_s2 + $0x3b0] sm:$0xff]  }
0x122d   :  { %10039 = vmatprep.subr.bf16.mxu0 %v11694_v61 }
0x122e   :  { %2994 = vst.msk [vmem:[#allocation2 + $0x18] sm:$0xff] %vm30_vm0, %v2990_v63  ;;  %10040 = vmatpush3.bf16.msra.mxu0 %v11694_v61  ;;  %v11696_v63 = vld [vmem:[%s14407_s2 + $0x3a8] sm:$0xff]  }
0x122f   :  { %v3003_v2 = vld [vmem:[#allocation2 + $0x3e] sm:$0xff]  ;;  %10041 = vmatprep.subr.bf16.mxu0 %v11695_v62 }
0x1230   :  { %v2999_v31 = vld [vmem:[#allocation2 + $0x3a] sm:$0xff] }
0x1231   :  { %v3001_v5 = vld [vmem:[#allocation2 + $0xe] sm:$0xff] }
0x1232   :  { %v2997_v39 = vld [vmem:[#allocation2 + $0xa] sm:$0xff]  ;;  %10042 = vmatpush3.bf16.msra.mxu0 %v11695_v62  ;;  %v12950_v62 = vld [vmem:[#allocation2 + $0x34] sm:$0xff] }
0x1233   :  { %v3004_v3 = vld [vmem:[#allocation2 + $0x46] sm:$0xff]  ;;  %v3008_v24 = vld [vmem:[#allocation2 + $0x4e] sm:$0xff]  ;;  %10043 = vmatprep.subr.bf16.mxu0 %v11696_v63 }
0x1234   :  { %v10892_v4 = vpack.i.bf16 %v3004_v3, %v3003_v2  ;;  %v3000_v7 = vld [vmem:[#allocation2 + $0x42] sm:$0xff]  ;;  %v3006_v9 = vld [vmem:[#allocation2 + $0x4a] sm:$0xff]  ;;  %v10917_v28 = vpack.i.bf16 %v3008_v24, %v3004_v3 }
0x1235   :  { %v3002_v8 = vld [vmem:[#allocation2 + $0x16] sm:$0xff]  ;;  %v10897_v23 = vpack.i.bf16 %v3006_v9, %v3000_v7  ;;  %v3007_v17 = vld [vmem:[#allocation2 + $0x1e] sm:$0xff] }
0x1236   :  { %10893 = vrot.lane.b32.xlu1 %v10892_v4, %s11880_s12  ;;  %v10902_v10 = vpack.i.bf16 %v3002_v8, %v3001_v5  ;;  %v2998_v11 = vld [vmem:[#allocation2 + $0x12] sm:$0xff]  ;;  %v3005_v15 = vld [vmem:[#allocation2 + $0x1a] sm:$0xff]  ;;  %v10912_v22 = vpack.i.bf16 %v3007_v17, %v3002_v8  ;;  %10044 = vmatpush3.bf16.msra.mxu0 %v11696_v63  ;;  %v12952_v63 = vld [vmem:[#allocation2 + $0x4] sm:$0xff] }
0x1237   :  { %v10907_v27 = vpack.i.bf16 %v3005_v15, %v2998_v11  ;;  %10045 = vmatprep.subr.bf16.mxu0 %v11697_v0  ;;  %v8718_v4 = vld [vmem:[%s14409_s3 + $0x35] ss:$0 sm:$0xff]  ;;  %v8720_v8 = vld [vmem:[%s14409_s3 + $0x36] ss:$0 sm:$0xff] }
0x1238   :  { %10903 = vrot.lane.b32.xlu0 %v10902_v10, %s11880_s12 }
0x123a   :  { %10898 = vrot.lane.b32.xlu1 %v10897_v23, %s11881_s15  ;;  %10046 = vmatpush3.bf16.msra.mxu0 %v11697_v0 }
0x123c   :  { %10908 = vrot.lane.b32.xlu0 %v10907_v27, %s11881_s15 }
0x123e   :  { %10918 = vrot.lane.b32.xlu1 %v10917_v28, %s11882_s16 }
0x1240   :  { %10913 = vrot.lane.b32.xlu0 %v10912_v22, %s11882_s16 }
0x12a8   :  { %v10894_v26 = vpop.permute.xlu1 %10893 }
0x12a9   :  { %v10896_v45 = vunpack.i.h.bf16 %v10894_v26  ;;  %v10895_v12 = vunpack.i.l.bf16 %v10894_v26 }
0x12aa   :  { %v10904_v33 = vpop.permute.xlu0 %10903 }
0x12ab   :  { %v10906_v35 = vunpack.i.h.bf16 %v10904_v33  ;;  %v10905_v32 = vunpack.i.l.bf16 %v10904_v33  ;;  %v3057_v42 = vsel %vm30_vm0, %v2999_v31, %v10895_v12  ;;  %v3058_v43 = vsel %vm30_vm0, %v3000_v7, %v10896_v45 }
0x12ac   :  { %v10899_v29 = vpop.permute.xlu1 %10898 }
0x12ad   :  { %v10901_v36 = vunpack.i.h.bf16 %v10899_v29  ;;  %v10900_v21 = vunpack.i.l.bf16 %v10899_v29  ;;  %v3055_v58 = vsel %vm30_vm0, %v2997_v39, %v10905_v32  ;;  %v3056_v44 = vsel %vm30_vm0, %v2998_v11, %v10906_v35  ;;  %v11701_v39 = vld [vmem:[%s14407_s2 + $0x380] sm:$0xff]  }
0x12ae   :  { %v10909_v47 = vpop.permute.xlu0 %10908 }
0x12af   :  { %v10911_v30 = vunpack.i.h.bf16 %v10909_v47  ;;  %v10910_v37 = vunpack.i.l.bf16 %v10909_v47  ;;  %v3061_v59 = vsel %vm143_vm1, %v3057_v42, %v10900_v21  ;;  %v3062_v48 = vsel %vm143_vm1, %v3058_v43, %v10901_v36 }
0x12b0   :  { %v10919_v38 = vpop.permute.xlu1 %10918 }
0x12b1   :  { %v10921_v40 = vunpack.i.h.bf16 %v10919_v38  ;;  %v10920_v41 = vunpack.i.l.bf16 %v10919_v38  ;;  %v3059_v53 = vsel %vm143_vm1, %v3055_v58, %v10910_v37  ;;  %v3060_v54 = vsel %vm143_vm1, %v3056_v44, %v10911_v30  ;;  %v11699_v37 = vld [vmem:[%s14407_s2 + $0x390] sm:$0xff]  }
0x12b2   :  { %v10914_v46 = vpop.permute.xlu0 %10913 }
0x12b3   :  { %v10916_v49 = vunpack.i.h.bf16 %v10914_v46  ;;  %v10915_v50 = vunpack.i.l.bf16 %v10914_v46  ;;  %v3065_v51 = vsel %vm148_vm2, %v3061_v59, %v10920_v41  ;;  %v3066_v52 = vsel %vm148_vm2, %v3062_v48, %v10921_v40  ;;  %v12940_v59 = vld [vmem:[#allocation2 + $0x54] sm:$0xff] }
0x12b4   :  { %v3068_v60 = vpack.c.bf16 %v3066_v52, %v3065_v51 }
0x12b5   :  { %v3063_v55 = vsel %vm148_vm2, %v3059_v53, %v10915_v50  ;;  %v3064_v56 = vsel %vm148_vm2, %v3060_v54, %v10916_v49  ;;  %v12943_v49 = vld [vmem:[#allocation2 + $0x24] sm:$0xff] }
0x12b6   :  { %v3067_v57 = vpack.c.bf16 %v3064_v56, %v3063_v55 }
0x12b8   :  { %10035 = vmatprep.mubr.bf16.mxu1 %v3067_v57 }
0x12b9   :  { %10036 = vmatmul.mubr.bf16.vlgmr.msra.gmra.mxu1 %v3068_v60 }
0x1379   :  { %v10037_v2 = vpop.f32.mrf.mxu1 }
0x137a   :  { %v3183_v3 = vadd.f32 %v10037_v2, %v8708_v1 }
0x137b   :  { %v3174_v5 = vpop.f32.mrf.mxu1 }
0x137c   :  { %v3191_v6 = vmax.f32 %v3183_v3, 0.0  ;;  %v3175_v7 = vadd.f32 %v8708_v1, %v3174_v5 }
0x137d   :  { %v10038_v9 = vpop.f32.mrf.mxu1 }
0x137e   :  { %v3200_v10 = vmul.f32 %v8718_v4, %v3191_v6  ;;  %v3189_v11 = vmax.f32 %v3175_v7, 0.0  ;;  %v3186_v15 = vadd.f32 %v10038_v9, %v8708_v1 }
0x137f   :  { %v3177_v23 = vpop.f32.mrf.mxu1 }
0x1380   :  { %v3209_v24 = vadd.f32 %v8720_v8, %v3200_v10  ;;  %v3198_v27 = vmul.f32 %v8718_v4, %v3189_v11  ;;  %v3192_v17 = vmax.f32 %v3186_v15, 0.0  ;;  %v3178_v28 = vadd.f32 %v8708_v1, %v3177_v23 }
0x1382   :  { %v3213_v22 = vadd.f32 %v3209_v24, %v12774_v16  ;;  %v3207_v26 = vadd.f32 %v8720_v8, %v3198_v27  ;;  %v3201_v33 = vmul.f32 %v8718_v4, %v3192_v17  ;;  %v3190_v29 = vmax.f32 %v3178_v28, 0.0  ;;  %v11698_v16 = vld [vmem:[%s14407_s2 + $0x398] sm:$0xff]  }
0x1383   :  { %10047 = vmatprep.subr.bf16.mxu0 %v11698_v16 }
0x1384   :  { %v12904_v45 = vmul.f32 %v3213_v22, %v11969_v13  ;;  %v3211_v12 = vadd.f32 %v3207_v26, %v12780_v18  ;;  %v3210_v35 = vadd.f32 %v8720_v8, %v3201_v33  ;;  %v3199_v32 = vmul.f32 %v8718_v4, %v3190_v29  ;;  %10048 = vmatpush3.bf16.msra.mxu0 %v11698_v16  ;;  %v11705_v16 = vld [vmem:[%s14407_s2 + $0x3e0] sm:$0xff]  }
0x1385   :  { %10049 = vmatprep.subr.bf16.mxu0 %v11699_v37 }
0x1386   :  { %3221 = vst.msk [vmem:[#allocation2 + $0x40] sm:$0xff] %vm30_vm0, %v12904_v45  ;;  %v12910_v47 = vmul.f32 %v3211_v12, %v11971_v14  ;;  %v3214_v36 = vadd.f32 %v3210_v35, %v12789_v34  ;;  %v3208_v21 = vadd.f32 %v8720_v8, %v3199_v32  ;;  %v11702_v32 = vld [vmem:[%s14407_s2 + $0x3f8] sm:$0xff]  }
0x1387   :  { %10059 = vmatprep.subr.bf16.mxu1 %v11702_v32 }
0x1388   :  { %3219 = vst.msk [vmem:[#allocation2 + $0x10] sm:$0xff] %vm30_vm0, %v12910_v47  ;;  %v12919_v18 = vmul.f32 %v3214_v36, %v11989_v19  ;;  %v3212_v30 = vadd.f32 %v3208_v21, %v12795_v25  ;;  %10050 = vmatpush3.bf16.msra.mxu0 %v11699_v37  ;;  %v11700_v25 = vld [vmem:[%s14407_s2 + $0x388] sm:$0xff]   ;;  %v11703_v36 = vld [vmem:[%s14407_s2 + $0x3f0] sm:$0xff]   ;;  %10060 = vmatpush3.bf16.msra.mxu1 %v11702_v32 }
0x1389   :  { %10051 = vmatprep.subr.bf16.mxu0 %v11700_v25  ;;  %10061 = vmatprep.subr.bf16.mxu1 %v11703_v36  ;;  %v11704_v21 = vld [vmem:[%s14407_s2 + $0x3e8] sm:$0xff]  }
0x138a   :  { %3222 = vst.msk [vmem:[#allocation2 + $0x48] sm:$0xff] %vm30_vm0, %v12919_v18  ;;  %v12925_v34 = vmul.f32 %v3212_v30, %v11991_v20  ;;  %v8738_v30 = vld [vmem:[%s14409_s3 + $0x38] ss:$0 sm:$0xff] }
0x138c   :  { %3220 = vst.msk [vmem:[#allocation2 + $0x18] sm:$0xff] %vm30_vm0, %v12925_v34  ;;  %10052 = vmatpush3.bf16.msra.mxu0 %v11700_v25  ;;  %10062 = vmatpush3.bf16.msra.mxu1 %v11703_v36 }
0x138d   :  { %v3226_v38 = vld [vmem:[#allocation2 + $0x3c] sm:$0xff]  ;;  %10053 = vmatprep.subr.bf16.mxu0 %v11701_v39  ;;  %10063 = vmatprep.subr.bf16.mxu1 %v11704_v21 }
0x138f   :  { %v3224_v41 = vld [vmem:[#allocation2 + $0xc] sm:$0xff] }
0x1390   :  { %10054 = vmatpush3.bf16.msra.mxu0 %v11701_v39  ;;  %10064 = vmatpush3.bf16.msra.mxu1 %v11704_v21 }
0x1391   :  { %v3228_v31 = vld [vmem:[#allocation2 + $0x44] sm:$0xff]  ;;  %v3230_v43 = vld [vmem:[#allocation2 + $0x4c] sm:$0xff]  ;;  %10065 = vmatprep.subr.bf16.mxu1 %v11705_v16 }
0x1392   :  { %v10922_v40 = vpack.i.bf16 %v3228_v31, %v3226_v38  ;;  %v10927_v46 = vpack.i.bf16 %v3230_v43, %v3228_v31  ;;  %v10947_v50 = vpack.i.bf16 %v12940_v59, %v3230_v43 }
0x1393   :  { %v3227_v42 = vld [vmem:[#allocation2 + $0x14] sm:$0xff]  ;;  %v3229_v44 = vld [vmem:[#allocation2 + $0x1c] sm:$0xff] }
0x1394   :  { %10923 = vrot.lane.b32.xlu1 %v10922_v40, %s11880_s12  ;;  %v10932_v58 = vpack.i.bf16 %v3227_v42, %v3224_v41  ;;  %v10937_v48 = vpack.i.bf16 %v3229_v44, %v3227_v42  ;;  %v10942_v51 = vpack.i.bf16 %v12943_v49, %v3229_v44  ;;  %10066 = vmatpush3.bf16.msra.mxu1 %v11705_v16 }
0x1396   :  { %10933 = vrot.lane.b32.xlu0 %v10932_v58, %s11880_s12 }
0x1398   :  { %10928 = vrot.lane.b32.xlu1 %v10927_v46, %s11881_s15 }
0x139a   :  { %10938 = vrot.lane.b32.xlu0 %v10937_v48, %s11881_s15 }
0x139c   :  { %10948 = vrot.lane.b32.xlu1 %v10947_v50, %s11882_s16 }
0x139e   :  { %10943 = vrot.lane.b32.xlu0 %v10942_v51, %s11882_s16 }
0x1406   :  { %v10924_v52 = vpop.permute.xlu1 %10923 }
0x1407   :  { %v10926_v55 = vunpack.i.h.bf16 %v10924_v52  ;;  %v10925_v56 = vunpack.i.l.bf16 %v10924_v52 }
0x1408   :  { %v10934_v53 = vpop.permute.xlu0 %10933 }
0x1409   :  { %v10936_v57 = vunpack.i.h.bf16 %v10934_v53  ;;  %v10935_v60 = vunpack.i.l.bf16 %v10934_v53  ;;  %v3280_v7 = vsel %vm30_vm0, %v3226_v38, %v10926_v55  ;;  %v3279_v8 = vsel %vm30_vm0, %v12950_v62, %v10925_v56  ;;  %v8748_v38 = vld [vmem:[%s14409_s3 + $0x39] ss:$0 sm:$0xff] }
0x140a   :  { %v10929_v54 = vpop.permute.xlu1 %10928  ;;  %v11706_v56 = vld [vmem:[%s14407_s2 + $0x3d8] sm:$0xff]  }
0x140b   :  { %v10931_v0 = vunpack.i.h.bf16 %v10929_v54  ;;  %v10930_v1 = vunpack.i.l.bf16 %v10929_v54  ;;  %v3278_v9 = vsel %vm30_vm0, %v3224_v41, %v10936_v57  ;;  %v3277_v10 = vsel %vm30_vm0, %v12952_v63, %v10935_v60  ;;  %v8750_v41 = vld [vmem:[%s14409_s3 + $0x3a] ss:$0 sm:$0xff]  ;;  %10067 = vmatprep.subr.bf16.mxu1 %v11706_v56 }
0x140c   :  { %v10939_v61 = vpop.permute.xlu0 %10938  ;;  %10068 = vmatpush3.bf16.msra.mxu1 %v11706_v56 }
0x140d   :  { %v10941_v2 = vunpack.i.h.bf16 %v10939_v61  ;;  %v10940_v3 = vunpack.i.l.bf16 %v10939_v61  ;;  %v3283_v15 = vsel %vm143_vm1, %v3279_v8, %v10930_v1  ;;  %v3284_v23 = vsel %vm143_vm1, %v3280_v7, %v10931_v0  ;;  %v11707_v0 = vld [vmem:[%s14407_s2 + $0x3d0] sm:$0xff]   ;;  %v11708_v1 = vld [vmem:[%s14407_s2 + $0x3c8] sm:$0xff]  }
0x140e   :  { %v10949_v4 = vpop.permute.xlu1 %10948  ;;  %10069 = vmatprep.subr.bf16.mxu1 %v11707_v0 }
0x140f   :  { %v10951_v5 = vunpack.i.h.bf16 %v10949_v4  ;;  %v10950_v6 = vunpack.i.l.bf16 %v10949_v4  ;;  %v3281_v22 = vsel %vm143_vm1, %v3277_v10, %v10940_v3  ;;  %v3282_v26 = vsel %vm143_vm1, %v3278_v9, %v10941_v2  ;;  %v11709_v4 = vld [vmem:[%s14407_s2 + $0x3c0] sm:$0xff]  }
0x1410   :  { %v10944_v11 = vpop.permute.xlu0 %10943  ;;  %10070 = vmatpush3.bf16.msra.mxu1 %v11707_v0 }
0x1411   :  { %v10946_v24 = vunpack.i.h.bf16 %v10944_v11  ;;  %v10945_v27 = vunpack.i.l.bf16 %v10944_v11  ;;  %v3287_v17 = vsel %vm148_vm2, %v3283_v15, %v10950_v6  ;;  %v3288_v28 = vsel %vm148_vm2, %v3284_v23, %v10951_v5  ;;  %10071 = vmatprep.subr.bf16.mxu1 %v11708_v1 }
0x1412   :  { %v3290_v35 = vpack.c.bf16 %v3288_v28, %v3287_v17 }
0x1413   :  { %v3285_v33 = vsel %vm148_vm2, %v3281_v22, %v10945_v27  ;;  %v3286_v29 = vsel %vm148_vm2, %v3282_v26, %v10946_v24 }
0x1414   :  { %v3289_v12 = vpack.c.bf16 %v3286_v29, %v3285_v33  ;;  %10072 = vmatpush3.bf16.msra.mxu1 %v11708_v1 }
0x1415   :  { %10073 = vmatprep.subr.bf16.mxu1 %v11709_v4 }
0x1416   :  { %10055 = vmatprep.mubr.bf16.mxu0 %v3289_v12 }
0x1417   :  { %10056 = vmatmul.mubr.bf16.vlgmr.msra.gmra.mxu0 %v3290_v35 }
0x1418   :  { %10074 = vmatpush3.bf16.msra.mxu1 %v11709_v4 }
0x14d7   :  { %v10057_v37 = vpop.f32.mrf.mxu0 }
0x14d8   :  { %v3405_v25 = vadd.f32 %v10057_v37, %v8738_v30 }
0x14d9   :  { %v3396_v31 = vpop.f32.mrf.mxu0 }
0x14da   :  { %v3413_v39 = vmax.f32 %v3405_v25, 0.0  ;;  %v3397_v40 = vadd.f32 %v8738_v30, %v3396_v31 }
0x14db   :  { %v10058_v42 = vpop.f32.mrf.mxu0 }
0x14dc   :  { %v3422_v43 = vmul.f32 %v8748_v38, %v3413_v39  ;;  %v3411_v58 = vmax.f32 %v3397_v40, 0.0  ;;  %v3408_v44 = vadd.f32 %v10058_v42, %v8738_v30 }
0x14dd   :  { %v3399_v46 = vpop.f32.mrf.mxu0 }
0x14de   :  { %v3431_v48 = vadd.f32 %v8750_v41, %v3422_v43  ;;  %v3420_v50 = vmul.f32 %v8748_v38, %v3411_v58  ;;  %v3414_v51 = vmax.f32 %v3408_v44, 0.0  ;;  %v3400_v52 = vadd.f32 %v8738_v30, %v3399_v46 }
0x14e0   :  { %3435 = vst.msk [vmem:[#allocation2 + $0x40] sm:$0xff] %vm30_vm0, %v3431_v48  ;;  %v3429_v53 = vadd.f32 %v8750_v41, %v3420_v50  ;;  %v3423_v54 = vmul.f32 %v8748_v38, %v3414_v51  ;;  %v3412_v55 = vmax.f32 %v3400_v52, 0.0  ;;  %v11710_v51 = vld [vmem:[%s14407_s2 + $0x438] sm:$0xff]   ;;  %v11711_v52 = vld [vmem:[%s14407_s2 + $0x430] sm:$0xff]  }
0x14e1   :  { %10079 = vmatprep.subr.bf16.mxu0 %v11710_v51 }
0x14e2   :  { %3433 = vst.msk [vmem:[#allocation2 + $0x10] sm:$0xff] %vm30_vm0, %v3429_v53  ;;  %v3432_v57 = vadd.f32 %v8750_v41, %v3423_v54  ;;  %v3421_v60 = vmul.f32 %v8748_v38, %v3412_v55  ;;  %10080 = vmatpush3.bf16.msra.mxu0 %v11710_v51  ;;  %v11712_v53 = vld [vmem:[%s14407_s2 + $0x428] sm:$0xff]   ;;  %v11713_v54 = vld [vmem:[%s14407_s2 + $0x420] sm:$0xff]   ;;  %v8768_v55 = vld [vmem:[%s14409_s3 + $0x3c] ss:$0 sm:$0xff] }
0x14e3   :  { %10081 = vmatprep.subr.bf16.mxu0 %v11711_v52 }
0x14e4   :  { %3436 = vst.msk [vmem:[#allocation2 + $0x48] sm:$0xff] %vm30_vm0, %v3432_v57  ;;  %v3430_v61 = vadd.f32 %v8750_v41, %v3421_v60  ;;  %v8778_v60 = vld [vmem:[%s14409_s3 + $0x3d] ss:$0 sm:$0xff] }
0x14e6   :  { %3434 = vst.msk [vmem:[#allocation2 + $0x18] sm:$0xff] %vm30_vm0, %v3430_v61  ;;  %10082 = vmatpush3.bf16.msra.mxu0 %v11711_v52 }
0x14e7   :  { %v3440_v2 = vld [vmem:[#allocation2 + $0x3c] sm:$0xff]  ;;  %10083 = vmatprep.subr.bf16.mxu0 %v11712_v53 }
0x14e9   :  { %v3438_v6 = vld [vmem:[#allocation2 + $0xc] sm:$0xff] }
0x14ea   :  { %10084 = vmatpush3.bf16.msra.mxu0 %v11712_v53 }
0x14eb   :  { %v3442_v3 = vld [vmem:[#allocation2 + $0x44] sm:$0xff]  ;;  %v3444_v8 = vld [vmem:[#allocation2 + $0x4c] sm:$0xff]  ;;  %10085 = vmatprep.subr.bf16.mxu0 %v11713_v54 }
0x14ec   :  { %v10952_v5 = vpack.i.bf16 %v3442_v3, %v3440_v2  ;;  %v10957_v11 = vpack.i.bf16 %v3444_v8, %v3442_v3  ;;  %v10977_v23 = vpack.i.bf16 %v12940_v59, %v3444_v8 }
0x14ed   :  { %v3441_v7 = vld [vmem:[#allocation2 + $0x14] sm:$0xff]  ;;  %v3443_v10 = vld [vmem:[#allocation2 + $0x1c] sm:$0xff] }
0x14ee   :  { %10953 = vrot.lane.b32.xlu1 %v10952_v5, %s11880_s12  ;;  %v10962_v9 = vpack.i.bf16 %v3441_v7, %v3438_v6  ;;  %v10967_v15 = vpack.i.bf16 %v3443_v10, %v3441_v7  ;;  %v10972_v24 = vpack.i.bf16 %v12943_v49, %v3443_v10  ;;  %10086 = vmatpush3.bf16.msra.mxu0 %v11713_v54 }
0x14f0   :  { %10963 = vrot.lane.b32.xlu0 %v10962_v9, %s11880_s12 }
0x14f2   :  { %10958 = vrot.lane.b32.xlu1 %v10957_v11, %s11881_s15 }
0x14f4   :  { %10968 = vrot.lane.b32.xlu0 %v10967_v15, %s11881_s15 }
0x14f6   :  { %10978 = vrot.lane.b32.xlu1 %v10977_v23, %s11882_s16 }
0x14f8   :  { %10973 = vrot.lane.b32.xlu0 %v10972_v24, %s11882_s16 }
0x1560   :  { %v10954_v27 = vpop.permute.xlu1 %10953 }
0x1561   :  { %v10956_v22 = vunpack.i.h.bf16 %v10954_v27  ;;  %v10955_v26 = vunpack.i.l.bf16 %v10954_v27 }
0x1562   :  { %v10964_v17 = vpop.permute.xlu0 %10963 }
0x1563   :  { %v10966_v33 = vunpack.i.h.bf16 %v10964_v17  ;;  %v10965_v29 = vunpack.i.l.bf16 %v10964_v17  ;;  %v3494_v37 = vsel %vm30_vm0, %v3440_v2, %v10956_v22  ;;  %v3493_v49 = vsel %vm30_vm0, %v12950_v62, %v10955_v26  ;;  %v8780_v2 = vld [vmem:[%s14409_s3 + $0x3e] ss:$0 sm:$0xff] }
0x1564   :  { %v10959_v28 = vpop.permute.xlu1 %10958 }
0x1565   :  { %v10961_v35 = vunpack.i.h.bf16 %v10959_v28  ;;  %v10960_v32 = vunpack.i.l.bf16 %v10959_v28  ;;  %v3492_v25 = vsel %vm30_vm0, %v3438_v6, %v10966_v33  ;;  %v3491_v38 = vsel %vm30_vm0, %v12952_v63, %v10965_v29 }
0x1566   :  { %v10969_v12 = vpop.permute.xlu0 %10968 }
0x1567   :  { %v10971_v36 = vunpack.i.h.bf16 %v10969_v12  ;;  %v10970_v21 = vunpack.i.l.bf16 %v10969_v12  ;;  %v3497_v39 = vsel %vm143_vm1, %v3493_v49, %v10960_v32  ;;  %v3498_v40 = vsel %vm143_vm1, %v3494_v37, %v10961_v35  ;;  %v11715_v32 = vld [vmem:[%s14407_s2 + $0x410] sm:$0xff]  }
0x1568   :  { %v10979_v16 = vpop.permute.xlu1 %10978 }
0x1569   :  { %v10981_v59 = vunpack.i.h.bf16 %v10979_v16  ;;  %v10980_v30 = vunpack.i.l.bf16 %v10979_v16  ;;  %v3495_v44 = vsel %vm143_vm1, %v3491_v38, %v10970_v21  ;;  %v3496_v62 = vsel %vm143_vm1, %v3492_v25, %v10971_v36 }
0x156a   :  { %v10974_v31 = vpop.permute.xlu0 %10973 }
0x156b   :  { %v10976_v41 = vunpack.i.h.bf16 %v10974_v31  ;;  %v10975_v42 = vunpack.i.l.bf16 %v10974_v31  ;;  %v3501_v43 = vsel %vm148_vm2, %v3497_v39, %v10980_v30  ;;  %v3502_v58 = vsel %vm148_vm2, %v3498_v40, %v10981_v59  ;;  %v11717_v39 = vld [vmem:[%s14407_s2 + $0x400] sm:$0xff]  }
0x156c   :  { %v3504_v50 = vpack.c.bf16 %v3502_v58, %v3501_v43 }
0x156d   :  { %v3499_v46 = vsel %vm148_vm2, %v3495_v44, %v10975_v42  ;;  %v3500_v48 = vsel %vm148_vm2, %v3496_v62, %v10976_v41 }
0x156e   :  { %v3503_v63 = vpack.c.bf16 %v3500_v48, %v3499_v46 }
0x1570   :  { %10075 = vmatprep.mubr.bf16.mxu1 %v3503_v63 }
0x1571   :  { %10076 = vmatmul.mubr.bf16.vlgmr.msra.gmra.mxu1 %v3504_v50 }
0x1631   :  { %v10077_v56 = vpop.f32.mrf.mxu1 }
0x1632   :  { %v3619_v57 = vadd.f32 %v10077_v56, %v8768_v55 }
0x1633   :  { %v3610_v61 = vpop.f32.mrf.mxu1 }
0x1634   :  { %v3627_v0 = vmax.f32 %v3619_v57, 0.0  ;;  %v3611_v1 = vadd.f32 %v8768_v55, %v3610_v61 }
0x1635   :  { %v10078_v3 = vpop.f32.mrf.mxu1 }
0x1636   :  { %v3636_v4 = vmul.f32 %v8778_v60, %v3627_v0  ;;  %v3625_v5 = vmax.f32 %v3611_v1, 0.0  ;;  %v3622_v6 = vadd.f32 %v10078_v3, %v8768_v55 }
0x1637   :  { %v3613_v7 = vpop.f32.mrf.mxu1 }
0x1638   :  { %v3645_v8 = vadd.f32 %v8780_v2, %v3636_v4  ;;  %v3634_v9 = vmul.f32 %v8778_v60, %v3625_v5  ;;  %v3628_v10 = vmax.f32 %v3622_v6, 0.0  ;;  %v3614_v11 = vadd.f32 %v8768_v55, %v3613_v7 }
0x163a   :  { %v3649_v15 = vadd.f32 %v3645_v8, %v12904_v45  ;;  %v3643_v23 = vadd.f32 %v8780_v2, %v3634_v9  ;;  %v3637_v24 = vmul.f32 %v8778_v60, %v3628_v10  ;;  %v3626_v27 = vmax.f32 %v3614_v11, 0.0  ;;  %v11714_v45 = vld [vmem:[%s14407_s2 + $0x418] sm:$0xff]  }
0x163b   :  { %10087 = vmatprep.subr.bf16.mxu0 %v11714_v45 }
0x163c   :  { %v13050_v17 = vmul.f32 %v3649_v15, %v11969_v13  ;;  %v3647_v28 = vadd.f32 %v3643_v23, %v12910_v47  ;;  %v3646_v22 = vadd.f32 %v8780_v2, %v3637_v24  ;;  %v3635_v26 = vmul.f32 %v8778_v60, %v3626_v27  ;;  %10088 = vmatpush3.bf16.msra.mxu0 %v11714_v45 }
0x163d   :  { %10089 = vmatprep.subr.bf16.mxu0 %v11715_v32 }
0x163e   :  { %3657 = vst.msk [vmem:[#allocation2 + $0x40] sm:$0xff] %vm30_vm0, %v13050_v17  ;;  %v13056_v33 = vmul.f32 %v3647_v28, %v11971_v14  ;;  %v3650_v29 = vadd.f32 %v3646_v22, %v12919_v18  ;;  %v3644_v12 = vadd.f32 %v8780_v2, %v3635_v26 }
0x1640   :  { %3655 = vst.msk [vmem:[#allocation2 + $0x10] sm:$0xff] %vm30_vm0, %v13056_v33  ;;  %v13065_v47 = vmul.f32 %v3650_v29, %v11989_v19  ;;  %v3648_v35 = vadd.f32 %v3644_v12, %v12925_v34  ;;  %10090 = vmatpush3.bf16.msra.mxu0 %v11715_v32  ;;  %v11716_v34 = vld [vmem:[%s14407_s2 + $0x408] sm:$0xff]  }
0x1641   :  { %10091 = vmatprep.subr.bf16.mxu0 %v11716_v34 }
0x1642   :  { %3658 = vst.msk [vmem:[#allocation2 + $0x48] sm:$0xff] %vm30_vm0, %v13065_v47  ;;  %v13071_v18 = vmul.f32 %v3648_v35, %v11991_v20 }
0x1644   :  { %3656 = vst.msk [vmem:[#allocation2 + $0x18] sm:$0xff] %vm30_vm0, %v13071_v18  ;;  %10092 = vmatpush3.bf16.msra.mxu0 %v11716_v34  ;;  %v11718_v34 = vld [vmem:[%s14407_s2 + $0x478] sm:$0xff]  }
0x1645   :  { %v3665_v36 = vld [vmem:[#allocation2 + $0x40] sm:$0xff]  ;;  %10093 = vmatprep.subr.bf16.mxu0 %v11717_v39  ;;  %10099 = vmatprep.subr.bf16.mxu1 %v11718_v34 }
0x1646   :  { %v3661_v60 = vld [vmem:[#allocation2 + $0x3f] sm:$0xff]  ;;  %10100 = vmatpush3.bf16.msra.mxu1 %v11718_v34 }
0x1647   :  { %v3663_v59 = vld [vmem:[#allocation2 + $0x10] sm:$0xff] }
0x1648   :  { %10094 = vmatpush3.bf16.msra.mxu0 %v11717_v39  ;;  %v3659_v3 = vld [vmem:[#allocation2 + $0xf] sm:$0xff]  ;;  %v8810_v39 = vld [vmem:[%s14409_s3 + $0x42] ss:$0 sm:$0xff] }
0x1649   :  { %v3666_v21 = vld [vmem:[#allocation2 + $0x48] sm:$0xff] }
0x164a   :  { %v10982_v16 = vpack.i.bf16 %v3666_v21, %v3665_v36  ;;  %v3669_v30 = vld [vmem:[#allocation2 + $0x41] sm:$0xff]  ;;  %v3670_v49 = vld [vmem:[#allocation2 + $0x49] sm:$0xff] }
0x164b   :  { %v3664_v37 = vld [vmem:[#allocation2 + $0x18] sm:$0xff]  ;;  %v10987_v40 = vpack.i.bf16 %v3670_v49, %v3669_v30  ;;  %v3673_v41 = vld [vmem:[#allocation2 + $0x42] sm:$0xff]  ;;  %v3674_v42 = vld [vmem:[#allocation2 + $0x4a] sm:$0xff] }
0x164c   :  { %10983 = vrot.lane.b32.xlu1 %v10982_v16, %s11880_s12  ;;  %v10992_v25 = vpack.i.bf16 %v3664_v37, %v3663_v59  ;;  %v3667_v38 = vld [vmem:[#allocation2 + $0x11] sm:$0xff]  ;;  %v3668_v31 = vld [vmem:[#allocation2 + $0x19] sm:$0xff]  ;;  %v11007_v62 = vpack.i.bf16 %v3674_v42, %v3673_v41  ;;  %v3662_v2 = vld [vmem:[#allocation2 + $0x47] sm:$0xff] }
0x164d   :  { %v10997_v43 = vpack.i.bf16 %v3668_v31, %v3667_v38  ;;  %v3671_v58 = vld [vmem:[#allocation2 + $0x12] sm:$0xff]  ;;  %v3672_v44 = vld [vmem:[#allocation2 + $0x1a] sm:$0xff]  ;;  %v11720_v21 = vld [vmem:[%s14407_s2 + $0x468] sm:$0xff]  }
0x164e   :  { %10993 = vrot.lane.b32.xlu0 %v10992_v25, %s11880_s12  ;;  %v11002_v46 = vpack.i.bf16 %v3672_v44, %v3671_v58  ;;  %v3660_v4 = vld [vmem:[#allocation2 + $0x17] sm:$0xff]  ;;  %v11721_v16 = vld [vmem:[%s14407_s2 + $0x460] sm:$0xff]  }
0x164f   :  { %v11719_v36 = vld [vmem:[%s14407_s2 + $0x470] sm:$0xff]   ;;  %v8798_v59 = vld [vmem:[%s14409_s3 + $0x40] ss:$0 sm:$0xff]  ;;  %v8808_v49 = vld [vmem:[%s14409_s3 + $0x41] ss:$0 sm:$0xff] }
0x1650   :  { %10988 = vrot.lane.b32.xlu1 %v10987_v40, %s11881_s15  ;;  %10101 = vmatprep.subr.bf16.mxu1 %v11719_v36 }
0x1651   :  { %10102 = vmatpush3.bf16.msra.mxu1 %v11719_v36 }
0x1652   :  { %10998 = vrot.lane.b32.xlu0 %v10997_v43, %s11881_s15  ;;  %10103 = vmatprep.subr.bf16.mxu1 %v11720_v21 }
0x1654   :  { %11008 = vrot.lane.b32.xlu1 %v11007_v62, %s11882_s16 }
0x1655   :  { %10104 = vmatpush3.bf16.msra.mxu1 %v11720_v21 }
0x1656   :  { %11003 = vrot.lane.b32.xlu0 %v11002_v46, %s11882_s16  ;;  %10105 = vmatprep.subr.bf16.mxu1 %v11721_v16 }
0x1659   :  { %10106 = vmatpush3.bf16.msra.mxu1 %v11721_v16 }
0x16be   :  { %v10984_v48 = vpop.permute.xlu1 %10983 }
0x16bf   :  { %v10986_v51 = vunpack.i.h.bf16 %v10984_v48  ;;  %v10985_v52 = vunpack.i.l.bf16 %v10984_v48 }
0x16c0   :  { %v10994_v63 = vpop.permute.xlu0 %10993 }
0x16c1   :  { %v10996_v53 = vunpack.i.h.bf16 %v10994_v63  ;;  %v10995_v54 = vunpack.i.l.bf16 %v10994_v63  ;;  %v3725_v7 = vsel %vm30_vm0, %v3661_v60, %v10985_v52  ;;  %v3726_v8 = vsel %vm30_vm0, %v3662_v2, %v10986_v51  ;;  %v11722_v52 = vld [vmem:[%s14407_s2 + $0x458] sm:$0xff]  }
0x16c2   :  { %v10989_v50 = vpop.permute.xlu1 %10988  ;;  %10107 = vmatprep.subr.bf16.mxu1 %v11722_v52 }
0x16c3   :  { %v10991_v56 = vunpack.i.h.bf16 %v10989_v50  ;;  %v10990_v57 = vunpack.i.l.bf16 %v10989_v50  ;;  %v3723_v9 = vsel %vm30_vm0, %v3659_v3, %v10995_v54  ;;  %v3724_v10 = vsel %vm30_vm0, %v3660_v4, %v10996_v53  ;;  %10108 = vmatpush3.bf16.msra.mxu1 %v11722_v52 }
0x16c4   :  { %v10999_v55 = vpop.permute.xlu0 %10998 }
0x16c5   :  { %v11001_v61 = vunpack.i.h.bf16 %v10999_v55  ;;  %v11000_v0 = vunpack.i.l.bf16 %v10999_v55  ;;  %v3729_v15 = vsel %vm143_vm1, %v3725_v7, %v10990_v57  ;;  %v3730_v23 = vsel %vm143_vm1, %v3726_v8, %v10991_v56  ;;  %v11723_v56 = vld [vmem:[%s14407_s2 + $0x450] sm:$0xff]   ;;  %v11724_v57 = vld [vmem:[%s14407_s2 + $0x448] sm:$0xff]   ;;  %v11725_v8 = vld [vmem:[%s14407_s2 + $0x440] sm:$0xff]  }
0x16c6   :  { %v11009_v1 = vpop.permute.xlu1 %11008  ;;  %10109 = vmatprep.subr.bf16.mxu1 %v11723_v56 }
0x16c7   :  { %v11011_v5 = vunpack.i.h.bf16 %v11009_v1  ;;  %v11010_v6 = vunpack.i.l.bf16 %v11009_v1  ;;  %v3727_v26 = vsel %vm143_vm1, %v3723_v9, %v11000_v0  ;;  %v3728_v29 = vsel %vm143_vm1, %v3724_v10, %v11001_v61  ;;  %10110 = vmatpush3.bf16.msra.mxu1 %v11723_v56 }
0x16c8   :  { %v11004_v11 = vpop.permute.xlu0 %11003  ;;  %10111 = vmatprep.subr.bf16.mxu1 %v11724_v57 }
0x16c9   :  { %v11006_v24 = vunpack.i.h.bf16 %v11004_v11  ;;  %v11005_v27 = vunpack.i.l.bf16 %v11004_v11  ;;  %v3733_v28 = vsel %vm148_vm2, %v3729_v15, %v11010_v6  ;;  %v3734_v22 = vsel %vm148_vm2, %v3730_v23, %v11011_v5 }
0x16ca   :  { %v3736_v32 = vpack.c.bf16 %v3734_v22, %v3733_v28 }
0x16cb   :  { %v3731_v12 = vsel %vm148_vm2, %v3727_v26, %v11005_v27  ;;  %v3732_v45 = vsel %vm148_vm2, %v3728_v29, %v11006_v24  ;;  %10112 = vmatpush3.bf16.msra.mxu1 %v11724_v57  ;;  %v11726_v57 = vld [vmem:[%s14407_s2 + $0x4b8] sm:$0xff]  }
0x16cc   :  { %v3735_v35 = vpack.c.bf16 %v3732_v45, %v3731_v12  ;;  %10113 = vmatprep.subr.bf16.mxu1 %v11725_v8  ;;  %10119 = vmatprep.subr.bf16.mxu0 %v11726_v57 }
0x16ce   :  { %10095 = vmatprep.mubr.bf16.mxu0 %v3735_v35 }
0x16cf   :  { %10096 = vmatmul.mubr.bf16.vlgmr.msra.gmra.mxu0 %v3736_v32  ;;  %10114 = vmatpush3.bf16.msra.mxu1 %v11725_v8  ;;  %v8840_v8 = vld [vmem:[%s14409_s3 + $0x46] ss:$0 sm:$0xff] }
0x16d0   :  { %10120 = vmatpush3.bf16.msra.mxu0 %v11726_v57 }
0x178f   :  { %v10097_v30 = vpop.f32.mrf.mxu0 }
0x1790   :  { %v3851_v37 = vadd.f32 %v10097_v30, %v8798_v59 }
0x1791   :  { %v3842_v25 = vpop.f32.mrf.mxu0 }
0x1792   :  { %v3859_v38 = vmax.f32 %v3851_v37, 0.0  ;;  %v3843_v31 = vadd.f32 %v8798_v59, %v3842_v25 }
0x1793   :  { %v10098_v40 = vpop.f32.mrf.mxu0 }
0x1794   :  { %v3868_v41 = vmul.f32 %v8808_v49, %v3859_v38  ;;  %v3857_v42 = vmax.f32 %v3843_v31, 0.0  ;;  %v3854_v43 = vadd.f32 %v10098_v40, %v8798_v59 }
0x1795   :  { %v3845_v58 = vpop.f32.mrf.mxu0 }
0x1796   :  { %v3877_v44 = vadd.f32 %v8810_v39, %v3868_v41  ;;  %v3866_v62 = vmul.f32 %v8808_v49, %v3857_v42  ;;  %v3860_v46 = vmax.f32 %v3854_v43, 0.0  ;;  %v3846_v48 = vadd.f32 %v8798_v59, %v3845_v58 }
0x1798   :  { %3881 = vst.msk [vmem:[#allocation2 + $0x40] sm:$0xff] %vm30_vm0, %v3877_v44  ;;  %v3875_v63 = vadd.f32 %v8810_v39, %v3866_v62  ;;  %v3869_v50 = vmul.f32 %v8808_v49, %v3860_v46  ;;  %v3858_v51 = vmax.f32 %v3846_v48, 0.0 }
0x179a   :  { %3879 = vst.msk [vmem:[#allocation2 + $0x10] sm:$0xff] %vm30_vm0, %v3875_v63  ;;  %v3878_v53 = vadd.f32 %v8810_v39, %v3869_v50  ;;  %v3867_v54 = vmul.f32 %v8808_v49, %v3858_v51 }
0x179c   :  { %3882 = vst.msk [vmem:[#allocation2 + $0x48] sm:$0xff] %vm30_vm0, %v3878_v53  ;;  %v3876_v55 = vadd.f32 %v8810_v39, %v3867_v54 }
0x179e   :  { %3880 = vst.msk [vmem:[#allocation2 + $0x18] sm:$0xff] %vm30_vm0, %v3876_v55 }
0x179f   :  { %v3889_v60 = vld [vmem:[#allocation2 + $0x40] sm:$0xff] }
0x17a0   :  { %v3885_v16 = vld [vmem:[#allocation2 + $0x3f] sm:$0xff] }
0x17a1   :  { %v3887_v1 = vld [vmem:[#allocation2 + $0x10] sm:$0xff] }
0x17a2   :  { %v3883_v49 = vld [vmem:[#allocation2 + $0xf] sm:$0xff] }
0x17a3   :  { %v3890_v61 = vld [vmem:[#allocation2 + $0x48] sm:$0xff] }
0x17a4   :  { %v11012_v0 = vpack.i.bf16 %v3890_v61, %v3889_v60  ;;  %v3893_v3 = vld [vmem:[#allocation2 + $0x41] sm:$0xff]  ;;  %v3894_v4 = vld [vmem:[#allocation2 + $0x49] sm:$0xff] }
0x17a5   :  { %v3888_v2 = vld [vmem:[#allocation2 + $0x18] sm:$0xff]  ;;  %v11017_v9 = vpack.i.bf16 %v3894_v4, %v3893_v3  ;;  %v3897_v10 = vld [vmem:[#allocation2 + $0x42] sm:$0xff]  ;;  %v3898_v11 = vld [vmem:[#allocation2 + $0x4a] sm:$0xff] }
0x17a6   :  { %11013 = vrot.lane.b32.xlu1 %v11012_v0, %s11880_s12  ;;  %v11022_v5 = vpack.i.bf16 %v3888_v2, %v3887_v1  ;;  %v3891_v6 = vld [vmem:[#allocation2 + $0x11] sm:$0xff]  ;;  %v3892_v7 = vld [vmem:[#allocation2 + $0x19] sm:$0xff]  ;;  %v11037_v27 = vpack.i.bf16 %v3898_v11, %v3897_v10  ;;  %v3886_v38 = vld [vmem:[#allocation2 + $0x47] sm:$0xff] }
0x17a7   :  { %v11027_v15 = vpack.i.bf16 %v3892_v7, %v3891_v6  ;;  %v3895_v23 = vld [vmem:[#allocation2 + $0x12] sm:$0xff]  ;;  %v3896_v24 = vld [vmem:[#allocation2 + $0x1a] sm:$0xff]  ;;  %v11728_v61 = vld [vmem:[%s14407_s2 + $0x4a8] sm:$0xff]  }
0x17a8   :  { %11023 = vrot.lane.b32.xlu0 %v11022_v5, %s11880_s12  ;;  %v11032_v28 = vpack.i.bf16 %v3896_v24, %v3895_v23  ;;  %v3884_v25 = vld [vmem:[#allocation2 + $0x17] sm:$0xff]  ;;  %v11729_v0 = vld [vmem:[%s14407_s2 + $0x4a0] sm:$0xff]  }
0x17a9   :  { %v11727_v60 = vld [vmem:[%s14407_s2 + $0x4b0] sm:$0xff]   ;;  %v8828_v1 = vld [vmem:[%s14409_s3 + $0x44] ss:$0 sm:$0xff]  ;;  %v8838_v4 = vld [vmem:[%s14409_s3 + $0x45] ss:$0 sm:$0xff] }
0x17aa   :  { %11018 = vrot.lane.b32.xlu1 %v11017_v9, %s11881_s15  ;;  %10121 = vmatprep.subr.bf16.mxu0 %v11727_v60 }
0x17ab   :  { %10122 = vmatpush3.bf16.msra.mxu0 %v11727_v60 }
0x17ac   :  { %11028 = vrot.lane.b32.xlu0 %v11027_v15, %s11881_s15  ;;  %10123 = vmatprep.subr.bf16.mxu0 %v11728_v61 }
0x17ae   :  { %11038 = vrot.lane.b32.xlu1 %v11037_v27, %s11882_s16 }
0x17af   :  { %10124 = vmatpush3.bf16.msra.mxu0 %v11728_v61 }
0x17b0   :  { %11033 = vrot.lane.b32.xlu0 %v11032_v28, %s11882_s16  ;;  %10125 = vmatprep.subr.bf16.mxu0 %v11729_v0 }
0x17b3   :  { %10126 = vmatpush3.bf16.msra.mxu0 %v11729_v0 }
0x1818   :  { %v11014_v22 = vpop.permute.xlu1 %11013 }
0x1819   :  { %v11016_v12 = vunpack.i.h.bf16 %v11014_v22  ;;  %v11015_v45 = vunpack.i.l.bf16 %v11014_v22 }
0x181a   :  { %v11024_v26 = vpop.permute.xlu0 %11023 }
0x181b   :  { %v11026_v35 = vunpack.i.h.bf16 %v11024_v26  ;;  %v11025_v32 = vunpack.i.l.bf16 %v11024_v26  ;;  %v3949_v40 = vsel %vm30_vm0, %v3885_v16, %v11015_v45  ;;  %v3950_v41 = vsel %vm30_vm0, %v3886_v38, %v11016_v12 }
0x181c   :  { %v11019_v29 = vpop.permute.xlu1 %11018 }
0x181d   :  { %v11021_v36 = vunpack.i.h.bf16 %v11019_v29  ;;  %v11020_v21 = vunpack.i.l.bf16 %v11019_v29  ;;  %v3947_v42 = vsel %vm30_vm0, %v3883_v49, %v11025_v32  ;;  %v3948_v43 = vsel %vm30_vm0, %v3884_v25, %v11026_v35 }
0x181e   :  { %v11029_v34 = vpop.permute.xlu0 %11028 }
0x181f   :  { %v11031_v59 = vunpack.i.h.bf16 %v11029_v34  ;;  %v11030_v30 = vunpack.i.l.bf16 %v11029_v34  ;;  %v3953_v44 = vsel %vm143_vm1, %v3949_v40, %v11020_v21  ;;  %v3954_v62 = vsel %vm143_vm1, %v3950_v41, %v11021_v36 }
0x1820   :  { %v11039_v37 = vpop.permute.xlu1 %11038 }
0x1821   :  { %v11041_v31 = vunpack.i.h.bf16 %v11039_v37  ;;  %v11040_v39 = vunpack.i.l.bf16 %v11039_v37  ;;  %v3951_v51 = vsel %vm143_vm1, %v3947_v42, %v11030_v30  ;;  %v3952_v52 = vsel %vm143_vm1, %v3948_v43, %v11031_v59  ;;  %v11731_v37 = vld [vmem:[%s14407_s2 + $0x490] sm:$0xff]  }
0x1822   :  { %v11034_v58 = vpop.permute.xlu0 %11033 }
0x1823   :  { %v11036_v46 = vunpack.i.h.bf16 %v11034_v58  ;;  %v11035_v48 = vunpack.i.l.bf16 %v11034_v58  ;;  %v3957_v63 = vsel %vm148_vm2, %v3953_v44, %v11040_v39  ;;  %v3958_v50 = vsel %vm148_vm2, %v3954_v62, %v11041_v31  ;;  %v11733_v44 = vld [vmem:[%s14407_s2 + $0x480] sm:$0xff]  }
0x1824   :  { %v3960_v56 = vpack.c.bf16 %v3958_v50, %v3957_v63 }
0x1825   :  { %v3955_v53 = vsel %vm148_vm2, %v3951_v51, %v11035_v48  ;;  %v3956_v54 = vsel %vm148_vm2, %v3952_v52, %v11036_v46 }
0x1826   :  { %v3959_v55 = vpack.c.bf16 %v3956_v54, %v3955_v53 }
0x1828   :  { %10115 = vmatprep.mubr.bf16.mxu1 %v3959_v55 }
0x1829   :  { %10116 = vmatmul.mubr.bf16.vlgmr.msra.gmra.mxu1 %v3960_v56 }
0x18e9   :  { %v10117_v2 = vpop.f32.mrf.mxu1 }
0x18ea   :  { %v4075_v3 = vadd.f32 %v10117_v2, %v8828_v1 }
0x18eb   :  { %v4066_v5 = vpop.f32.mrf.mxu1 }
0x18ec   :  { %v4083_v6 = vmax.f32 %v4075_v3, 0.0  ;;  %v4067_v7 = vadd.f32 %v8828_v1, %v4066_v5 }
0x18ed   :  { %v10118_v9 = vpop.f32.mrf.mxu1 }
0x18ee   :  { %v4092_v10 = vmul.f32 %v8838_v4, %v4083_v6  ;;  %v4081_v11 = vmax.f32 %v4067_v7, 0.0  ;;  %v4078_v15 = vadd.f32 %v10118_v9, %v8828_v1 }
0x18ef   :  { %v4069_v23 = vpop.f32.mrf.mxu1 }
0x18f0   :  { %v4101_v24 = vadd.f32 %v8840_v8, %v4092_v10  ;;  %v4090_v27 = vmul.f32 %v8838_v4, %v4081_v11  ;;  %v4084_v28 = vmax.f32 %v4078_v15, 0.0  ;;  %v4070_v22 = vadd.f32 %v8828_v1, %v4069_v23 }
0x18f2   :  { %v4105_v26 = vadd.f32 %v4101_v24, %v13050_v17  ;;  %v4099_v29 = vadd.f32 %v8840_v8, %v4090_v27  ;;  %v4093_v12 = vmul.f32 %v8838_v4, %v4084_v28  ;;  %v4082_v45 = vmax.f32 %v4070_v22, 0.0  ;;  %v11730_v17 = vld [vmem:[%s14407_s2 + $0x498] sm:$0xff]  }
0x18f3   :  { %10127 = vmatprep.subr.bf16.mxu0 %v11730_v17 }
0x18f4   :  { %v13180_v35 = vmul.f32 %v4105_v26, %v11969_v13  ;;  %v4103_v32 = vadd.f32 %v4099_v29, %v13056_v33  ;;  %v4102_v34 = vadd.f32 %v8840_v8, %v4093_v12  ;;  %v4091_v36 = vmul.f32 %v8838_v4, %v4082_v45  ;;  %10128 = vmatpush3.bf16.msra.mxu0 %v11730_v17 }
0x18f5   :  { %10129 = vmatprep.subr.bf16.mxu0 %v11731_v37 }
0x18f6   :  { %4113 = vst.msk [vmem:[#allocation2 + $0x40] sm:$0xff] %vm30_vm0, %v13180_v35  ;;  %v13186_v21 = vmul.f32 %v4103_v32, %v11971_v14  ;;  %v4106_v16 = vadd.f32 %v4102_v34, %v13065_v47  ;;  %v4100_v59 = vadd.f32 %v8840_v8, %v4091_v36 }
0x18f8   :  { %4111 = vst.msk [vmem:[#allocation2 + $0x10] sm:$0xff] %vm30_vm0, %v13186_v21  ;;  %v13195_v33 = vmul.f32 %v4106_v16, %v11989_v19  ;;  %v4104_v30 = vadd.f32 %v4100_v59, %v13071_v18  ;;  %10130 = vmatpush3.bf16.msra.mxu0 %v11731_v37  ;;  %v11732_v18 = vld [vmem:[%s14407_s2 + $0x488] sm:$0xff]  }
0x18f9   :  { %10131 = vmatprep.subr.bf16.mxu0 %v11732_v18 }
0x18fa   :  { %4114 = vst.msk [vmem:[#allocation2 + $0x48] sm:$0xff] %vm30_vm0, %v13195_v33  ;;  %v13201_v47 = vmul.f32 %v4104_v30, %v11991_v20 }
0x18fc   :  { %4112 = vst.msk [vmem:[#allocation2 + $0x18] sm:$0xff] %vm30_vm0, %v13201_v47  ;;  %10132 = vmatpush3.bf16.msra.mxu0 %v11732_v18  ;;  %v11734_v18 = vld [vmem:[%s14407_s2 + $0x4f8] sm:$0xff]  }
0x18fd   :  { %v4121_v49 = vld [vmem:[#allocation2 + $0x3f] sm:$0xff]  ;;  %10133 = vmatprep.subr.bf16.mxu0 %v11733_v44  ;;  %10139 = vmatprep.subr.bf16.mxu1 %v11734_v18 }
0x18fe   :  { %v4117_v4 = vld [vmem:[#allocation2 + $0x3d] sm:$0xff]  ;;  %10140 = vmatpush3.bf16.msra.mxu1 %v11734_v18 }
0x18ff   :  { %v4119_v31 = vld [vmem:[#allocation2 + $0xf] sm:$0xff] }
0x1900   :  { %10134 = vmatpush3.bf16.msra.mxu0 %v11733_v44  ;;  %v4115_v9 = vld [vmem:[#allocation2 + $0xd] sm:$0xff]  ;;  %v8870_v44 = vld [vmem:[%s14409_s3 + $0x4a] ss:$0 sm:$0xff] }
0x1901   :  { %v4122_v25 = vld [vmem:[#allocation2 + $0x47] sm:$0xff] }
0x1902   :  { %v11042_v38 = vpack.i.bf16 %v4122_v25, %v4121_v49  ;;  %v4125_v40 = vld [vmem:[#allocation2 + $0x41] sm:$0xff]  ;;  %v4126_v41 = vld [vmem:[#allocation2 + $0x49] sm:$0xff] }
0x1903   :  { %v4120_v39 = vld [vmem:[#allocation2 + $0x17] sm:$0xff]  ;;  %v11047_v62 = vpack.i.bf16 %v4126_v41, %v4125_v40  ;;  %v4129_v46 = vld [vmem:[#allocation2 + $0x43] sm:$0xff]  ;;  %v4130_v48 = vld [vmem:[#allocation2 + $0x4b] sm:$0xff] }
0x1904   :  { %11043 = vrot.lane.b32.xlu1 %v11042_v38, %s11880_s12  ;;  %v11052_v42 = vpack.i.bf16 %v4120_v39, %v4119_v31  ;;  %v4123_v43 = vld [vmem:[#allocation2 + $0x11] sm:$0xff]  ;;  %v4124_v58 = vld [vmem:[#allocation2 + $0x19] sm:$0xff]  ;;  %v11067_v52 = vpack.i.bf16 %v4130_v48, %v4129_v46  ;;  %v4118_v8 = vld [vmem:[#allocation2 + $0x45] sm:$0xff] }
0x1905   :  { %v11057_v63 = vpack.i.bf16 %v4124_v58, %v4123_v43  ;;  %v4127_v50 = vld [vmem:[#allocation2 + $0x13] sm:$0xff]  ;;  %v4128_v51 = vld [vmem:[#allocation2 + $0x1b] sm:$0xff]  ;;  %v11736_v25 = vld [vmem:[%s14407_s2 + $0x4e8] sm:$0xff]  }
0x1906   :  { %11053 = vrot.lane.b32.xlu0 %v11052_v42, %s11880_s12  ;;  %v11062_v53 = vpack.i.bf16 %v4128_v51, %v4127_v50  ;;  %v4116_v10 = vld [vmem:[#allocation2 + $0x15] sm:$0xff]  ;;  %v11737_v38 = vld [vmem:[%s14407_s2 + $0x4e0] sm:$0xff]   ;;  %v8858_v31 = vld [vmem:[%s14409_s3 + $0x48] ss:$0 sm:$0xff] }
0x1907   :  { %v11735_v49 = vld [vmem:[%s14407_s2 + $0x4f0] sm:$0xff]   ;;  %v8868_v41 = vld [vmem:[%s14409_s3 + $0x49] ss:$0 sm:$0xff] }
0x1908   :  { %11048 = vrot.lane.b32.xlu1 %v11047_v62, %s11881_s15  ;;  %10141 = vmatprep.subr.bf16.mxu1 %v11735_v49 }
0x1909   :  { %10142 = vmatpush3.bf16.msra.mxu1 %v11735_v49 }
0x190a   :  { %11058 = vrot.lane.b32.xlu0 %v11057_v63, %s11881_s15  ;;  %10143 = vmatprep.subr.bf16.mxu1 %v11736_v25 }
0x190c   :  { %11068 = vrot.lane.b32.xlu1 %v11067_v52, %s11882_s16 }
0x190d   :  { %10144 = vmatpush3.bf16.msra.mxu1 %v11736_v25 }
0x190e   :  { %11063 = vrot.lane.b32.xlu0 %v11062_v53, %s11882_s16  ;;  %10145 = vmatprep.subr.bf16.mxu1 %v11737_v38 }
0x1911   :  { %10146 = vmatpush3.bf16.msra.mxu1 %v11737_v38 }
0x1976   :  { %v11044_v54 = vpop.permute.xlu1 %11043 }
0x1977   :  { %v11046_v57 = vunpack.i.h.bf16 %v11044_v54  ;;  %v11045_v60 = vunpack.i.l.bf16 %v11044_v54 }
0x1978   :  { %v11054_v55 = vpop.permute.xlu0 %11053 }
0x1979   :  { %v11056_v61 = vunpack.i.h.bf16 %v11054_v55  ;;  %v11055_v0 = vunpack.i.l.bf16 %v11054_v55  ;;  %v4181_v23 = vsel %vm30_vm0, %v4117_v4, %v11045_v60  ;;  %v4182_v24 = vsel %vm30_vm0, %v4118_v8, %v11046_v57  ;;  %v11738_v60 = vld [vmem:[%s14407_s2 + $0x4d8] sm:$0xff]  }
0x197a   :  { %v11049_v56 = vpop.permute.xlu1 %11048  ;;  %10147 = vmatprep.subr.bf16.mxu1 %v11738_v60 }
0x197b   :  { %v11051_v2 = vunpack.i.h.bf16 %v11049_v56  ;;  %v11050_v3 = vunpack.i.l.bf16 %v11049_v56  ;;  %v4179_v27 = vsel %vm30_vm0, %v4115_v9, %v11055_v0  ;;  %v4180_v28 = vsel %vm30_vm0, %v4116_v10, %v11056_v61  ;;  %10148 = vmatpush3.bf16.msra.mxu1 %v11738_v60 }
0x197c   :  { %v11059_v1 = vpop.permute.xlu0 %11058 }
0x197d   :  { %v11061_v5 = vunpack.i.h.bf16 %v11059_v1  ;;  %v11060_v6 = vunpack.i.l.bf16 %v11059_v1  ;;  %v4185_v26 = vsel %vm143_vm1, %v4181_v23, %v11050_v3  ;;  %v4186_v29 = vsel %vm143_vm1, %v4182_v24, %v11051_v2  ;;  %v11739_v2 = vld [vmem:[%s14407_s2 + $0x4d0] sm:$0xff]   ;;  %v11740_v3 = vld [vmem:[%s14407_s2 + $0x4c8] sm:$0xff]   ;;  %v11741_v24 = vld [vmem:[%s14407_s2 + $0x4c0] sm:$0xff]  }
0x197e   :  { %v11069_v7 = vpop.permute.xlu1 %11068  ;;  %10149 = vmatprep.subr.bf16.mxu1 %v11739_v2 }
0x197f   :  { %v11071_v11 = vunpack.i.h.bf16 %v11069_v7  ;;  %v11070_v15 = vunpack.i.l.bf16 %v11069_v7  ;;  %v4183_v36 = vsel %vm143_vm1, %v4179_v27, %v11060_v6  ;;  %v4184_v16 = vsel %vm143_vm1, %v4180_v28, %v11061_v5  ;;  %10150 = vmatpush3.bf16.msra.mxu1 %v11739_v2 }
0x1980   :  { %v11064_v22 = vpop.permute.xlu0 %11063  ;;  %10151 = vmatprep.subr.bf16.mxu1 %v11740_v3 }
0x1981   :  { %v11066_v12 = vunpack.i.h.bf16 %v11064_v22  ;;  %v11065_v45 = vunpack.i.l.bf16 %v11064_v22  ;;  %v4189_v32 = vsel %vm148_vm2, %v4185_v26, %v11070_v15  ;;  %v4190_v34 = vsel %vm148_vm2, %v4186_v29, %v11071_v11 }
0x1982   :  { %v4192_v37 = vpack.c.bf16 %v4190_v34, %v4189_v32 }
0x1983   :  { %v4187_v59 = vsel %vm148_vm2, %v4183_v36, %v11065_v45  ;;  %v4188_v17 = vsel %vm148_vm2, %v4184_v16, %v11066_v12  ;;  %10152 = vmatpush3.bf16.msra.mxu1 %v11740_v3  ;;  %v11742_v3 = vld [vmem:[%s14407_s2 + $0x538] sm:$0xff]  }
0x1984   :  { %v4191_v30 = vpack.c.bf16 %v4188_v17, %v4187_v59  ;;  %10153 = vmatprep.subr.bf16.mxu1 %v11741_v24  ;;  %10159 = vmatprep.subr.bf16.mxu0 %v11742_v3 }
0x1986   :  { %10135 = vmatprep.mubr.bf16.mxu0 %v4191_v30 }
0x1987   :  { %10136 = vmatmul.mubr.bf16.vlgmr.msra.gmra.mxu0 %v4192_v37  ;;  %10154 = vmatpush3.bf16.msra.mxu1 %v11741_v24  ;;  %v8900_v24 = vld [vmem:[%s14409_s3 + $0x4e] ss:$0 sm:$0xff] }
0x1988   :  { %10160 = vmatpush3.bf16.msra.mxu0 %v11742_v3 }
0x1a47   :  { %v10137_v39 = vpop.f32.mrf.mxu0 }
0x1a48   :  { %v4307_v40 = vadd.f32 %v10137_v39, %v8858_v31 }
0x1a49   :  { %v4298_v42 = vpop.f32.mrf.mxu0 }
0x1a4a   :  { %v4315_v43 = vmax.f32 %v4307_v40, 0.0  ;;  %v4299_v58 = vadd.f32 %v8858_v31, %v4298_v42 }
0x1a4b   :  { %v10138_v62 = vpop.f32.mrf.mxu0 }
0x1a4c   :  { %v4324_v46 = vmul.f32 %v8868_v41, %v4315_v43  ;;  %v4313_v48 = vmax.f32 %v4299_v58, 0.0  ;;  %v4310_v63 = vadd.f32 %v10138_v62, %v8858_v31 }
0x1a4d   :  { %v4301_v50 = vpop.f32.mrf.mxu0 }
0x1a4e   :  { %v4333_v51 = vadd.f32 %v8870_v44, %v4324_v46  ;;  %v4322_v52 = vmul.f32 %v8868_v41, %v4313_v48  ;;  %v4316_v53 = vmax.f32 %v4310_v63, 0.0  ;;  %v4302_v54 = vadd.f32 %v8858_v31, %v4301_v50 }
0x1a50   :  { %4337 = vst.msk [vmem:[#allocation2 + $0x40] sm:$0xff] %vm30_vm0, %v4333_v51  ;;  %v4331_v55 = vadd.f32 %v8870_v44, %v4322_v52  ;;  %v4325_v56 = vmul.f32 %v8868_v41, %v4316_v53  ;;  %v4314_v57 = vmax.f32 %v4302_v54, 0.0 }
0x1a52   :  { %4335 = vst.msk [vmem:[#allocation2 + $0x10] sm:$0xff] %vm30_vm0, %v4331_v55  ;;  %v4334_v61 = vadd.f32 %v8870_v44, %v4325_v56  ;;  %v4323_v0 = vmul.f32 %v8868_v41, %v4314_v57 }
0x1a54   :  { %4338 = vst.msk [vmem:[#allocation2 + $0x48] sm:$0xff] %vm30_vm0, %v4334_v61  ;;  %v4332_v1 = vadd.f32 %v8870_v44, %v4323_v0 }
0x1a56   :  { %4336 = vst.msk [vmem:[#allocation2 + $0x18] sm:$0xff] %vm30_vm0, %v4332_v1 }
0x1a57   :  { %v4345_v4 = vld [vmem:[#allocation2 + $0x3f] sm:$0xff] }
0x1a58   :  { %v4341_v38 = vld [vmem:[#allocation2 + $0x3d] sm:$0xff] }
0x1a59   :  { %v4343_v7 = vld [vmem:[#allocation2 + $0xf] sm:$0xff] }
0x1a5a   :  { %v4339_v42 = vld [vmem:[#allocation2 + $0xd] sm:$0xff] }
0x1a5b   :  { %v4346_v5 = vld [vmem:[#allocation2 + $0x47] sm:$0xff] }
0x1a5c   :  { %v11072_v6 = vpack.i.bf16 %v4346_v5, %v4345_v4  ;;  %v4349_v9 = vld [vmem:[#allocation2 + $0x41] sm:$0xff]  ;;  %v4350_v10 = vld [vmem:[#allocation2 + $0x49] sm:$0xff] }
0x1a5d   :  { %v4344_v8 = vld [vmem:[#allocation2 + $0x17] sm:$0xff]  ;;  %v11077_v27 = vpack.i.bf16 %v4350_v10, %v4349_v9  ;;  %v4353_v28 = vld [vmem:[#allocation2 + $0x43] sm:$0xff]  ;;  %v4354_v22 = vld [vmem:[#allocation2 + $0x4b] sm:$0xff] }
0x1a5e   :  { %11073 = vrot.lane.b32.xlu1 %v11072_v6, %s11880_s12  ;;  %v11082_v11 = vpack.i.bf16 %v4344_v8, %v4343_v7  ;;  %v4347_v15 = vld [vmem:[#allocation2 + $0x11] sm:$0xff]  ;;  %v4348_v23 = vld [vmem:[#allocation2 + $0x19] sm:$0xff]  ;;  %v11097_v45 = vpack.i.bf16 %v4354_v22, %v4353_v28  ;;  %v4342_v41 = vld [vmem:[#allocation2 + $0x45] sm:$0xff] }
0x1a5f   :  { %v11087_v26 = vpack.i.bf16 %v4348_v23, %v4347_v15  ;;  %v4351_v29 = vld [vmem:[#allocation2 + $0x13] sm:$0xff]  ;;  %v4352_v12 = vld [vmem:[#allocation2 + $0x1b] sm:$0xff]  ;;  %v11744_v5 = vld [vmem:[%s14407_s2 + $0x528] sm:$0xff]  }
0x1a60   :  { %11083 = vrot.lane.b32.xlu0 %v11082_v11, %s11880_s12  ;;  %v11092_v32 = vpack.i.bf16 %v4352_v12, %v4351_v29  ;;  %v4340_v43 = vld [vmem:[#allocation2 + $0x15] sm:$0xff]  ;;  %v11745_v6 = vld [vmem:[%s14407_s2 + $0x520] sm:$0xff]   ;;  %v8888_v7 = vld [vmem:[%s14409_s3 + $0x4c] ss:$0 sm:$0xff] }
0x1a61   :  { %v11743_v4 = vld [vmem:[%s14407_s2 + $0x530] sm:$0xff]   ;;  %v8898_v10 = vld [vmem:[%s14409_s3 + $0x4d] ss:$0 sm:$0xff] }
0x1a62   :  { %11078 = vrot.lane.b32.xlu1 %v11077_v27, %s11881_s15  ;;  %10161 = vmatprep.subr.bf16.mxu0 %v11743_v4 }
0x1a63   :  { %10162 = vmatpush3.bf16.msra.mxu0 %v11743_v4 }
0x1a64   :  { %11088 = vrot.lane.b32.xlu0 %v11087_v26, %s11881_s15  ;;  %10163 = vmatprep.subr.bf16.mxu0 %v11744_v5 }
0x1a66   :  { %11098 = vrot.lane.b32.xlu1 %v11097_v45, %s11882_s16 }
0x1a67   :  { %10164 = vmatpush3.bf16.msra.mxu0 %v11744_v5 }
0x1a68   :  { %11093 = vrot.lane.b32.xlu0 %v11092_v32, %s11882_s16  ;;  %10165 = vmatprep.subr.bf16.mxu0 %v11745_v6 }
0x1a6b   :  { %10166 = vmatpush3.bf16.msra.mxu0 %v11745_v6 }
0x1ad0   :  { %v11074_v34 = vpop.permute.xlu1 %11073 }
0x1ad1   :  { %v11076_v59 = vunpack.i.h.bf16 %v11074_v34  ;;  %v11075_v17 = vunpack.i.l.bf16 %v11074_v34 }
0x1ad2   :  { %v11084_v36 = vpop.permute.xlu0 %11083 }
0x1ad3   :  { %v11086_v30 = vunpack.i.h.bf16 %v11084_v36  ;;  %v11085_v37 = vunpack.i.l.bf16 %v11084_v36  ;;  %v4405_v62 = vsel %vm30_vm0, %v4341_v38, %v11075_v17  ;;  %v4406_v46 = vsel %vm30_vm0, %v4342_v41, %v11076_v59 }
0x1ad4   :  { %v11079_v16 = vpop.permute.xlu1 %11078 }
0x1ad5   :  { %v11081_v49 = vunpack.i.h.bf16 %v11079_v16  ;;  %v11080_v25 = vunpack.i.l.bf16 %v11079_v16  ;;  %v4403_v48 = vsel %vm30_vm0, %v4339_v42, %v11085_v37  ;;  %v4404_v63 = vsel %vm30_vm0, %v4340_v43, %v11086_v30 }
0x1ad6   :  { %v11089_v18 = vpop.permute.xlu0 %11088 }
0x1ad7   :  { %v11091_v31 = vunpack.i.h.bf16 %v11089_v18  ;;  %v11090_v39 = vunpack.i.l.bf16 %v11089_v18  ;;  %v4409_v51 = vsel %vm143_vm1, %v4405_v62, %v11080_v25  ;;  %v4410_v52 = vsel %vm143_vm1, %v4406_v46, %v11081_v49 }
0x1ad8   :  { %v11099_v40 = vpop.permute.xlu1 %11098 }
0x1ad9   :  { %v11101_v58 = vunpack.i.h.bf16 %v11099_v40  ;;  %v11100_v44 = vunpack.i.l.bf16 %v11099_v40  ;;  %v4407_v57 = vsel %vm143_vm1, %v4403_v48, %v11090_v39  ;;  %v4408_v60 = vsel %vm143_vm1, %v4404_v63, %v11091_v31  ;;  %v11747_v40 = vld [vmem:[%s14407_s2 + $0x510] sm:$0xff]  }
0x1ada   :  { %v11094_v50 = vpop.permute.xlu0 %11093 }
0x1adb   :  { %v11096_v53 = vunpack.i.h.bf16 %v11094_v50  ;;  %v11095_v54 = vunpack.i.l.bf16 %v11094_v50  ;;  %v4413_v55 = vsel %vm148_vm2, %v4409_v51, %v11100_v44  ;;  %v4414_v56 = vsel %vm148_vm2, %v4410_v52, %v11101_v58  ;;  %v11749_v44 = vld [vmem:[%s14407_s2 + $0x500] sm:$0xff]  }
0x1adc   :  { %v4416_v2 = vpack.c.bf16 %v4414_v56, %v4413_v55 }
0x1add   :  { %v4411_v61 = vsel %vm148_vm2, %v4407_v57, %v11095_v54  ;;  %v4412_v0 = vsel %vm148_vm2, %v4408_v60, %v11096_v53 }
0x1ade   :  { %v4415_v1 = vpack.c.bf16 %v4412_v0, %v4411_v61 }
0x1ae0   :  { %10155 = vmatprep.mubr.bf16.mxu1 %v4415_v1 }
0x1ae1   :  { %10156 = vmatmul.mubr.bf16.vlgmr.msra.gmra.mxu1 %v4416_v2 }
0x1ba1   :  { %v10157_v8 = vpop.f32.mrf.mxu1 }
0x1ba2   :  { %v4531_v9 = vadd.f32 %v10157_v8, %v8888_v7 }
0x1ba3   :  { %v4522_v11 = vpop.f32.mrf.mxu1 }
0x1ba4   :  { %v4539_v15 = vmax.f32 %v4531_v9, 0.0  ;;  %v4523_v23 = vadd.f32 %v8888_v7, %v4522_v11 }
0x1ba5   :  { %v10158_v27 = vpop.f32.mrf.mxu1 }
0x1ba6   :  { %v4548_v28 = vmul.f32 %v8898_v10, %v4539_v15  ;;  %v4537_v22 = vmax.f32 %v4523_v23, 0.0  ;;  %v4534_v26 = vadd.f32 %v10158_v27, %v8888_v7 }
0x1ba7   :  { %v4525_v29 = vpop.f32.mrf.mxu1 }
0x1ba8   :  { %v4557_v12 = vadd.f32 %v8900_v24, %v4548_v28  ;;  %v4546_v45 = vmul.f32 %v8898_v10, %v4537_v22  ;;  %v4540_v32 = vmax.f32 %v4534_v26, 0.0  ;;  %v4526_v34 = vadd.f32 %v8888_v7, %v4525_v29 }
0x1baa   :  { %v4561_v36 = vadd.f32 %v4557_v12, %v13180_v35  ;;  %v4555_v16 = vadd.f32 %v8900_v24, %v4546_v45  ;;  %v4549_v59 = vmul.f32 %v8898_v10, %v4540_v32  ;;  %v4538_v17 = vmax.f32 %v4526_v34, 0.0  ;;  %v11746_v35 = vld [vmem:[%s14407_s2 + $0x518] sm:$0xff]  }
0x1bab   :  { %10167 = vmatprep.subr.bf16.mxu0 %v11746_v35 }
0x1bac   :  { %v13310_v30 = vmul.f32 %v4561_v36, %v11969_v13  ;;  %v4559_v37 = vadd.f32 %v4555_v16, %v13186_v21  ;;  %v4558_v18 = vadd.f32 %v8900_v24, %v4549_v59  ;;  %v4547_v49 = vmul.f32 %v8898_v10, %v4538_v17  ;;  %10168 = vmatpush3.bf16.msra.mxu0 %v11746_v35  ;;  %v11751_v35 = vld [vmem:[%s14407_s2 + $0x570] sm:$0xff]  }
0x1bad   :  { %10169 = vmatprep.subr.bf16.mxu0 %v11747_v40 }
0x1bae   :  { %4569 = vst.msk [vmem:[#allocation2 + $0x40] sm:$0xff] %vm30_vm0, %v13310_v30  ;;  %v13316_v25 = vmul.f32 %v4559_v37, %v11971_v14  ;;  %v4562_v38 = vadd.f32 %v4558_v18, %v13195_v33  ;;  %v4556_v31 = vadd.f32 %v8900_v24, %v4547_v49 }
0x1bb0   :  { %4567 = vst.msk [vmem:[#allocation2 + $0x10] sm:$0xff] %vm30_vm0, %v13316_v25  ;;  %v13325_v21 = vmul.f32 %v4562_v38, %v11989_v19  ;;  %v4560_v39 = vadd.f32 %v4556_v31, %v13201_v47  ;;  %10170 = vmatpush3.bf16.msra.mxu0 %v11747_v40  ;;  %v11748_v47 = vld [vmem:[%s14407_s2 + $0x508] sm:$0xff]   ;;  %v11750_v31 = vld [vmem:[%s14407_s2 + $0x578] sm:$0xff]   ;;  %v11753_v40 = vld [vmem:[%s14407_s2 + $0x560] sm:$0xff]  }
0x1bb1   :  { %10171 = vmatprep.subr.bf16.mxu0 %v11748_v47  ;;  %10179 = vmatprep.subr.bf16.mxu1 %v11750_v31 }
0x1bb2   :  { %4570 = vst.msk [vmem:[#allocation2 + $0x48] sm:$0xff] %vm30_vm0, %v13325_v21  ;;  %v13331_v33 = vmul.f32 %v4560_v39, %v11991_v20  ;;  %10180 = vmatpush3.bf16.msra.mxu1 %v11750_v31  ;;  %v11752_v39 = vld [vmem:[%s14407_s2 + $0x568] sm:$0xff]  }
0x1bb3   :  { %10181 = vmatprep.subr.bf16.mxu1 %v11751_v35 }
0x1bb4   :  { %4568 = vst.msk [vmem:[#allocation2 + $0x18] sm:$0xff] %vm30_vm0, %v13331_v33  ;;  %10172 = vmatpush3.bf16.msra.mxu0 %v11748_v47  ;;  %v8918_v47 = vld [vmem:[%s14409_s3 + $0x50] ss:$0 sm:$0xff] }
0x1bb5   :  { %v4577_v41 = vld [vmem:[#allocation2 + $0x3e] sm:$0xff]  ;;  %10173 = vmatprep.subr.bf16.mxu0 %v11749_v44 }
0x1bb6   :  { %v4573_v11 = vld [vmem:[#allocation2 + $0x3a] sm:$0xff]  ;;  %10182 = vmatpush3.bf16.msra.mxu1 %v11751_v35 }
0x1bb7   :  { %v4575_v58 = vld [vmem:[#allocation2 + $0xe] sm:$0xff]  ;;  %10183 = vmatprep.subr.bf16.mxu1 %v11752_v39 }
0x1bb8   :  { %10174 = vmatpush3.bf16.msra.mxu0 %v11749_v44  ;;  %v4571_v15 = vld [vmem:[#allocation2 + $0xa] sm:$0xff] }
0x1bb9   :  { %v4578_v42 = vld [vmem:[#allocation2 + $0x46] sm:$0xff]  ;;  %v4582_v53 = vld [vmem:[#allocation2 + $0x4e] sm:$0xff] }
0x1bba   :  { %v11102_v43 = vpack.i.bf16 %v4578_v42, %v4577_v41  ;;  %v4574_v46 = vld [vmem:[#allocation2 + $0x42] sm:$0xff]  ;;  %v4580_v48 = vld [vmem:[#allocation2 + $0x4a] sm:$0xff]  ;;  %v11127_v56 = vpack.i.bf16 %v4582_v53, %v4578_v42  ;;  %10184 = vmatpush3.bf16.msra.mxu1 %v11752_v39 }
0x1bbb   :  { %v4576_v62 = vld [vmem:[#allocation2 + $0x16] sm:$0xff]  ;;  %v11107_v52 = vpack.i.bf16 %v4580_v48, %v4574_v46  ;;  %v4581_v55 = vld [vmem:[#allocation2 + $0x1e] sm:$0xff]  ;;  %10185 = vmatprep.subr.bf16.mxu1 %v11753_v40 }
0x1bbc   :  { %11103 = vrot.lane.b32.xlu1 %v11102_v43, %s11880_s12  ;;  %v11112_v63 = vpack.i.bf16 %v4576_v62, %v4575_v58  ;;  %v4572_v50 = vld [vmem:[#allocation2 + $0x12] sm:$0xff]  ;;  %v4579_v51 = vld [vmem:[#allocation2 + $0x1a] sm:$0xff]  ;;  %v11122_v57 = vpack.i.bf16 %v4581_v55, %v4576_v62  ;;  %v8928_v43 = vld [vmem:[%s14409_s3 + $0x51] ss:$0 sm:$0xff] }
0x1bbd   :  { %v11117_v54 = vpack.i.bf16 %v4579_v51, %v4572_v50 }
0x1bbe   :  { %11113 = vrot.lane.b32.xlu0 %v11112_v63, %s11880_s12  ;;  %10186 = vmatpush3.bf16.msra.mxu1 %v11753_v40 }
0x1bc0   :  { %11108 = vrot.lane.b32.xlu1 %v11107_v52, %s11881_s15 }
0x1bc2   :  { %11118 = vrot.lane.b32.xlu0 %v11117_v54, %s11881_s15 }
0x1bc4   :  { %11128 = vrot.lane.b32.xlu1 %v11127_v56, %s11882_s16 }
0x1bc6   :  { %11123 = vrot.lane.b32.xlu0 %v11122_v57, %s11882_s16 }
0x1c2e   :  { %v11104_v60 = vpop.permute.xlu1 %11103 }
0x1c2f   :  { %v11106_v1 = vunpack.i.h.bf16 %v11104_v60  ;;  %v11105_v2 = vunpack.i.l.bf16 %v11104_v60 }
0x1c30   :  { %v11114_v61 = vpop.permute.xlu0 %11113 }
0x1c31   :  { %v11116_v3 = vunpack.i.h.bf16 %v11114_v61  ;;  %v11115_v4 = vunpack.i.l.bf16 %v11114_v61  ;;  %v4631_v27 = vsel %vm30_vm0, %v4573_v11, %v11105_v2  ;;  %v4632_v28 = vsel %vm30_vm0, %v4574_v46, %v11106_v1  ;;  %v8930_v46 = vld [vmem:[%s14409_s3 + $0x52] ss:$0 sm:$0xff] }
0x1c32   :  { %v11109_v0 = vpop.permute.xlu1 %11108 }
0x1c33   :  { %v11111_v6 = vunpack.i.h.bf16 %v11109_v0  ;;  %v11110_v7 = vunpack.i.l.bf16 %v11109_v0  ;;  %v4629_v22 = vsel %vm30_vm0, %v4571_v15, %v11115_v4  ;;  %v4630_v26 = vsel %vm30_vm0, %v4572_v50, %v11116_v3  ;;  %v11754_v0 = vld [vmem:[%s14407_s2 + $0x558] sm:$0xff]   ;;  %v11755_v4 = vld [vmem:[%s14407_s2 + $0x550] sm:$0xff]  }
0x1c34   :  { %v11119_v5 = vpop.permute.xlu0 %11118  ;;  %10187 = vmatprep.subr.bf16.mxu1 %v11754_v0 }
0x1c35   :  { %v11121_v8 = vunpack.i.h.bf16 %v11119_v5  ;;  %v11120_v9 = vunpack.i.l.bf16 %v11119_v5  ;;  %v4635_v12 = vsel %vm143_vm1, %v4631_v27, %v11110_v7  ;;  %v4636_v45 = vsel %vm143_vm1, %v4632_v28, %v11111_v6  ;;  %10188 = vmatpush3.bf16.msra.mxu1 %v11754_v0  ;;  %v11756_v5 = vld [vmem:[%s14407_s2 + $0x548] sm:$0xff]  }
0x1c36   :  { %v11129_v10 = vpop.permute.xlu1 %11128  ;;  %10189 = vmatprep.subr.bf16.mxu1 %v11755_v4 }
0x1c37   :  { %v11131_v23 = vunpack.i.h.bf16 %v11129_v10  ;;  %v11130_v24 = vunpack.i.l.bf16 %v11129_v10  ;;  %v4633_v36 = vsel %vm143_vm1, %v4629_v22, %v11120_v9  ;;  %v4634_v16 = vsel %vm143_vm1, %v4630_v26, %v11121_v8  ;;  %v11757_v10 = vld [vmem:[%s14407_s2 + $0x540] sm:$0xff]  }
0x1c38   :  { %v11124_v29 = vpop.permute.xlu0 %11123 }
0x1c39   :  { %v11126_v32 = vunpack.i.h.bf16 %v11124_v29  ;;  %v11125_v34 = vunpack.i.l.bf16 %v11124_v29  ;;  %v4639_v59 = vsel %vm148_vm2, %v4635_v12, %v11130_v24  ;;  %v4640_v17 = vsel %vm148_vm2, %v4636_v45, %v11131_v23  ;;  %10190 = vmatpush3.bf16.msra.mxu1 %v11755_v4  ;;  %v11761_v4 = vld [vmem:[%s14407_s2 + $0x5a0] sm:$0xff]  }
0x1c3a   :  { %v4642_v38 = vpack.c.bf16 %v4640_v17, %v4639_v59  ;;  %10191 = vmatprep.subr.bf16.mxu1 %v11756_v5 }
0x1c3b   :  { %v4637_v37 = vsel %vm148_vm2, %v4633_v36, %v11125_v34  ;;  %v4638_v18 = vsel %vm148_vm2, %v4634_v16, %v11126_v32 }
0x1c3c   :  { %v4641_v49 = vpack.c.bf16 %v4638_v18, %v4637_v37 }
0x1c3d   :  { %10192 = vmatpush3.bf16.msra.mxu1 %v11756_v5  ;;  %v8948_v5 = vld [vmem:[%s14409_s3 + $0x54] ss:$0 sm:$0xff] }
0x1c3e   :  { %10175 = vmatprep.mubr.bf16.mxu0 %v4641_v49  ;;  %10193 = vmatprep.subr.bf16.mxu1 %v11757_v10 }
0x1c3f   :  { %10176 = vmatmul.mubr.bf16.vlgmr.msra.gmra.mxu0 %v4642_v38 }
0x1c41   :  { %10194 = vmatpush3.bf16.msra.mxu1 %v11757_v10 }
0x1cff   :  { %v10177_v41 = vpop.f32.mrf.mxu0 }
0x1d00   :  { %v4757_v42 = vadd.f32 %v10177_v41, %v8918_v47 }
0x1d01   :  { %v4748_v58 = vpop.f32.mrf.mxu0 }
0x1d02   :  { %v4765_v44 = vmax.f32 %v4757_v42, 0.0  ;;  %v4749_v62 = vadd.f32 %v8918_v47, %v4748_v58 }
0x1d03   :  { %v10178_v48 = vpop.f32.mrf.mxu0 }
0x1d04   :  { %v4774_v63 = vmul.f32 %v8928_v43, %v4765_v44  ;;  %v4763_v50 = vmax.f32 %v4749_v62, 0.0  ;;  %v4760_v51 = vadd.f32 %v10178_v48, %v8918_v47 }
0x1d05   :  { %v4751_v52 = vpop.f32.mrf.mxu0 }
0x1d06   :  { %v4783_v53 = vadd.f32 %v8930_v46, %v4774_v63  ;;  %v4772_v54 = vmul.f32 %v8928_v43, %v4763_v50  ;;  %v4766_v55 = vmax.f32 %v4760_v51, 0.0  ;;  %v4752_v56 = vadd.f32 %v8918_v47, %v4751_v52 }
0x1d08   :  { %4787 = vst.msk [vmem:[#allocation2 + $0x40] sm:$0xff] %vm30_vm0, %v4783_v53  ;;  %v4781_v57 = vadd.f32 %v8930_v46, %v4772_v54  ;;  %v4775_v60 = vmul.f32 %v8928_v43, %v4766_v55  ;;  %v4764_v61 = vmax.f32 %v4752_v56, 0.0 }
0x1d0a   :  { %4785 = vst.msk [vmem:[#allocation2 + $0x10] sm:$0xff] %vm30_vm0, %v4781_v57  ;;  %v4784_v1 = vadd.f32 %v8930_v46, %v4775_v60  ;;  %v4773_v2 = vmul.f32 %v8928_v43, %v4764_v61 }
0x1d0c   :  { %4788 = vst.msk [vmem:[#allocation2 + $0x48] sm:$0xff] %vm30_vm0, %v4784_v1  ;;  %v4782_v3 = vadd.f32 %v8930_v46, %v4773_v2  ;;  %v11758_v1 = vld [vmem:[%s14407_s2 + $0x5b8] sm:$0xff]   ;;  %v11759_v2 = vld [vmem:[%s14407_s2 + $0x5b0] sm:$0xff]  }
0x1d0d   :  { %10199 = vmatprep.subr.bf16.mxu0 %v11758_v1 }
0x1d0e   :  { %4786 = vst.msk [vmem:[#allocation2 + $0x18] sm:$0xff] %vm30_vm0, %v4782_v3  ;;  %10200 = vmatpush3.bf16.msra.mxu0 %v11758_v1  ;;  %v11760_v3 = vld [vmem:[%s14407_s2 + $0x5a8] sm:$0xff]  }
0x1d0f   :  { %v4795_v6 = vld [vmem:[#allocation2 + $0x3e] sm:$0xff]  ;;  %10201 = vmatprep.subr.bf16.mxu0 %v11759_v2 }
0x1d10   :  { %v4791_v47 = vld [vmem:[#allocation2 + $0x3a] sm:$0xff] }
0x1d11   :  { %v4793_v9 = vld [vmem:[#allocation2 + $0xe] sm:$0xff] }
0x1d12   :  { %v4789_v41 = vld [vmem:[#allocation2 + $0xa] sm:$0xff]  ;;  %10202 = vmatpush3.bf16.msra.mxu0 %v11759_v2  ;;  %v13486_v2 = vld [vmem:[#allocation2 + $0x34] sm:$0xff] }
0x1d13   :  { %v4796_v7 = vld [vmem:[#allocation2 + $0x46] sm:$0xff]  ;;  %v4800_v26 = vld [vmem:[#allocation2 + $0x4e] sm:$0xff]  ;;  %10203 = vmatprep.subr.bf16.mxu0 %v11760_v3 }
0x1d14   :  { %v11132_v8 = vpack.i.bf16 %v4796_v7, %v4795_v6  ;;  %v4792_v15 = vld [vmem:[#allocation2 + $0x42] sm:$0xff]  ;;  %v4798_v23 = vld [vmem:[#allocation2 + $0x4a] sm:$0xff]  ;;  %v11157_v45 = vpack.i.bf16 %v4800_v26, %v4796_v7 }
0x1d15   :  { %v4794_v11 = vld [vmem:[#allocation2 + $0x16] sm:$0xff]  ;;  %v11137_v22 = vpack.i.bf16 %v4798_v23, %v4792_v15  ;;  %v4799_v12 = vld [vmem:[#allocation2 + $0x1e] sm:$0xff] }
0x1d16   :  { %11133 = vrot.lane.b32.xlu1 %v11132_v8, %s11880_s12  ;;  %v11142_v24 = vpack.i.bf16 %v4794_v11, %v4793_v9  ;;  %v4790_v27 = vld [vmem:[#allocation2 + $0x12] sm:$0xff]  ;;  %v4797_v28 = vld [vmem:[#allocation2 + $0x1a] sm:$0xff]  ;;  %v11152_v32 = vpack.i.bf16 %v4799_v12, %v4794_v11  ;;  %10204 = vmatpush3.bf16.msra.mxu0 %v11760_v3  ;;  %v13488_v3 = vld [vmem:[#allocation2 + $0x4] sm:$0xff] }
0x1d17   :  { %v11147_v29 = vpack.i.bf16 %v4797_v28, %v4790_v27  ;;  %10205 = vmatprep.subr.bf16.mxu0 %v11761_v4  ;;  %v8958_v8 = vld [vmem:[%s14409_s3 + $0x55] ss:$0 sm:$0xff] }
0x1d18   :  { %11143 = vrot.lane.b32.xlu0 %v11142_v24, %s11880_s12 }
0x1d1a   :  { %11138 = vrot.lane.b32.xlu1 %v11137_v22, %s11881_s15  ;;  %10206 = vmatpush3.bf16.msra.mxu0 %v11761_v4 }
0x1d1c   :  { %11148 = vrot.lane.b32.xlu0 %v11147_v29, %s11881_s15 }
0x1d1e   :  { %11158 = vrot.lane.b32.xlu1 %v11157_v45, %s11882_s16 }
0x1d20   :  { %11153 = vrot.lane.b32.xlu0 %v11152_v32, %s11882_s16 }
0x1d88   :  { %v11134_v34 = vpop.permute.xlu1 %11133 }
0x1d89   :  { %v11136_v59 = vunpack.i.h.bf16 %v11134_v34  ;;  %v11135_v17 = vunpack.i.l.bf16 %v11134_v34 }
0x1d8a   :  { %v11144_v36 = vpop.permute.xlu0 %11143 }
0x1d8b   :  { %v11146_v37 = vunpack.i.h.bf16 %v11144_v36  ;;  %v11145_v18 = vunpack.i.l.bf16 %v11144_v36  ;;  %v4849_v58 = vsel %vm30_vm0, %v4791_v47, %v11135_v17  ;;  %v4850_v44 = vsel %vm30_vm0, %v4792_v15, %v11136_v59  ;;  %v8960_v15 = vld [vmem:[%s14409_s3 + $0x56] ss:$0 sm:$0xff] }
0x1d8c   :  { %v11139_v16 = vpop.permute.xlu1 %11138 }
0x1d8d   :  { %v11141_v38 = vunpack.i.h.bf16 %v11139_v16  ;;  %v11140_v31 = vunpack.i.l.bf16 %v11139_v16  ;;  %v4847_v62 = vsel %vm30_vm0, %v4789_v41, %v11145_v18  ;;  %v4848_v46 = vsel %vm30_vm0, %v4790_v27, %v11146_v37 }
0x1d8e   :  { %v11149_v49 = vpop.permute.xlu0 %11148 }
0x1d8f   :  { %v11151_v35 = vunpack.i.h.bf16 %v11149_v49  ;;  %v11150_v39 = vunpack.i.l.bf16 %v11149_v49  ;;  %v4853_v63 = vsel %vm143_vm1, %v4849_v58, %v11140_v31  ;;  %v4854_v50 = vsel %vm143_vm1, %v4850_v44, %v11141_v38 }
0x1d90   :  { %v11159_v40 = vpop.permute.xlu1 %11158 }
0x1d91   :  { %v11161_v42 = vunpack.i.h.bf16 %v11159_v40  ;;  %v11160_v43 = vunpack.i.l.bf16 %v11159_v40  ;;  %v4851_v53 = vsel %vm143_vm1, %v4847_v62, %v11150_v39  ;;  %v4852_v54 = vsel %vm143_vm1, %v4848_v46, %v11151_v35  ;;  %v11763_v39 = vld [vmem:[%s14407_s2 + $0x590] sm:$0xff]  }
0x1d92   :  { %v11154_v48 = vpop.permute.xlu0 %11153 }
0x1d93   :  { %v11156_v51 = vunpack.i.h.bf16 %v11154_v48  ;;  %v11155_v52 = vunpack.i.l.bf16 %v11154_v48  ;;  %v4857_v55 = vsel %vm148_vm2, %v4853_v63, %v11160_v43  ;;  %v4858_v56 = vsel %vm148_vm2, %v4854_v50, %v11161_v42  ;;  %v11765_v42 = vld [vmem:[%s14407_s2 + $0x580] sm:$0xff]   ;;  %v13476_v63 = vld [vmem:[#allocation2 + $0x54] sm:$0xff] }
0x1d94   :  { %v4860_v0 = vpack.c.bf16 %v4858_v56, %v4857_v55 }
0x1d95   :  { %v4855_v57 = vsel %vm148_vm2, %v4851_v53, %v11155_v52  ;;  %v4856_v60 = vsel %vm148_vm2, %v4852_v54, %v11156_v51  ;;  %v13479_v51 = vld [vmem:[#allocation2 + $0x24] sm:$0xff] }
0x1d96   :  { %v4859_v61 = vpack.c.bf16 %v4856_v60, %v4855_v57 }
0x1d98   :  { %10195 = vmatprep.mubr.bf16.mxu1 %v4859_v61 }
0x1d99   :  { %10196 = vmatmul.mubr.bf16.vlgmr.msra.gmra.mxu1 %v4860_v0 }
0x1e59   :  { %v10197_v6 = vpop.f32.mrf.mxu1 }
0x1e5a   :  { %v4975_v7 = vadd.f32 %v10197_v6, %v8948_v5 }
0x1e5b   :  { %v4966_v9 = vpop.f32.mrf.mxu1 }
0x1e5c   :  { %v4983_v10 = vmax.f32 %v4975_v7, 0.0  ;;  %v4967_v11 = vadd.f32 %v8948_v5, %v4966_v9 }
0x1e5d   :  { %v10198_v23 = vpop.f32.mrf.mxu1 }
0x1e5e   :  { %v4992_v24 = vmul.f32 %v8958_v8, %v4983_v10  ;;  %v4981_v27 = vmax.f32 %v4967_v11, 0.0  ;;  %v4978_v28 = vadd.f32 %v10198_v23, %v8948_v5 }
0x1e5f   :  { %v4969_v22 = vpop.f32.mrf.mxu1 }
0x1e60   :  { %v5001_v26 = vadd.f32 %v8960_v15, %v4992_v24  ;;  %v4990_v29 = vmul.f32 %v8958_v8, %v4981_v27  ;;  %v4984_v12 = vmax.f32 %v4978_v28, 0.0  ;;  %v4970_v45 = vadd.f32 %v8948_v5, %v4969_v22 }
0x1e62   :  { %v5005_v32 = vadd.f32 %v5001_v26, %v13310_v30  ;;  %v4999_v34 = vadd.f32 %v8960_v15, %v4990_v29  ;;  %v4993_v36 = vmul.f32 %v8958_v8, %v4984_v12  ;;  %v4982_v16 = vmax.f32 %v4970_v45, 0.0  ;;  %v11762_v30 = vld [vmem:[%s14407_s2 + $0x598] sm:$0xff]  }
0x1e63   :  { %10207 = vmatprep.subr.bf16.mxu0 %v11762_v30 }
0x1e64   :  { %v13440_v59 = vmul.f32 %v5005_v32, %v11969_v13  ;;  %v5003_v17 = vadd.f32 %v4999_v34, %v13316_v25  ;;  %v5002_v37 = vadd.f32 %v8960_v15, %v4993_v36  ;;  %v4991_v18 = vmul.f32 %v8958_v8, %v4982_v16  ;;  %10208 = vmatpush3.bf16.msra.mxu0 %v11762_v30  ;;  %v11769_v30 = vld [vmem:[%s14407_s2 + $0x5e0] sm:$0xff]  }
0x1e65   :  { %10209 = vmatprep.subr.bf16.mxu0 %v11763_v39 }
0x1e66   :  { %5013 = vst.msk [vmem:[#allocation2 + $0x40] sm:$0xff] %vm30_vm0, %v13440_v59  ;;  %v13446_v49 = vmul.f32 %v5003_v17, %v11971_v14  ;;  %v5006_v38 = vadd.f32 %v5002_v37, %v13325_v21  ;;  %v5000_v31 = vadd.f32 %v8960_v15, %v4991_v18  ;;  %v11766_v18 = vld [vmem:[%s14407_s2 + $0x5f8] sm:$0xff]  }
0x1e67   :  { %10219 = vmatprep.subr.bf16.mxu1 %v11766_v18 }
0x1e68   :  { %5011 = vst.msk [vmem:[#allocation2 + $0x10] sm:$0xff] %vm30_vm0, %v13446_v49  ;;  %v13455_v25 = vmul.f32 %v5006_v38, %v11989_v19  ;;  %v5004_v35 = vadd.f32 %v5000_v31, %v13331_v33  ;;  %10210 = vmatpush3.bf16.msra.mxu0 %v11763_v39  ;;  %v11764_v33 = vld [vmem:[%s14407_s2 + $0x588] sm:$0xff]   ;;  %v11767_v38 = vld [vmem:[%s14407_s2 + $0x5f0] sm:$0xff]   ;;  %10220 = vmatpush3.bf16.msra.mxu1 %v11766_v18 }
0x1e69   :  { %10211 = vmatprep.subr.bf16.mxu0 %v11764_v33  ;;  %10221 = vmatprep.subr.bf16.mxu1 %v11767_v38  ;;  %v11768_v31 = vld [vmem:[%s14407_s2 + $0x5e8] sm:$0xff]  }
0x1e6a   :  { %5014 = vst.msk [vmem:[#allocation2 + $0x48] sm:$0xff] %vm30_vm0, %v13455_v25  ;;  %v13461_v21 = vmul.f32 %v5004_v35, %v11991_v20  ;;  %v8978_v35 = vld [vmem:[%s14409_s3 + $0x58] ss:$0 sm:$0xff] }
0x1e6c   :  { %5012 = vst.msk [vmem:[#allocation2 + $0x18] sm:$0xff] %vm30_vm0, %v13461_v21  ;;  %10212 = vmatpush3.bf16.msra.mxu0 %v11764_v33  ;;  %10222 = vmatpush3.bf16.msra.mxu1 %v11767_v38 }
0x1e6d   :  { %v5018_v40 = vld [vmem:[#allocation2 + $0x3c] sm:$0xff]  ;;  %10213 = vmatprep.subr.bf16.mxu0 %v11765_v42  ;;  %10223 = vmatprep.subr.bf16.mxu1 %v11768_v31 }
0x1e6f   :  { %v5016_v43 = vld [vmem:[#allocation2 + $0xc] sm:$0xff] }
0x1e70   :  { %10214 = vmatpush3.bf16.msra.mxu0 %v11765_v42  ;;  %10224 = vmatpush3.bf16.msra.mxu1 %v11768_v31 }
0x1e71   :  { %v5020_v47 = vld [vmem:[#allocation2 + $0x44] sm:$0xff]  ;;  %v5022_v44 = vld [vmem:[#allocation2 + $0x4c] sm:$0xff]  ;;  %10225 = vmatprep.subr.bf16.mxu1 %v11769_v30 }
0x1e72   :  { %v11162_v41 = vpack.i.bf16 %v5020_v47, %v5018_v40  ;;  %v11167_v48 = vpack.i.bf16 %v5022_v44, %v5020_v47  ;;  %v11187_v52 = vpack.i.bf16 %v13476_v63, %v5022_v44 }
0x1e73   :  { %v5019_v58 = vld [vmem:[#allocation2 + $0x14] sm:$0xff]  ;;  %v5021_v46 = vld [vmem:[#allocation2 + $0x1c] sm:$0xff] }
0x1e74   :  { %11163 = vrot.lane.b32.xlu1 %v11162_v41, %s11880_s12  ;;  %v11172_v62 = vpack.i.bf16 %v5019_v58, %v5016_v43  ;;  %v11177_v50 = vpack.i.bf16 %v5021_v46, %v5019_v58  ;;  %v11182_v53 = vpack.i.bf16 %v13479_v51, %v5021_v46  ;;  %10226 = vmatpush3.bf16.msra.mxu1 %v11769_v30 }
0x1e76   :  { %11173 = vrot.lane.b32.xlu0 %v11172_v62, %s11880_s12 }
0x1e78   :  { %11168 = vrot.lane.b32.xlu1 %v11167_v48, %s11881_s15 }
0x1e7a   :  { %11178 = vrot.lane.b32.xlu0 %v11177_v50, %s11881_s15 }
0x1e7c   :  { %11188 = vrot.lane.b32.xlu1 %v11187_v52, %s11882_s16 }
0x1e7e   :  { %11183 = vrot.lane.b32.xlu0 %v11182_v53, %s11882_s16 }
0x1ee6   :  { %v11164_v54 = vpop.permute.xlu1 %11163 }
0x1ee7   :  { %v11166_v57 = vunpack.i.h.bf16 %v11164_v54  ;;  %v11165_v60 = vunpack.i.l.bf16 %v11164_v54 }
0x1ee8   :  { %v11174_v55 = vpop.permute.xlu0 %11173 }
0x1ee9   :  { %v11176_v61 = vunpack.i.h.bf16 %v11174_v55  ;;  %v11175_v0 = vunpack.i.l.bf16 %v11174_v55  ;;  %v5072_v11 = vsel %vm30_vm0, %v5018_v40, %v11166_v57  ;;  %v5071_v15 = vsel %vm30_vm0, %v13486_v2, %v11165_v60  ;;  %v8988_v40 = vld [vmem:[%s14409_s3 + $0x59] ss:$0 sm:$0xff] }
0x1eea   :  { %v11169_v56 = vpop.permute.xlu1 %11168  ;;  %v11770_v60 = vld [vmem:[%s14407_s2 + $0x5d8] sm:$0xff]  }
0x1eeb   :  { %v11171_v4 = vunpack.i.h.bf16 %v11169_v56  ;;  %v11170_v5 = vunpack.i.l.bf16 %v11169_v56  ;;  %v5070_v23 = vsel %vm30_vm0, %v5016_v43, %v11176_v61  ;;  %v5069_v24 = vsel %vm30_vm0, %v13488_v3, %v11175_v0  ;;  %v8990_v43 = vld [vmem:[%s14409_s3 + $0x5a] ss:$0 sm:$0xff]  ;;  %10227 = vmatprep.subr.bf16.mxu1 %v11770_v60 }
0x1eec   :  { %v11179_v1 = vpop.permute.xlu0 %11178  ;;  %10228 = vmatpush3.bf16.msra.mxu1 %v11770_v60 }
0x1eed   :  { %v11181_v6 = vunpack.i.h.bf16 %v11179_v1  ;;  %v11180_v7 = vunpack.i.l.bf16 %v11179_v1  ;;  %v5075_v28 = vsel %vm143_vm1, %v5071_v15, %v11170_v5  ;;  %v5076_v22 = vsel %vm143_vm1, %v5072_v11, %v11171_v4  ;;  %v11771_v4 = vld [vmem:[%s14407_s2 + $0x5d0] sm:$0xff]   ;;  %v11772_v5 = vld [vmem:[%s14407_s2 + $0x5c8] sm:$0xff]  }
0x1eee   :  { %v11189_v8 = vpop.permute.xlu1 %11188  ;;  %10229 = vmatprep.subr.bf16.mxu1 %v11771_v4 }
0x1eef   :  { %v11191_v9 = vunpack.i.h.bf16 %v11189_v8  ;;  %v11190_v10 = vunpack.i.l.bf16 %v11189_v8  ;;  %v5073_v12 = vsel %vm143_vm1, %v5069_v24, %v11180_v7  ;;  %v5074_v45 = vsel %vm143_vm1, %v5070_v23, %v11181_v6 }
0x1ef0   :  { %v11184_v27 = vpop.permute.xlu0 %11183  ;;  %10230 = vmatpush3.bf16.msra.mxu1 %v11771_v4 }
0x1ef1   :  { %v11186_v26 = vunpack.i.h.bf16 %v11184_v27  ;;  %v11185_v29 = vunpack.i.l.bf16 %v11184_v27  ;;  %v5079_v32 = vsel %vm148_vm2, %v5075_v28, %v11190_v10  ;;  %v5080_v34 = vsel %vm148_vm2, %v5076_v22, %v11191_v9  ;;  %10231 = vmatprep.subr.bf16.mxu1 %v11772_v5  ;;  %v11773_v9 = vld [vmem:[%s14407_s2 + $0x5c0] sm:$0xff]  }
0x1ef2   :  { %v5082_v37 = vpack.c.bf16 %v5080_v34, %v5079_v32 }
0x1ef3   :  { %v5077_v36 = vsel %vm148_vm2, %v5073_v12, %v11185_v29  ;;  %v5078_v16 = vsel %vm148_vm2, %v5074_v45, %v11186_v26 }
0x1ef4   :  { %v5081_v17 = vpack.c.bf16 %v5078_v16, %v5077_v36  ;;  %10232 = vmatpush3.bf16.msra.mxu1 %v11772_v5 }
0x1ef5   :  { %10233 = vmatprep.subr.bf16.mxu1 %v11773_v9 }
0x1ef6   :  { %10215 = vmatprep.mubr.bf16.mxu0 %v5081_v17 }
0x1ef7   :  { %10216 = vmatmul.mubr.bf16.vlgmr.msra.gmra.mxu0 %v5082_v37 }
0x1ef8   :  { %10234 = vmatpush3.bf16.msra.mxu1 %v11773_v9 }
0x1fb7   :  { %v10217_v39 = vpop.f32.mrf.mxu0 }
0x1fb8   :  { %v5197_v33 = vadd.f32 %v10217_v39, %v8978_v35 }
0x1fb9   :  { %v5188_v47 = vpop.f32.mrf.mxu0 }
0x1fba   :  { %v5205_v41 = vmax.f32 %v5197_v33, 0.0  ;;  %v5189_v42 = vadd.f32 %v8978_v35, %v5188_v47 }
0x1fbb   :  { %v10218_v58 = vpop.f32.mrf.mxu0 }
0x1fbc   :  { %v5214_v44 = vmul.f32 %v8988_v40, %v5205_v41  ;;  %v5203_v62 = vmax.f32 %v5189_v42, 0.0  ;;  %v5200_v46 = vadd.f32 %v10218_v58, %v8978_v35 }
0x1fbd   :  { %v5191_v48 = vpop.f32.mrf.mxu0 }
0x1fbe   :  { %v5223_v50 = vadd.f32 %v8990_v43, %v5214_v44  ;;  %v5212_v52 = vmul.f32 %v8988_v40, %v5203_v62  ;;  %v5206_v53 = vmax.f32 %v5200_v46, 0.0  ;;  %v5192_v54 = vadd.f32 %v8978_v35, %v5191_v48 }
0x1fc0   :  { %5227 = vst.msk [vmem:[#allocation2 + $0x40] sm:$0xff] %vm30_vm0, %v5223_v50  ;;  %v5221_v55 = vadd.f32 %v8990_v43, %v5212_v52  ;;  %v5215_v56 = vmul.f32 %v8988_v40, %v5206_v53  ;;  %v5204_v57 = vmax.f32 %v5192_v54, 0.0  ;;  %v11774_v53 = vld [vmem:[%s14407_s2 + $0x638] sm:$0xff]   ;;  %v11775_v54 = vld [vmem:[%s14407_s2 + $0x630] sm:$0xff]  }
0x1fc1   :  { %10239 = vmatprep.subr.bf16.mxu0 %v11774_v53 }
0x1fc2   :  { %5225 = vst.msk [vmem:[#allocation2 + $0x10] sm:$0xff] %vm30_vm0, %v5221_v55  ;;  %v5224_v61 = vadd.f32 %v8990_v43, %v5215_v56  ;;  %v5213_v0 = vmul.f32 %v8988_v40, %v5204_v57  ;;  %10240 = vmatpush3.bf16.msra.mxu0 %v11774_v53  ;;  %v11776_v55 = vld [vmem:[%s14407_s2 + $0x628] sm:$0xff]   ;;  %v11777_v56 = vld [vmem:[%s14407_s2 + $0x620] sm:$0xff]   ;;  %v9008_v57 = vld [vmem:[%s14409_s3 + $0x5c] ss:$0 sm:$0xff] }
0x1fc3   :  { %10241 = vmatprep.subr.bf16.mxu0 %v11775_v54 }
0x1fc4   :  { %5228 = vst.msk [vmem:[#allocation2 + $0x48] sm:$0xff] %vm30_vm0, %v5224_v61  ;;  %v5222_v1 = vadd.f32 %v8990_v43, %v5213_v0  ;;  %v9018_v0 = vld [vmem:[%s14409_s3 + $0x5d] ss:$0 sm:$0xff] }
0x1fc6   :  { %5226 = vst.msk [vmem:[#allocation2 + $0x18] sm:$0xff] %vm30_vm0, %v5222_v1  ;;  %10242 = vmatpush3.bf16.msra.mxu0 %v11775_v54 }
0x1fc7   :  { %v5232_v6 = vld [vmem:[#allocation2 + $0x3c] sm:$0xff]  ;;  %10243 = vmatprep.subr.bf16.mxu0 %v11776_v55 }
0x1fc9   :  { %v5230_v10 = vld [vmem:[#allocation2 + $0xc] sm:$0xff] }
0x1fca   :  { %10244 = vmatpush3.bf16.msra.mxu0 %v11776_v55 }
0x1fcb   :  { %v5234_v7 = vld [vmem:[#allocation2 + $0x44] sm:$0xff]  ;;  %v5236_v15 = vld [vmem:[#allocation2 + $0x4c] sm:$0xff]  ;;  %10245 = vmatprep.subr.bf16.mxu0 %v11777_v56 }
0x1fcc   :  { %v11192_v8 = vpack.i.bf16 %v5234_v7, %v5232_v6  ;;  %v11197_v27 = vpack.i.bf16 %v5236_v15, %v5234_v7  ;;  %v11217_v22 = vpack.i.bf16 %v13476_v63, %v5236_v15 }
0x1fcd   :  { %v5233_v11 = vld [vmem:[#allocation2 + $0x14] sm:$0xff]  ;;  %v5235_v24 = vld [vmem:[#allocation2 + $0x1c] sm:$0xff] }
0x1fce   :  { %11193 = vrot.lane.b32.xlu1 %v11192_v8, %s11880_s12  ;;  %v11202_v23 = vpack.i.bf16 %v5233_v11, %v5230_v10  ;;  %v11207_v28 = vpack.i.bf16 %v5235_v24, %v5233_v11  ;;  %v11212_v26 = vpack.i.bf16 %v13479_v51, %v5235_v24  ;;  %10246 = vmatpush3.bf16.msra.mxu0 %v11777_v56 }
0x1fd0   :  { %11203 = vrot.lane.b32.xlu0 %v11202_v23, %s11880_s12 }
0x1fd2   :  { %11198 = vrot.lane.b32.xlu1 %v11197_v27, %s11881_s15 }
0x1fd4   :  { %11208 = vrot.lane.b32.xlu0 %v11207_v28, %s11881_s15 }
0x1fd6   :  { %11218 = vrot.lane.b32.xlu1 %v11217_v22, %s11882_s16 }
0x1fd8   :  { %11213 = vrot.lane.b32.xlu0 %v11212_v26, %s11882_s16 }
0x2040   :  { %v11194_v29 = vpop.permute.xlu1 %11193 }
0x2041   :  { %v11196_v32 = vunpack.i.h.bf16 %v11194_v29  ;;  %v11195_v34 = vunpack.i.l.bf16 %v11194_v29 }
0x2042   :  { %v11204_v12 = vpop.permute.xlu0 %11203 }
0x2043   :  { %v11206_v36 = vunpack.i.h.bf16 %v11204_v12  ;;  %v11205_v16 = vunpack.i.l.bf16 %v11204_v12  ;;  %v5286_v39 = vsel %vm30_vm0, %v5232_v6, %v11196_v32  ;;  %v5285_v51 = vsel %vm30_vm0, %v13486_v2, %v11195_v34  ;;  %v9020_v6 = vld [vmem:[%s14409_s3 + $0x5e] ss:$0 sm:$0xff] }
0x2044   :  { %v11199_v45 = vpop.permute.xlu1 %11198 }
0x2045   :  { %v11201_v37 = vunpack.i.h.bf16 %v11199_v45  ;;  %v11200_v18 = vunpack.i.l.bf16 %v11199_v45  ;;  %v5284_v33 = vsel %vm30_vm0, %v5230_v10, %v11206_v36  ;;  %v5283_v40 = vsel %vm30_vm0, %v13488_v3, %v11205_v16 }
0x2046   :  { %v11209_v17 = vpop.permute.xlu0 %11208 }
0x2047   :  { %v11211_v38 = vunpack.i.h.bf16 %v11209_v17  ;;  %v11210_v31 = vunpack.i.l.bf16 %v11209_v17  ;;  %v5289_v41 = vsel %vm143_vm1, %v5285_v51, %v11200_v18  ;;  %v5290_v42 = vsel %vm143_vm1, %v5286_v39, %v11201_v37  ;;  %v11779_v18 = vld [vmem:[%s14407_s2 + $0x610] sm:$0xff]  }
0x2048   :  { %v11219_v30 = vpop.permute.xlu1 %11218 }
0x2049   :  { %v11221_v63 = vunpack.i.h.bf16 %v11219_v30  ;;  %v11220_v35 = vunpack.i.l.bf16 %v11219_v30  ;;  %v5287_v44 = vsel %vm143_vm1, %v5283_v40, %v11210_v31  ;;  %v5288_v62 = vsel %vm143_vm1, %v5284_v33, %v11211_v38 }
0x204a   :  { %v11214_v47 = vpop.permute.xlu0 %11213 }
0x204b   :  { %v11216_v43 = vunpack.i.h.bf16 %v11214_v47  ;;  %v11215_v58 = vunpack.i.l.bf16 %v11214_v47  ;;  %v5293_v46 = vsel %vm148_vm2, %v5289_v41, %v11220_v35  ;;  %v5294_v2 = vsel %vm148_vm2, %v5290_v42, %v11221_v63  ;;  %v11781_v41 = vld [vmem:[%s14407_s2 + $0x600] sm:$0xff]  }
0x204c   :  { %v5296_v52 = vpack.c.bf16 %v5294_v2, %v5293_v46 }
0x204d   :  { %v5291_v48 = vsel %vm148_vm2, %v5287_v44, %v11215_v58  ;;  %v5292_v50 = vsel %vm148_vm2, %v5288_v62, %v11216_v43 }
0x204e   :  { %v5295_v3 = vpack.c.bf16 %v5292_v50, %v5291_v48 }
0x2050   :  { %10235 = vmatprep.mubr.bf16.mxu1 %v5295_v3 }
0x2051   :  { %10236 = vmatmul.mubr.bf16.vlgmr.msra.gmra.mxu1 %v5296_v52 }
0x2111   :  { %v10237_v60 = vpop.f32.mrf.mxu1 }
0x2112   :  { %v5411_v61 = vadd.f32 %v10237_v60, %v9008_v57 }
0x2113   :  { %v5402_v1 = vpop.f32.mrf.mxu1 }
0x2114   :  { %v5419_v4 = vmax.f32 %v5411_v61, 0.0  ;;  %v5403_v5 = vadd.f32 %v9008_v57, %v5402_v1 }
0x2115   :  { %v10238_v7 = vpop.f32.mrf.mxu1 }
0x2116   :  { %v5428_v8 = vmul.f32 %v9018_v0, %v5419_v4  ;;  %v5417_v9 = vmax.f32 %v5403_v5, 0.0  ;;  %v5414_v10 = vadd.f32 %v10238_v7, %v9008_v57 }
0x2117   :  { %v5405_v11 = vpop.f32.mrf.mxu1 }
0x2118   :  { %v5437_v15 = vadd.f32 %v9020_v6, %v5428_v8  ;;  %v5426_v23 = vmul.f32 %v9018_v0, %v5417_v9  ;;  %v5420_v24 = vmax.f32 %v5414_v10, 0.0  ;;  %v5406_v27 = vadd.f32 %v9008_v57, %v5405_v11 }
0x211a   :  { %v5441_v28 = vadd.f32 %v5437_v15, %v13440_v59  ;;  %v5435_v22 = vadd.f32 %v9020_v6, %v5426_v23  ;;  %v5429_v26 = vmul.f32 %v9018_v0, %v5420_v24  ;;  %v5418_v29 = vmax.f32 %v5406_v27, 0.0  ;;  %v11778_v59 = vld [vmem:[%s14407_s2 + $0x618] sm:$0xff]  }
0x211b   :  { %10247 = vmatprep.subr.bf16.mxu0 %v11778_v59 }
0x211c   :  { %v13586_v12 = vmul.f32 %v5441_v28, %v11969_v13  ;;  %v5439_v45 = vadd.f32 %v5435_v22, %v13446_v49  ;;  %v5438_v32 = vadd.f32 %v9020_v6, %v5429_v26  ;;  %v5427_v34 = vmul.f32 %v9018_v0, %v5418_v29  ;;  %10248 = vmatpush3.bf16.msra.mxu0 %v11778_v59 }
0x211d   :  { %10249 = vmatprep.subr.bf16.mxu0 %v11779_v18 }
0x211e   :  { %5449 = vst.msk [vmem:[#allocation2 + $0x40] sm:$0xff] %vm30_vm0, %v13586_v12  ;;  %v13592_v36 = vmul.f32 %v5439_v45, %v11971_v14  ;;  %v5442_v16 = vadd.f32 %v5438_v32, %v13455_v25  ;;  %v5436_v17 = vadd.f32 %v9020_v6, %v5427_v34 }
0x2120   :  { %5447 = vst.msk [vmem:[#allocation2 + $0x10] sm:$0xff] %vm30_vm0, %v13592_v36  ;;  %v13601_v49 = vmul.f32 %v5442_v16, %v11989_v19  ;;  %v5440_v37 = vadd.f32 %v5436_v17, %v13461_v21  ;;  %10250 = vmatpush3.bf16.msra.mxu0 %v11779_v18  ;;  %v11780_v21 = vld [vmem:[%s14407_s2 + $0x608] sm:$0xff]  }
0x2121   :  { %10251 = vmatprep.subr.bf16.mxu0 %v11780_v21 }
0x2122   :  { %5450 = vst.msk [vmem:[#allocation2 + $0x48] sm:$0xff] %vm30_vm0, %v13601_v49  ;;  %v13607_v25 = vmul.f32 %v5440_v37, %v11991_v20 }
0x2124   :  { %5448 = vst.msk [vmem:[#allocation2 + $0x18] sm:$0xff] %vm30_vm0, %v13607_v25  ;;  %10252 = vmatpush3.bf16.msra.mxu0 %v11780_v21  ;;  %v11782_v21 = vld [vmem:[%s14407_s2 + $0x678] sm:$0xff]  }
0x2125   :  { %v5457_v38 = vld [vmem:[#allocation2 + $0x40] sm:$0xff]  ;;  %10253 = vmatprep.subr.bf16.mxu0 %v11781_v41  ;;  %10259 = vmatprep.subr.bf16.mxu1 %v11782_v21 }
0x2126   :  { %v5453_v0 = vld [vmem:[#allocation2 + $0x3f] sm:$0xff]  ;;  %10260 = vmatpush3.bf16.msra.mxu1 %v11782_v21 }
0x2127   :  { %v5455_v63 = vld [vmem:[#allocation2 + $0x10] sm:$0xff] }
0x2128   :  { %10254 = vmatpush3.bf16.msra.mxu0 %v11781_v41  ;;  %v5451_v7 = vld [vmem:[#allocation2 + $0xf] sm:$0xff]  ;;  %v9050_v41 = vld [vmem:[%s14409_s3 + $0x62] ss:$0 sm:$0xff] }
0x2129   :  { %v5458_v31 = vld [vmem:[#allocation2 + $0x48] sm:$0xff] }
0x212a   :  { %v11222_v30 = vpack.i.bf16 %v5458_v31, %v5457_v38  ;;  %v5461_v39 = vld [vmem:[#allocation2 + $0x41] sm:$0xff]  ;;  %v5462_v51 = vld [vmem:[#allocation2 + $0x49] sm:$0xff] }
0x212b   :  { %v5456_v35 = vld [vmem:[#allocation2 + $0x18] sm:$0xff]  ;;  %v11227_v42 = vpack.i.bf16 %v5462_v51, %v5461_v39  ;;  %v5465_v43 = vld [vmem:[#allocation2 + $0x42] sm:$0xff]  ;;  %v5466_v58 = vld [vmem:[#allocation2 + $0x4a] sm:$0xff] }
0x212c   :  { %11223 = vrot.lane.b32.xlu1 %v11222_v30, %s11880_s12  ;;  %v11232_v33 = vpack.i.bf16 %v5456_v35, %v5455_v63  ;;  %v5459_v40 = vld [vmem:[#allocation2 + $0x11] sm:$0xff]  ;;  %v5460_v47 = vld [vmem:[#allocation2 + $0x19] sm:$0xff]  ;;  %v11247_v2 = vpack.i.bf16 %v5466_v58, %v5465_v43  ;;  %v5454_v6 = vld [vmem:[#allocation2 + $0x47] sm:$0xff] }
0x212d   :  { %v11237_v44 = vpack.i.bf16 %v5460_v47, %v5459_v40  ;;  %v5463_v62 = vld [vmem:[#allocation2 + $0x12] sm:$0xff]  ;;  %v5464_v46 = vld [vmem:[#allocation2 + $0x1a] sm:$0xff]  ;;  %v11784_v31 = vld [vmem:[%s14407_s2 + $0x668] sm:$0xff]  }
0x212e   :  { %11233 = vrot.lane.b32.xlu0 %v11232_v33, %s11880_s12  ;;  %v11242_v48 = vpack.i.bf16 %v5464_v46, %v5463_v62  ;;  %v5452_v8 = vld [vmem:[#allocation2 + $0x17] sm:$0xff]  ;;  %v11785_v30 = vld [vmem:[%s14407_s2 + $0x660] sm:$0xff]  }
0x212f   :  { %v11783_v38 = vld [vmem:[%s14407_s2 + $0x670] sm:$0xff]   ;;  %v9038_v63 = vld [vmem:[%s14409_s3 + $0x60] ss:$0 sm:$0xff]  ;;  %v9048_v51 = vld [vmem:[%s14409_s3 + $0x61] ss:$0 sm:$0xff] }
0x2130   :  { %11228 = vrot.lane.b32.xlu1 %v11227_v42, %s11881_s15  ;;  %10261 = vmatprep.subr.bf16.mxu1 %v11783_v38 }
0x2131   :  { %10262 = vmatpush3.bf16.msra.mxu1 %v11783_v38 }
0x2132   :  { %11238 = vrot.lane.b32.xlu0 %v11237_v44, %s11881_s15  ;;  %10263 = vmatprep.subr.bf16.mxu1 %v11784_v31 }
0x2134   :  { %11248 = vrot.lane.b32.xlu1 %v11247_v2, %s11882_s16 }
0x2135   :  { %10264 = vmatpush3.bf16.msra.mxu1 %v11784_v31 }
0x2136   :  { %11243 = vrot.lane.b32.xlu0 %v11242_v48, %s11882_s16  ;;  %10265 = vmatprep.subr.bf16.mxu1 %v11785_v30 }
0x2139   :  { %10266 = vmatpush3.bf16.msra.mxu1 %v11785_v30 }
0x219e   :  { %v11224_v50 = vpop.permute.xlu1 %11223 }
0x219f   :  { %v11226_v53 = vunpack.i.h.bf16 %v11224_v50  ;;  %v11225_v54 = vunpack.i.l.bf16 %v11224_v50 }
0x21a0   :  { %v11234_v3 = vpop.permute.xlu0 %11233 }
0x21a1   :  { %v11236_v55 = vunpack.i.h.bf16 %v11234_v3  ;;  %v11235_v56 = vunpack.i.l.bf16 %v11234_v3  ;;  %v5517_v11 = vsel %vm30_vm0, %v5453_v0, %v11225_v54  ;;  %v5518_v15 = vsel %vm30_vm0, %v5454_v6, %v11226_v53  ;;  %v11786_v54 = vld [vmem:[%s14407_s2 + $0x658] sm:$0xff]  }
0x21a2   :  { %v11229_v52 = vpop.permute.xlu1 %11228  ;;  %10267 = vmatprep.subr.bf16.mxu1 %v11786_v54 }
0x21a3   :  { %v11231_v60 = vunpack.i.h.bf16 %v11229_v52  ;;  %v11230_v61 = vunpack.i.l.bf16 %v11229_v52  ;;  %v5515_v23 = vsel %vm30_vm0, %v5451_v7, %v11235_v56  ;;  %v5516_v24 = vsel %vm30_vm0, %v5452_v8, %v11236_v55  ;;  %10268 = vmatpush3.bf16.msra.mxu1 %v11786_v54 }
0x21a4   :  { %v11239_v57 = vpop.permute.xlu0 %11238 }
0x21a5   :  { %v11241_v1 = vunpack.i.h.bf16 %v11239_v57  ;;  %v11240_v4 = vunpack.i.l.bf16 %v11239_v57  ;;  %v5521_v28 = vsel %vm143_vm1, %v5517_v11, %v11230_v61  ;;  %v5522_v22 = vsel %vm143_vm1, %v5518_v15, %v11231_v60  ;;  %v11787_v60 = vld [vmem:[%s14407_s2 + $0x650] sm:$0xff]   ;;  %v11788_v61 = vld [vmem:[%s14407_s2 + $0x648] sm:$0xff]   ;;  %v11789_v15 = vld [vmem:[%s14407_s2 + $0x640] sm:$0xff]  }
0x21a6   :  { %v11249_v5 = vpop.permute.xlu1 %11248  ;;  %10269 = vmatprep.subr.bf16.mxu1 %v11787_v60 }
0x21a7   :  { %v11251_v9 = vunpack.i.h.bf16 %v11249_v5  ;;  %v11250_v10 = vunpack.i.l.bf16 %v11249_v5  ;;  %v5519_v45 = vsel %vm143_vm1, %v5515_v23, %v11240_v4  ;;  %v5520_v32 = vsel %vm143_vm1, %v5516_v24, %v11241_v1  ;;  %10270 = vmatpush3.bf16.msra.mxu1 %v11787_v60 }
0x21a8   :  { %v11244_v27 = vpop.permute.xlu0 %11243  ;;  %10271 = vmatprep.subr.bf16.mxu1 %v11788_v61 }
0x21a9   :  { %v11246_v26 = vunpack.i.h.bf16 %v11244_v27  ;;  %v11245_v29 = vunpack.i.l.bf16 %v11244_v27  ;;  %v5525_v34 = vsel %vm148_vm2, %v5521_v28, %v11250_v10  ;;  %v5526_v16 = vsel %vm148_vm2, %v5522_v22, %v11251_v9 }
0x21aa   :  { %v5528_v18 = vpack.c.bf16 %v5526_v16, %v5525_v34 }
0x21ab   :  { %v5523_v17 = vsel %vm148_vm2, %v5519_v45, %v11245_v29  ;;  %v5524_v59 = vsel %vm148_vm2, %v5520_v32, %v11246_v26  ;;  %10272 = vmatpush3.bf16.msra.mxu1 %v11788_v61  ;;  %v11790_v61 = vld [vmem:[%s14407_s2 + $0x6b8] sm:$0xff]  }
0x21ac   :  { %v5527_v37 = vpack.c.bf16 %v5524_v59, %v5523_v17  ;;  %10273 = vmatprep.subr.bf16.mxu1 %v11789_v15  ;;  %10279 = vmatprep.subr.bf16.mxu0 %v11790_v61 }
0x21ae   :  { %10255 = vmatprep.mubr.bf16.mxu0 %v5527_v37 }
0x21af   :  { %10256 = vmatmul.mubr.bf16.vlgmr.msra.gmra.mxu0 %v5528_v18  ;;  %10274 = vmatpush3.bf16.msra.mxu1 %v11789_v15  ;;  %v9080_v15 = vld [vmem:[%s14409_s3 + $0x66] ss:$0 sm:$0xff] }
0x21b0   :  { %10280 = vmatpush3.bf16.msra.mxu0 %v11790_v61 }
0x226f   :  { %v10257_v35 = vpop.f32.mrf.mxu0 }
0x2270   :  { %v5643_v39 = vadd.f32 %v10257_v35, %v9038_v63 }
0x2271   :  { %v5634_v33 = vpop.f32.mrf.mxu0 }
0x2272   :  { %v5651_v40 = vmax.f32 %v5643_v39, 0.0  ;;  %v5635_v47 = vadd.f32 %v9038_v63, %v5634_v33 }
0x2273   :  { %v10258_v42 = vpop.f32.mrf.mxu0 }
0x2274   :  { %v5660_v43 = vmul.f32 %v9048_v51, %v5651_v40  ;;  %v5649_v58 = vmax.f32 %v5635_v47, 0.0  ;;  %v5646_v44 = vadd.f32 %v10258_v42, %v9038_v63 }
0x2275   :  { %v5637_v62 = vpop.f32.mrf.mxu0 }
0x2276   :  { %v5669_v46 = vadd.f32 %v9050_v41, %v5660_v43  ;;  %v5658_v2 = vmul.f32 %v9048_v51, %v5649_v58  ;;  %v5652_v48 = vmax.f32 %v5646_v44, 0.0  ;;  %v5638_v50 = vadd.f32 %v9038_v63, %v5637_v62 }
0x2278   :  { %5673 = vst.msk [vmem:[#allocation2 + $0x40] sm:$0xff] %vm30_vm0, %v5669_v46  ;;  %v5667_v3 = vadd.f32 %v9050_v41, %v5658_v2  ;;  %v5661_v52 = vmul.f32 %v9048_v51, %v5652_v48  ;;  %v5650_v53 = vmax.f32 %v5638_v50, 0.0 }
0x227a   :  { %5671 = vst.msk [vmem:[#allocation2 + $0x10] sm:$0xff] %vm30_vm0, %v5667_v3  ;;  %v5670_v55 = vadd.f32 %v9050_v41, %v5661_v52  ;;  %v5659_v56 = vmul.f32 %v9048_v51, %v5650_v53 }
0x227c   :  { %5674 = vst.msk [vmem:[#allocation2 + $0x48] sm:$0xff] %vm30_vm0, %v5670_v55  ;;  %v5668_v57 = vadd.f32 %v9050_v41, %v5659_v56 }
0x227e   :  { %5672 = vst.msk [vmem:[#allocation2 + $0x18] sm:$0xff] %vm30_vm0, %v5668_v57 }
0x227f   :  { %v5681_v0 = vld [vmem:[#allocation2 + $0x40] sm:$0xff] }
0x2280   :  { %v5677_v30 = vld [vmem:[#allocation2 + $0x3f] sm:$0xff] }
0x2281   :  { %v5679_v5 = vld [vmem:[#allocation2 + $0x10] sm:$0xff] }
0x2282   :  { %v5675_v33 = vld [vmem:[#allocation2 + $0xf] sm:$0xff] }
0x2283   :  { %v5682_v1 = vld [vmem:[#allocation2 + $0x48] sm:$0xff] }
0x2284   :  { %v11252_v4 = vpack.i.bf16 %v5682_v1, %v5681_v0  ;;  %v5685_v7 = vld [vmem:[#allocation2 + $0x41] sm:$0xff]  ;;  %v5686_v8 = vld [vmem:[#allocation2 + $0x49] sm:$0xff] }
0x2285   :  { %v5680_v6 = vld [vmem:[#allocation2 + $0x18] sm:$0xff]  ;;  %v11257_v23 = vpack.i.bf16 %v5686_v8, %v5685_v7  ;;  %v5689_v24 = vld [vmem:[#allocation2 + $0x42] sm:$0xff]  ;;  %v5690_v27 = vld [vmem:[#allocation2 + $0x4a] sm:$0xff] }
0x2286   :  { %11253 = vrot.lane.b32.xlu1 %v11252_v4, %s11880_s12  ;;  %v11262_v9 = vpack.i.bf16 %v5680_v6, %v5679_v5  ;;  %v5683_v10 = vld [vmem:[#allocation2 + $0x11] sm:$0xff]  ;;  %v5684_v11 = vld [vmem:[#allocation2 + $0x19] sm:$0xff]  ;;  %v11277_v29 = vpack.i.bf16 %v5690_v27, %v5689_v24  ;;  %v5678_v51 = vld [vmem:[#allocation2 + $0x47] sm:$0xff] }
0x2287   :  { %v11267_v28 = vpack.i.bf16 %v5684_v11, %v5683_v10  ;;  %v5687_v22 = vld [vmem:[#allocation2 + $0x12] sm:$0xff]  ;;  %v5688_v26 = vld [vmem:[#allocation2 + $0x1a] sm:$0xff]  ;;  %v11792_v1 = vld [vmem:[%s14407_s2 + $0x6a8] sm:$0xff]  }
0x2288   :  { %11263 = vrot.lane.b32.xlu0 %v11262_v9, %s11880_s12  ;;  %v11272_v45 = vpack.i.bf16 %v5688_v26, %v5687_v22  ;;  %v5676_v40 = vld [vmem:[#allocation2 + $0x17] sm:$0xff]  ;;  %v11793_v4 = vld [vmem:[%s14407_s2 + $0x6a0] sm:$0xff]  }
0x2289   :  { %v11791_v0 = vld [vmem:[%s14407_s2 + $0x6b0] sm:$0xff]   ;;  %v9068_v5 = vld [vmem:[%s14409_s3 + $0x64] ss:$0 sm:$0xff]  ;;  %v9078_v8 = vld [vmem:[%s14409_s3 + $0x65] ss:$0 sm:$0xff] }
0x228a   :  { %11258 = vrot.lane.b32.xlu1 %v11257_v23, %s11881_s15  ;;  %10281 = vmatprep.subr.bf16.mxu0 %v11791_v0 }
0x228b   :  { %10282 = vmatpush3.bf16.msra.mxu0 %v11791_v0 }
0x228c   :  { %11268 = vrot.lane.b32.xlu0 %v11267_v28, %s11881_s15  ;;  %10283 = vmatprep.subr.bf16.mxu0 %v11792_v1 }
0x228e   :  { %11278 = vrot.lane.b32.xlu1 %v11277_v29, %s11882_s16 }
0x228f   :  { %10284 = vmatpush3.bf16.msra.mxu0 %v11792_v1 }
0x2290   :  { %11273 = vrot.lane.b32.xlu0 %v11272_v45, %s11882_s16  ;;  %10285 = vmatprep.subr.bf16.mxu0 %v11793_v4 }
0x2293   :  { %10286 = vmatpush3.bf16.msra.mxu0 %v11793_v4 }
0x22f8   :  { %v11254_v32 = vpop.permute.xlu1 %11253 }
0x22f9   :  { %v11256_v17 = vunpack.i.h.bf16 %v11254_v32  ;;  %v11255_v59 = vunpack.i.l.bf16 %v11254_v32 }
0x22fa   :  { %v11264_v34 = vpop.permute.xlu0 %11263 }
0x22fb   :  { %v11266_v37 = vunpack.i.h.bf16 %v11264_v34  ;;  %v11265_v18 = vunpack.i.l.bf16 %v11264_v34  ;;  %v5741_v42 = vsel %vm30_vm0, %v5677_v30, %v11255_v59  ;;  %v5742_v43 = vsel %vm30_vm0, %v5678_v51, %v11256_v17 }
0x22fc   :  { %v11259_v16 = vpop.permute.xlu1 %11258 }
0x22fd   :  { %v11261_v38 = vunpack.i.h.bf16 %v11259_v16  ;;  %v11260_v31 = vunpack.i.l.bf16 %v11259_v16  ;;  %v5739_v58 = vsel %vm30_vm0, %v5675_v33, %v11265_v18  ;;  %v5740_v44 = vsel %vm30_vm0, %v5676_v40, %v11266_v37 }
0x22fe   :  { %v11269_v21 = vpop.permute.xlu0 %11268 }
0x22ff   :  { %v11271_v63 = vunpack.i.h.bf16 %v11269_v21  ;;  %v11270_v35 = vunpack.i.l.bf16 %v11269_v21  ;;  %v5745_v46 = vsel %vm143_vm1, %v5741_v42, %v11260_v31  ;;  %v5746_v2 = vsel %vm143_vm1, %v5742_v43, %v11261_v38 }
0x2300   :  { %v11279_v39 = vpop.permute.xlu1 %11278 }
0x2301   :  { %v11281_v47 = vunpack.i.h.bf16 %v11279_v39  ;;  %v11280_v41 = vunpack.i.l.bf16 %v11279_v39  ;;  %v5743_v3 = vsel %vm143_vm1, %v5739_v58, %v11270_v35  ;;  %v5744_v52 = vsel %vm143_vm1, %v5740_v44, %v11271_v63  ;;  %v11795_v39 = vld [vmem:[%s14407_s2 + $0x690] sm:$0xff]  }
0x2302   :  { %v11274_v62 = vpop.permute.xlu0 %11273 }
0x2303   :  { %v11276_v48 = vunpack.i.h.bf16 %v11274_v62  ;;  %v11275_v50 = vunpack.i.l.bf16 %v11274_v62  ;;  %v5749_v53 = vsel %vm148_vm2, %v5745_v46, %v11280_v41  ;;  %v5750_v54 = vsel %vm148_vm2, %v5746_v2, %v11281_v47  ;;  %v11797_v46 = vld [vmem:[%s14407_s2 + $0x680] sm:$0xff]  }
0x2304   :  { %v5752_v60 = vpack.c.bf16 %v5750_v54, %v5749_v53 }
0x2305   :  { %v5747_v55 = vsel %vm148_vm2, %v5743_v3, %v11275_v50  ;;  %v5748_v56 = vsel %vm148_vm2, %v5744_v52, %v11276_v48 }
0x2306   :  { %v5751_v57 = vpack.c.bf16 %v5748_v56, %v5747_v55 }
0x2308   :  { %10275 = vmatprep.mubr.bf16.mxu1 %v5751_v57 }
0x2309   :  { %10276 = vmatmul.mubr.bf16.vlgmr.msra.gmra.mxu1 %v5752_v60 }
0x23c9   :  { %v10277_v6 = vpop.f32.mrf.mxu1 }
0x23ca   :  { %v5867_v7 = vadd.f32 %v10277_v6, %v9068_v5 }
0x23cb   :  { %v5858_v9 = vpop.f32.mrf.mxu1 }
0x23cc   :  { %v5875_v10 = vmax.f32 %v5867_v7, 0.0  ;;  %v5859_v11 = vadd.f32 %v9068_v5, %v5858_v9 }
0x23cd   :  { %v10278_v23 = vpop.f32.mrf.mxu1 }
0x23ce   :  { %v5884_v24 = vmul.f32 %v9078_v8, %v5875_v10  ;;  %v5873_v27 = vmax.f32 %v5859_v11, 0.0  ;;  %v5870_v28 = vadd.f32 %v10278_v23, %v9068_v5 }
0x23cf   :  { %v5861_v22 = vpop.f32.mrf.mxu1 }
0x23d0   :  { %v5893_v26 = vadd.f32 %v9080_v15, %v5884_v24  ;;  %v5882_v29 = vmul.f32 %v9078_v8, %v5873_v27  ;;  %v5876_v45 = vmax.f32 %v5870_v28, 0.0  ;;  %v5862_v32 = vadd.f32 %v9068_v5, %v5861_v22 }
0x23d2   :  { %v5897_v34 = vadd.f32 %v5893_v26, %v13586_v12  ;;  %v5891_v16 = vadd.f32 %v9080_v15, %v5882_v29  ;;  %v5885_v17 = vmul.f32 %v9078_v8, %v5876_v45  ;;  %v5874_v59 = vmax.f32 %v5862_v32, 0.0  ;;  %v11794_v12 = vld [vmem:[%s14407_s2 + $0x698] sm:$0xff]  }
0x23d3   :  { %10287 = vmatprep.subr.bf16.mxu0 %v11794_v12 }
0x23d4   :  { %v13716_v37 = vmul.f32 %v5897_v34, %v11969_v13  ;;  %v5895_v18 = vadd.f32 %v5891_v16, %v13592_v36  ;;  %v5894_v21 = vadd.f32 %v9080_v15, %v5885_v17  ;;  %v5883_v38 = vmul.f32 %v9078_v8, %v5874_v59  ;;  %10288 = vmatpush3.bf16.msra.mxu0 %v11794_v12 }
0x23d5   :  { %10289 = vmatprep.subr.bf16.mxu0 %v11795_v39 }
0x23d6   :  { %5905 = vst.msk [vmem:[#allocation2 + $0x40] sm:$0xff] %vm30_vm0, %v13716_v37  ;;  %v13722_v31 = vmul.f32 %v5895_v18, %v11971_v14  ;;  %v5898_v30 = vadd.f32 %v5894_v21, %v13601_v49  ;;  %v5892_v63 = vadd.f32 %v9080_v15, %v5883_v38 }
0x23d8   :  { %5903 = vst.msk [vmem:[#allocation2 + $0x10] sm:$0xff] %vm30_vm0, %v13722_v31  ;;  %v13731_v36 = vmul.f32 %v5898_v30, %v11989_v19  ;;  %v5896_v35 = vadd.f32 %v5892_v63, %v13607_v25  ;;  %10290 = vmatpush3.bf16.msra.mxu0 %v11795_v39  ;;  %v11796_v25 = vld [vmem:[%s14407_s2 + $0x688] sm:$0xff]  }
0x23d9   :  { %10291 = vmatprep.subr.bf16.mxu0 %v11796_v25 }
0x23da   :  { %5906 = vst.msk [vmem:[#allocation2 + $0x48] sm:$0xff] %vm30_vm0, %v13731_v36  ;;  %v13737_v49 = vmul.f32 %v5896_v35, %v11991_v20 }
0x23dc   :  { %5904 = vst.msk [vmem:[#allocation2 + $0x18] sm:$0xff] %vm30_vm0, %v13737_v49  ;;  %10292 = vmatpush3.bf16.msra.mxu0 %v11796_v25  ;;  %v11798_v25 = vld [vmem:[%s14407_s2 + $0x6f8] sm:$0xff]  }
0x23dd   :  { %v5913_v51 = vld [vmem:[#allocation2 + $0x3f] sm:$0xff]  ;;  %10293 = vmatprep.subr.bf16.mxu0 %v11797_v46  ;;  %10299 = vmatprep.subr.bf16.mxu1 %v11798_v25 }
0x23de   :  { %v5909_v8 = vld [vmem:[#allocation2 + $0x3d] sm:$0xff]  ;;  %10300 = vmatpush3.bf16.msra.mxu1 %v11798_v25 }
0x23df   :  { %v5911_v47 = vld [vmem:[#allocation2 + $0xf] sm:$0xff] }
0x23e0   :  { %10294 = vmatpush3.bf16.msra.mxu0 %v11797_v46  ;;  %v5907_v23 = vld [vmem:[#allocation2 + $0xd] sm:$0xff]  ;;  %v9110_v46 = vld [vmem:[%s14409_s3 + $0x6a] ss:$0 sm:$0xff] }
0x23e1   :  { %v5914_v33 = vld [vmem:[#allocation2 + $0x47] sm:$0xff] }
0x23e2   :  { %v11282_v40 = vpack.i.bf16 %v5914_v33, %v5913_v51  ;;  %v5917_v42 = vld [vmem:[#allocation2 + $0x41] sm:$0xff]  ;;  %v5918_v43 = vld [vmem:[#allocation2 + $0x49] sm:$0xff] }
0x23e3   :  { %v5912_v41 = vld [vmem:[#allocation2 + $0x17] sm:$0xff]  ;;  %v11287_v2 = vpack.i.bf16 %v5918_v43, %v5917_v42  ;;  %v5921_v48 = vld [vmem:[#allocation2 + $0x43] sm:$0xff]  ;;  %v5922_v50 = vld [vmem:[#allocation2 + $0x4b] sm:$0xff] }
0x23e4   :  { %11283 = vrot.lane.b32.xlu1 %v11282_v40, %s11880_s12  ;;  %v11292_v58 = vpack.i.bf16 %v5912_v41, %v5911_v47  ;;  %v5915_v44 = vld [vmem:[#allocation2 + $0x11] sm:$0xff]  ;;  %v5916_v62 = vld [vmem:[#allocation2 + $0x19] sm:$0xff]  ;;  %v11307_v54 = vpack.i.bf16 %v5922_v50, %v5921_v48  ;;  %v5910_v15 = vld [vmem:[#allocation2 + $0x45] sm:$0xff] }
0x23e5   :  { %v11297_v3 = vpack.i.bf16 %v5916_v62, %v5915_v44  ;;  %v5919_v52 = vld [vmem:[#allocation2 + $0x13] sm:$0xff]  ;;  %v5920_v53 = vld [vmem:[#allocation2 + $0x1b] sm:$0xff]  ;;  %v11800_v33 = vld [vmem:[%s14407_s2 + $0x6e8] sm:$0xff]  }
0x23e6   :  { %11293 = vrot.lane.b32.xlu0 %v11292_v58, %s11880_s12  ;;  %v11302_v55 = vpack.i.bf16 %v5920_v53, %v5919_v52  ;;  %v5908_v24 = vld [vmem:[#allocation2 + $0x15] sm:$0xff]  ;;  %v11801_v40 = vld [vmem:[%s14407_s2 + $0x6e0] sm:$0xff]   ;;  %v9098_v47 = vld [vmem:[%s14409_s3 + $0x68] ss:$0 sm:$0xff] }
0x23e7   :  { %v11799_v51 = vld [vmem:[%s14407_s2 + $0x6f0] sm:$0xff]   ;;  %v9108_v43 = vld [vmem:[%s14409_s3 + $0x69] ss:$0 sm:$0xff] }
0x23e8   :  { %11288 = vrot.lane.b32.xlu1 %v11287_v2, %s11881_s15  ;;  %10301 = vmatprep.subr.bf16.mxu1 %v11799_v51 }
0x23e9   :  { %10302 = vmatpush3.bf16.msra.mxu1 %v11799_v51 }
0x23ea   :  { %11298 = vrot.lane.b32.xlu0 %v11297_v3, %s11881_s15  ;;  %10303 = vmatprep.subr.bf16.mxu1 %v11800_v33 }
0x23ec   :  { %11308 = vrot.lane.b32.xlu1 %v11307_v54, %s11882_s16 }
0x23ed   :  { %10304 = vmatpush3.bf16.msra.mxu1 %v11800_v33 }
0x23ee   :  { %11303 = vrot.lane.b32.xlu0 %v11302_v55, %s11882_s16  ;;  %10305 = vmatprep.subr.bf16.mxu1 %v11801_v40 }
0x23f1   :  { %10306 = vmatpush3.bf16.msra.mxu1 %v11801_v40 }
0x2456   :  { %v11284_v56 = vpop.permute.xlu1 %11283 }
0x2457   :  { %v11286_v61 = vunpack.i.h.bf16 %v11284_v56  ;;  %v11285_v0 = vunpack.i.l.bf16 %v11284_v56 }
0x2458   :  { %v11294_v57 = vpop.permute.xlu0 %11293 }
0x2459   :  { %v11296_v1 = vunpack.i.h.bf16 %v11294_v57  ;;  %v11295_v4 = vunpack.i.l.bf16 %v11294_v57  ;;  %v5973_v22 = vsel %vm30_vm0, %v5909_v8, %v11285_v0  ;;  %v5974_v26 = vsel %vm30_vm0, %v5910_v15, %v11286_v61  ;;  %v11802_v0 = vld [vmem:[%s14407_s2 + $0x6d8] sm:$0xff]  }
0x245a   :  { %v11289_v60 = vpop.permute.xlu1 %11288  ;;  %10307 = vmatprep.subr.bf16.mxu1 %v11802_v0 }
0x245b   :  { %v11291_v6 = vunpack.i.h.bf16 %v11289_v60  ;;  %v11290_v7 = vunpack.i.l.bf16 %v11289_v60  ;;  %v5971_v29 = vsel %vm30_vm0, %v5907_v23, %v11295_v4  ;;  %v5972_v45 = vsel %vm30_vm0, %v5908_v24, %v11296_v1  ;;  %10308 = vmatpush3.bf16.msra.mxu1 %v11802_v0 }
0x245c   :  { %v11299_v5 = vpop.permute.xlu0 %11298 }
0x245d   :  { %v11301_v9 = vunpack.i.h.bf16 %v11299_v5  ;;  %v11300_v10 = vunpack.i.l.bf16 %v11299_v5  ;;  %v5977_v34 = vsel %vm143_vm1, %v5973_v22, %v11290_v7  ;;  %v5978_v16 = vsel %vm143_vm1, %v5974_v26, %v11291_v6  ;;  %v11803_v6 = vld [vmem:[%s14407_s2 + $0x6d0] sm:$0xff]   ;;  %v11804_v7 = vld [vmem:[%s14407_s2 + $0x6c8] sm:$0xff]   ;;  %v11805_v26 = vld [vmem:[%s14407_s2 + $0x6c0] sm:$0xff]  }
0x245e   :  { %v11309_v11 = vpop.permute.xlu1 %11308  ;;  %10309 = vmatprep.subr.bf16.mxu1 %v11803_v6 }
0x245f   :  { %v11311_v27 = vunpack.i.h.bf16 %v11309_v11  ;;  %v11310_v28 = vunpack.i.l.bf16 %v11309_v11  ;;  %v5975_v18 = vsel %vm143_vm1, %v5971_v29, %v11300_v10  ;;  %v5976_v21 = vsel %vm143_vm1, %v5972_v45, %v11301_v9  ;;  %10310 = vmatpush3.bf16.msra.mxu1 %v11803_v6 }
0x2460   :  { %v11304_v32 = vpop.permute.xlu0 %11303  ;;  %10311 = vmatprep.subr.bf16.mxu1 %v11804_v7 }
0x2461   :  { %v11306_v17 = vunpack.i.h.bf16 %v11304_v32  ;;  %v11305_v59 = vunpack.i.l.bf16 %v11304_v32  ;;  %v5981_v38 = vsel %vm148_vm2, %v5977_v34, %v11310_v28  ;;  %v5982_v30 = vsel %vm148_vm2, %v5978_v16, %v11311_v27 }
0x2462   :  { %v5984_v39 = vpack.c.bf16 %v5982_v30, %v5981_v38 }
0x2463   :  { %v5979_v63 = vsel %vm148_vm2, %v5975_v18, %v11305_v59  ;;  %v5980_v12 = vsel %vm148_vm2, %v5976_v21, %v11306_v17  ;;  %10312 = vmatpush3.bf16.msra.mxu1 %v11804_v7  ;;  %v11806_v7 = vld [vmem:[%s14407_s2 + $0x738] sm:$0xff]  }
0x2464   :  { %v5983_v35 = vpack.c.bf16 %v5980_v12, %v5979_v63  ;;  %10313 = vmatprep.subr.bf16.mxu1 %v11805_v26  ;;  %10319 = vmatprep.subr.bf16.mxu0 %v11806_v7 }
0x2466   :  { %10295 = vmatprep.mubr.bf16.mxu0 %v5983_v35 }
0x2467   :  { %10296 = vmatmul.mubr.bf16.vlgmr.msra.gmra.mxu0 %v5984_v39  ;;  %10314 = vmatpush3.bf16.msra.mxu1 %v11805_v26  ;;  %v9140_v26 = vld [vmem:[%s14409_s3 + $0x6e] ss:$0 sm:$0xff] }
0x2468   :  { %10320 = vmatpush3.bf16.msra.mxu0 %v11806_v7 }
0x2527   :  { %v10297_v41 = vpop.f32.mrf.mxu0 }
0x2528   :  { %v6099_v42 = vadd.f32 %v10297_v41, %v9098_v47 }
0x2529   :  { %v6090_v58 = vpop.f32.mrf.mxu0 }
0x252a   :  { %v6107_v44 = vmax.f32 %v6099_v42, 0.0  ;;  %v6091_v62 = vadd.f32 %v9098_v47, %v6090_v58 }
0x252b   :  { %v10298_v2 = vpop.f32.mrf.mxu0 }
0x252c   :  { %v6116_v48 = vmul.f32 %v9108_v43, %v6107_v44  ;;  %v6105_v50 = vmax.f32 %v6091_v62, 0.0  ;;  %v6102_v3 = vadd.f32 %v10298_v2, %v9098_v47 }
0x252d   :  { %v6093_v52 = vpop.f32.mrf.mxu0 }
0x252e   :  { %v6125_v53 = vadd.f32 %v9110_v46, %v6116_v48  ;;  %v6114_v54 = vmul.f32 %v9108_v43, %v6105_v50  ;;  %v6108_v55 = vmax.f32 %v6102_v3, 0.0  ;;  %v6094_v56 = vadd.f32 %v9098_v47, %v6093_v52 }
0x2530   :  { %6129 = vst.msk [vmem:[#allocation2 + $0x40] sm:$0xff] %vm30_vm0, %v6125_v53  ;;  %v6123_v57 = vadd.f32 %v9110_v46, %v6114_v54  ;;  %v6117_v60 = vmul.f32 %v9108_v43, %v6108_v55  ;;  %v6106_v61 = vmax.f32 %v6094_v56, 0.0 }
0x2532   :  { %6127 = vst.msk [vmem:[#allocation2 + $0x10] sm:$0xff] %vm30_vm0, %v6123_v57  ;;  %v6126_v1 = vadd.f32 %v9110_v46, %v6117_v60  ;;  %v6115_v4 = vmul.f32 %v9108_v43, %v6106_v61 }
0x2534   :  { %6130 = vst.msk [vmem:[#allocation2 + $0x48] sm:$0xff] %vm30_vm0, %v6126_v1  ;;  %v6124_v5 = vadd.f32 %v9110_v46, %v6115_v4 }
0x2536   :  { %6128 = vst.msk [vmem:[#allocation2 + $0x18] sm:$0xff] %vm30_vm0, %v6124_v5 }
0x2537   :  { %v6137_v8 = vld [vmem:[#allocation2 + $0x3f] sm:$0xff] }
0x2538   :  { %v6133_v40 = vld [vmem:[#allocation2 + $0x3d] sm:$0xff] }
0x2539   :  { %v6135_v11 = vld [vmem:[#allocation2 + $0xf] sm:$0xff] }
0x253a   :  { %v6131_v58 = vld [vmem:[#allocation2 + $0xd] sm:$0xff] }
0x253b   :  { %v6138_v9 = vld [vmem:[#allocation2 + $0x47] sm:$0xff] }
0x253c   :  { %v11312_v10 = vpack.i.bf16 %v6138_v9, %v6137_v8  ;;  %v6141_v23 = vld [vmem:[#allocation2 + $0x41] sm:$0xff]  ;;  %v6142_v24 = vld [vmem:[#allocation2 + $0x49] sm:$0xff] }
0x253d   :  { %v6136_v15 = vld [vmem:[#allocation2 + $0x17] sm:$0xff]  ;;  %v11317_v29 = vpack.i.bf16 %v6142_v24, %v6141_v23  ;;  %v6145_v45 = vld [vmem:[#allocation2 + $0x43] sm:$0xff]  ;;  %v6146_v32 = vld [vmem:[#allocation2 + $0x4b] sm:$0xff] }
0x253e   :  { %11313 = vrot.lane.b32.xlu1 %v11312_v10, %s11880_s12  ;;  %v11322_v27 = vpack.i.bf16 %v6136_v15, %v6135_v11  ;;  %v6139_v28 = vld [vmem:[#allocation2 + $0x11] sm:$0xff]  ;;  %v6140_v22 = vld [vmem:[#allocation2 + $0x19] sm:$0xff]  ;;  %v11337_v59 = vpack.i.bf16 %v6146_v32, %v6145_v45  ;;  %v6134_v43 = vld [vmem:[#allocation2 + $0x45] sm:$0xff] }
0x253f   :  { %v11327_v34 = vpack.i.bf16 %v6140_v22, %v6139_v28  ;;  %v6143_v16 = vld [vmem:[#allocation2 + $0x13] sm:$0xff]  ;;  %v6144_v17 = vld [vmem:[#allocation2 + $0x1b] sm:$0xff]  ;;  %v11808_v9 = vld [vmem:[%s14407_s2 + $0x728] sm:$0xff]  }
0x2540   :  { %11323 = vrot.lane.b32.xlu0 %v11322_v27, %s11880_s12  ;;  %v11332_v18 = vpack.i.bf16 %v6144_v17, %v6143_v16  ;;  %v6132_v44 = vld [vmem:[#allocation2 + $0x15] sm:$0xff]  ;;  %v11809_v10 = vld [vmem:[%s14407_s2 + $0x720] sm:$0xff]   ;;  %v9128_v11 = vld [vmem:[%s14409_s3 + $0x6c] ss:$0 sm:$0xff] }
0x2541   :  { %v11807_v8 = vld [vmem:[%s14407_s2 + $0x730] sm:$0xff]   ;;  %v9138_v24 = vld [vmem:[%s14409_s3 + $0x6d] ss:$0 sm:$0xff] }
0x2542   :  { %11318 = vrot.lane.b32.xlu1 %v11317_v29, %s11881_s15  ;;  %10321 = vmatprep.subr.bf16.mxu0 %v11807_v8 }
0x2543   :  { %10322 = vmatpush3.bf16.msra.mxu0 %v11807_v8 }
0x2544   :  { %11328 = vrot.lane.b32.xlu0 %v11327_v34, %s11881_s15  ;;  %10323 = vmatprep.subr.bf16.mxu0 %v11808_v9 }
0x2546   :  { %11338 = vrot.lane.b32.xlu1 %v11337_v59, %s11882_s16 }
0x2547   :  { %10324 = vmatpush3.bf16.msra.mxu0 %v11808_v9 }
0x2548   :  { %11333 = vrot.lane.b32.xlu0 %v11332_v18, %s11882_s16  ;;  %10325 = vmatprep.subr.bf16.mxu0 %v11809_v10 }
0x254b   :  { %10326 = vmatpush3.bf16.msra.mxu0 %v11809_v10 }
0x25b0   :  { %v11314_v21 = vpop.permute.xlu1 %11313 }
0x25b1   :  { %v11316_v63 = vunpack.i.h.bf16 %v11314_v21  ;;  %v11315_v12 = vunpack.i.l.bf16 %v11314_v21 }
0x25b2   :  { %v11324_v38 = vpop.permute.xlu0 %11323 }
0x25b3   :  { %v11326_v35 = vunpack.i.h.bf16 %v11324_v38  ;;  %v11325_v39 = vunpack.i.l.bf16 %v11324_v38  ;;  %v6197_v2 = vsel %vm30_vm0, %v6133_v40, %v11315_v12  ;;  %v6198_v48 = vsel %vm30_vm0, %v6134_v43, %v11316_v63 }
0x25b4   :  { %v11319_v30 = vpop.permute.xlu1 %11318 }
0x25b5   :  { %v11321_v51 = vunpack.i.h.bf16 %v11319_v30  ;;  %v11320_v33 = vunpack.i.l.bf16 %v11319_v30  ;;  %v6195_v50 = vsel %vm30_vm0, %v6131_v58, %v11325_v39  ;;  %v6196_v3 = vsel %vm30_vm0, %v6132_v44, %v11326_v35 }
0x25b6   :  { %v11329_v25 = vpop.permute.xlu0 %11328 }
0x25b7   :  { %v11331_v47 = vunpack.i.h.bf16 %v11329_v25  ;;  %v11330_v41 = vunpack.i.l.bf16 %v11329_v25  ;;  %v6201_v53 = vsel %vm143_vm1, %v6197_v2, %v11320_v33  ;;  %v6202_v54 = vsel %vm143_vm1, %v6198_v48, %v11321_v51 }
0x25b8   :  { %v11339_v42 = vpop.permute.xlu1 %11338 }
0x25b9   :  { %v11341_v62 = vunpack.i.h.bf16 %v11339_v42  ;;  %v11340_v46 = vunpack.i.l.bf16 %v11339_v42  ;;  %v6199_v57 = vsel %vm143_vm1, %v6195_v50, %v11330_v41  ;;  %v6200_v60 = vsel %vm143_vm1, %v6196_v3, %v11331_v47  ;;  %v11811_v42 = vld [vmem:[%s14407_s2 + $0x710] sm:$0xff]  }
0x25ba   :  { %v11334_v52 = vpop.permute.xlu0 %11333 }
0x25bb   :  { %v11336_v55 = vunpack.i.h.bf16 %v11334_v52  ;;  %v11335_v56 = vunpack.i.l.bf16 %v11334_v52  ;;  %v6205_v61 = vsel %vm148_vm2, %v6201_v53, %v11340_v46  ;;  %v6206_v0 = vsel %vm148_vm2, %v6202_v54, %v11341_v62  ;;  %v11813_v46 = vld [vmem:[%s14407_s2 + $0x700] sm:$0xff]  }
0x25bc   :  { %v6208_v6 = vpack.c.bf16 %v6206_v0, %v6205_v61 }
0x25bd   :  { %v6203_v1 = vsel %vm148_vm2, %v6199_v57, %v11335_v56  ;;  %v6204_v4 = vsel %vm148_vm2, %v6200_v60, %v11336_v55 }
0x25be   :  { %v6207_v5 = vpack.c.bf16 %v6204_v4, %v6203_v1 }
0x25c0   :  { %10315 = vmatprep.mubr.bf16.mxu1 %v6207_v5 }
0x25c1   :  { %10316 = vmatmul.mubr.bf16.vlgmr.msra.gmra.mxu1 %v6208_v6 }
0x2681   :  { %v10317_v15 = vpop.f32.mrf.mxu1 }
0x2682   :  { %v6323_v23 = vadd.f32 %v10317_v15, %v9128_v11 }
0x2683   :  { %v6314_v27 = vpop.f32.mrf.mxu1 }
0x2684   :  { %v6331_v28 = vmax.f32 %v6323_v23, 0.0  ;;  %v6315_v22 = vadd.f32 %v9128_v11, %v6314_v27 }
0x2685   :  { %v10318_v29 = vpop.f32.mrf.mxu1 }
0x2686   :  { %v6340_v45 = vmul.f32 %v9138_v24, %v6331_v28  ;;  %v6329_v32 = vmax.f32 %v6315_v22, 0.0  ;;  %v6326_v34 = vadd.f32 %v10318_v29, %v9128_v11 }
0x2687   :  { %v6317_v16 = vpop.f32.mrf.mxu1 }
0x2688   :  { %v6349_v17 = vadd.f32 %v9140_v26, %v6340_v45  ;;  %v6338_v59 = vmul.f32 %v9138_v24, %v6329_v32  ;;  %v6332_v18 = vmax.f32 %v6326_v34, 0.0  ;;  %v6318_v21 = vadd.f32 %v9128_v11, %v6317_v16 }
0x268a   :  { %v6353_v38 = vadd.f32 %v6349_v17, %v13716_v37  ;;  %v6347_v30 = vadd.f32 %v9140_v26, %v6338_v59  ;;  %v6341_v63 = vmul.f32 %v9138_v24, %v6332_v18  ;;  %v6330_v12 = vmax.f32 %v6318_v21, 0.0  ;;  %v11810_v37 = vld [vmem:[%s14407_s2 + $0x718] sm:$0xff]  }
0x268b   :  { %10327 = vmatprep.subr.bf16.mxu0 %v11810_v37 }
0x268c   :  { %v13846_v35 = vmul.f32 %v6353_v38, %v11969_v13  ;;  %v6351_v39 = vadd.f32 %v6347_v30, %v13722_v31  ;;  %v6350_v25 = vadd.f32 %v9140_v26, %v6341_v63  ;;  %v6339_v51 = vmul.f32 %v9138_v24, %v6330_v12  ;;  %10328 = vmatpush3.bf16.msra.mxu0 %v11810_v37  ;;  %v11815_v37 = vld [vmem:[%s14407_s2 + $0x770] sm:$0xff]  }
0x268d   :  { %10329 = vmatprep.subr.bf16.mxu0 %v11811_v42 }
0x268e   :  { %6361 = vst.msk [vmem:[#allocation2 + $0x40] sm:$0xff] %vm30_vm0, %v13846_v35  ;;  %v13852_v33 = vmul.f32 %v6351_v39, %v11971_v14  ;;  %v6354_v40 = vadd.f32 %v6350_v25, %v13731_v36  ;;  %v6348_v47 = vadd.f32 %v9140_v26, %v6339_v51 }
0x2690   :  { %6359 = vst.msk [vmem:[#allocation2 + $0x10] sm:$0xff] %vm30_vm0, %v13852_v33  ;;  %v13861_v31 = vmul.f32 %v6354_v40, %v11989_v19  ;;  %v6352_v41 = vadd.f32 %v6348_v47, %v13737_v49  ;;  %10330 = vmatpush3.bf16.msra.mxu0 %v11811_v42  ;;  %v11812_v49 = vld [vmem:[%s14407_s2 + $0x708] sm:$0xff]   ;;  %v11814_v47 = vld [vmem:[%s14407_s2 + $0x778] sm:$0xff]   ;;  %v11817_v42 = vld [vmem:[%s14407_s2 + $0x760] sm:$0xff]  }
0x2691   :  { %10331 = vmatprep.subr.bf16.mxu0 %v11812_v49  ;;  %10339 = vmatprep.subr.bf16.mxu1 %v11814_v47 }
0x2692   :  { %6362 = vst.msk [vmem:[#allocation2 + $0x48] sm:$0xff] %vm30_vm0, %v13861_v31  ;;  %v13867_v36 = vmul.f32 %v6352_v41, %v11991_v20  ;;  %10340 = vmatpush3.bf16.msra.mxu1 %v11814_v47  ;;  %v11816_v41 = vld [vmem:[%s14407_s2 + $0x768] sm:$0xff]  }
0x2693   :  { %10341 = vmatprep.subr.bf16.mxu1 %v11815_v37 }
0x2694   :  { %6360 = vst.msk [vmem:[#allocation2 + $0x18] sm:$0xff] %vm30_vm0, %v13867_v36  ;;  %10332 = vmatpush3.bf16.msra.mxu0 %v11812_v49  ;;  %v9158_v49 = vld [vmem:[%s14409_s3 + $0x70] ss:$0 sm:$0xff] }
0x2695   :  { %v6369_v43 = vld [vmem:[#allocation2 + $0x3e] sm:$0xff]  ;;  %10333 = vmatprep.subr.bf16.mxu0 %v11813_v46 }
0x2696   :  { %v6365_v27 = vld [vmem:[#allocation2 + $0x3a] sm:$0xff]  ;;  %10342 = vmatpush3.bf16.msra.mxu1 %v11815_v37 }
0x2697   :  { %v6367_v62 = vld [vmem:[#allocation2 + $0xe] sm:$0xff]  ;;  %10343 = vmatprep.subr.bf16.mxu1 %v11816_v41 }
0x2698   :  { %10334 = vmatpush3.bf16.msra.mxu0 %v11813_v46  ;;  %v6363_v28 = vld [vmem:[#allocation2 + $0xa] sm:$0xff] }
0x2699   :  { %v6370_v58 = vld [vmem:[#allocation2 + $0x46] sm:$0xff]  ;;  %v6374_v55 = vld [vmem:[#allocation2 + $0x4e] sm:$0xff] }
0x269a   :  { %v11342_v44 = vpack.i.bf16 %v6370_v58, %v6369_v43  ;;  %v6366_v48 = vld [vmem:[#allocation2 + $0x42] sm:$0xff]  ;;  %v6372_v50 = vld [vmem:[#allocation2 + $0x4a] sm:$0xff]  ;;  %v11367_v60 = vpack.i.bf16 %v6374_v55, %v6370_v58  ;;  %10344 = vmatpush3.bf16.msra.mxu1 %v11816_v41 }
0x269b   :  { %v6368_v2 = vld [vmem:[#allocation2 + $0x16] sm:$0xff]  ;;  %v11347_v54 = vpack.i.bf16 %v6372_v50, %v6366_v48  ;;  %v6373_v57 = vld [vmem:[#allocation2 + $0x1e] sm:$0xff]  ;;  %10345 = vmatprep.subr.bf16.mxu1 %v11817_v42 }
0x269c   :  { %11343 = vrot.lane.b32.xlu1 %v11342_v44, %s11880_s12  ;;  %v11352_v3 = vpack.i.bf16 %v6368_v2, %v6367_v62  ;;  %v6364_v52 = vld [vmem:[#allocation2 + $0x12] sm:$0xff]  ;;  %v6371_v53 = vld [vmem:[#allocation2 + $0x1a] sm:$0xff]  ;;  %v11362_v61 = vpack.i.bf16 %v6373_v57, %v6368_v2  ;;  %v9168_v44 = vld [vmem:[%s14409_s3 + $0x71] ss:$0 sm:$0xff] }
0x269d   :  { %v11357_v56 = vpack.i.bf16 %v6371_v53, %v6364_v52 }
0x269e   :  { %11353 = vrot.lane.b32.xlu0 %v11352_v3, %s11880_s12  ;;  %10346 = vmatpush3.bf16.msra.mxu1 %v11817_v42 }
0x26a0   :  { %11348 = vrot.lane.b32.xlu1 %v11347_v54, %s11881_s15 }
0x26a2   :  { %11358 = vrot.lane.b32.xlu0 %v11357_v56, %s11881_s15 }
0x26a4   :  { %11368 = vrot.lane.b32.xlu1 %v11367_v60, %s11882_s16 }
0x26a6   :  { %11363 = vrot.lane.b32.xlu0 %v11362_v61, %s11882_s16 }
0x270e   :  { %v11344_v0 = vpop.permute.xlu1 %11343 }
0x270f   :  { %v11346_v5 = vunpack.i.h.bf16 %v11344_v0  ;;  %v11345_v6 = vunpack.i.l.bf16 %v11344_v0 }
0x2710   :  { %v11354_v1 = vpop.permute.xlu0 %11353 }
0x2711   :  { %v11356_v7 = vunpack.i.h.bf16 %v11354_v1  ;;  %v11355_v8 = vunpack.i.l.bf16 %v11354_v1  ;;  %v6423_v29 = vsel %vm30_vm0, %v6365_v27, %v11345_v6  ;;  %v6424_v45 = vsel %vm30_vm0, %v6366_v48, %v11346_v5  ;;  %v9170_v48 = vld [vmem:[%s14409_s3 + $0x72] ss:$0 sm:$0xff] }
0x2712   :  { %v11349_v4 = vpop.permute.xlu1 %11348 }
0x2713   :  { %v11351_v10 = vunpack.i.h.bf16 %v11349_v4  ;;  %v11350_v11 = vunpack.i.l.bf16 %v11349_v4  ;;  %v6421_v32 = vsel %vm30_vm0, %v6363_v28, %v11355_v8  ;;  %v6422_v34 = vsel %vm30_vm0, %v6364_v52, %v11356_v7  ;;  %v11818_v4 = vld [vmem:[%s14407_s2 + $0x758] sm:$0xff]   ;;  %v11819_v8 = vld [vmem:[%s14407_s2 + $0x750] sm:$0xff]  }
0x2714   :  { %v11359_v9 = vpop.permute.xlu0 %11358  ;;  %10347 = vmatprep.subr.bf16.mxu1 %v11818_v4 }
0x2715   :  { %v11361_v15 = vunpack.i.h.bf16 %v11359_v9  ;;  %v11360_v23 = vunpack.i.l.bf16 %v11359_v9  ;;  %v6427_v17 = vsel %vm143_vm1, %v6423_v29, %v11350_v11  ;;  %v6428_v59 = vsel %vm143_vm1, %v6424_v45, %v11351_v10  ;;  %10348 = vmatpush3.bf16.msra.mxu1 %v11818_v4  ;;  %v11820_v9 = vld [vmem:[%s14407_s2 + $0x748] sm:$0xff]  }
0x2716   :  { %v11369_v24 = vpop.permute.xlu1 %11368  ;;  %10349 = vmatprep.subr.bf16.mxu1 %v11819_v8 }
0x2717   :  { %v11371_v22 = vunpack.i.h.bf16 %v11369_v24  ;;  %v11370_v26 = vunpack.i.l.bf16 %v11369_v24  ;;  %v6425_v38 = vsel %vm143_vm1, %v6421_v32, %v11360_v23  ;;  %v6426_v30 = vsel %vm143_vm1, %v6422_v34, %v11361_v15  ;;  %v11821_v24 = vld [vmem:[%s14407_s2 + $0x740] sm:$0xff]  }
0x2718   :  { %v11364_v16 = vpop.permute.xlu0 %11363 }
0x2719   :  { %v11366_v18 = vunpack.i.h.bf16 %v11364_v16  ;;  %v11365_v21 = vunpack.i.l.bf16 %v11364_v16  ;;  %v6431_v63 = vsel %vm148_vm2, %v6427_v17, %v11370_v26  ;;  %v6432_v12 = vsel %vm148_vm2, %v6428_v59, %v11371_v22  ;;  %10350 = vmatpush3.bf16.msra.mxu1 %v11819_v8  ;;  %v11825_v8 = vld [vmem:[%s14407_s2 + $0x7a0] sm:$0xff]  }
0x271a   :  { %v6434_v40 = vpack.c.bf16 %v6432_v12, %v6431_v63  ;;  %10351 = vmatprep.subr.bf16.mxu1 %v11820_v9 }
0x271b   :  { %v6429_v39 = vsel %vm148_vm2, %v6425_v38, %v11365_v21  ;;  %v6430_v25 = vsel %vm148_vm2, %v6426_v30, %v11366_v18 }
0x271c   :  { %v6433_v51 = vpack.c.bf16 %v6430_v25, %v6429_v39 }
0x271d   :  { %10352 = vmatpush3.bf16.msra.mxu1 %v11820_v9  ;;  %v9188_v9 = vld [vmem:[%s14409_s3 + $0x74] ss:$0 sm:$0xff] }
0x271e   :  { %10335 = vmatprep.mubr.bf16.mxu0 %v6433_v51  ;;  %10353 = vmatprep.subr.bf16.mxu1 %v11821_v24 }
0x271f   :  { %10336 = vmatmul.mubr.bf16.vlgmr.msra.gmra.mxu0 %v6434_v40 }
0x2721   :  { %10354 = vmatpush3.bf16.msra.mxu1 %v11821_v24 }
0x27df   :  { %v10337_v43 = vpop.f32.mrf.mxu0 }
0x27e0   :  { %v6549_v58 = vadd.f32 %v10337_v43, %v9158_v49 }
0x27e1   :  { %v6540_v62 = vpop.f32.mrf.mxu0 }
0x27e2   :  { %v6557_v46 = vmax.f32 %v6549_v58, 0.0  ;;  %v6541_v2 = vadd.f32 %v9158_v49, %v6540_v62 }
0x27e3   :  { %v10338_v50 = vpop.f32.mrf.mxu0 }
0x27e4   :  { %v6566_v3 = vmul.f32 %v9168_v44, %v6557_v46  ;;  %v6555_v52 = vmax.f32 %v6541_v2, 0.0  ;;  %v6552_v53 = vadd.f32 %v10338_v50, %v9158_v49 }
0x27e5   :  { %v6543_v54 = vpop.f32.mrf.mxu0 }
0x27e6   :  { %v6575_v55 = vadd.f32 %v9170_v48, %v6566_v3  ;;  %v6564_v56 = vmul.f32 %v9168_v44, %v6555_v52  ;;  %v6558_v57 = vmax.f32 %v6552_v53, 0.0  ;;  %v6544_v60 = vadd.f32 %v9158_v49, %v6543_v54 }
0x27e8   :  { %6579 = vst.msk [vmem:[#allocation2 + $0x40] sm:$0xff] %vm30_vm0, %v6575_v55  ;;  %v6573_v61 = vadd.f32 %v9170_v48, %v6564_v56  ;;  %v6567_v0 = vmul.f32 %v9168_v44, %v6558_v57  ;;  %v6556_v1 = vmax.f32 %v6544_v60, 0.0 }
0x27ea   :  { %6577 = vst.msk [vmem:[#allocation2 + $0x10] sm:$0xff] %vm30_vm0, %v6573_v61  ;;  %v6576_v5 = vadd.f32 %v9170_v48, %v6567_v0  ;;  %v6565_v6 = vmul.f32 %v9168_v44, %v6556_v1 }
0x27ec   :  { %6580 = vst.msk [vmem:[#allocation2 + $0x48] sm:$0xff] %vm30_vm0, %v6576_v5  ;;  %v6574_v7 = vadd.f32 %v9170_v48, %v6565_v6  ;;  %v11822_v5 = vld [vmem:[%s14407_s2 + $0x7b8] sm:$0xff]   ;;  %v11823_v6 = vld [vmem:[%s14407_s2 + $0x7b0] sm:$0xff]  }
0x27ed   :  { %10359 = vmatprep.subr.bf16.mxu0 %v11822_v5 }
0x27ee   :  { %6578 = vst.msk [vmem:[#allocation2 + $0x18] sm:$0xff] %vm30_vm0, %v6574_v7  ;;  %10360 = vmatpush3.bf16.msra.mxu0 %v11822_v5  ;;  %v11824_v7 = vld [vmem:[%s14407_s2 + $0x7a8] sm:$0xff]  }
0x27ef   :  { %v6587_v10 = vld [vmem:[#allocation2 + $0x3e] sm:$0xff]  ;;  %10361 = vmatprep.subr.bf16.mxu0 %v11823_v6 }
0x27f0   :  { %v6583_v49 = vld [vmem:[#allocation2 + $0x3a] sm:$0xff] }
0x27f1   :  { %v6585_v23 = vld [vmem:[#allocation2 + $0xe] sm:$0xff] }
0x27f2   :  { %v6581_v43 = vld [vmem:[#allocation2 + $0xa] sm:$0xff]  ;;  %10362 = vmatpush3.bf16.msra.mxu0 %v11823_v6  ;;  %v14022_v6 = vld [vmem:[#allocation2 + $0x34] sm:$0xff] }
0x27f3   :  { %v6588_v11 = vld [vmem:[#allocation2 + $0x46] sm:$0xff]  ;;  %v6592_v34 = vld [vmem:[#allocation2 + $0x4e] sm:$0xff]  ;;  %10363 = vmatprep.subr.bf16.mxu0 %v11824_v7 }
0x27f4   :  { %v11372_v15 = vpack.i.bf16 %v6588_v11, %v6587_v10  ;;  %v6584_v28 = vld [vmem:[#allocation2 + $0x42] sm:$0xff]  ;;  %v6590_v22 = vld [vmem:[#allocation2 + $0x4a] sm:$0xff]  ;;  %v11397_v59 = vpack.i.bf16 %v6592_v34, %v6588_v11 }
0x27f5   :  { %v6586_v27 = vld [vmem:[#allocation2 + $0x16] sm:$0xff]  ;;  %v11377_v32 = vpack.i.bf16 %v6590_v22, %v6584_v28  ;;  %v6591_v17 = vld [vmem:[#allocation2 + $0x1e] sm:$0xff] }
0x27f6   :  { %11373 = vrot.lane.b32.xlu1 %v11372_v15, %s11880_s12  ;;  %v11382_v26 = vpack.i.bf16 %v6586_v27, %v6585_v23  ;;  %v6582_v29 = vld [vmem:[#allocation2 + $0x12] sm:$0xff]  ;;  %v6589_v45 = vld [vmem:[#allocation2 + $0x1a] sm:$0xff]  ;;  %v11392_v18 = vpack.i.bf16 %v6591_v17, %v6586_v27  ;;  %10364 = vmatpush3.bf16.msra.mxu0 %v11824_v7  ;;  %v14024_v7 = vld [vmem:[#allocation2 + $0x4] sm:$0xff] }
0x27f7   :  { %v11387_v16 = vpack.i.bf16 %v6589_v45, %v6582_v29  ;;  %10365 = vmatprep.subr.bf16.mxu0 %v11825_v8  ;;  %v9198_v15 = vld [vmem:[%s14409_s3 + $0x75] ss:$0 sm:$0xff] }
0x27f8   :  { %11383 = vrot.lane.b32.xlu0 %v11382_v26, %s11880_s12 }
0x27fa   :  { %11378 = vrot.lane.b32.xlu1 %v11377_v32, %s11881_s15  ;;  %10366 = vmatpush3.bf16.msra.mxu0 %v11825_v8 }
0x27fc   :  { %11388 = vrot.lane.b32.xlu0 %v11387_v16, %s11881_s15 }
0x27fe   :  { %11398 = vrot.lane.b32.xlu1 %v11397_v59, %s11882_s16 }
0x2800   :  { %11393 = vrot.lane.b32.xlu0 %v11392_v18, %s11882_s16 }
0x2868   :  { %v11374_v21 = vpop.permute.xlu1 %11373 }
0x2869   :  { %v11376_v63 = vunpack.i.h.bf16 %v11374_v21  ;;  %v11375_v12 = vunpack.i.l.bf16 %v11374_v21 }
0x286a   :  { %v11384_v38 = vpop.permute.xlu0 %11383 }
0x286b   :  { %v11386_v39 = vunpack.i.h.bf16 %v11384_v38  ;;  %v11385_v25 = vunpack.i.l.bf16 %v11384_v38  ;;  %v6641_v62 = vsel %vm30_vm0, %v6583_v49, %v11375_v12  ;;  %v6642_v46 = vsel %vm30_vm0, %v6584_v28, %v11376_v63  ;;  %v9200_v28 = vld [vmem:[%s14409_s3 + $0x76] ss:$0 sm:$0xff] }
0x286c   :  { %v11379_v30 = vpop.permute.xlu1 %11378 }
0x286d   :  { %v11381_v40 = vunpack.i.h.bf16 %v11379_v30  ;;  %v11380_v47 = vunpack.i.l.bf16 %v11379_v30  ;;  %v6639_v2 = vsel %vm30_vm0, %v6581_v43, %v11385_v25  ;;  %v6640_v48 = vsel %vm30_vm0, %v6582_v29, %v11386_v39 }
0x286e   :  { %v11389_v51 = vpop.permute.xlu0 %11388 }
0x286f   :  { %v11391_v37 = vunpack.i.h.bf16 %v11389_v51  ;;  %v11390_v41 = vunpack.i.l.bf16 %v11389_v51  ;;  %v6645_v3 = vsel %vm143_vm1, %v6641_v62, %v11380_v47  ;;  %v6646_v52 = vsel %vm143_vm1, %v6642_v46, %v11381_v40 }
0x2870   :  { %v11399_v42 = vpop.permute.xlu1 %11398 }
0x2871   :  { %v11401_v58 = vunpack.i.h.bf16 %v11399_v42  ;;  %v11400_v44 = vunpack.i.l.bf16 %v11399_v42  ;;  %v6643_v55 = vsel %vm143_vm1, %v6639_v2, %v11390_v41  ;;  %v6644_v56 = vsel %vm143_vm1, %v6640_v48, %v11391_v37  ;;  %v11827_v41 = vld [vmem:[%s14407_s2 + $0x790] sm:$0xff]  }
0x2872   :  { %v11394_v50 = vpop.permute.xlu0 %11393 }
0x2873   :  { %v11396_v53 = vunpack.i.h.bf16 %v11394_v50  ;;  %v11395_v54 = vunpack.i.l.bf16 %v11394_v50  ;;  %v6649_v57 = vsel %vm148_vm2, %v6645_v3, %v11400_v44  ;;  %v6650_v60 = vsel %vm148_vm2, %v6646_v52, %v11401_v58  ;;  %v11829_v58 = vld [vmem:[%s14407_s2 + $0x780] sm:$0xff]   ;;  %v14012_v3 = vld [vmem:[#allocation2 + $0x54] sm:$0xff] }
0x2874   :  { %v6652_v4 = vpack.c.bf16 %v6650_v60, %v6649_v57 }
0x2875   :  { %v6647_v61 = vsel %vm148_vm2, %v6643_v55, %v11395_v54  ;;  %v6648_v0 = vsel %vm148_vm2, %v6644_v56, %v11396_v53  ;;  %v14015_v53 = vld [vmem:[#allocation2 + $0x24] sm:$0xff] }
0x2876   :  { %v6651_v1 = vpack.c.bf16 %v6648_v0, %v6647_v61 }
0x2878   :  { %10355 = vmatprep.mubr.bf16.mxu1 %v6651_v1 }
0x2879   :  { %10356 = vmatmul.mubr.bf16.vlgmr.msra.gmra.mxu1 %v6652_v4 }
0x2939   :  { %v10357_v10 = vpop.f32.mrf.mxu1 }
0x293a   :  { %v6767_v11 = vadd.f32 %v10357_v10, %v9188_v9 }
0x293b   :  { %v6758_v23 = vpop.f32.mrf.mxu1 }
0x293c   :  { %v6775_v24 = vmax.f32 %v6767_v11, 0.0  ;;  %v6759_v27 = vadd.f32 %v9188_v9, %v6758_v23 }
0x293d   :  { %v10358_v22 = vpop.f32.mrf.mxu1 }
0x293e   :  { %v6784_v26 = vmul.f32 %v9198_v15, %v6775_v24  ;;  %v6773_v29 = vmax.f32 %v6759_v27, 0.0  ;;  %v6770_v45 = vadd.f32 %v10358_v22, %v9188_v9 }
0x293f   :  { %v6761_v32 = vpop.f32.mrf.mxu1 }
0x2940   :  { %v6793_v34 = vadd.f32 %v9200_v28, %v6784_v26  ;;  %v6782_v16 = vmul.f32 %v9198_v15, %v6773_v29  ;;  %v6776_v17 = vmax.f32 %v6770_v45, 0.0  ;;  %v6762_v59 = vadd.f32 %v9188_v9, %v6761_v32 }
0x2942   :  { %v6797_v18 = vadd.f32 %v6793_v34, %v13846_v35  ;;  %v6791_v21 = vadd.f32 %v9200_v28, %v6782_v16  ;;  %v6785_v38 = vmul.f32 %v9198_v15, %v6776_v17  ;;  %v6774_v30 = vmax.f32 %v6762_v59, 0.0  ;;  %v11826_v35 = vld [vmem:[%s14407_s2 + $0x798] sm:$0xff]  }
0x2943   :  { %10367 = vmatprep.subr.bf16.mxu0 %v11826_v35 }
0x2944   :  { %v13976_v63 = vmul.f32 %v6797_v18, %v11969_v13  ;;  %v6795_v12 = vadd.f32 %v6791_v21, %v13852_v33  ;;  %v6794_v39 = vadd.f32 %v9200_v28, %v6785_v38  ;;  %v6783_v25 = vmul.f32 %v9198_v15, %v6774_v30  ;;  %10368 = vmatpush3.bf16.msra.mxu0 %v11826_v35  ;;  %v11833_v35 = vld [vmem:[%s14407_s2 + $0x7e0] sm:$0xff]  }
0x2945   :  { %10369 = vmatprep.subr.bf16.mxu0 %v11827_v41 }
0x2946   :  { %6805 = vst.msk [vmem:[#allocation2 + $0x40] sm:$0xff] %vm30_vm0, %v13976_v63  ;;  %v13982_v51 = vmul.f32 %v6795_v12, %v11971_v14  ;;  %v6798_v40 = vadd.f32 %v6794_v39, %v13861_v31  ;;  %v6792_v47 = vadd.f32 %v9200_v28, %v6783_v25  ;;  %v11830_v25 = vld [vmem:[%s14407_s2 + $0x7f8] sm:$0xff]  }
0x2947   :  { %10379 = vmatprep.subr.bf16.mxu1 %v11830_v25 }
0x2948   :  { %6803 = vst.msk [vmem:[#allocation2 + $0x10] sm:$0xff] %vm30_vm0, %v13982_v51  ;;  %v13991_v33 = vmul.f32 %v6798_v40, %v11989_v19  ;;  %v6796_v37 = vadd.f32 %v6792_v47, %v13867_v36  ;;  %10370 = vmatpush3.bf16.msra.mxu0 %v11827_v41  ;;  %v11828_v36 = vld [vmem:[%s14407_s2 + $0x788] sm:$0xff]   ;;  %v11831_v40 = vld [vmem:[%s14407_s2 + $0x7f0] sm:$0xff]   ;;  %10380 = vmatpush3.bf16.msra.mxu1 %v11830_v25 }
0x2949   :  { %10371 = vmatprep.subr.bf16.mxu0 %v11828_v36  ;;  %10381 = vmatprep.subr.bf16.mxu1 %v11831_v40  ;;  %v11832_v47 = vld [vmem:[%s14407_s2 + $0x7e8] sm:$0xff]  }
0x294a   :  { %6806 = vst.msk [vmem:[#allocation2 + $0x48] sm:$0xff] %vm30_vm0, %v13991_v33  ;;  %v13997_v31 = vmul.f32 %v6796_v37, %v11991_v20  ;;  %v9218_v37 = vld [vmem:[%s14409_s3 + $0x78] ss:$0 sm:$0xff] }
0x294c   :  { %6804 = vst.msk [vmem:[#allocation2 + $0x18] sm:$0xff] %vm30_vm0, %v13997_v31  ;;  %10372 = vmatpush3.bf16.msra.mxu0 %v11828_v36  ;;  %10382 = vmatpush3.bf16.msra.mxu1 %v11831_v40 }
0x294d   :  { %v6810_v42 = vld [vmem:[#allocation2 + $0x3c] sm:$0xff]  ;;  %10373 = vmatprep.subr.bf16.mxu0 %v11829_v58  ;;  %10383 = vmatprep.subr.bf16.mxu1 %v11832_v47 }
0x294f   :  { %v6808_v44 = vld [vmem:[#allocation2 + $0xc] sm:$0xff] }
0x2950   :  { %10374 = vmatpush3.bf16.msra.mxu0 %v11829_v58  ;;  %10384 = vmatpush3.bf16.msra.mxu1 %v11832_v47 }
0x2951   :  { %v6812_v49 = vld [vmem:[#allocation2 + $0x44] sm:$0xff]  ;;  %v6814_v46 = vld [vmem:[#allocation2 + $0x4c] sm:$0xff]  ;;  %10385 = vmatprep.subr.bf16.mxu1 %v11833_v35 }
0x2952   :  { %v11402_v43 = vpack.i.bf16 %v6812_v49, %v6810_v42  ;;  %v11407_v50 = vpack.i.bf16 %v6814_v46, %v6812_v49  ;;  %v11427_v54 = vpack.i.bf16 %v14012_v3, %v6814_v46 }
0x2953   :  { %v6811_v62 = vld [vmem:[#allocation2 + $0x14] sm:$0xff]  ;;  %v6813_v48 = vld [vmem:[#allocation2 + $0x1c] sm:$0xff] }
0x2954   :  { %11403 = vrot.lane.b32.xlu1 %v11402_v43, %s11880_s12  ;;  %v11412_v2 = vpack.i.bf16 %v6811_v62, %v6808_v44  ;;  %v11417_v52 = vpack.i.bf16 %v6813_v48, %v6811_v62  ;;  %v11422_v55 = vpack.i.bf16 %v14015_v53, %v6813_v48  ;;  %10386 = vmatpush3.bf16.msra.mxu1 %v11833_v35 }
0x2956   :  { %11413 = vrot.lane.b32.xlu0 %v11412_v2, %s11880_s12 }
0x2958   :  { %11408 = vrot.lane.b32.xlu1 %v11407_v50, %s11881_s15 }
0x295a   :  { %11418 = vrot.lane.b32.xlu0 %v11417_v52, %s11881_s15 }
0x295c   :  { %11428 = vrot.lane.b32.xlu1 %v11427_v54, %s11882_s16 }
0x295e   :  { %11423 = vrot.lane.b32.xlu0 %v11422_v55, %s11882_s16 }
0x29c6   :  { %v11404_v56 = vpop.permute.xlu1 %11403 }
0x29c7   :  { %v11406_v61 = vunpack.i.h.bf16 %v11404_v56  ;;  %v11405_v0 = vunpack.i.l.bf16 %v11404_v56 }
0x29c8   :  { %v11414_v57 = vpop.permute.xlu0 %11413 }
0x29c9   :  { %v11416_v1 = vunpack.i.h.bf16 %v11414_v57  ;;  %v11415_v4 = vunpack.i.l.bf16 %v11414_v57  ;;  %v6864_v27 = vsel %vm30_vm0, %v6810_v42, %v11406_v61  ;;  %v6863_v28 = vsel %vm30_vm0, %v14022_v6, %v11405_v0  ;;  %v9228_v42 = vld [vmem:[%s14409_s3 + $0x79] ss:$0 sm:$0xff] }
0x29ca   :  { %v11409_v60 = vpop.permute.xlu1 %11408  ;;  %v11834_v0 = vld [vmem:[%s14407_s2 + $0x7d8] sm:$0xff]  }
0x29cb   :  { %v11411_v8 = vunpack.i.h.bf16 %v11409_v60  ;;  %v11410_v9 = vunpack.i.l.bf16 %v11409_v60  ;;  %v6862_v22 = vsel %vm30_vm0, %v6808_v44, %v11416_v1  ;;  %v6861_v26 = vsel %vm30_vm0, %v14024_v7, %v11415_v4  ;;  %v9230_v44 = vld [vmem:[%s14409_s3 + $0x7a] ss:$0 sm:$0xff]  ;;  %10387 = vmatprep.subr.bf16.mxu1 %v11834_v0 }
0x29cc   :  { %v11419_v5 = vpop.permute.xlu0 %11418  ;;  %10388 = vmatpush3.bf16.msra.mxu1 %v11834_v0 }
0x29cd   :  { %v11421_v10 = vunpack.i.h.bf16 %v11419_v5  ;;  %v11420_v11 = vunpack.i.l.bf16 %v11419_v5  ;;  %v6867_v45 = vsel %vm143_vm1, %v6863_v28, %v11410_v9  ;;  %v6868_v32 = vsel %vm143_vm1, %v6864_v27, %v11411_v8  ;;  %v11835_v8 = vld [vmem:[%s14407_s2 + $0x7d0] sm:$0xff]   ;;  %v11836_v9 = vld [vmem:[%s14407_s2 + $0x7c8] sm:$0xff]  }
0x29ce   :  { %v11429_v15 = vpop.permute.xlu1 %11428  ;;  %10389 = vmatprep.subr.bf16.mxu1 %v11835_v8 }
0x29cf   :  { %v11431_v23 = vunpack.i.h.bf16 %v11429_v15  ;;  %v11430_v24 = vunpack.i.l.bf16 %v11429_v15  ;;  %v6865_v17 = vsel %vm143_vm1, %v6861_v26, %v11420_v11  ;;  %v6866_v59 = vsel %vm143_vm1, %v6862_v22, %v11421_v10 }
0x29d0   :  { %v11424_v29 = vpop.permute.xlu0 %11423  ;;  %10390 = vmatpush3.bf16.msra.mxu1 %v11835_v8 }
0x29d1   :  { %v11426_v34 = vunpack.i.h.bf16 %v11424_v29  ;;  %v11425_v16 = vunpack.i.l.bf16 %v11424_v29  ;;  %v6871_v18 = vsel %vm148_vm2, %v6867_v45, %v11430_v24  ;;  %v6872_v21 = vsel %vm148_vm2, %v6868_v32, %v11431_v23  ;;  %10391 = vmatprep.subr.bf16.mxu1 %v11836_v9  ;;  %v11837_v23 = vld [vmem:[%s14407_s2 + $0x7c0] sm:$0xff]  }
0x29d2   :  { %v6874_v39 = vpack.c.bf16 %v6872_v21, %v6871_v18 }
0x29d3   :  { %v6869_v38 = vsel %vm148_vm2, %v6865_v17, %v11425_v16  ;;  %v6870_v30 = vsel %vm148_vm2, %v6866_v59, %v11426_v34 }
0x29d4   :  { %v6873_v12 = vpack.c.bf16 %v6870_v30, %v6869_v38  ;;  %10392 = vmatpush3.bf16.msra.mxu1 %v11836_v9 }
0x29d5   :  { %10393 = vmatprep.subr.bf16.mxu1 %v11837_v23 }
0x29d6   :  { %10375 = vmatprep.mubr.bf16.mxu0 %v6873_v12 }
0x29d7   :  { %10376 = vmatmul.mubr.bf16.vlgmr.msra.gmra.mxu0 %v6874_v39 }
0x29d8   :  { %10394 = vmatpush3.bf16.msra.mxu1 %v11837_v23 }
0x2a97   :  { %v10377_v41 = vpop.f32.mrf.mxu0 }
0x2a98   :  { %v6989_v36 = vadd.f32 %v10377_v41, %v9218_v37 }
0x2a99   :  { %v6980_v49 = vpop.f32.mrf.mxu0 }
0x2a9a   :  { %v6997_v43 = vmax.f32 %v6989_v36, 0.0  ;;  %v6981_v58 = vadd.f32 %v9218_v37, %v6980_v49 }
0x2a9b   :  { %v10378_v62 = vpop.f32.mrf.mxu0 }
0x2a9c   :  { %v7006_v46 = vmul.f32 %v9228_v42, %v6997_v43  ;;  %v6995_v2 = vmax.f32 %v6981_v58, 0.0  ;;  %v6992_v48 = vadd.f32 %v10378_v62, %v9218_v37 }
0x2a9d   :  { %v6983_v50 = vpop.f32.mrf.mxu0 }
0x2a9e   :  { %v7015_v52 = vadd.f32 %v9230_v44, %v7006_v46  ;;  %v7004_v54 = vmul.f32 %v9228_v42, %v6995_v2  ;;  %v6998_v55 = vmax.f32 %v6992_v48, 0.0  ;;  %v6984_v56 = vadd.f32 %v9218_v37, %v6983_v50 }
0x2aa0   :  { %7019 = vst.msk [vmem:[#allocation2 + $0x40] sm:$0xff] %vm30_vm0, %v7015_v52  ;;  %v7013_v57 = vadd.f32 %v9230_v44, %v7004_v54  ;;  %v7007_v60 = vmul.f32 %v9228_v42, %v6998_v55  ;;  %v6996_v61 = vmax.f32 %v6984_v56, 0.0  ;;  %v11838_v55 = vld [vmem:[%s14407_s2 + $0x838] sm:$0xff]   ;;  %v11839_v56 = vld [vmem:[%s14407_s2 + $0x830] sm:$0xff]  }
0x2aa1   :  { %10399 = vmatprep.subr.bf16.mxu0 %v11838_v55 }
0x2aa2   :  { %7017 = vst.msk [vmem:[#allocation2 + $0x10] sm:$0xff] %vm30_vm0, %v7013_v57  ;;  %v7016_v1 = vadd.f32 %v9230_v44, %v7007_v60  ;;  %v7005_v4 = vmul.f32 %v9228_v42, %v6996_v61  ;;  %10400 = vmatpush3.bf16.msra.mxu0 %v11838_v55  ;;  %v11840_v57 = vld [vmem:[%s14407_s2 + $0x828] sm:$0xff]   ;;  %v11841_v60 = vld [vmem:[%s14407_s2 + $0x820] sm:$0xff]   ;;  %v9248_v61 = vld [vmem:[%s14409_s3 + $0x7c] ss:$0 sm:$0xff] }
0x2aa3   :  { %10401 = vmatprep.subr.bf16.mxu0 %v11839_v56 }
0x2aa4   :  { %7020 = vst.msk [vmem:[#allocation2 + $0x48] sm:$0xff] %vm30_vm0, %v7016_v1  ;;  %v7014_v5 = vadd.f32 %v9230_v44, %v7005_v4  ;;  %v9258_v4 = vld [vmem:[%s14409_s3 + $0x7d] ss:$0 sm:$0xff] }
0x2aa6   :  { %7018 = vst.msk [vmem:[#allocation2 + $0x18] sm:$0xff] %vm30_vm0, %v7014_v5  ;;  %10402 = vmatpush3.bf16.msra.mxu0 %v11839_v56 }
0x2aa7   :  { %v7024_v10 = vld [vmem:[#allocation2 + $0x3c] sm:$0xff]  ;;  %10403 = vmatprep.subr.bf16.mxu0 %v11840_v57 }
0x2aa9   :  { %v7022_v24 = vld [vmem:[#allocation2 + $0xc] sm:$0xff] }
0x2aaa   :  { %10404 = vmatpush3.bf16.msra.mxu0 %v11840_v57 }
0x2aab   :  { %v7026_v11 = vld [vmem:[#allocation2 + $0x44] sm:$0xff]  ;;  %v7028_v28 = vld [vmem:[#allocation2 + $0x4c] sm:$0xff]  ;;  %10405 = vmatprep.subr.bf16.mxu0 %v11841_v60 }
0x2aac   :  { %v11432_v15 = vpack.i.bf16 %v7026_v11, %v7024_v10  ;;  %v11437_v29 = vpack.i.bf16 %v7028_v28, %v7026_v11  ;;  %v11457_v32 = vpack.i.bf16 %v14012_v3, %v7028_v28 }
0x2aad   :  { %v7025_v27 = vld [vmem:[#allocation2 + $0x14] sm:$0xff]  ;;  %v7027_v26 = vld [vmem:[#allocation2 + $0x1c] sm:$0xff] }
0x2aae   :  { %11433 = vrot.lane.b32.xlu1 %v11432_v15, %s11880_s12  ;;  %v11442_v22 = vpack.i.bf16 %v7025_v27, %v7022_v24  ;;  %v11447_v45 = vpack.i.bf16 %v7027_v26, %v7025_v27  ;;  %v11452_v34 = vpack.i.bf16 %v14015_v53, %v7027_v26  ;;  %10406 = vmatpush3.bf16.msra.mxu0 %v11841_v60 }
0x2ab0   :  { %11443 = vrot.lane.b32.xlu0 %v11442_v22, %s11880_s12 }
0x2ab2   :  { %11438 = vrot.lane.b32.xlu1 %v11437_v29, %s11881_s15 }
0x2ab4   :  { %11448 = vrot.lane.b32.xlu0 %v11447_v45, %s11881_s15 }
0x2ab6   :  { %11458 = vrot.lane.b32.xlu1 %v11457_v32, %s11882_s16 }
0x2ab8   :  { %11453 = vrot.lane.b32.xlu0 %v11452_v34, %s11882_s16 }
0x2b20   :  { %v11434_v16 = vpop.permute.xlu1 %11433 }
0x2b21   :  { %v11436_v18 = vunpack.i.h.bf16 %v11434_v16  ;;  %v11435_v21 = vunpack.i.l.bf16 %v11434_v16 }
0x2b22   :  { %v11444_v17 = vpop.permute.xlu0 %11443 }
0x2b23   :  { %v11446_v38 = vunpack.i.h.bf16 %v11444_v17  ;;  %v11445_v30 = vunpack.i.l.bf16 %v11444_v17  ;;  %v7078_v41 = vsel %vm30_vm0, %v7024_v10, %v11436_v18  ;;  %v7077_v53 = vsel %vm30_vm0, %v14022_v6, %v11435_v21  ;;  %v9260_v10 = vld [vmem:[%s14409_s3 + $0x7e] ss:$0 sm:$0xff] }
0x2b24   :  { %v11439_v59 = vpop.permute.xlu1 %11438 }
0x2b25   :  { %v11441_v39 = vunpack.i.h.bf16 %v11439_v59  ;;  %v11440_v25 = vunpack.i.l.bf16 %v11439_v59  ;;  %v7076_v36 = vsel %vm30_vm0, %v7022_v24, %v11446_v38  ;;  %v7075_v42 = vsel %vm30_vm0, %v14024_v7, %v11445_v30 }
0x2b26   :  { %v11449_v12 = vpop.permute.xlu0 %11448 }
0x2b27   :  { %v11451_v40 = vunpack.i.h.bf16 %v11449_v12  ;;  %v11450_v47 = vunpack.i.l.bf16 %v11449_v12  ;;  %v7081_v43 = vsel %vm143_vm1, %v7077_v53, %v11440_v25  ;;  %v7082_v58 = vsel %vm143_vm1, %v7078_v41, %v11441_v39  ;;  %v11843_v25 = vld [vmem:[%s14407_s2 + $0x810] sm:$0xff]  }
0x2b28   :  { %v11459_v35 = vpop.permute.xlu1 %11458 }
0x2b29   :  { %v11461_v3 = vunpack.i.h.bf16 %v11459_v35  ;;  %v11460_v37 = vunpack.i.l.bf16 %v11459_v35  ;;  %v7079_v46 = vsel %vm143_vm1, %v7075_v42, %v11450_v47  ;;  %v7080_v2 = vsel %vm143_vm1, %v7076_v36, %v11451_v40 }
0x2b2a   :  { %v11454_v49 = vpop.permute.xlu0 %11453 }
0x2b2b   :  { %v11456_v44 = vunpack.i.h.bf16 %v11454_v49  ;;  %v11455_v62 = vunpack.i.l.bf16 %v11454_v49  ;;  %v7085_v48 = vsel %vm148_vm2, %v7081_v43, %v11460_v37  ;;  %v7086_v6 = vsel %vm148_vm2, %v7082_v58, %v11461_v3  ;;  %v11845_v43 = vld [vmem:[%s14407_s2 + $0x800] sm:$0xff]  }
0x2b2c   :  { %v7088_v54 = vpack.c.bf16 %v7086_v6, %v7085_v48 }
0x2b2d   :  { %v7083_v50 = vsel %vm148_vm2, %v7079_v46, %v11455_v62  ;;  %v7084_v52 = vsel %vm148_vm2, %v7080_v2, %v11456_v44 }
0x2b2e   :  { %v7087_v7 = vpack.c.bf16 %v7084_v52, %v7083_v50 }
0x2b30   :  { %10395 = vmatprep.mubr.bf16.mxu1 %v7087_v7 }
0x2b31   :  { %10396 = vmatmul.mubr.bf16.vlgmr.msra.gmra.mxu1 %v7088_v54 }
0x2bf1   :  { %v10397_v0 = vpop.f32.mrf.mxu1 }
0x2bf2   :  { %v7203_v1 = vadd.f32 %v10397_v0, %v9248_v61 }
0x2bf3   :  { %v7194_v5 = vpop.f32.mrf.mxu1 }
0x2bf4   :  { %v7211_v8 = vmax.f32 %v7203_v1, 0.0  ;;  %v7195_v9 = vadd.f32 %v9248_v61, %v7194_v5 }
0x2bf5   :  { %v10398_v11 = vpop.f32.mrf.mxu1 }
0x2bf6   :  { %v7220_v15 = vmul.f32 %v9258_v4, %v7211_v8  ;;  %v7209_v23 = vmax.f32 %v7195_v9, 0.0  ;;  %v7206_v24 = vadd.f32 %v10398_v11, %v9248_v61 }
0x2bf7   :  { %v7197_v27 = vpop.f32.mrf.mxu1 }
0x2bf8   :  { %v7229_v28 = vadd.f32 %v9260_v10, %v7220_v15  ;;  %v7218_v22 = vmul.f32 %v9258_v4, %v7209_v23  ;;  %v7212_v26 = vmax.f32 %v7206_v24, 0.0  ;;  %v7198_v29 = vadd.f32 %v9248_v61, %v7197_v27 }
0x2bfa   :  { %v7233_v45 = vadd.f32 %v7229_v28, %v13976_v63  ;;  %v7227_v32 = vadd.f32 %v9260_v10, %v7218_v22  ;;  %v7221_v34 = vmul.f32 %v9258_v4, %v7212_v26  ;;  %v7210_v16 = vmax.f32 %v7198_v29, 0.0  ;;  %v11842_v63 = vld [vmem:[%s14407_s2 + $0x818] sm:$0xff]  }
0x2bfb   :  { %10407 = vmatprep.subr.bf16.mxu0 %v11842_v63 }
0x2bfc   :  { %v14122_v17 = vmul.f32 %v7233_v45, %v11969_v13  ;;  %v7231_v59 = vadd.f32 %v7227_v32, %v13982_v51  ;;  %v7230_v18 = vadd.f32 %v9260_v10, %v7221_v34  ;;  %v7219_v21 = vmul.f32 %v9258_v4, %v7210_v16  ;;  %10408 = vmatpush3.bf16.msra.mxu0 %v11842_v63 }
0x2bfd   :  { %10409 = vmatprep.subr.bf16.mxu0 %v11843_v25 }
0x2bfe   :  { %7241 = vst.msk [vmem:[#allocation2 + $0x40] sm:$0xff] %vm30_vm0, %v14122_v17  ;;  %v14128_v38 = vmul.f32 %v7231_v59, %v11971_v14  ;;  %v7234_v30 = vadd.f32 %v7230_v18, %v13991_v33  ;;  %v7228_v12 = vadd.f32 %v9260_v10, %v7219_v21 }
0x2c00   :  { %7239 = vst.msk [vmem:[#allocation2 + $0x10] sm:$0xff] %vm30_vm0, %v14128_v38  ;;  %v14137_v51 = vmul.f32 %v7234_v30, %v11989_v19  ;;  %v7232_v39 = vadd.f32 %v7228_v12, %v13997_v31  ;;  %10410 = vmatpush3.bf16.msra.mxu0 %v11843_v25  ;;  %v11844_v31 = vld [vmem:[%s14407_s2 + $0x808] sm:$0xff]  }
0x2c01   :  { %10411 = vmatprep.subr.bf16.mxu0 %v11844_v31 }
0x2c02   :  { %7242 = vst.msk [vmem:[#allocation2 + $0x48] sm:$0xff] %vm30_vm0, %v14137_v51  ;;  %v14143_v33 = vmul.f32 %v7232_v39, %v11991_v20 }
0x2c04   :  { %7240 = vst.msk [vmem:[#allocation2 + $0x18] sm:$0xff] %vm30_vm0, %v14143_v33  ;;  %10412 = vmatpush3.bf16.msra.mxu0 %v11844_v31  ;;  %v11846_v31 = vld [vmem:[%s14407_s2 + $0x878] sm:$0xff]  }
0x2c05   :  { %v7249_v40 = vld [vmem:[#allocation2 + $0x40] sm:$0xff]  ;;  %10413 = vmatprep.subr.bf16.mxu0 %v11845_v43  ;;  %10419 = vmatprep.subr.bf16.mxu1 %v11846_v31 }
0x2c06   :  { %v7245_v4 = vld [vmem:[#allocation2 + $0x3f] sm:$0xff]  ;;  %10420 = vmatpush3.bf16.msra.mxu1 %v11846_v31 }
0x2c07   :  { %v7247_v3 = vld [vmem:[#allocation2 + $0x10] sm:$0xff] }
0x2c08   :  { %10414 = vmatpush3.bf16.msra.mxu0 %v11845_v43  ;;  %v7243_v11 = vld [vmem:[#allocation2 + $0xf] sm:$0xff]  ;;  %v9290_v43 = vld [vmem:[%s14409_s3 + $0x82] ss:$0 sm:$0xff] }
0x2c09   :  { %v7250_v47 = vld [vmem:[#allocation2 + $0x48] sm:$0xff] }
0x2c0a   :  { %v11462_v35 = vpack.i.bf16 %v7250_v47, %v7249_v40  ;;  %v7253_v41 = vld [vmem:[#allocation2 + $0x41] sm:$0xff]  ;;  %v7254_v53 = vld [vmem:[#allocation2 + $0x49] sm:$0xff] }
0x2c0b   :  { %v7248_v37 = vld [vmem:[#allocation2 + $0x18] sm:$0xff]  ;;  %v11467_v58 = vpack.i.bf16 %v7254_v53, %v7253_v41  ;;  %v7257_v44 = vld [vmem:[#allocation2 + $0x42] sm:$0xff]  ;;  %v7258_v62 = vld [vmem:[#allocation2 + $0x4a] sm:$0xff] }
0x2c0c   :  { %11463 = vrot.lane.b32.xlu1 %v11462_v35, %s11880_s12  ;;  %v11472_v36 = vpack.i.bf16 %v7248_v37, %v7247_v3  ;;  %v7251_v42 = vld [vmem:[#allocation2 + $0x11] sm:$0xff]  ;;  %v7252_v49 = vld [vmem:[#allocation2 + $0x19] sm:$0xff]  ;;  %v11487_v6 = vpack.i.bf16 %v7258_v62, %v7257_v44  ;;  %v7246_v10 = vld [vmem:[#allocation2 + $0x47] sm:$0xff] }
0x2c0d   :  { %v11477_v46 = vpack.i.bf16 %v7252_v49, %v7251_v42  ;;  %v7255_v2 = vld [vmem:[#allocation2 + $0x12] sm:$0xff]  ;;  %v7256_v48 = vld [vmem:[#allocation2 + $0x1a] sm:$0xff]  ;;  %v11848_v47 = vld [vmem:[%s14407_s2 + $0x868] sm:$0xff]  }
0x2c0e   :  { %11473 = vrot.lane.b32.xlu0 %v11472_v36, %s11880_s12  ;;  %v11482_v50 = vpack.i.bf16 %v7256_v48, %v7255_v2  ;;  %v7244_v15 = vld [vmem:[#allocation2 + $0x17] sm:$0xff]  ;;  %v11849_v35 = vld [vmem:[%s14407_s2 + $0x860] sm:$0xff]  }
0x2c0f   :  { %v11847_v40 = vld [vmem:[%s14407_s2 + $0x870] sm:$0xff]   ;;  %v9278_v3 = vld [vmem:[%s14409_s3 + $0x80] ss:$0 sm:$0xff]  ;;  %v9288_v53 = vld [vmem:[%s14409_s3 + $0x81] ss:$0 sm:$0xff] }
0x2c10   :  { %11468 = vrot.lane.b32.xlu1 %v11467_v58, %s11881_s15  ;;  %10421 = vmatprep.subr.bf16.mxu1 %v11847_v40 }
0x2c11   :  { %10422 = vmatpush3.bf16.msra.mxu1 %v11847_v40 }
0x2c12   :  { %11478 = vrot.lane.b32.xlu0 %v11477_v46, %s11881_s15  ;;  %10423 = vmatprep.subr.bf16.mxu1 %v11848_v47 }
0x2c14   :  { %11488 = vrot.lane.b32.xlu1 %v11487_v6, %s11882_s16 }
0x2c15   :  { %10424 = vmatpush3.bf16.msra.mxu1 %v11848_v47 }
0x2c16   :  { %11483 = vrot.lane.b32.xlu0 %v11482_v50, %s11882_s16  ;;  %10425 = vmatprep.subr.bf16.mxu1 %v11849_v35 }
0x2c19   :  { %10426 = vmatpush3.bf16.msra.mxu1 %v11849_v35 }
0x2c7e   :  { %v11464_v52 = vpop.permute.xlu1 %11463 }
0x2c7f   :  { %v11466_v55 = vunpack.i.h.bf16 %v11464_v52  ;;  %v11465_v56 = vunpack.i.l.bf16 %v11464_v52 }
0x2c80   :  { %v11474_v7 = vpop.permute.xlu0 %11473 }
0x2c81   :  { %v11476_v57 = vunpack.i.h.bf16 %v11474_v7  ;;  %v11475_v60 = vunpack.i.l.bf16 %v11474_v7  ;;  %v7309_v27 = vsel %vm30_vm0, %v7245_v4, %v11465_v56  ;;  %v7310_v28 = vsel %vm30_vm0, %v7246_v10, %v11466_v55  ;;  %v11850_v56 = vld [vmem:[%s14407_s2 + $0x858] sm:$0xff]  }
0x2c82   :  { %v11469_v54 = vpop.permute.xlu1 %11468  ;;  %10427 = vmatprep.subr.bf16.mxu1 %v11850_v56 }
0x2c83   :  { %v11471_v0 = vunpack.i.h.bf16 %v11469_v54  ;;  %v11470_v1 = vunpack.i.l.bf16 %v11469_v54  ;;  %v7307_v22 = vsel %vm30_vm0, %v7243_v11, %v11475_v60  ;;  %v7308_v26 = vsel %vm30_vm0, %v7244_v15, %v11476_v57  ;;  %10428 = vmatpush3.bf16.msra.mxu1 %v11850_v56 }
0x2c84   :  { %v11479_v61 = vpop.permute.xlu0 %11478 }
0x2c85   :  { %v11481_v5 = vunpack.i.h.bf16 %v11479_v61  ;;  %v11480_v8 = vunpack.i.l.bf16 %v11479_v61  ;;  %v7313_v45 = vsel %vm143_vm1, %v7309_v27, %v11470_v1  ;;  %v7314_v32 = vsel %vm143_vm1, %v7310_v28, %v11471_v0  ;;  %v11851_v0 = vld [vmem:[%s14407_s2 + $0x850] sm:$0xff]   ;;  %v11852_v1 = vld [vmem:[%s14407_s2 + $0x848] sm:$0xff]   ;;  %v11853_v28 = vld [vmem:[%s14407_s2 + $0x840] sm:$0xff]  }
0x2c86   :  { %v11489_v9 = vpop.permute.xlu1 %11488  ;;  %10429 = vmatprep.subr.bf16.mxu1 %v11851_v0 }
0x2c87   :  { %v11491_v23 = vunpack.i.h.bf16 %v11489_v9  ;;  %v11490_v24 = vunpack.i.l.bf16 %v11489_v9  ;;  %v7311_v59 = vsel %vm143_vm1, %v7307_v22, %v11480_v8  ;;  %v7312_v18 = vsel %vm143_vm1, %v7308_v26, %v11481_v5  ;;  %10430 = vmatpush3.bf16.msra.mxu1 %v11851_v0 }
0x2c88   :  { %v11484_v29 = vpop.permute.xlu0 %11483  ;;  %10431 = vmatprep.subr.bf16.mxu1 %v11852_v1 }
0x2c89   :  { %v11486_v34 = vunpack.i.h.bf16 %v11484_v29  ;;  %v11485_v16 = vunpack.i.l.bf16 %v11484_v29  ;;  %v7317_v21 = vsel %vm148_vm2, %v7313_v45, %v11490_v24  ;;  %v7318_v30 = vsel %vm148_vm2, %v7314_v32, %v11491_v23 }
0x2c8a   :  { %v7320_v25 = vpack.c.bf16 %v7318_v30, %v7317_v21 }
0x2c8b   :  { %v7315_v12 = vsel %vm148_vm2, %v7311_v59, %v11485_v16  ;;  %v7316_v63 = vsel %vm148_vm2, %v7312_v18, %v11486_v34  ;;  %10432 = vmatpush3.bf16.msra.mxu1 %v11852_v1  ;;  %v11854_v1 = vld [vmem:[%s14410_s4 + $0x8] sm:$0xff]  }
0x2c8c   :  { %v7319_v39 = vpack.c.bf16 %v7316_v63, %v7315_v12  ;;  %10433 = vmatprep.subr.bf16.mxu1 %v11853_v28  ;;  %10439 = vmatprep.subr.bf16.mxu0 %v11854_v1 }
0x2c8e   :  { %10415 = vmatprep.mubr.bf16.mxu0 %v7319_v39 }
0x2c8f   :  { %10416 = vmatmul.mubr.bf16.vlgmr.msra.gmra.mxu0 %v7320_v25  ;;  %10434 = vmatpush3.bf16.msra.mxu1 %v11853_v28 }
0x2c90   :  { %10440 = vmatpush3.bf16.msra.mxu0 %v11854_v1 }
0x2d4f   :  { %v10417_v37 = vpop.f32.mrf.mxu0 }
0x2d50   :  { %v7435_v41 = vadd.f32 %v10417_v37, %v9278_v3 }
0x2d51   :  { %v7426_v36 = vpop.f32.mrf.mxu0 }
0x2d52   :  { %v7443_v42 = vmax.f32 %v7435_v41, 0.0  ;;  %v7427_v49 = vadd.f32 %v9278_v3, %v7426_v36 }
0x2d53   :  { %v10418_v58 = vpop.f32.mrf.mxu0 }
0x2d54   :  { %v7452_v44 = vmul.f32 %v9288_v53, %v7443_v42  ;;  %v7441_v62 = vmax.f32 %v7427_v49, 0.0  ;;  %v7438_v46 = vadd.f32 %v10418_v58, %v9278_v3 }
0x2d55   :  { %v7429_v2 = vpop.f32.mrf.mxu0 }
0x2d56   :  { %v7461_v48 = vadd.f32 %v9290_v43, %v7452_v44  ;;  %v7450_v6 = vmul.f32 %v9288_v53, %v7441_v62  ;;  %v7444_v50 = vmax.f32 %v7438_v46, 0.0  ;;  %v7430_v52 = vadd.f32 %v9278_v3, %v7429_v2 }
0x2d58   :  { %7465 = vst.msk [vmem:[#allocation2 + $0x40] sm:$0xff] %vm30_vm0, %v7461_v48  ;;  %v7459_v7 = vadd.f32 %v9290_v43, %v7450_v6  ;;  %v7453_v54 = vmul.f32 %v9288_v53, %v7444_v50  ;;  %v7442_v55 = vmax.f32 %v7430_v52, 0.0 }
0x2d5a   :  { %7463 = vst.msk [vmem:[#allocation2 + $0x10] sm:$0xff] %vm30_vm0, %v7459_v7  ;;  %v7462_v57 = vadd.f32 %v9290_v43, %v7453_v54  ;;  %v7451_v60 = vmul.f32 %v9288_v53, %v7442_v55 }
0x2d5c   :  { %7466 = vst.msk [vmem:[#allocation2 + $0x48] sm:$0xff] %vm30_vm0, %v7462_v57  ;;  %v7460_v61 = vadd.f32 %v9290_v43, %v7451_v60 }
0x2d5e   :  { %7464 = vst.msk [vmem:[#allocation2 + $0x18] sm:$0xff] %vm30_vm0, %v7460_v61 }
0x2d5f   :  { %v7473_v4 = vld [vmem:[#allocation2 + $0x40] sm:$0xff] }
0x2d60   :  { %v7469_v35 = vld [vmem:[#allocation2 + $0x3f] sm:$0xff] }
0x2d61   :  { %v7471_v9 = vld [vmem:[#allocation2 + $0x10] sm:$0xff] }
0x2d62   :  { %v7467_v36 = vld [vmem:[#allocation2 + $0xf] sm:$0xff] }
0x2d63   :  { %v7474_v5 = vld [vmem:[#allocation2 + $0x48] sm:$0xff] }
0x2d64   :  { %v11492_v8 = vpack.i.bf16 %v7474_v5, %v7473_v4  ;;  %v7477_v11 = vld [vmem:[#allocation2 + $0x41] sm:$0xff]  ;;  %v7478_v15 = vld [vmem:[#allocation2 + $0x49] sm:$0xff] }
0x2d65   :  { %v7472_v10 = vld [vmem:[#allocation2 + $0x18] sm:$0xff]  ;;  %v11497_v22 = vpack.i.bf16 %v7478_v15, %v7477_v11  ;;  %v7481_v26 = vld [vmem:[#allocation2 + $0x42] sm:$0xff]  ;;  %v7482_v29 = vld [vmem:[#allocation2 + $0x4a] sm:$0xff] }
0x2d66   :  { %11493 = vrot.lane.b32.xlu1 %v11492_v8, %s11880_s12  ;;  %v11502_v23 = vpack.i.bf16 %v7472_v10, %v7471_v9  ;;  %v7475_v24 = vld [vmem:[#allocation2 + $0x11] sm:$0xff]  ;;  %v7476_v27 = vld [vmem:[#allocation2 + $0x19] sm:$0xff]  ;;  %v11517_v16 = vpack.i.bf16 %v7482_v29, %v7481_v26  ;;  %v7470_v53 = vld [vmem:[#allocation2 + $0x47] sm:$0xff] }
0x2d67   :  { %v11507_v45 = vpack.i.bf16 %v7476_v27, %v7475_v24  ;;  %v7479_v32 = vld [vmem:[#allocation2 + $0x12] sm:$0xff]  ;;  %v7480_v34 = vld [vmem:[#allocation2 + $0x1a] sm:$0xff]  ;;  %v9308_v5 = vld [vmem:[%s14409_s3 + $0x84] ss:$0 sm:$0xff] }
0x2d68   :  { %11503 = vrot.lane.b32.xlu0 %v11502_v23, %s11880_s12  ;;  %v11512_v59 = vpack.i.bf16 %v7480_v34, %v7479_v32  ;;  %v7468_v42 = vld [vmem:[#allocation2 + $0x17] sm:$0xff]  ;;  %v11855_v4 = vld [vmem:[%s14410_s4] sm:$0xff]  }
0x2d69   :  { %10441 = vmatprep.subr.bf16.mxu0 %v11855_v4  ;;  %v9318_v15 = vld [vmem:[%s14409_s3 + $0x85] ss:$0 sm:$0xff]  ;;  %v9320_v29 = vld [vmem:[%s14409_s3 + $0x86] ss:$0 sm:$0xff] }
0x2d6a   :  { %11498 = vrot.lane.b32.xlu1 %v11497_v22, %s11881_s15  ;;  %10442 = vmatpush3.bf16.msra.mxu0 %v11855_v4 }
0x2d6c   :  { %11508 = vrot.lane.b32.xlu0 %v11507_v45, %s11881_s15 }
0x2d6e   :  { %11518 = vrot.lane.b32.xlu1 %v11517_v16, %s11882_s16 }
0x2d70   :  { %11513 = vrot.lane.b32.xlu0 %v11512_v59, %s11882_s16 }
0x2dd8   :  { %v11494_v18 = vpop.permute.xlu1 %11493 }
0x2dd9   :  { %v11496_v12 = vunpack.i.h.bf16 %v11494_v18  ;;  %v11495_v63 = vunpack.i.l.bf16 %v11494_v18 }
0x2dda   :  { %v11504_v21 = vpop.permute.xlu0 %11503 }
0x2ddb   :  { %v11506_v39 = vunpack.i.h.bf16 %v11504_v21  ;;  %v11505_v25 = vunpack.i.l.bf16 %v11504_v21  ;;  %v7533_v58 = vsel %vm30_vm0, %v7469_v35, %v11495_v63  ;;  %v7534_v44 = vsel %vm30_vm0, %v7470_v53, %v11496_v12 }
0x2ddc   :  { %v11499_v30 = vpop.permute.xlu1 %11498 }
0x2ddd   :  { %v11501_v40 = vunpack.i.h.bf16 %v11499_v30  ;;  %v11500_v47 = vunpack.i.l.bf16 %v11499_v30  ;;  %v7531_v62 = vsel %vm30_vm0, %v7467_v36, %v11505_v25  ;;  %v7532_v46 = vsel %vm30_vm0, %v7468_v42, %v11506_v39  ;;  %v9321_v36 = vld [vmem:[%s14411_s5] ss:$0 sm:$0xff] }
0x2dde   :  { %v11509_v31 = vpop.permute.xlu0 %11508 }
0x2ddf   :  { %v11511_v3 = vunpack.i.h.bf16 %v11509_v31  ;;  %v11510_v37 = vunpack.i.l.bf16 %v11509_v31  ;;  %v7537_v48 = vsel %vm143_vm1, %v7533_v58, %v11500_v47  ;;  %v7538_v6 = vsel %vm143_vm1, %v7534_v44, %v11501_v40  ;;  %v11874_v58 = vld [vmem:[%s14408_s0 + $0x10] sm:$0xff] }
0x2de0   :  { %v11519_v41 = vpop.permute.xlu1 %11518 }
0x2de1   :  { %v11521_v49 = vunpack.i.h.bf16 %v11519_v41  ;;  %v11520_v43 = vunpack.i.l.bf16 %v11519_v41  ;;  %v7535_v7 = vsel %vm143_vm1, %v7531_v62, %v11510_v37  ;;  %v7536_v54 = vsel %vm143_vm1, %v7532_v46, %v11511_v3 }
0x2de2   :  { %v11514_v2 = vpop.permute.xlu0 %11513 }
0x2de3   :  { %v11516_v50 = vunpack.i.h.bf16 %v11514_v2  ;;  %v11515_v52 = vunpack.i.l.bf16 %v11514_v2  ;;  %v7541_v55 = vsel %vm148_vm2, %v7537_v48, %v11520_v43  ;;  %v7542_v56 = vsel %vm148_vm2, %v7538_v6, %v11521_v49  ;;  %v11875_v2 = vld [vmem:[%s14408_s0] sm:$0xff] }
0x2de4   :  { %v7544_v0 = vpack.c.bf16 %v7542_v56, %v7541_v55  ;;  %v11877_v56 = vld [vmem:[%s14408_s0 + $0x8] sm:$0xff] }
0x2de5   :  { %v7539_v57 = vsel %vm148_vm2, %v7535_v7, %v11515_v52  ;;  %v7540_v60 = vsel %vm148_vm2, %v7536_v54, %v11516_v50  ;;  %v11860_v50 = vld [vmem:[%s14407_s2 + $0x898] sm:$0xff]  }
0x2de6   :  { %v7543_v61 = vpack.c.bf16 %v7540_v60, %v7539_v57  ;;  %v11876_v7 = vld [vmem:[%s14408_s0 + $0x18] sm:$0xff]  ;;  %v11861_v60 = vld [vmem:[%s14407_s2 + $0x890] sm:$0xff]  }
0x2de8   :  { %10435 = vmatprep.mubr.bf16.mxu1 %v7543_v61  ;;  %v11862_v61 = vld [vmem:[%s14407_s2 + $0x888] sm:$0xff]  }
0x2de9   :  { %10436 = vmatmul.mubr.bf16.vlgmr.msra.gmra.mxu1 %v7544_v0 }
0x2ea9   :  { %v10437_v8 = vpop.f32.mrf.mxu1 }
0x2eaa   :  { %v7659_v9 = vadd.f32 %v10437_v8, %v9308_v5 }
0x2eab   :  { %v7650_v10 = vpop.f32.mrf.mxu1 }
0x2eac   :  { %v7667_v11 = vmax.f32 %v7659_v9, 0.0  ;;  %v7651_v23 = vadd.f32 %v9308_v5, %v7650_v10 }
0x2ead   :  { %v10438_v24 = vpop.f32.mrf.mxu1 }
0x2eae   :  { %v7665_v27 = vmax.f32 %v7651_v23, 0.0  ;;  %v7662_v28 = vadd.f32 %v10438_v24, %v9308_v5  ;;  %v7676_v22 = vmul.f32 %v9318_v15, %v7667_v11  ;;  %v11863_v24 = vld [vmem:[%s14407_s2 + $0x880] sm:$0xff]  }
0x2eaf   :  { %v7653_v26 = vpop.f32.mrf.mxu1 }
0x2eb0   :  { %v7674_v45 = vmul.f32 %v9318_v15, %v7665_v27  ;;  %v7668_v32 = vmax.f32 %v7662_v28, 0.0  ;;  %v7654_v34 = vadd.f32 %v9308_v5, %v7653_v26  ;;  %v7685_v21 = vadd.f32 %v9320_v29, %v7676_v22 }
0x2eb2   :  { %v7683_v16 = vadd.f32 %v9320_v29, %v7674_v45  ;;  %v7677_v59 = vmul.f32 %v9318_v15, %v7668_v32  ;;  %v7666_v18 = vmax.f32 %v7654_v34, 0.0  ;;  %v7689_v31 = vadd.f32 %v7685_v21, %v14122_v17  ;;  %v11856_v17 = vld [vmem:[%s14407_s2 + $0x8b8] sm:$0xff]  }
0x2eb3   :  { %10447 = vmatprep.subr.bf16.mxu1 %v11856_v17 }
0x2eb4   :  { %v7686_v30 = vadd.f32 %v9320_v29, %v7677_v59  ;;  %v7675_v12 = vmul.f32 %v9318_v15, %v7666_v18  ;;  %v7687_v63 = vadd.f32 %v7683_v16, %v14128_v38  ;;  %v7693_v37 = vmul.f32 %v7689_v31, %v11969_v13  ;;  %v11857_v38 = vld [vmem:[%s14407_s2 + $0x8b0] sm:$0xff]   ;;  %10448 = vmatpush3.bf16.msra.mxu1 %v11856_v17 }
0x2eb5   :  { %10449 = vmatprep.subr.bf16.mxu1 %v11857_v38 }
0x2eb6   :  { %v7690_v39 = vadd.f32 %v7686_v30, %v14137_v51  ;;  %v7684_v25 = vadd.f32 %v9320_v29, %v7675_v12  ;;  %v7691_v35 = vmul.f32 %v7687_v63, %v11971_v14  ;;  %v11858_v51 = vld [vmem:[%s14407_s2 + $0x8a8] sm:$0xff]  }
0x2eb8   :  { %v7688_v40 = vadd.f32 %v7684_v25, %v14143_v33  ;;  %v7694_v47 = vmul.f32 %v7690_v39, %v11989_v19  ;;  %10450 = vmatpush3.bf16.msra.mxu1 %v11857_v38  ;;  %v11859_v33 = vld [vmem:[%s14407_s2 + $0x8a0] sm:$0xff]  }
0x2eb9   :  { %10451 = vmatprep.subr.bf16.mxu1 %v11858_v51 }
0x2eba   :  { %v7692_v3 = vmul.f32 %v7688_v40, %v11991_v20  ;;  %v7696_v53 = vpack.c.bf16 %v7694_v47, %v7693_v37 }
0x2ebc   :  { %v7695_v41 = vpack.c.bf16 %v7692_v3, %v7691_v35  ;;  %10452 = vmatpush3.bf16.msra.mxu1 %v11858_v51 }
0x2ebd   :  { %10453 = vmatprep.subr.bf16.mxu1 %v11859_v33 }
0x2ebe   :  { %10443 = vmatprep.mubr.msk.bf16.mxu0 %vm30_vm0, %v7695_v41 }
0x2ebf   :  { %10444 = vmatmul.mubr.msk.bf16.vlgmr.msra.gmra.mxu0 %vm30_vm0, %v7696_v53 }
0x2ec0   :  { %10454 = vmatpush3.bf16.msra.mxu1 %v11859_v33 }
0x2ec1   :  { %10455 = vmatprep.subr.bf16.mxu1 %v11860_v50 }
0x2ec4   :  { %10456 = vmatpush3.bf16.msra.mxu1 %v11860_v50 }
0x2ec5   :  { %10457 = vmatprep.subr.bf16.mxu1 %v11861_v60 }
0x2ec8   :  { %10458 = vmatpush3.bf16.msra.mxu1 %v11861_v60  ;;  %v11867_v60 = vld [vmem:[%s14407_s2 + $0x8e0] sm:$0xff]  }
0x2ec9   :  { %10459 = vmatprep.subr.bf16.mxu1 %v11862_v61 }
0x2ecc   :  { %10460 = vmatpush3.bf16.msra.mxu1 %v11862_v61  ;;  %v9343_v61 = vld [vmem:[%s14409_s3 + $0x88] ss:$0 sm:$0xff] }
0x2ecd   :  { %10461 = vmatprep.subr.bf16.mxu1 %v11863_v24 }
0x2ed0   :  { %10462 = vmatpush3.bf16.msra.mxu1 %v11863_v24 }
0x2f7f   :  { %v10445_v42 = vpop.f32.mrf.mxu0 }
0x2f80   :  { %v7769_v49 = vadd.f32 %v10445_v42, %v9321_v36 }
0x2f81   :  { %v7760_v43 = vpop.f32.mrf.mxu0 }
0x2f82   :  { %v7777_v44 = vadd.f32 %v11874_v58, %v7769_v49  ;;  %v7761_v62 = vadd.f32 %v9321_v36, %v7760_v43 }
0x2f83   :  { %v10446_v46 = vpop.f32.mrf.mxu0 }
0x2f84   :  { %7781 = vst.msk [vmem:[#allocation2 + $0x40] sm:$0xff] %vm30_vm0, %v7777_v44  ;;  %v7775_v48 = vadd.f32 %v11875_v2, %v7761_v62  ;;  %v7772_v6 = vadd.f32 %v10446_v46, %v9321_v36 }
0x2f85   :  { %v7763_v52 = vpop.f32.mrf.mxu0 }
0x2f86   :  { %7779 = vst.msk [vmem:[#allocation2 + $0x10] sm:$0xff] %vm30_vm0, %v7775_v48  ;;  %v7778_v54 = vadd.f32 %v11876_v7, %v7772_v6  ;;  %v7764_v55 = vadd.f32 %v9321_v36, %v7763_v52 }
0x2f88   :  { %7782 = vst.msk [vmem:[#allocation2 + $0x48] sm:$0xff] %vm30_vm0, %v7778_v54  ;;  %v7776_v57 = vadd.f32 %v11877_v56, %v7764_v55  ;;  %v11864_v55 = vld [vmem:[%s14407_s2 + $0x8f8] sm:$0xff]   ;;  %v11865_v56 = vld [vmem:[%s14407_s2 + $0x8f0] sm:$0xff]  }
0x2f89   :  { %10467 = vmatprep.subr.bf16.mxu0 %v11864_v55 }
0x2f8a   :  { %7780 = vst.msk [vmem:[#allocation2 + $0x18] sm:$0xff] %vm30_vm0, %v7776_v57  ;;  %10468 = vmatpush3.bf16.msra.mxu0 %v11864_v55  ;;  %v11866_v57 = vld [vmem:[%s14407_s2 + $0x8e8] sm:$0xff]  }
0x2f8b   :  { %v7789_v0 = vld [vmem:[#allocation2 + $0x40] sm:$0xff]  ;;  %10469 = vmatprep.subr.bf16.mxu0 %v11865_v56 }
0x2f8c   :  { %v7785_v40 = vld [vmem:[#allocation2 + $0x3f] sm:$0xff] }
0x2f8d   :  { %v7787_v5 = vld [vmem:[#allocation2 + $0x10] sm:$0xff] }
0x2f8e   :  { %v7783_v41 = vld [vmem:[#allocation2 + $0xf] sm:$0xff]  ;;  %10470 = vmatpush3.bf16.msra.mxu0 %v11865_v56 }
0x2f8f   :  { %v7790_v1 = vld [vmem:[#allocation2 + $0x48] sm:$0xff]  ;;  %10471 = vmatprep.subr.bf16.mxu0 %v11866_v57 }
0x2f90   :  { %v11522_v4 = vpack.i.bf16 %v7790_v1, %v7789_v0  ;;  %v7793_v9 = vld [vmem:[#allocation2 + $0x41] sm:$0xff]  ;;  %v7794_v10 = vld [vmem:[#allocation2 + $0x49] sm:$0xff] }
0x2f91   :  { %v7788_v8 = vld [vmem:[#allocation2 + $0x18] sm:$0xff]  ;;  %v11527_v27 = vpack.i.bf16 %v7794_v10, %v7793_v9  ;;  %v7797_v28 = vld [vmem:[#allocation2 + $0x42] sm:$0xff]  ;;  %v7798_v22 = vld [vmem:[#allocation2 + $0x4a] sm:$0xff] }
0x2f92   :  { %11523 = vrot.lane.b32.xlu1 %v11522_v4, %s11880_s12  ;;  %v11532_v11 = vpack.i.bf16 %v7788_v8, %v7787_v5  ;;  %v7791_v15 = vld [vmem:[#allocation2 + $0x11] sm:$0xff]  ;;  %v7792_v23 = vld [vmem:[#allocation2 + $0x19] sm:$0xff]  ;;  %v11547_v32 = vpack.i.bf16 %v7798_v22, %v7797_v28  ;;  %v7786_v37 = vld [vmem:[#allocation2 + $0x47] sm:$0xff]  ;;  %10472 = vmatpush3.bf16.msra.mxu0 %v11866_v57 }
0x2f93   :  { %v11537_v26 = vpack.i.bf16 %v7792_v23, %v7791_v15  ;;  %v7795_v29 = vld [vmem:[#allocation2 + $0x12] sm:$0xff]  ;;  %v7796_v45 = vld [vmem:[#allocation2 + $0x1a] sm:$0xff]  ;;  %10473 = vmatprep.subr.bf16.mxu0 %v11867_v60  ;;  %v9353_v4 = vld [vmem:[%s14409_s3 + $0x89] ss:$0 sm:$0xff] }
0x2f94   :  { %11533 = vrot.lane.b32.xlu0 %v11532_v11, %s11880_s12  ;;  %v11542_v34 = vpack.i.bf16 %v7796_v45, %v7795_v29  ;;  %v7784_v53 = vld [vmem:[#allocation2 + $0x17] sm:$0xff]  ;;  %v9355_v10 = vld [vmem:[%s14409_s3 + $0x8a] ss:$0 sm:$0xff] }
0x2f96   :  { %11528 = vrot.lane.b32.xlu1 %v11527_v27, %s11881_s15  ;;  %10474 = vmatpush3.bf16.msra.mxu0 %v11867_v60 }
0x2f98   :  { %11538 = vrot.lane.b32.xlu0 %v11537_v26, %s11881_s15 }
0x2f9a   :  { %11548 = vrot.lane.b32.xlu1 %v11547_v32, %s11882_s16 }
0x2f9c   :  { %11543 = vrot.lane.b32.xlu0 %v11542_v34, %s11882_s16 }
0x3004   :  { %v11524_v16 = vpop.permute.xlu1 %11523 }
0x3005   :  { %v11526_v21 = vunpack.i.h.bf16 %v11524_v16  ;;  %v11525_v30 = vunpack.i.l.bf16 %v11524_v16  ;;  %v11868_v16 = vld [vmem:[%s14407_s2 + $0x8d8] sm:$0xff]  }
0x3006   :  { %v11534_v59 = vpop.permute.xlu0 %11533  ;;  %10475 = vmatprep.subr.bf16.mxu0 %v11868_v16 }
0x3007   :  { %v11536_v12 = vunpack.i.h.bf16 %v11534_v59  ;;  %v11535_v63 = vunpack.i.l.bf16 %v11534_v59  ;;  %v7849_v51 = vsel %vm30_vm0, %v7785_v40, %v11525_v30  ;;  %v7850_v33 = vsel %vm30_vm0, %v7786_v37, %v11526_v21  ;;  %10476 = vmatpush3.bf16.msra.mxu0 %v11868_v16  ;;  %v11869_v30 = vld [vmem:[%s14407_s2 + $0x8d0] sm:$0xff]  }
0x3008   :  { %v11529_v18 = vpop.permute.xlu1 %11528  ;;  %10477 = vmatprep.subr.bf16.mxu0 %v11869_v30 }
0x3009   :  { %v11531_v25 = vunpack.i.h.bf16 %v11529_v18  ;;  %v11530_v31 = vunpack.i.l.bf16 %v11529_v18  ;;  %v7847_v36 = vsel %vm30_vm0, %v7783_v41, %v11535_v63  ;;  %v7848_v42 = vsel %vm30_vm0, %v7784_v53, %v11536_v12  ;;  %v11870_v12 = vld [vmem:[%s14407_s2 + $0x8c8] sm:$0xff]   ;;  %v11871_v53 = vld [vmem:[%s14407_s2 + $0x8c0] sm:$0xff]  }
0x300a   :  { %v11539_v39 = vpop.permute.xlu0 %11538 }
0x300b   :  { %v11541_v47 = vunpack.i.h.bf16 %v11539_v39  ;;  %v11540_v35 = vunpack.i.l.bf16 %v11539_v39  ;;  %v7853_v43 = vsel %vm143_vm1, %v7849_v51, %v11530_v31  ;;  %v7854_v58 = vsel %vm143_vm1, %v7850_v33, %v11531_v25  ;;  %10478 = vmatpush3.bf16.msra.mxu0 %v11869_v30 }
0x300c   :  { %v11549_v3 = vpop.permute.xlu1 %11548  ;;  %10479 = vmatprep.subr.bf16.mxu0 %v11870_v12 }
0x300d   :  { %v11551_v17 = vunpack.i.h.bf16 %v11549_v3  ;;  %v11550_v38 = vunpack.i.l.bf16 %v11549_v3  ;;  %v7851_v46 = vsel %vm143_vm1, %v7847_v36, %v11540_v35  ;;  %v7852_v2 = vsel %vm143_vm1, %v7848_v42, %v11541_v47 }
0x300e   :  { %v11544_v49 = vpop.permute.xlu0 %11543 }
0x300f   :  { %v11546_v44 = vunpack.i.h.bf16 %v11544_v49  ;;  %v11545_v62 = vunpack.i.l.bf16 %v11544_v49  ;;  %v7857_v48 = vsel %vm148_vm2, %v7853_v43, %v11550_v38  ;;  %v7858_v6 = vsel %vm148_vm2, %v7854_v58, %v11551_v17  ;;  %10480 = vmatpush3.bf16.msra.mxu0 %v11870_v12 }
0x3010   :  { %v7860_v54 = vpack.c.bf16 %v7858_v6, %v7857_v48  ;;  %10481 = vmatprep.subr.bf16.mxu0 %v11871_v53 }
0x3011   :  { %v7855_v50 = vsel %vm148_vm2, %v7851_v46, %v11545_v62  ;;  %v7856_v52 = vsel %vm148_vm2, %v7852_v2, %v11546_v44 }
0x3012   :  { %v7859_v7 = vpack.c.bf16 %v7856_v52, %v7855_v50 }
0x3013   :  { %10482 = vmatpush3.bf16.msra.mxu0 %v11871_v53 }
0x3014   :  { %10463 = vmatprep.mubr.bf16.mxu1 %v7859_v7 }
0x3015   :  { %10464 = vmatmul.mubr.bf16.vlgmr.msra.gmra.mxu1 %v7860_v54 }
0x30d5   :  { %v10465_v0 = vpop.f32.mrf.mxu1 }
0x30d6   :  { %v7975_v1 = vadd.f32 %v10465_v0, %v9343_v61 }
0x30d7   :  { %v7966_v5 = vpop.f32.mrf.mxu1 }
0x30d8   :  { %v7983_v8 = vmax.f32 %v7975_v1, 0.0  ;;  %v7967_v9 = vadd.f32 %v9343_v61, %v7966_v5 }
0x30d9   :  { %v10466_v11 = vpop.f32.mrf.mxu1 }
0x30da   :  { %v7992_v15 = vmul.f32 %v9353_v4, %v7983_v8  ;;  %v7981_v23 = vmax.f32 %v7967_v9, 0.0  ;;  %v7978_v24 = vadd.f32 %v10466_v11, %v9343_v61 }
0x30db   :  { %v7969_v27 = vpop.f32.mrf.mxu1 }
0x30dc   :  { %v8001_v28 = vadd.f32 %v9355_v10, %v7992_v15  ;;  %v7990_v22 = vmul.f32 %v9353_v4, %v7981_v23  ;;  %v7984_v26 = vmax.f32 %v7978_v24, 0.0  ;;  %v7970_v29 = vadd.f32 %v9343_v61, %v7969_v27 }
0x30de   :  { %8005 = vst.msk [vmem:[#allocation2 + $0x40] sm:$0xff] %vm30_vm0, %v8001_v28  ;;  %v7999_v45 = vadd.f32 %v9355_v10, %v7990_v22  ;;  %v7993_v32 = vmul.f32 %v9353_v4, %v7984_v26  ;;  %v7982_v34 = vmax.f32 %v7970_v29, 0.0 }
0x30e0   :  { %8003 = vst.msk [vmem:[#allocation2 + $0x10] sm:$0xff] %vm30_vm0, %v7999_v45  ;;  %v8002_v59 = vadd.f32 %v9355_v10, %v7993_v32  ;;  %v7991_v18 = vmul.f32 %v9353_v4, %v7982_v34 }
0x30e2   :  { %8006 = vst.msk [vmem:[#allocation2 + $0x48] sm:$0xff] %vm30_vm0, %v8002_v59  ;;  %v8000_v21 = vadd.f32 %v9355_v10, %v7991_v18  ;;  %v11872_v59 = vld [vmem:[%s14412_s6 + $0x8] sm:$0xff]   ;;  %v11873_v18 = vld [vmem:[%s14412_s6] sm:$0xff]  }
0x30e3   :  { %10487 = vmatprep.subr.bf16.mxu1 %v11872_v59 }
0x30e4   :  { %8004 = vst.msk [vmem:[#allocation2 + $0x18] sm:$0xff] %vm30_vm0, %v8000_v21  ;;  %10488 = vmatpush3.bf16.msra.mxu1 %v11872_v59  ;;  %v9373_v21 = vld [vmem:[%s14409_s3 + $0x8c] ss:$0 sm:$0xff] }
0x30e5   :  { %v8013_v63 = vld [vmem:[#allocation2 + $0x40] sm:$0xff]  ;;  %10489 = vmatprep.subr.bf16.mxu1 %v11873_v18 }
0x30e6   :  { %v8009_v54 = vld [vmem:[#allocation2 + $0x3f] sm:$0xff] }
0x30e7   :  { %v8011_v31 = vld [vmem:[#allocation2 + $0x10] sm:$0xff] }
0x30e8   :  { %v8007_v61 = vld [vmem:[#allocation2 + $0xf] sm:$0xff]  ;;  %10490 = vmatpush3.bf16.msra.mxu1 %v11873_v18 }
0x30e9   :  { %v8014_v39 = vld [vmem:[#allocation2 + $0x48] sm:$0xff] }
0x30ea   :  { %v11552_v25 = vpack.i.bf16 %v8014_v39, %v8013_v63  ;;  %v8017_v47 = vld [vmem:[#allocation2 + $0x41] sm:$0xff]  ;;  %v8018_v35 = vld [vmem:[#allocation2 + $0x49] sm:$0xff] }
0x30eb   :  { %v8012_v40 = vld [vmem:[#allocation2 + $0x18] sm:$0xff]  ;;  %v11557_v17 = vpack.i.bf16 %v8018_v35, %v8017_v47  ;;  %v8021_v38 = vld [vmem:[#allocation2 + $0x42] sm:$0xff]  ;;  %v8022_v51 = vld [vmem:[#allocation2 + $0x4a] sm:$0xff] }
0x30ec   :  { %11553 = vrot.lane.b32.xlu1 %v11552_v25, %s11880_s12  ;;  %v11562_v3 = vpack.i.bf16 %v8012_v40, %v8011_v31  ;;  %v8015_v37 = vld [vmem:[#allocation2 + $0x11] sm:$0xff]  ;;  %v8016_v41 = vld [vmem:[#allocation2 + $0x19] sm:$0xff]  ;;  %v11577_v49 = vpack.i.bf16 %v8022_v51, %v8021_v38  ;;  %v8010_v60 = vld [vmem:[#allocation2 + $0x47] sm:$0xff] }
0x30ed   :  { %v11567_v33 = vpack.i.bf16 %v8016_v41, %v8015_v37  ;;  %v8019_v36 = vld [vmem:[#allocation2 + $0x12] sm:$0xff]  ;;  %v8020_v42 = vld [vmem:[#allocation2 + $0x1a] sm:$0xff] }
0x30ee   :  { %11563 = vrot.lane.b32.xlu0 %v11562_v3, %s11880_s12  ;;  %v11572_v43 = vpack.i.bf16 %v8020_v42, %v8019_v36  ;;  %v8008_v0 = vld [vmem:[#allocation2 + $0x17] sm:$0xff]  ;;  %v9383_v3 = vld [vmem:[%s14409_s3 + $0x8d] ss:$0 sm:$0xff] }
0x30f0   :  { %11558 = vrot.lane.b32.xlu1 %v11557_v17, %s11881_s15 }
0x30f2   :  { %11568 = vrot.lane.b32.xlu0 %v11567_v33, %s11881_s15  ;;  %v9385_v33 = vld [vmem:[%s14409_s3 + $0x8e] ss:$0 sm:$0xff] }
0x30f4   :  { %11578 = vrot.lane.b32.xlu1 %v11577_v49, %s11882_s16 }
0x30f6   :  { %11573 = vrot.lane.b32.xlu0 %v11572_v43, %s11882_s16 }
0x315e   :  { %v11554_v58 = vpop.permute.xlu1 %11553 }
0x315f   :  { %v11556_v46 = vunpack.i.h.bf16 %v11554_v58  ;;  %v11555_v2 = vunpack.i.l.bf16 %v11554_v58 }
0x3160   :  { %v11564_v44 = vpop.permute.xlu0 %11563 }
0x3161   :  { %v11566_v48 = vunpack.i.h.bf16 %v11564_v44  ;;  %v11565_v6 = vunpack.i.l.bf16 %v11564_v44  ;;  %v8073_v5 = vsel %vm30_vm0, %v8009_v54, %v11555_v2  ;;  %v8074_v8 = vsel %vm30_vm0, %v8010_v60, %v11556_v46  ;;  %v9386_v46 = vld [vmem:[%s14413_s7] ss:$0 sm:$0xff] }
0x3162   :  { %v11559_v62 = vpop.permute.xlu1 %11558 }
0x3163   :  { %v11561_v52 = vunpack.i.h.bf16 %v11559_v62  ;;  %v11560_v7 = vunpack.i.l.bf16 %v11559_v62  ;;  %v8071_v9 = vsel %vm30_vm0, %v8007_v61, %v11565_v6  ;;  %v8072_v10 = vsel %vm30_vm0, %v8008_v0, %v11566_v48 }
0x3164   :  { %v11569_v50 = vpop.permute.xlu0 %11568 }
0x3165   :  { %v11571_v55 = vunpack.i.h.bf16 %v11569_v50  ;;  %v11570_v56 = vunpack.i.l.bf16 %v11569_v50  ;;  %v8077_v15 = vsel %vm143_vm1, %v8073_v5, %v11560_v7  ;;  %v8078_v23 = vsel %vm143_vm1, %v8074_v8, %v11561_v52 }
0x3166   :  { %v11579_v57 = vpop.permute.xlu1 %11578 }
0x3167   :  { %v11581_v1 = vunpack.i.h.bf16 %v11579_v57  ;;  %v11580_v4 = vunpack.i.l.bf16 %v11579_v57  ;;  %v8075_v28 = vsel %vm143_vm1, %v8071_v9, %v11570_v56  ;;  %v8076_v22 = vsel %vm143_vm1, %v8072_v10, %v11571_v55 }
0x3168   :  { %v11574_v11 = vpop.permute.xlu0 %11573 }
0x3169   :  { %v11576_v24 = vunpack.i.h.bf16 %v11574_v11  ;;  %v11575_v27 = vunpack.i.l.bf16 %v11574_v11  ;;  %v8081_v26 = vsel %vm148_vm2, %v8077_v15, %v11580_v4  ;;  %v8082_v29 = vsel %vm148_vm2, %v8078_v23, %v11581_v1 }
0x316a   :  { %v8084_v16 = vpack.c.bf16 %v8082_v29, %v8081_v26 }
0x316b   :  { %v8079_v45 = vsel %vm148_vm2, %v8075_v28, %v11575_v27  ;;  %v8080_v32 = vsel %vm148_vm2, %v8076_v22, %v11576_v24 }
0x316c   :  { %v8083_v34 = vpack.c.bf16 %v8080_v32, %v8079_v45 }
0x316e   :  { %10483 = vmatprep.mubr.bf16.mxu0 %v8083_v34 }
0x316f   :  { %10484 = vmatmul.mubr.bf16.vlgmr.msra.gmra.mxu0 %v8084_v16 }
0x322f   :  { %v10485_v30 = vpop.f32.mrf.mxu0 }
0x3230   :  { %v8199_v12 = vadd.f32 %v10485_v30, %v9373_v21 }
0x3231   :  { %v8190_v63 = vpop.f32.mrf.mxu0 }
0x3232   :  { %v8191_v39 = vadd.f32 %v9373_v21, %v8190_v63  ;;  %v8207_v47 = vmax.f32 %v8199_v12, 0.0 }
0x3233   :  { %v10486_v25 = vpop.f32.mrf.mxu0 }
0x3234   :  { %v8205_v31 = vmax.f32 %v8191_v39, 0.0  ;;  %v8202_v40 = vadd.f32 %v10486_v25, %v9373_v21  ;;  %v8216_v51 = vmul.f32 %v9383_v3, %v8207_v47 }
0x3235   :  { %v8193_v35 = vpop.f32.mrf.mxu0 }
0x3236   :  { %v8208_v37 = vmax.f32 %v8202_v40, 0.0  ;;  %v8194_v41 = vadd.f32 %v9373_v21, %v8193_v35  ;;  %v8214_v53 = vmul.f32 %v9383_v3, %v8205_v31  ;;  %v8225_v58 = vadd.f32 %v9385_v33, %v8216_v51 }
0x3238   :  { %v8217_v17 = vmul.f32 %v9383_v3, %v8208_v37  ;;  %v8206_v38 = vmax.f32 %v8194_v41, 0.0  ;;  %v8223_v49 = vadd.f32 %v9385_v33, %v8214_v53 }
0x323a   :  { %v8215_v36 = vmul.f32 %v9383_v3, %v8206_v38  ;;  %v8226_v42 = vadd.f32 %v9385_v33, %v8217_v17 }
0x323c   :  { %v8224_v43 = vadd.f32 %v9385_v33, %v8215_v36  ;;  %v8228_v62 = vpack.c.bf16 %v8226_v42, %v8225_v58 }
0x323e   :  { %v8227_v44 = vpack.c.bf16 %v8224_v43, %v8223_v49 }
0x3240   :  { %10491 = vmatprep.mubr.msk.bf16.mxu1 %vm30_vm0, %v8227_v44 }
0x3241   :  { %10492 = vmatmul.mubr.msk.bf16.vlgmr.msra.gmra.mxu1 %vm30_vm0, %v8228_v62 }
0x3301   :  { %v10493_v2 = vpop.f32.mrf.mxu1 }
0x3302   :  { %v8301_v48 = vadd.f32 %v10493_v2, %v9386_v46 }
0x3303   :  { %v8292_v6 = vpop.f32.mrf.mxu1 }
0x3304   :  { %v8309_v50 = vmul.f32 %v8301_v48, %v11969_v13  ;;  %v8293_v52 = vadd.f32 %v9386_v46, %v8292_v6 }
0x3305   :  { %v10494_v7 = vpop.f32.mrf.mxu1 }
0x3306   :  { %8314 = vst.msk [vmem:[%s14414_s8 + $0x10] sm:$0xff] %vm8311_vm3, %v8309_v50  ;;  %v8307_v54 = vmul.f32 %v8293_v52, %v11971_v14  ;;  %v8304_v55 = vadd.f32 %v10494_v7, %v9386_v46 }
0x3307   :  { %v8295_v56 = vpop.f32.mrf.mxu1 }
0x3308   :  { %8312 = vst.msk [vmem:[%s14414_s8] sm:$0xff] %vm8311_vm3, %v8307_v54  ;;  %v8310_v57 = vmul.f32 %v8304_v55, %v11989_v19  ;;  %v8296_v60 = vadd.f32 %v9386_v46, %v8295_v56 }
0x330a   :  { %8315 = vst.msk [vmem:[%s14414_s8 + $0x18] sm:$0xff] %vm8311_vm3, %v8310_v57  ;;  %v8308_v13 = vmul.f32 %v8296_v60, %v11991_v20 }
0x330c   :  { %8313 = vst.msk [vmem:[%s14414_s8 + $0x8] sm:$0xff] %vm8311_vm3, %v8308_v13 }

</bundles_post_ra>
